<compile_context>
chip_gen: v7x
topology: tpu7x:2x2x1
jax: 0.10.0
libtpu: 0.0.40
codegen_flags: <defaults>
</compile_context>

<pallas_src>
import functools
import math

import jax
import jax.numpy as jnp
from jax.experimental import pallas as pl
from jax.experimental.pallas import tpu as pltpu


_VMEM_LIMIT_BYTES = 48 * 1024 * 1024   # below v7x's 64 MiB physical VMEM, raises the 16/32 MiB
                                        # scoped defaults on v5e/v6e.


def _compiler_params(n_grid_axes):
    return pltpu.CompilerParams(
        dimension_semantics=("parallel",) * n_grid_axes,
        vmem_limit_bytes=_VMEM_LIMIT_BYTES)


# ---------------------------------------------------------------------------
# 3x3 convolution (fused im2col, lane-dense output)
# ---------------------------------------------------------------------------

def _conv3x3_kernel(x_ref, w_ref, o_ref, *, f_padded):
    """3x3 'same' conv with the spatial dims flattened onto the lane axis.

    x_ref: (1, C, L)   padded input, L = (T + 4) * (F + 2), row-major over (T, F)
    w_ref: (9, O, C)   tap-major bf16 weights, tap index = kw * 3 + kh
    o_ref: (1, O, N)   N = T * (F + 2); feature columns F and F+1 are wrap-around garbage and are
                       either sliced away by the wrapper or neutralized by the consumer.
    """
    n = o_ref.shape[2]
    x = x_ref[0].astype(jnp.bfloat16)                         # (C, L)
    acc = jnp.zeros(o_ref.shape[1:], jnp.float32)             # (O, N) f32 accumulator
    for kw in range(3):          # shift along T (frames)
        for kh in range(3):      # shift along F (features)
            start = (kw + 1) * f_padded + kh                  # static, always in-bounds
            xs = x[:, start:start + n]                        # (C, N) static lane-offset slice
            wk = w_ref[kw * 3 + kh]                           # (O, C) bf16
            acc = acc + jnp.dot(wk, xs, preferred_element_type=jnp.float32)
    o_ref[0] = acc.astype(o_ref.dtype)


def conv2d_3x3(x, w, padded_out=False):
    """nn.Conv2d(kernel_size=3, padding=1, bias=False) on canonical (B, C, T, F) activations.

    w is in PyTorch layout (O, C, kh, kw) with kh over F and kw over T.  With padded_out=True the
    result keeps the two garbage feature columns (shape (B, O, T, F+2)) so downstream Pallas
    kernels can consume it without an HBM un-pad copy.
    """
    B, C, T, F = x.shape
    O = w.shape[0]
    Fp = F + 2
    # 2 zero frames before/after T (so every flat tap offset is in-bounds), 1 zero feature column
    # on each side of F.  The flatten of (T+4, F+2) is a free row-major bitcast.
    xp = jnp.pad(x, ((0, 0), (0, 0), (2, 2), (1, 1))).reshape(B, C, (T + 4) * Fp)
    w9 = jnp.transpose(w, (3, 2, 0, 1)).reshape(9, O, C).astype(jnp.bfloat16)
    N = T * Fp
    out = pl.pallas_call(
        functools.partial(_conv3x3_kernel, f_padded=Fp),
        out_shape=jax.ShapeDtypeStruct((B, O, N), x.dtype),
        grid=(B,),
        in_specs=[pl.BlockSpec((1, C, (T + 4) * Fp), lambda b: (b, 0, 0)),
                  pl.BlockSpec((9, O, C), lambda b: (0, 0, 0))],
        out_specs=pl.BlockSpec((1, O, N), lambda b: (b, 0, 0)),
        compiler_params=_compiler_params(1),
    )(xp, w9).reshape(B, O, T, Fp)
    # Valid outputs live in feature columns [0, F); the trailing two columns are wrap-around.
    return out if padded_out else out[:, :, :, :F]


# ---------------------------------------------------------------------------
# Multichannel layer norm
# ---------------------------------------------------------------------------

def _layernorm_kernel(x_ref, w_ref, b_ref, o_ref, *, eps):
    x = x_ref[:, 0].astype(jnp.float32)                       # (B, T, F)
    mean = jnp.mean(x, axis=-1, keepdims=True)
    var = jnp.mean(jnp.square(x - mean), axis=-1, keepdims=True)
    xn = (x - mean) * jax.lax.rsqrt(var + eps)
    o_ref[:, 0] = (xn * w_ref[0] + b_ref[0]).astype(o_ref.dtype)


def multichannel_layer_norm(x, weight, bias, eps=1e-5):
    """MultichannelLayerNorm: normalize over F per (b, c, t); per-(c, f) affine.

    x: (B, C, T, F); weight, bias: (C, 1, F).
    """
    B, C, T, F = x.shape
    return pl.pallas_call(
        functools.partial(_layernorm_kernel, eps=eps),
        out_shape=jax.ShapeDtypeStruct((B, C, T, F), x.dtype),
        grid=(C,),
        in_specs=[pl.BlockSpec((B, 1, T, F), lambda c: (0, c, 0, 0)),
                  pl.BlockSpec((1, 1, F), lambda c: (c, 0, 0)),
                  pl.BlockSpec((1, 1, F), lambda c: (c, 0, 0))],
        out_specs=pl.BlockSpec((B, 1, T, F), lambda c: (0, c, 0, 0)),
        compiler_params=_compiler_params(1),
    )(x, weight, bias)


# ---------------------------------------------------------------------------
# Fused Linear2d -> GELU -> Linear2d (per-channel feed-forward over features)
# ---------------------------------------------------------------------------

def _ffn_kernel(x_ref, w1_ref, w2_ref, o_ref):
    w1 = w1_ref[0]                                            # (Fin_p, Fhid) bf16
    w2 = w2_ref[0]                                            # (Fhid, Fout) bf16
    for b in range(x_ref.shape[0]):                           # B is small & static -> unrolled
        xb = x_ref[b, 0].astype(jnp.bfloat16)                 # (T, Fin_p)
        y = jnp.dot(xb, w1, preferred_element_type=jnp.float32)   # (T, Fhid), f32 accumulate
        # exact (erf) GELU, matching nn.GELU() default
        y = 0.5 * y * (1.0 + jax.lax.erf(y * (1.0 / math.sqrt(2.0))))
        o_ref[b, 0] = jnp.dot(y.astype(jnp.bfloat16), w2,
                              preferred_element_type=jnp.float32).astype(o_ref.dtype)


def linear2d_ffn(x_padded, w1, w2, true_fin):
    """linear2(GELU(linear1(x))) fused, per channel over the feature axis.

    x_padded: (B, C, T, Fin+2) — conv1 output with its 2 garbage feature columns retained.
    w1: (C, Fhid, Fin), w2: (C, Fout, Fhid) in PyTorch (out, in) layout.
    W1 is zero-padded with two extra input rows so the garbage columns contribute exactly 0.
    """
    B, C, T, Fin_p = x_padded.shape
    Fhid = w1.shape[1]
    Fout = w2.shape[1]
    w1t = jnp.pad(jnp.transpose(w1, (0, 2, 1)).astype(jnp.bfloat16),
                  ((0, 0), (0, Fin_p - true_fin), (0, 0)))    # (C, Fin_p, Fhid)
    w2t = jnp.transpose(w2, (0, 2, 1)).astype(jnp.bfloat16)   # (C, Fhid, Fout)
    return pl.pallas_call(
        _ffn_kernel,
        out_shape=jax.ShapeDtypeStruct((B, C, T, Fout), x_padded.dtype),
        grid=(C,),
        in_specs=[pl.BlockSpec((B, 1, T, Fin_p), lambda c: (0, c, 0, 0)),
                  pl.BlockSpec((1, Fin_p, Fhid), lambda c: (c, 0, 0)),
                  pl.BlockSpec((1, Fhid, Fout), lambda c: (c, 0, 0))],
        out_specs=pl.BlockSpec((B, 1, T, Fout), lambda c: (0, c, 0, 0)),
        compiler_params=_compiler_params(1),
    )(x_padded, w1t, w2t)


# ---------------------------------------------------------------------------
# Multichannel multihead attention core
# ---------------------------------------------------------------------------

def _attn_kernel(*refs, scale, num_heads, feats, has_prev):
    if has_prev:
        qkv_ref, pqk_ref, a_ref, qk_ref = refs
    else:
        qkv_ref, a_ref, qk_ref = refs
    dh = feats // num_heads
    # qkv_ref: (1, 3, T, F+2); trailing 2 feature columns are conv garbage and are never read
    # because head slices only cover [0, feats).
    q = qkv_ref[0, 0].astype(jnp.bfloat16)                    # (T, Fp)
    k = qkv_ref[0, 1].astype(jnp.bfloat16)
    v = qkv_ref[0, 2].astype(jnp.bfloat16)
    for h in range(num_heads):                                # static, unrolled; heads = lane slices
        sl = slice(h * dh, (h + 1) * dh)
        s = jax.lax.dot_general(q[:, sl], k[:, sl], (((1,), (1,)), ((), ())),
                                preferred_element_type=jnp.float32) * scale
        if has_prev:
            s = s + pqk_ref[0, h]
        qk_ref[0, h] = s                                      # accumulated logits for next layer
        m = jnp.max(s, axis=-1, keepdims=True)
        p = jnp.exp(s - m)
        p = p * pl.reciprocal(jnp.sum(p, axis=-1, keepdims=True), approx=True)
        a_ref[0, 0, :, sl] = jax.lax.dot_general(
            p.astype(jnp.bfloat16), v[:, sl], (((1,), (0,)), ((), ())),
            preferred_element_type=jnp.float32).astype(a_ref.dtype)


def multichannel_attention(x, qkv_w, num_heads, prev_qk=None):
    """MultichannelMultiheadAttention (canonical): fused 3x3-conv Q/K/V projection, heads split
    over features, attention over frames, additive prev_qk logits.

    x: (B, Cin, T, F); qkv_w: (3*A, Cin, 3, 3) interleaved (q_j, k_j, v_j) per attention map.
    Returns a: (B, A, T, F) and qk: (B*A, H, T, T) float32.
    """
    # TODO(synk): original module may apply rotary embeddings to q/k; source not provided, omitted.
    B, Cin, T, F = x.shape
    A = qkv_w.shape[0] // 3
    Fp = F + 2
    # Single conv reads the attention input once; output stays padded (consumed in-kernel).
    qkv = conv2d_3x3(x, qkv_w, padded_out=True)               # (B, 3A, T, Fp)
    # TODO(synk): reference scale (per-head dim vs full feature dim) unverified; using per-head.
    scale = 1.0 / math.sqrt(F // num_heads)
    has_prev = prev_qk is not None

    qkv_spec = pl.BlockSpec((1, 3, T, Fp), lambda b, j: (b, j, 0, 0))
    qk_spec = pl.BlockSpec((1, num_heads, T, T), lambda b, j: (b * A + j, 0, 0, 0))
    a_spec = pl.BlockSpec((1, 1, T, F), lambda b, j: (b, j, 0, 0))
    in_specs = [qkv_spec] + ([qk_spec] if has_prev else [])
    args = (qkv,) + ((prev_qk,) if has_prev else ())

    a, qk = pl.pallas_call(
        functools.partial(_attn_kernel, scale=scale, num_heads=num_heads,
                          feats=F, has_prev=has_prev),
        out_shape=(jax.ShapeDtypeStruct((B, A, T, F), x.dtype),
                   jax.ShapeDtypeStruct((B * A, num_heads, T, T), jnp.float32)),
        grid=(B, A),
        in_specs=in_specs,
        out_specs=(a_spec, qk_spec),
        compiler_params=_compiler_params(2),
    )(*args)
    return a, qk


# ---------------------------------------------------------------------------
# Parameter init (deterministic, synthetic) + model forward
# ---------------------------------------------------------------------------

def _conv_init(key, out_c, in_c, k=3):
    fan_in = in_c * k * k
    return jax.random.normal(key, (out_c, in_c, k, k), jnp.float32) / math.sqrt(fan_in)


def _linear_init(key, c, out_f, in_f):
    return jax.random.normal(key, (c, out_f, in_f), jnp.float32) / math.sqrt(in_f)


def init_frame_transformer_params(key, *, in_channels, stacks, features, num_heads,
                                  feature_expansion, channel_expansion,
                                  num_attention_maps, num_layers, freeze_layers):
    C0 = in_channels * stacks + 1          # channels seen by every encoder
    A = num_attention_maps
    params = {}

    key, kpos = jax.random.split(key)
    # TODO(synk): exact ConvolutionalEmbedding definition was not provided; modelled as a
    # bias-free 3x3 conv producing a single positional-embedding channel.
    params["pos_w"] = _conv_init(kpos, 1, in_channels)

    layers = []
    for i in range(num_layers):
        key, k1, k2, k3, k4, k5, k6, k7 = jax.random.split(key, 8)
        attn_in = C0 + i * A                                   # channels + prev_attn
        mid = int((C0 + A) * channel_expansion)                # conv1 output channels
        q_w = _conv_init(k1, A, attn_in)
        k_w = _conv_init(k2, A, attn_in)
        v_w = _conv_init(k3, A, attn_in)
        # interleave (q_j, k_j, v_j) per attention map so one conv produces adjacent q/k/v rows
        qkv_w = jnp.stack([q_w, k_w, v_w], axis=1).reshape(3 * A, attn_in, 3, 3)
        layers.append(dict(
            norm_w=jnp.ones((C0, 1, features), jnp.float32),
            norm_b=jnp.zeros((C0, 1, features), jnp.float32),
            qkv_w=qkv_w,
            conv1_w=_conv_init(k4, mid, C0 + A + i * A),
            linear1_w=_linear_init(k5, mid, int(features * feature_expansion), features),
            linear2_w=_linear_init(k6, mid, features, int(features * feature_expansion)),
            conv2_w=_conv_init(k7, C0, mid),
            residual_w=jnp.ones((C0, features), jnp.float32).at[:freeze_layers].set(0.0),
        ))
    params["layers"] = layers
    return params


def frame_transformer_forward(params, x, *, num_heads, stacks):
    """FrameTransformer.forward.  x: (B, in_channels, F, T) -> (B, 2, F, T)."""
    xc = jnp.transpose(x, (0, 1, 3, 2))                        # single boundary transpose -> (B, C, T, F)
    p = conv2d_3x3(xc, params["pos_w"])                        # positional embedding, (B, 1, T, F)
    h = jnp.concatenate([xc] * stacks + [p], axis=1)           # (B, C0, T, F)
    F = h.shape[-1]

    pattn, pqk = None, None
    for layer in params["layers"]:
        hN = multichannel_layer_norm(h, layer["norm_w"], layer["norm_b"])
        attn_in = hN if pattn is None else jnp.concatenate([hN, pattn], axis=1)
        a, pqk = multichannel_attention(attn_in, layer["qkv_w"], num_heads, prev_qk=pqk)
        ff_in = (jnp.concatenate([hN, a], axis=1) if pattn is None
                 else jnp.concatenate([hN, a, pattn], axis=1))
        zp = conv2d_3x3(ff_in, layer["conv1_w"], padded_out=True)   # padded, no un-pad copy
        z = linear2d_ffn(zp, layer["linear1_w"], layer["linear2_w"], true_fin=F)
        z = conv2d_3x3(z, layer["conv2_w"])
        # Residual epilogue (dropout == identity in eval).  Left to XLA on purpose: it fuses with
        # the conv2 un-pad slice into a single elementwise pass over h.
        h = h + layer["residual_w"][None, :, None, :] * z
        pattn = a if pattn is None else jnp.concatenate([pattn, a], axis=1)

    return jnp.transpose(h[:, :2, :, :], (0, 1, 3, 2))         # back to (B, 2, F, T)


# ---------------------------------------------------------------------------
# Demo
# ---------------------------------------------------------------------------

if __name__ == "__main__":
    key = jax.random.PRNGKey(0)
    B, in_channels, n_fft, T = 2, 2, 64, 8
    features = n_fft // 2                                      # max_bin

    cfg = dict(in_channels=in_channels, stacks=2, features=features, num_heads=4,
               feature_expansion=2, channel_expansion=2, num_attention_maps=1,
               num_layers=3, freeze_layers=2)

    kp, kx = jax.random.split(key)
    params = init_frame_transformer_params(kp, **cfg)
    x = jax.random.normal(kx, (B, in_channels, features, T), jnp.float32)

    fwd = jax.jit(functools.partial(frame_transformer_forward,
                                    num_heads=cfg["num_heads"], stacks=cfg["stacks"]))
    out = jax.block_until_ready(fwd(params, x))

    assert out.shape == (B, 2, features, T), out.shape
    assert bool(jnp.all(jnp.isfinite(out)))
    print("KERNEL_OK")
</pallas_src>

<mosaic_0001>
module attributes {stable_mosaic.version = 11 : i64} {
  func.func @_conv3x3_kernel(%arg0: i32, %arg1: memref<1x2x408xf32, #tpu.memory_space<vmem>>, %arg2: memref<9x1x2xbf16, #tpu.memory_space<vmem>>, %arg3: memref<1x1x272xf32, #tpu.memory_space<vmem>>) attributes {dimension_semantics = [#tpu.dimension_semantics<parallel>], iteration_bounds = array<i64: 2>, scalar_prefetch = 0 : i64, scratch_operands = 0 : i64, tpu.core_type = #tpu.core_type<tc>, window_params = [{transform_indices = @transform_0, window_bounds = array<i64: 1, 2, 408>}, {pipeline_mode = #tpu.pipeline_mode<synchronous>, transform_indices = @transform_1, window_bounds = array<i64: 9, 1, 2>}, {transform_indices = @transform_2, window_bounds = array<i64: 1, 1, 272>}]} {
    %c0 = arith.constant 0 : index
    %c0_0 = arith.constant 0 : index
    %c0_1 = arith.constant 0 : index
    %0 = vector.load %arg1[%c0, %c0_0, %c0_1] : memref<1x2x408xf32, #tpu.memory_space<vmem>>, vector<1x2x408xf32>
    %1 = vector.shape_cast %0 : vector<1x2x408xf32> to vector<2x408xf32>
    %2 = arith.truncf %1 : vector<2x408xf32> to vector<2x408xbf16>
    %cst = arith.constant 0.000000e+00 : f32
    %3 = vector.broadcast %cst : f32 to vector<1x272xf32>
    %4 = vector.extract_strided_slice %2 {offsets = [0, 34], sizes = [2, 272], strides = [1, 1]} : vector<2x408xbf16> to vector<2x272xbf16>
    %c0_2 = arith.constant 0 : index
    %c0_3 = arith.constant 0 : index
    %c0_4 = arith.constant 0 : index
    %5 = vector.load %arg2[%c0_2, %c0_3, %c0_4] : memref<9x1x2xbf16, #tpu.memory_space<vmem>>, vector<1x1x2xbf16>
    %6 = vector.shape_cast %5 : vector<1x1x2xbf16> to vector<1x2xbf16>
    %cst_5 = arith.constant dense<0.000000e+00> : vector<1x272xf32>
    %7 = tpu.matmul %6, %4, %cst_5 {dimension_numbers = #tpu.dot_dimension_numbers<[1], [0], [0], [1], [0, 0, 1, 1], [], []>} : vector<1x2xbf16>, vector<2x272xbf16>, vector<1x272xf32> -> vector<1x272xf32>
    %8 = arith.addf %3, %7 : vector<1x272xf32>
    %9 = vector.extract_strided_slice %2 {offsets = [0, 35], sizes = [2, 272], strides = [1, 1]} : vector<2x408xbf16> to vector<2x272xbf16>
    %c1 = arith.constant 1 : index
    %c0_6 = arith.constant 0 : index
    %c0_7 = arith.constant 0 : index
    %10 = vector.load %arg2[%c1, %c0_6, %c0_7] : memref<9x1x2xbf16, #tpu.memory_space<vmem>>, vector<1x1x2xbf16>
    %11 = vector.shape_cast %10 : vector<1x1x2xbf16> to vector<1x2xbf16>
    %cst_8 = arith.constant dense<0.000000e+00> : vector<1x272xf32>
    %12 = tpu.matmul %11, %9, %cst_8 {dimension_numbers = #tpu.dot_dimension_numbers<[1], [0], [0], [1], [0, 0, 1, 1], [], []>} : vector<1x2xbf16>, vector<2x272xbf16>, vector<1x272xf32> -> vector<1x272xf32>
    %13 = arith.addf %8, %12 : vector<1x272xf32>
    %14 = vector.extract_strided_slice %2 {offsets = [0, 36], sizes = [2, 272], strides = [1, 1]} : vector<2x408xbf16> to vector<2x272xbf16>
    %c2 = arith.constant 2 : index
    %c0_9 = arith.constant 0 : index
    %c0_10 = arith.constant 0 : index
    %15 = vector.load %arg2[%c2, %c0_9, %c0_10] : memref<9x1x2xbf16, #tpu.memory_space<vmem>>, vector<1x1x2xbf16>
    %16 = vector.shape_cast %15 : vector<1x1x2xbf16> to vector<1x2xbf16>
    %cst_11 = arith.constant dense<0.000000e+00> : vector<1x272xf32>
    %17 = tpu.matmul %16, %14, %cst_11 {dimension_numbers = #tpu.dot_dimension_numbers<[1], [0], [0], [1], [0, 0, 1, 1], [], []>} : vector<1x2xbf16>, vector<2x272xbf16>, vector<1x272xf32> -> vector<1x272xf32>
    %18 = arith.addf %13, %17 : vector<1x272xf32>
    %19 = vector.extract_strided_slice %2 {offsets = [0, 68], sizes = [2, 272], strides = [1, 1]} : vector<2x408xbf16> to vector<2x272xbf16>
    %c3 = arith.constant 3 : index
    %c0_12 = arith.constant 0 : index
    %c0_13 = arith.constant 0 : index
    %20 = vector.load %arg2[%c3, %c0_12, %c0_13] : memref<9x1x2xbf16, #tpu.memory_space<vmem>>, vector<1x1x2xbf16>
    %21 = vector.shape_cast %20 : vector<1x1x2xbf16> to vector<1x2xbf16>
    %cst_14 = arith.constant dense<0.000000e+00> : vector<1x272xf32>
    %22 = tpu.matmul %21, %19, %cst_14 {dimension_numbers = #tpu.dot_dimension_numbers<[1], [0], [0], [1], [0, 0, 1, 1], [], []>} : vector<1x2xbf16>, vector<2x272xbf16>, vector<1x272xf32> -> vector<1x272xf32>
    %23 = arith.addf %18, %22 : vector<1x272xf32>
    %24 = vector.extract_strided_slice %2 {offsets = [0, 69], sizes = [2, 272], strides = [1, 1]} : vector<2x408xbf16> to vector<2x272xbf16>
    %c4 = arith.constant 4 : index
    %c0_15 = arith.constant 0 : index
    %c0_16 = arith.constant 0 : index
    %25 = vector.load %arg2[%c4, %c0_15, %c0_16] : memref<9x1x2xbf16, #tpu.memory_space<vmem>>, vector<1x1x2xbf16>
    %26 = vector.shape_cast %25 : vector<1x1x2xbf16> to vector<1x2xbf16>
    %cst_17 = arith.constant dense<0.000000e+00> : vector<1x272xf32>
    %27 = tpu.matmul %26, %24, %cst_17 {dimension_numbers = #tpu.dot_dimension_numbers<[1], [0], [0], [1], [0, 0, 1, 1], [], []>} : vector<1x2xbf16>, vector<2x272xbf16>, vector<1x272xf32> -> vector<1x272xf32>
    %28 = arith.addf %23, %27 : vector<1x272xf32>
    %29 = vector.extract_strided_slice %2 {offsets = [0, 70], sizes = [2, 272], strides = [1, 1]} : vector<2x408xbf16> to vector<2x272xbf16>
    %c5 = arith.constant 5 : index
    %c0_18 = arith.constant 0 : index
    %c0_19 = arith.constant 0 : index
    %30 = vector.load %arg2[%c5, %c0_18, %c0_19] : memref<9x1x2xbf16, #tpu.memory_space<vmem>>, vector<1x1x2xbf16>
    %31 = vector.shape_cast %30 : vector<1x1x2xbf16> to vector<1x2xbf16>
    %cst_20 = arith.constant dense<0.000000e+00> : vector<1x272xf32>
    %32 = tpu.matmul %31, %29, %cst_20 {dimension_numbers = #tpu.dot_dimension_numbers<[1], [0], [0], [1], [0, 0, 1, 1], [], []>} : vector<1x2xbf16>, vector<2x272xbf16>, vector<1x272xf32> -> vector<1x272xf32>
    %33 = arith.addf %28, %32 : vector<1x272xf32>
    %34 = vector.extract_strided_slice %2 {offsets = [0, 102], sizes = [2, 272], strides = [1, 1]} : vector<2x408xbf16> to vector<2x272xbf16>
    %c6 = arith.constant 6 : index
    %c0_21 = arith.constant 0 : index
    %c0_22 = arith.constant 0 : index
    %35 = vector.load %arg2[%c6, %c0_21, %c0_22] : memref<9x1x2xbf16, #tpu.memory_space<vmem>>, vector<1x1x2xbf16>
    %36 = vector.shape_cast %35 : vector<1x1x2xbf16> to vector<1x2xbf16>
    %cst_23 = arith.constant dense<0.000000e+00> : vector<1x272xf32>
    %37 = tpu.matmul %36, %34, %cst_23 {dimension_numbers = #tpu.dot_dimension_numbers<[1], [0], [0], [1], [0, 0, 1, 1], [], []>} : vector<1x2xbf16>, vector<2x272xbf16>, vector<1x272xf32> -> vector<1x272xf32>
    %38 = arith.addf %33, %37 : vector<1x272xf32>
    %39 = vector.extract_strided_slice %2 {offsets = [0, 103], sizes = [2, 272], strides = [1, 1]} : vector<2x408xbf16> to vector<2x272xbf16>
    %c7 = arith.constant 7 : index
    %c0_24 = arith.constant 0 : index
    %c0_25 = arith.constant 0 : index
    %40 = vector.load %arg2[%c7, %c0_24, %c0_25] : memref<9x1x2xbf16, #tpu.memory_space<vmem>>, vector<1x1x2xbf16>
    %41 = vector.shape_cast %40 : vector<1x1x2xbf16> to vector<1x2xbf16>
    %cst_26 = arith.constant dense<0.000000e+00> : vector<1x272xf32>
    %42 = tpu.matmul %41, %39, %cst_26 {dimension_numbers = #tpu.dot_dimension_numbers<[1], [0], [0], [1], [0, 0, 1, 1], [], []>} : vector<1x2xbf16>, vector<2x272xbf16>, vector<1x272xf32> -> vector<1x272xf32>
    %43 = arith.addf %38, %42 : vector<1x272xf32>
    %44 = vector.extract_strided_slice %2 {offsets = [0, 104], sizes = [2, 272], strides = [1, 1]} : vector<2x408xbf16> to vector<2x272xbf16>
    %c8 = arith.constant 8 : index
    %c0_27 = arith.constant 0 : index
    %c0_28 = arith.constant 0 : index
    %45 = vector.load %arg2[%c8, %c0_27, %c0_28] : memref<9x1x2xbf16, #tpu.memory_space<vmem>>, vector<1x1x2xbf16>
    %46 = vector.shape_cast %45 : vector<1x1x2xbf16> to vector<1x2xbf16>
    %cst_29 = arith.constant dense<0.000000e+00> : vector<1x272xf32>
    %47 = tpu.matmul %46, %44, %cst_29 {dimension_numbers = #tpu.dot_dimension_numbers<[1], [0], [0], [1], [0, 0, 1, 1], [], []>} : vector<1x2xbf16>, vector<2x272xbf16>, vector<1x272xf32> -> vector<1x272xf32>
    %48 = arith.addf %43, %47 : vector<1x272xf32>
    %c0_30 = arith.constant 0 : index
    %c0_31 = arith.constant 0 : index
    %c0_32 = arith.constant 0 : index
    %49 = vector.load %arg3[%c0_30, %c0_31, %c0_32] : memref<1x1x272xf32, #tpu.memory_space<vmem>>, vector<1x1x272xf32>
    %50 = vector.shape_cast %49 : vector<1x1x272xf32> to vector<1x272xf32>
    %51 = vector.shape_cast %48 : vector<1x272xf32> to vector<1x1x272xf32>
    tpu.vector_store %arg3[%c0_30, %c0_31, %c0_32], %51 {strides = array<i32>} : memref<1x1x272xf32, #tpu.memory_space<vmem>>, vector<1x1x272xf32>,
    return
  }
  func.func @transform_0(%arg0: i32) -> (i32, i32, i32) {
    %c0_i32 = arith.constant 0 : i32
    %c0_i32_0 = arith.constant 0 : i32
    %c0_i32_1 = arith.constant 0 : i32
    return %arg0, %c0_i32, %c0_i32_0 : i32, i32, i32
  }
  func.func @transform_1(%arg0: i32) -> (i32, i32, i32) {
    %c0_i32 = arith.constant 0 : i32
    %c0_i32_0 = arith.constant 0 : i32
    %c0_i32_1 = arith.constant 0 : i32
    %c0_i32_2 = arith.constant 0 : i32
    return %c0_i32, %c0_i32_0, %c0_i32_1 : i32, i32, i32
  }
  func.func @transform_2(%arg0: i32) -> (i32, i32, i32) {
    %c0_i32 = arith.constant 0 : i32
    %c0_i32_0 = arith.constant 0 : i32
    %c0_i32_1 = arith.constant 0 : i32
    return %arg0, %c0_i32, %c0_i32_0 : i32, i32, i32
  }
}

module attributes {stable_mosaic.version = 11 : i64} {
  func.func @_layernorm_kernel(%arg0: i32, %arg1: memref<2x1x8x32xf32, #tpu.memory_space<vmem>>, %arg2: memref<1x1x32xf32, #tpu.memory_space<vmem>>, %arg3: memref<1x1x32xf32, #tpu.memory_space<vmem>>, %arg4: memref<2x1x8x32xf32, #tpu.memory_space<vmem>>) attributes {dimension_semantics = [#tpu.dimension_semantics<parallel>], iteration_bounds = array<i64: 5>, scalar_prefetch = 0 : i64, scratch_operands = 0 : i64, tpu.core_type = #tpu.core_type<tc>, window_params = [{transform_indices = @transform_0, window_bounds = array<i64: 2, 1, 8, 32>}, {transform_indices = @transform_1, window_bounds = array<i64: 1, 1, 32>}, {transform_indices = @transform_2, window_bounds = array<i64: 1, 1, 32>}, {transform_indices = @transform_3, window_bounds = array<i64: 2, 1, 8, 32>}]} {
    %c0 = arith.constant 0 : index
    %c0_0 = arith.constant 0 : index
    %c0_1 = arith.constant 0 : index
    %c0_2 = arith.constant 0 : index
    %0 = vector.load %arg1[%c0, %c0_0, %c0_1, %c0_2] : memref<2x1x8x32xf32, #tpu.memory_space<vmem>>, vector<2x1x8x32xf32>
    %1 = vector.shape_cast %0 : vector<2x1x8x32xf32> to vector<2x8x32xf32>
    %cst = arith.constant dense<0.000000e+00> : vector<2x8xf32>
    %2 = vector.multi_reduction <add>, %1, %cst [2] : vector<2x8x32xf32> to vector<2x8xf32>
    %3 = vector.shape_cast %2 : vector<2x8xf32> to vector<2x8x1xf32>
    %cst_3 = arith.constant 3.200000e+01 : f32
    %4 = vector.broadcast %cst_3 : f32 to vector<2x8x1xf32>
    %5 = arith.divf %3, %4 : vector<2x8x1xf32>
    %6 = vector.broadcast %5 : vector<2x8x1xf32> to vector<2x8x32xf32>
    %7 = arith.subf %1, %6 : vector<2x8x32xf32>
    %8 = arith.mulf %7, %7 : vector<2x8x32xf32>
    %cst_4 = arith.constant dense<0.000000e+00> : vector<2x8xf32>
    %9 = vector.multi_reduction <add>, %8, %cst_4 [2] : vector<2x8x32xf32> to vector<2x8xf32>
    %10 = vector.shape_cast %9 : vector<2x8xf32> to vector<2x8x1xf32>
    %cst_5 = arith.constant 3.200000e+01 : f32
    %11 = vector.broadcast %cst_5 : f32 to vector<2x8x1xf32>
    %12 = arith.divf %10, %11 : vector<2x8x1xf32>
    %13 = vector.broadcast %5 : vector<2x8x1xf32> to vector<2x8x32xf32>
    %14 = arith.subf %1, %13 : vector<2x8x32xf32>
    %cst_6 = arith.constant 9.99999974E-6 : f32
    %15 = vector.broadcast %cst_6 : f32 to vector<2x8x1xf32>
    %16 = arith.addf %12, %15 : vector<2x8x1xf32>
    %17 = math.rsqrt %16 : vector<2x8x1xf32>
    %18 = vector.broadcast %17 : vector<2x8x1xf32> to vector<2x8x32xf32>
    %19 = arith.mulf %14, %18 : vector<2x8x32xf32>
    %c0_7 = arith.constant 0 : index
    %c0_8 = arith.constant 0 : index
    %c0_9 = arith.constant 0 : index
    %20 = vector.load %arg2[%c0_7, %c0_8, %c0_9] : memref<1x1x32xf32, #tpu.memory_space<vmem>>, vector<1x1x32xf32>
    %21 = vector.shape_cast %20 : vector<1x1x32xf32> to vector<1x32xf32>
    %22 = vector.shape_cast %21 : vector<1x32xf32> to vector<1x1x32xf32>
    %23 = vector.broadcast %22 : vector<1x1x32xf32> to vector<2x8x32xf32>
    %24 = arith.mulf %19, %23 : vector<2x8x32xf32>
    %c0_10 = arith.constant 0 : index
    %c0_11 = arith.constant 0 : index
    %c0_12 = arith.constant 0 : index
    %25 = vector.load %arg3[%c0_10, %c0_11, %c0_12] : memref<1x1x32xf32, #tpu.memory_space<vmem>>, vector<1x1x32xf32>
    %26 = vector.shape_cast %25 : vector<1x1x32xf32> to vector<1x32xf32>
    %27 = vector.shape_cast %26 : vector<1x32xf32> to vector<1x1x32xf32>
    %28 = vector.broadcast %27 : vector<1x1x32xf32> to vector<2x8x32xf32>
    %29 = arith.addf %24, %28 : vector<2x8x32xf32>
    %c0_13 = arith.constant 0 : index
    %c0_14 = arith.constant 0 : index
    %c0_15 = arith.constant 0 : index
    %c0_16 = arith.constant 0 : index
    %30 = vector.load %arg4[%c0_13, %c0_14, %c0_15, %c0_16] : memref<2x1x8x32xf32, #tpu.memory_space<vmem>>, vector<2x1x8x32xf32>
    %31 = vector.shape_cast %30 : vector<2x1x8x32xf32> to vector<2x8x32xf32>
    %32 = vector.shape_cast %29 : vector<2x8x32xf32> to vector<2x1x8x32xf32>
    tpu.vector_store %arg4[%c0_13, %c0_14, %c0_15, %c0_16], %32 {strides = array<i32>} : memref<2x1x8x32xf32, #tpu.memory_space<vmem>>, vector<2x1x8x32xf32>,
    return
  }
  func.func @transform_0(%arg0: i32) -> (i32, i32, i32, i32) {
    %c0_i32 = arith.constant 0 : i32
    %c0_i32_0 = arith.constant 0 : i32
    %c0_i32_1 = arith.constant 0 : i32
    %c0_i32_2 = arith.constant 0 : i32
    return %c0_i32, %arg0, %c0_i32_0, %c0_i32_1 : i32, i32, i32, i32
  }
  func.func @transform_1(%arg0: i32) -> (i32, i32, i32) {
    %c0_i32 = arith.constant 0 : i32
    %c0_i32_0 = arith.constant 0 : i32
    %c0_i32_1 = arith.constant 0 : i32
    return %arg0, %c0_i32, %c0_i32_0 : i32, i32, i32
  }
  func.func @transform_2(%arg0: i32) -> (i32, i32, i32) {
    %c0_i32 = arith.constant 0 : i32
    %c0_i32_0 = arith.constant 0 : i32
    %c0_i32_1 = arith.constant 0 : i32
    return %arg0, %c0_i32, %c0_i32_0 : i32, i32, i32
  }
  func.func @transform_3(%arg0: i32) -> (i32, i32, i32, i32) {
    %c0_i32 = arith.constant 0 : i32
    %c0_i32_0 = arith.constant 0 : i32
    %c0_i32_1 = arith.constant 0 : i32
    %c0_i32_2 = arith.constant 0 : i32
    return %c0_i32, %arg0, %c0_i32_0, %c0_i32_1 : i32, i32, i32, i32
  }
}

module attributes {stable_mosaic.version = 11 : i64} {
  func.func @_conv3x3_kernel(%arg0: i32, %arg1: memref<1x5x408xf32, #tpu.memory_space<vmem>>, %arg2: memref<9x3x5xbf16, #tpu.memory_space<vmem>>, %arg3: memref<1x3x272xf32, #tpu.memory_space<vmem>>) attributes {dimension_semantics = [#tpu.dimension_semantics<parallel>], iteration_bounds = array<i64: 2>, scalar_prefetch = 0 : i64, scratch_operands = 0 : i64, tpu.core_type = #tpu.core_type<tc>, window_params = [{transform_indices = @transform_0, window_bounds = array<i64: 1, 5, 408>}, {pipeline_mode = #tpu.pipeline_mode<synchronous>, transform_indices = @transform_1, window_bounds = array<i64: 9, 3, 5>}, {transform_indices = @transform_2, window_bounds = array<i64: 1, 3, 272>}]} {
    %c0 = arith.constant 0 : index
    %c0_0 = arith.constant 0 : index
    %c0_1 = arith.constant 0 : index
    %0 = vector.load %arg1[%c0, %c0_0, %c0_1] : memref<1x5x408xf32, #tpu.memory_space<vmem>>, vector<1x5x408xf32>
    %1 = vector.shape_cast %0 : vector<1x5x408xf32> to vector<5x408xf32>
    %2 = arith.truncf %1 : vector<5x408xf32> to vector<5x408xbf16>
    %cst = arith.constant 0.000000e+00 : f32
    %3 = vector.broadcast %cst : f32 to vector<3x272xf32>
    %4 = vector.extract_strided_slice %2 {offsets = [0, 34], sizes = [5, 272], strides = [1, 1]} : vector<5x408xbf16> to vector<5x272xbf16>
    %c0_2 = arith.constant 0 : index
    %c0_3 = arith.constant 0 : index
    %c0_4 = arith.constant 0 : index
    %5 = vector.load %arg2[%c0_2, %c0_3, %c0_4] : memref<9x3x5xbf16, #tpu.memory_space<vmem>>, vector<1x3x5xbf16>
    %6 = vector.shape_cast %5 : vector<1x3x5xbf16> to vector<3x5xbf16>
    %cst_5 = arith.constant dense<0.000000e+00> : vector<3x272xf32>
    %7 = tpu.matmul %6, %4, %cst_5 {dimension_numbers = #tpu.dot_dimension_numbers<[1], [0], [0], [1], [0, 0, 1, 1], [], []>} : vector<3x5xbf16>, vector<5x272xbf16>, vector<3x272xf32> -> vector<3x272xf32>
    %8 = arith.addf %3, %7 : vector<3x272xf32>
    %9 = vector.extract_strided_slice %2 {offsets = [0, 35], sizes = [5, 272], strides = [1, 1]} : vector<5x408xbf16> to vector<5x272xbf16>
    %c1 = arith.constant 1 : index
    %c0_6 = arith.constant 0 : index
    %c0_7 = arith.constant 0 : index
    %10 = vector.load %arg2[%c1, %c0_6, %c0_7] : memref<9x3x5xbf16, #tpu.memory_space<vmem>>, vector<1x3x5xbf16>
    %11 = vector.shape_cast %10 : vector<1x3x5xbf16> to vector<3x5xbf16>
    %cst_8 = arith.constant dense<0.000000e+00> : vector<3x272xf32>
    %12 = tpu.matmul %11, %9, %cst_8 {dimension_numbers = #tpu.dot_dimension_numbers<[1], [0], [0], [1], [0, 0, 1, 1], [], []>} : vector<3x5xbf16>, vector<5x272xbf16>, vector<3x272xf32> -> vector<3x272xf32>
    %13 = arith.addf %8, %12 : vector<3x272xf32>
    %14 = vector.extract_strided_slice %2 {offsets = [0, 36], sizes = [5, 272], strides = [1, 1]} : vector<5x408xbf16> to vector<5x272xbf16>
    %c2 = arith.constant 2 : index
    %c0_9 = arith.constant 0 : index
    %c0_10 = arith.constant 0 : index
    %15 = vector.load %arg2[%c2, %c0_9, %c0_10] : memref<9x3x5xbf16, #tpu.memory_space<vmem>>, vector<1x3x5xbf16>
    %16 = vector.shape_cast %15 : vector<1x3x5xbf16> to vector<3x5xbf16>
    %cst_11 = arith.constant dense<0.000000e+00> : vector<3x272xf32>
    %17 = tpu.matmul %16, %14, %cst_11 {dimension_numbers = #tpu.dot_dimension_numbers<[1], [0], [0], [1], [0, 0, 1, 1], [], []>} : vector<3x5xbf16>, vector<5x272xbf16>, vector<3x272xf32> -> vector<3x272xf32>
    %18 = arith.addf %13, %17 : vector<3x272xf32>
    %19 = vector.extract_strided_slice %2 {offsets = [0, 68], sizes = [5, 272], strides = [1, 1]} : vector<5x408xbf16> to vector<5x272xbf16>
    %c3 = arith.constant 3 : index
    %c0_12 = arith.constant 0 : index
    %c0_13 = arith.constant 0 : index
    %20 = vector.load %arg2[%c3, %c0_12, %c0_13] : memref<9x3x5xbf16, #tpu.memory_space<vmem>>, vector<1x3x5xbf16>
    %21 = vector.shape_cast %20 : vector<1x3x5xbf16> to vector<3x5xbf16>
    %cst_14 = arith.constant dense<0.000000e+00> : vector<3x272xf32>
    %22 = tpu.matmul %21, %19, %cst_14 {dimension_numbers = #tpu.dot_dimension_numbers<[1], [0], [0], [1], [0, 0, 1, 1], [], []>} : vector<3x5xbf16>, vector<5x272xbf16>, vector<3x272xf32> -> vector<3x272xf32>
    %23 = arith.addf %18, %22 : vector<3x272xf32>
    %24 = vector.extract_strided_slice %2 {offsets = [0, 69], sizes = [5, 272], strides = [1, 1]} : vector<5x408xbf16> to vector<5x272xbf16>
    %c4 = arith.constant 4 : index
    %c0_15 = arith.constant 0 : index
    %c0_16 = arith.constant 0 : index
    %25 = vector.load %arg2[%c4, %c0_15, %c0_16] : memref<9x3x5xbf16, #tpu.memory_space<vmem>>, vector<1x3x5xbf16>
    %26 = vector.shape_cast %25 : vector<1x3x5xbf16> to vector<3x5xbf16>
    %cst_17 = arith.constant dense<0.000000e+00> : vector<3x272xf32>
    %27 = tpu.matmul %26, %24, %cst_17 {dimension_numbers = #tpu.dot_dimension_numbers<[1], [0], [0], [1], [0, 0, 1, 1], [], []>} : vector<3x5xbf16>, vector<5x272xbf16>, vector<3x272xf32> -> vector<3x272xf32>
    %28 = arith.addf %23, %27 : vector<3x272xf32>
    %29 = vector.extract_strided_slice %2 {offsets = [0, 70], sizes = [5, 272], strides = [1, 1]} : vector<5x408xbf16> to vector<5x272xbf16>
    %c5 = arith.constant 5 : index
    %c0_18 = arith.constant 0 : index
    %c0_19 = arith.constant 0 : index
    %30 = vector.load %arg2[%c5, %c0_18, %c0_19] : memref<9x3x5xbf16, #tpu.memory_space<vmem>>, vector<1x3x5xbf16>
    %31 = vector.shape_cast %30 : vector<1x3x5xbf16> to vector<3x5xbf16>
    %cst_20 = arith.constant dense<0.000000e+00> : vector<3x272xf32>
    %32 = tpu.matmul %31, %29, %cst_20 {dimension_numbers = #tpu.dot_dimension_numbers<[1], [0], [0], [1], [0, 0, 1, 1], [], []>} : vector<3x5xbf16>, vector<5x272xbf16>, vector<3x272xf32> -> vector<3x272xf32>
    %33 = arith.addf %28, %32 : vector<3x272xf32>
    %34 = vector.extract_strided_slice %2 {offsets = [0, 102], sizes = [5, 272], strides = [1, 1]} : vector<5x408xbf16> to vector<5x272xbf16>
    %c6 = arith.constant 6 : index
    %c0_21 = arith.constant 0 : index
    %c0_22 = arith.constant 0 : index
    %35 = vector.load %arg2[%c6, %c0_21, %c0_22] : memref<9x3x5xbf16, #tpu.memory_space<vmem>>, vector<1x3x5xbf16>
    %36 = vector.shape_cast %35 : vector<1x3x5xbf16> to vector<3x5xbf16>
    %cst_23 = arith.constant dense<0.000000e+00> : vector<3x272xf32>
    %37 = tpu.matmul %36, %34, %cst_23 {dimension_numbers = #tpu.dot_dimension_numbers<[1], [0], [0], [1], [0, 0, 1, 1], [], []>} : vector<3x5xbf16>, vector<5x272xbf16>, vector<3x272xf32> -> vector<3x272xf32>
    %38 = arith.addf %33, %37 : vector<3x272xf32>
    %39 = vector.extract_strided_slice %2 {offsets = [0, 103], sizes = [5, 272], strides = [1, 1]} : vector<5x408xbf16> to vector<5x272xbf16>
    %c7 = arith.constant 7 : index
    %c0_24 = arith.constant 0 : index
    %c0_25 = arith.constant 0 : index
    %40 = vector.load %arg2[%c7, %c0_24, %c0_25] : memref<9x3x5xbf16, #tpu.memory_space<vmem>>, vector<1x3x5xbf16>
    %41 = vector.shape_cast %40 : vector<1x3x5xbf16> to vector<3x5xbf16>
    %cst_26 = arith.constant dense<0.000000e+00> : vector<3x272xf32>
    %42 = tpu.matmul %41, %39, %cst_26 {dimension_numbers = #tpu.dot_dimension_numbers<[1], [0], [0], [1], [0, 0, 1, 1], [], []>} : vector<3x5xbf16>, vector<5x272xbf16>, vector<3x272xf32> -> vector<3x272xf32>
    %43 = arith.addf %38, %42 : vector<3x272xf32>
    %44 = vector.extract_strided_slice %2 {offsets = [0, 104], sizes = [5, 272], strides = [1, 1]} : vector<5x408xbf16> to vector<5x272xbf16>
    %c8 = arith.constant 8 : index
    %c0_27 = arith.constant 0 : index
    %c0_28 = arith.constant 0 : index
    %45 = vector.load %arg2[%c8, %c0_27, %c0_28] : memref<9x3x5xbf16, #tpu.memory_space<vmem>>, vector<1x3x5xbf16>
    %46 = vector.shape_cast %45 : vector<1x3x5xbf16> to vector<3x5xbf16>
    %cst_29 = arith.constant dense<0.000000e+00> : vector<3x272xf32>
    %47 = tpu.matmul %46, %44, %cst_29 {dimension_numbers = #tpu.dot_dimension_numbers<[1], [0], [0], [1], [0, 0, 1, 1], [], []>} : vector<3x5xbf16>, vector<5x272xbf16>, vector<3x272xf32> -> vector<3x272xf32>
    %48 = arith.addf %43, %47 : vector<3x272xf32>
    %c0_30 = arith.constant 0 : index
    %c0_31 = arith.constant 0 : index
    %c0_32 = arith.constant 0 : index
    %49 = vector.load %arg3[%c0_30, %c0_31, %c0_32] : memref<1x3x272xf32, #tpu.memory_space<vmem>>, vector<1x3x272xf32>
    %50 = vector.shape_cast %49 : vector<1x3x272xf32> to vector<3x272xf32>
    %51 = vector.shape_cast %48 : vector<3x272xf32> to vector<1x3x272xf32>
    tpu.vector_store %arg3[%c0_30, %c0_31, %c0_32], %51 {strides = array<i32>} : memref<1x3x272xf32, #tpu.memory_space<vmem>>, vector<1x3x272xf32>,
    return
  }
  func.func @transform_0(%arg0: i32) -> (i32, i32, i32) {
    %c0_i32 = arith.constant 0 : i32
    %c0_i32_0 = arith.constant 0 : i32
    %c0_i32_1 = arith.constant 0 : i32
    return %arg0, %c0_i32, %c0_i32_0 : i32, i32, i32
  }
  func.func @transform_1(%arg0: i32) -> (i32, i32, i32) {
    %c0_i32 = arith.constant 0 : i32
    %c0_i32_0 = arith.constant 0 : i32
    %c0_i32_1 = arith.constant 0 : i32
    %c0_i32_2 = arith.constant 0 : i32
    return %c0_i32, %c0_i32_0, %c0_i32_1 : i32, i32, i32
  }
  func.func @transform_2(%arg0: i32) -> (i32, i32, i32) {
    %c0_i32 = arith.constant 0 : i32
    %c0_i32_0 = arith.constant 0 : i32
    %c0_i32_1 = arith.constant 0 : i32
    return %arg0, %c0_i32, %c0_i32_0 : i32, i32, i32
  }
}

module attributes {stable_mosaic.version = 11 : i64} {
  func.func @_attn_kernel(%arg0: i32, %arg1: i32, %arg2: memref<1x3x8x34xf32, #tpu.memory_space<vmem>>, %arg3: memref<1x1x8x32xf32, #tpu.memory_space<vmem>>, %arg4: memref<1x4x8x8xf32, #tpu.memory_space<vmem>>) attributes {dimension_semantics = [#tpu.dimension_semantics<parallel>, #tpu.dimension_semantics<parallel>], iteration_bounds = array<i64: 2, 1>, scalar_prefetch = 0 : i64, scratch_operands = 0 : i64, tpu.core_type = #tpu.core_type<tc>, window_params = [{transform_indices = @transform_0, window_bounds = array<i64: 1, 3, 8, 34>}, {transform_indices = @transform_1, window_bounds = array<i64: 1, 1, 8, 32>}, {transform_indices = @transform_2, window_bounds = array<i64: 1, 4, 8, 8>}]} {
    %c0 = arith.constant 0 : index
    %c0_0 = arith.constant 0 : index
    %c0_1 = arith.constant 0 : index
    %c0_2 = arith.constant 0 : index
    %0 = vector.load %arg2[%c0, %c0_0, %c0_1, %c0_2] : memref<1x3x8x34xf32, #tpu.memory_space<vmem>>, vector<1x1x8x34xf32>
    %1 = vector.shape_cast %0 : vector<1x1x8x34xf32> to vector<8x34xf32>
    %2 = arith.truncf %1 : vector<8x34xf32> to vector<8x34xbf16>
    %c0_3 = arith.constant 0 : index
    %c1 = arith.constant 1 : index
    %c0_4 = arith.constant 0 : index
    %c0_5 = arith.constant 0 : index
    %3 = vector.load %arg2[%c0_3, %c1, %c0_4, %c0_5] : memref<1x3x8x34xf32, #tpu.memory_space<vmem>>, vector<1x1x8x34xf32>
    %4 = vector.shape_cast %3 : vector<1x1x8x34xf32> to vector<8x34xf32>
    %5 = arith.truncf %4 : vector<8x34xf32> to vector<8x34xbf16>
    %c0_6 = arith.constant 0 : index
    %c2 = arith.constant 2 : index
    %c0_7 = arith.constant 0 : index
    %c0_8 = arith.constant 0 : index
    %6 = vector.load %arg2[%c0_6, %c2, %c0_7, %c0_8] : memref<1x3x8x34xf32, #tpu.memory_space<vmem>>, vector<1x1x8x34xf32>
    %7 = vector.shape_cast %6 : vector<1x1x8x34xf32> to vector<8x34xf32>
    %8 = arith.truncf %7 : vector<8x34xf32> to vector<8x34xbf16>
    %9 = vector.extract_strided_slice %2 {offsets = [0, 0], sizes = [8, 8], strides = [1, 1]} : vector<8x34xbf16> to vector<8x8xbf16>
    %10 = vector.extract_strided_slice %5 {offsets = [0, 0], sizes = [8, 8], strides = [1, 1]} : vector<8x34xbf16> to vector<8x8xbf16>
    %cst = arith.constant dense<0.000000e+00> : vector<8x8xf32>
    %11 = tpu.matmul %9, %10, %cst {dimension_numbers = #tpu.dot_dimension_numbers<[1], [1], [0], [0], [0, 0, 1, 0], [], []>} : vector<8x8xbf16>, vector<8x8xbf16>, vector<8x8xf32> -> vector<8x8xf32>
    %cst_9 = arith.constant 0.353553385 : f32
    %12 = vector.broadcast %cst_9 : f32 to vector<8x8xf32>
    %13 = arith.mulf %11, %12 : vector<8x8xf32>
    %c0_10 = arith.constant 0 : index
    %c0_11 = arith.constant 0 : index
    %c0_12 = arith.constant 0 : index
    %c0_13 = arith.constant 0 : index
    %14 = vector.load %arg4[%c0_10, %c0_11, %c0_12, %c0_13] : memref<1x4x8x8xf32, #tpu.memory_space<vmem>>, vector<1x1x8x8xf32>
    %15 = vector.shape_cast %14 : vector<1x1x8x8xf32> to vector<8x8xf32>
    %16 = vector.shape_cast %13 : vector<8x8xf32> to vector<1x1x8x8xf32>
    tpu.vector_store %arg4[%c0_10, %c0_11, %c0_12, %c0_13], %16 {strides = array<i32>} : memref<1x4x8x8xf32, #tpu.memory_space<vmem>>, vector<1x1x8x8xf32>,
    %cst_14 = arith.constant dense<0xFF800000> : vector<8xf32>
    %17 = vector.multi_reduction <maximumf>, %13, %cst_14 [1] : vector<8x8xf32> to vector<8xf32>
    %18 = vector.shape_cast %17 : vector<8xf32> to vector<8x1xf32>
    %19 = vector.broadcast %18 : vector<8x1xf32> to vector<8x8xf32>
    %20 = arith.subf %13, %19 : vector<8x8xf32>
    %21 = math.exp %20 : vector<8x8xf32>
    %cst_15 = arith.constant dense<0.000000e+00> : vector<8xf32>
    %22 = vector.multi_reduction <add>, %21, %cst_15 [1] : vector<8x8xf32> to vector<8xf32>
    %23 = vector.shape_cast %22 : vector<8xf32> to vector<8x1xf32>
    %24 = tpu.reciprocal %23 {approx = true} : vector<8x1xf32> -> vector<8x1xf32>
    %25 = vector.broadcast %24 : vector<8x1xf32> to vector<8x8xf32>
    %26 = arith.mulf %21, %25 : vector<8x8xf32>
    %27 = arith.truncf %26 : vector<8x8xf32> to vector<8x8xbf16>
    %28 = vector.extract_strided_slice %8 {offsets = [0, 0], sizes = [8, 8], strides = [1, 1]} : vector<8x34xbf16> to vector<8x8xbf16>
    %cst_16 = arith.constant dense<0.000000e+00> : vector<8x8xf32>
    %29 = tpu.matmul %27, %28, %cst_16 {dimension_numbers = #tpu.dot_dimension_numbers<[1], [0], [0], [1], [0, 0, 1, 1], [], []>} : vector<8x8xbf16>, vector<8x8xbf16>, vector<8x8xf32> -> vector<8x8xf32>
    %c0_17 = arith.constant 0 : index
    %c0_18 = arith.constant 0 : index
    %c0_19 = arith.constant 0 : index
    %c0_20 = arith.constant 0 : index
    %30 = vector.load %arg3[%c0_17, %c0_18, %c0_19, %c0_20] : memref<1x1x8x32xf32, #tpu.memory_space<vmem>>, vector<1x1x8x8xf32>
    %31 = vector.shape_cast %30 : vector<1x1x8x8xf32> to vector<8x8xf32>
    %32 = vector.shape_cast %29 : vector<8x8xf32> to vector<1x1x8x8xf32>
    tpu.vector_store %arg3[%c0_17, %c0_18, %c0_19, %c0_20], %32 {strides = array<i32>} : memref<1x1x8x32xf32, #tpu.memory_space<vmem>>, vector<1x1x8x8xf32>,
    %33 = vector.extract_strided_slice %2 {offsets = [0, 8], sizes = [8, 8], strides = [1, 1]} : vector<8x34xbf16> to vector<8x8xbf16>
    %34 = vector.extract_strided_slice %5 {offsets = [0, 8], sizes = [8, 8], strides = [1, 1]} : vector<8x34xbf16> to vector<8x8xbf16>
    %cst_21 = arith.constant dense<0.000000e+00> : vector<8x8xf32>
    %35 = tpu.matmul %33, %34, %cst_21 {dimension_numbers = #tpu.dot_dimension_numbers<[1], [1], [0], [0], [0, 0, 1, 0], [], []>} : vector<8x8xbf16>, vector<8x8xbf16>, vector<8x8xf32> -> vector<8x8xf32>
    %cst_22 = arith.constant 0.353553385 : f32
    %36 = vector.broadcast %cst_22 : f32 to vector<8x8xf32>
    %37 = arith.mulf %35, %36 : vector<8x8xf32>
    %c0_23 = arith.constant 0 : index
    %c1_24 = arith.constant 1 : index
    %c0_25 = arith.constant 0 : index
    %c0_26 = arith.constant 0 : index
    %38 = vector.load %arg4[%c0_23, %c1_24, %c0_25, %c0_26] : memref<1x4x8x8xf32, #tpu.memory_space<vmem>>, vector<1x1x8x8xf32>
    %39 = vector.shape_cast %38 : vector<1x1x8x8xf32> to vector<8x8xf32>
    %40 = vector.shape_cast %37 : vector<8x8xf32> to vector<1x1x8x8xf32>
    tpu.vector_store %arg4[%c0_23, %c1_24, %c0_25, %c0_26], %40 {strides = array<i32>} : memref<1x4x8x8xf32, #tpu.memory_space<vmem>>, vector<1x1x8x8xf32>,
    %cst_27 = arith.constant dense<0xFF800000> : vector<8xf32>
    %41 = vector.multi_reduction <maximumf>, %37, %cst_27 [1] : vector<8x8xf32> to vector<8xf32>
    %42 = vector.shape_cast %41 : vector<8xf32> to vector<8x1xf32>
    %43 = vector.broadcast %42 : vector<8x1xf32> to vector<8x8xf32>
    %44 = arith.subf %37, %43 : vector<8x8xf32>
    %45 = math.exp %44 : vector<8x8xf32>
    %cst_28 = arith.constant dense<0.000000e+00> : vector<8xf32>
    %46 = vector.multi_reduction <add>, %45, %cst_28 [1] : vector<8x8xf32> to vector<8xf32>
    %47 = vector.shape_cast %46 : vector<8xf32> to vector<8x1xf32>
    %48 = tpu.reciprocal %47 {approx = true} : vector<8x1xf32> -> vector<8x1xf32>
    %49 = vector.broadcast %48 : vector<8x1xf32> to vector<8x8xf32>
    %50 = arith.mulf %45, %49 : vector<8x8xf32>
    %51 = arith.truncf %50 : vector<8x8xf32> to vector<8x8xbf16>
    %52 = vector.extract_strided_slice %8 {offsets = [0, 8], sizes = [8, 8], strides = [1, 1]} : vector<8x34xbf16> to vector<8x8xbf16>
    %cst_29 = arith.constant dense<0.000000e+00> : vector<8x8xf32>
    %53 = tpu.matmul %51, %52, %cst_29 {dimension_numbers = #tpu.dot_dimension_numbers<[1], [0], [0], [1], [0, 0, 1, 1], [], []>} : vector<8x8xbf16>, vector<8x8xbf16>, vector<8x8xf32> -> vector<8x8xf32>
    %c0_30 = arith.constant 0 : index
    %c0_31 = arith.constant 0 : index
    %c0_32 = arith.constant 0 : index
    %c8 = arith.constant 8 : index
    %54 = vector.load %arg3[%c0_30, %c0_31, %c0_32, %c8] : memref<1x1x8x32xf32, #tpu.memory_space<vmem>>, vector<1x1x8x8xf32>
    %55 = vector.shape_cast %54 : vector<1x1x8x8xf32> to vector<8x8xf32>
    %56 = vector.shape_cast %53 : vector<8x8xf32> to vector<1x1x8x8xf32>
    tpu.vector_store %arg3[%c0_30, %c0_31, %c0_32, %c8], %56 {strides = array<i32>} : memref<1x1x8x32xf32, #tpu.memory_space<vmem>>, vector<1x1x8x8xf32>,
    %57 = vector.extract_strided_slice %2 {offsets = [0, 16], sizes = [8, 8], strides = [1, 1]} : vector<8x34xbf16> to vector<8x8xbf16>
    %58 = vector.extract_strided_slice %5 {offsets = [0, 16], sizes = [8, 8], strides = [1, 1]} : vector<8x34xbf16> to vector<8x8xbf16>
    %cst_33 = arith.constant dense<0.000000e+00> : vector<8x8xf32>
    %59 = tpu.matmul %57, %58, %cst_33 {dimension_numbers = #tpu.dot_dimension_numbers<[1], [1], [0], [0], [0, 0, 1, 0], [], []>} : vector<8x8xbf16>, vector<8x8xbf16>, vector<8x8xf32> -> vector<8x8xf32>
    %cst_34 = arith.constant 0.353553385 : f32
    %60 = vector.broadcast %cst_34 : f32 to vector<8x8xf32>
    %61 = arith.mulf %59, %60 : vector<8x8xf32>
    %c0_35 = arith.constant 0 : index
    %c2_36 = arith.constant 2 : index
    %c0_37 = arith.constant 0 : index
    %c0_38 = arith.constant 0 : index
    %62 = vector.load %arg4[%c0_35, %c2_36, %c0_37, %c0_38] : memref<1x4x8x8xf32, #tpu.memory_space<vmem>>, vector<1x1x8x8xf32>
    %63 = vector.shape_cast %62 : vector<1x1x8x8xf32> to vector<8x8xf32>
    %64 = vector.shape_cast %61 : vector<8x8xf32> to vector<1x1x8x8xf32>
    tpu.vector_store %arg4[%c0_35, %c2_36, %c0_37, %c0_38], %64 {strides = array<i32>} : memref<1x4x8x8xf32, #tpu.memory_space<vmem>>, vector<1x1x8x8xf32>,
    %cst_39 = arith.constant dense<0xFF800000> : vector<8xf32>
    %65 = vector.multi_reduction <maximumf>, %61, %cst_39 [1] : vector<8x8xf32> to vector<8xf32>
    %66 = vector.shape_cast %65 : vector<8xf32> to vector<8x1xf32>
    %67 = vector.broadcast %66 : vector<8x1xf32> to vector<8x8xf32>
    %68 = arith.subf %61, %67 : vector<8x8xf32>
    %69 = math.exp %68 : vector<8x8xf32>
    %cst_40 = arith.constant dense<0.000000e+00> : vector<8xf32>
    %70 = vector.multi_reduction <add>, %69, %cst_40 [1] : vector<8x8xf32> to vector<8xf32>
    %71 = vector.shape_cast %70 : vector<8xf32> to vector<8x1xf32>
    %72 = tpu.reciprocal %71 {approx = true} : vector<8x1xf32> -> vector<8x1xf32>
    %73 = vector.broadcast %72 : vector<8x1xf32> to vector<8x8xf32>
    %74 = arith.mulf %69, %73 : vector<8x8xf32>
    %75 = arith.truncf %74 : vector<8x8xf32> to vector<8x8xbf16>
    %76 = vector.extract_strided_slice %8 {offsets = [0, 16], sizes = [8, 8], strides = [1, 1]} : vector<8x34xbf16> to vector<8x8xbf16>
    %cst_41 = arith.constant dense<0.000000e+00> : vector<8x8xf32>
    %77 = tpu.matmul %75, %76, %cst_41 {dimension_numbers = #tpu.dot_dimension_numbers<[1], [0], [0], [1], [0, 0, 1, 1], [], []>} : vector<8x8xbf16>, vector<8x8xbf16>, vector<8x8xf32> -> vector<8x8xf32>
    %c0_42 = arith.constant 0 : index
    %c0_43 = arith.constant 0 : index
    %c0_44 = arith.constant 0 : index
    %c16 = arith.constant 16 : index
    %78 = vector.load %arg3[%c0_42, %c0_43, %c0_44, %c16] : memref<1x1x8x32xf32, #tpu.memory_space<vmem>>, vector<1x1x8x8xf32>
    %79 = vector.shape_cast %78 : vector<1x1x8x8xf32> to vector<8x8xf32>
    %80 = vector.shape_cast %77 : vector<8x8xf32> to vector<1x1x8x8xf32>
    tpu.vector_store %arg3[%c0_42, %c0_43, %c0_44, %c16], %80 {strides = array<i32>} : memref<1x1x8x32xf32, #tpu.memory_space<vmem>>, vector<1x1x8x8xf32>,
    %81 = vector.extract_strided_slice %2 {offsets = [0, 24], sizes = [8, 8], strides = [1, 1]} : vector<8x34xbf16> to vector<8x8xbf16>
    %82 = vector.extract_strided_slice %5 {offsets = [0, 24], sizes = [8, 8], strides = [1, 1]} : vector<8x34xbf16> to vector<8x8xbf16>
    %cst_45 = arith.constant dense<0.000000e+00> : vector<8x8xf32>
    %83 = tpu.matmul %81, %82, %cst_45 {dimension_numbers = #tpu.dot_dimension_numbers<[1], [1], [0], [0], [0, 0, 1, 0], [], []>} : vector<8x8xbf16>, vector<8x8xbf16>, vector<8x8xf32> -> vector<8x8xf32>
    %cst_46 = arith.constant 0.353553385 : f32
    %84 = vector.broadcast %cst_46 : f32 to vector<8x8xf32>
    %85 = arith.mulf %83, %84 : vector<8x8xf32>
    %c0_47 = arith.constant 0 : index
    %c3 = arith.constant 3 : index
    %c0_48 = arith.constant 0 : index
    %c0_49 = arith.constant 0 : index
    %86 = vector.load %arg4[%c0_47, %c3, %c0_48, %c0_49] : memref<1x4x8x8xf32, #tpu.memory_space<vmem>>, vector<1x1x8x8xf32>
    %87 = vector.shape_cast %86 : vector<1x1x8x8xf32> to vector<8x8xf32>
    %88 = vector.shape_cast %85 : vector<8x8xf32> to vector<1x1x8x8xf32>
    tpu.vector_store %arg4[%c0_47, %c3, %c0_48, %c0_49], %88 {strides = array<i32>} : memref<1x4x8x8xf32, #tpu.memory_space<vmem>>, vector<1x1x8x8xf32>,
    %cst_50 = arith.constant dense<0xFF800000> : vector<8xf32>
    %89 = vector.multi_reduction <maximumf>, %85, %cst_50 [1] : vector<8x8xf32> to vector<8xf32>
    %90 = vector.shape_cast %89 : vector<8xf32> to vector<8x1xf32>
    %91 = vector.broadcast %90 : vector<8x1xf32> to vector<8x8xf32>
    %92 = arith.subf %85, %91 : vector<8x8xf32>
    %93 = math.exp %92 : vector<8x8xf32>
    %cst_51 = arith.constant dense<0.000000e+00> : vector<8xf32>
    %94 = vector.multi_reduction <add>, %93, %cst_51 [1] : vector<8x8xf32> to vector<8xf32>
    %95 = vector.shape_cast %94 : vector<8xf32> to vector<8x1xf32>
    %96 = tpu.reciprocal %95 {approx = true} : vector<8x1xf32> -> vector<8x1xf32>
    %97 = vector.broadcast %96 : vector<8x1xf32> to vector<8x8xf32>
    %98 = arith.mulf %93, %97 : vector<8x8xf32>
    %99 = arith.truncf %98 : vector<8x8xf32> to vector<8x8xbf16>
    %100 = vector.extract_strided_slice %8 {offsets = [0, 24], sizes = [8, 8], strides = [1, 1]} : vector<8x34xbf16> to vector<8x8xbf16>
    %cst_52 = arith.constant dense<0.000000e+00> : vector<8x8xf32>
    %101 = tpu.matmul %99, %100, %cst_52 {dimension_numbers = #tpu.dot_dimension_numbers<[1], [0], [0], [1], [0, 0, 1, 1], [], []>} : vector<8x8xbf16>, vector<8x8xbf16>, vector<8x8xf32> -> vector<8x8xf32>
    %c0_53 = arith.constant 0 : index
    %c0_54 = arith.constant 0 : index
    %c0_55 = arith.constant 0 : index
    %c24 = arith.constant 24 : index
    %102 = vector.load %arg3[%c0_53, %c0_54, %c0_55, %c24] : memref<1x1x8x32xf32, #tpu.memory_space<vmem>>, vector<1x1x8x8xf32>
    %103 = vector.shape_cast %102 : vector<1x1x8x8xf32> to vector<8x8xf32>
    %104 = vector.shape_cast %101 : vector<8x8xf32> to vector<1x1x8x8xf32>
    tpu.vector_store %arg3[%c0_53, %c0_54, %c0_55, %c24], %104 {strides = array<i32>} : memref<1x1x8x32xf32, #tpu.memory_space<vmem>>, vector<1x1x8x8xf32>,
    return
  }
  func.func @transform_0(%arg0: i32, %arg1: i32) -> (i32, i32, i32, i32) {
    %c0_i32 = arith.constant 0 : i32
    %c0_i32_0 = arith.constant 0 : i32
    %c0_i32_1 = arith.constant 0 : i32
    return %arg0, %arg1, %c0_i32, %c0_i32_0 : i32, i32, i32, i32
  }
  func.func @transform_1(%arg0: i32, %arg1: i32) -> (i32, i32, i32, i32) {
    %c0_i32 = arith.constant 0 : i32
    %c0_i32_0 = arith.constant 0 : i32
    %c0_i32_1 = arith.constant 0 : i32
    return %arg0, %arg1, %c0_i32, %c0_i32_0 : i32, i32, i32, i32
  }
  func.func @transform_2(%arg0: i32, %arg1: i32) -> (i32, i32, i32, i32) {
    %c1_i32 = arith.constant 1 : i32
    %0 = arith.muli %arg0, %c1_i32 : i32
    %1 = arith.addi %0, %arg1 : i32
    %c0_i32 = arith.constant 0 : i32
    %c0_i32_0 = arith.constant 0 : i32
    %c0_i32_1 = arith.constant 0 : i32
    %c0_i32_2 = arith.constant 0 : i32
    return %1, %c0_i32, %c0_i32_0, %c0_i32_1 : i32, i32, i32, i32
  }
}

module attributes {stable_mosaic.version = 11 : i64} {
  func.func @_conv3x3_kernel(%arg0: i32, %arg1: memref<1x6x408xf32, #tpu.memory_space<vmem>>, %arg2: memref<9x12x6xbf16, #tpu.memory_space<vmem>>, %arg3: memref<1x12x272xf32, #tpu.memory_space<vmem>>) attributes {dimension_semantics = [#tpu.dimension_semantics<parallel>], iteration_bounds = array<i64: 2>, scalar_prefetch = 0 : i64, scratch_operands = 0 : i64, tpu.core_type = #tpu.core_type<tc>, window_params = [{transform_indices = @transform_0, window_bounds = array<i64: 1, 6, 408>}, {pipeline_mode = #tpu.pipeline_mode<synchronous>, transform_indices = @transform_1, window_bounds = array<i64: 9, 12, 6>}, {transform_indices = @transform_2, window_bounds = array<i64: 1, 12, 272>}]} {
    %c0 = arith.constant 0 : index
    %c0_0 = arith.constant 0 : index
    %c0_1 = arith.constant 0 : index
    %0 = vector.load %arg1[%c0, %c0_0, %c0_1] : memref<1x6x408xf32, #tpu.memory_space<vmem>>, vector<1x6x408xf32>
    %1 = vector.shape_cast %0 : vector<1x6x408xf32> to vector<6x408xf32>
    %2 = arith.truncf %1 : vector<6x408xf32> to vector<6x408xbf16>
    %cst = arith.constant 0.000000e+00 : f32
    %3 = vector.broadcast %cst : f32 to vector<12x272xf32>
    %4 = vector.extract_strided_slice %2 {offsets = [0, 34], sizes = [6, 272], strides = [1, 1]} : vector<6x408xbf16> to vector<6x272xbf16>
    %c0_2 = arith.constant 0 : index
    %c0_3 = arith.constant 0 : index
    %c0_4 = arith.constant 0 : index
    %5 = vector.load %arg2[%c0_2, %c0_3, %c0_4] : memref<9x12x6xbf16, #tpu.memory_space<vmem>>, vector<1x12x6xbf16>
    %6 = vector.shape_cast %5 : vector<1x12x6xbf16> to vector<12x6xbf16>
    %cst_5 = arith.constant dense<0.000000e+00> : vector<12x272xf32>
    %7 = tpu.matmul %6, %4, %cst_5 {dimension_numbers = #tpu.dot_dimension_numbers<[1], [0], [0], [1], [0, 0, 1, 1], [], []>} : vector<12x6xbf16>, vector<6x272xbf16>, vector<12x272xf32> -> vector<12x272xf32>
    %8 = arith.addf %3, %7 : vector<12x272xf32>
    %9 = vector.extract_strided_slice %2 {offsets = [0, 35], sizes = [6, 272], strides = [1, 1]} : vector<6x408xbf16> to vector<6x272xbf16>
    %c1 = arith.constant 1 : index
    %c0_6 = arith.constant 0 : index
    %c0_7 = arith.constant 0 : index
    %10 = vector.load %arg2[%c1, %c0_6, %c0_7] : memref<9x12x6xbf16, #tpu.memory_space<vmem>>, vector<1x12x6xbf16>
    %11 = vector.shape_cast %10 : vector<1x12x6xbf16> to vector<12x6xbf16>
    %cst_8 = arith.constant dense<0.000000e+00> : vector<12x272xf32>
    %12 = tpu.matmul %11, %9, %cst_8 {dimension_numbers = #tpu.dot_dimension_numbers<[1], [0], [0], [1], [0, 0, 1, 1], [], []>} : vector<12x6xbf16>, vector<6x272xbf16>, vector<12x272xf32> -> vector<12x272xf32>
    %13 = arith.addf %8, %12 : vector<12x272xf32>
    %14 = vector.extract_strided_slice %2 {offsets = [0, 36], sizes = [6, 272], strides = [1, 1]} : vector<6x408xbf16> to vector<6x272xbf16>
    %c2 = arith.constant 2 : index
    %c0_9 = arith.constant 0 : index
    %c0_10 = arith.constant 0 : index
    %15 = vector.load %arg2[%c2, %c0_9, %c0_10] : memref<9x12x6xbf16, #tpu.memory_space<vmem>>, vector<1x12x6xbf16>
    %16 = vector.shape_cast %15 : vector<1x12x6xbf16> to vector<12x6xbf16>
    %cst_11 = arith.constant dense<0.000000e+00> : vector<12x272xf32>
    %17 = tpu.matmul %16, %14, %cst_11 {dimension_numbers = #tpu.dot_dimension_numbers<[1], [0], [0], [1], [0, 0, 1, 1], [], []>} : vector<12x6xbf16>, vector<6x272xbf16>, vector<12x272xf32> -> vector<12x272xf32>
    %18 = arith.addf %13, %17 : vector<12x272xf32>
    %19 = vector.extract_strided_slice %2 {offsets = [0, 68], sizes = [6, 272], strides = [1, 1]} : vector<6x408xbf16> to vector<6x272xbf16>
    %c3 = arith.constant 3 : index
    %c0_12 = arith.constant 0 : index
    %c0_13 = arith.constant 0 : index
    %20 = vector.load %arg2[%c3, %c0_12, %c0_13] : memref<9x12x6xbf16, #tpu.memory_space<vmem>>, vector<1x12x6xbf16>
    %21 = vector.shape_cast %20 : vector<1x12x6xbf16> to vector<12x6xbf16>
    %cst_14 = arith.constant dense<0.000000e+00> : vector<12x272xf32>
    %22 = tpu.matmul %21, %19, %cst_14 {dimension_numbers = #tpu.dot_dimension_numbers<[1], [0], [0], [1], [0, 0, 1, 1], [], []>} : vector<12x6xbf16>, vector<6x272xbf16>, vector<12x272xf32> -> vector<12x272xf32>
    %23 = arith.addf %18, %22 : vector<12x272xf32>
    %24 = vector.extract_strided_slice %2 {offsets = [0, 69], sizes = [6, 272], strides = [1, 1]} : vector<6x408xbf16> to vector<6x272xbf16>
    %c4 = arith.constant 4 : index
    %c0_15 = arith.constant 0 : index
    %c0_16 = arith.constant 0 : index
    %25 = vector.load %arg2[%c4, %c0_15, %c0_16] : memref<9x12x6xbf16, #tpu.memory_space<vmem>>, vector<1x12x6xbf16>
    %26 = vector.shape_cast %25 : vector<1x12x6xbf16> to vector<12x6xbf16>
    %cst_17 = arith.constant dense<0.000000e+00> : vector<12x272xf32>
    %27 = tpu.matmul %26, %24, %cst_17 {dimension_numbers = #tpu.dot_dimension_numbers<[1], [0], [0], [1], [0, 0, 1, 1], [], []>} : vector<12x6xbf16>, vector<6x272xbf16>, vector<12x272xf32> -> vector<12x272xf32>
    %28 = arith.addf %23, %27 : vector<12x272xf32>
    %29 = vector.extract_strided_slice %2 {offsets = [0, 70], sizes = [6, 272], strides = [1, 1]} : vector<6x408xbf16> to vector<6x272xbf16>
    %c5 = arith.constant 5 : index
    %c0_18 = arith.constant 0 : index
    %c0_19 = arith.constant 0 : index
    %30 = vector.load %arg2[%c5, %c0_18, %c0_19] : memref<9x12x6xbf16, #tpu.memory_space<vmem>>, vector<1x12x6xbf16>
    %31 = vector.shape_cast %30 : vector<1x12x6xbf16> to vector<12x6xbf16>
    %cst_20 = arith.constant dense<0.000000e+00> : vector<12x272xf32>
    %32 = tpu.matmul %31, %29, %cst_20 {dimension_numbers = #tpu.dot_dimension_numbers<[1], [0], [0], [1], [0, 0, 1, 1], [], []>} : vector<12x6xbf16>, vector<6x272xbf16>, vector<12x272xf32> -> vector<12x272xf32>
    %33 = arith.addf %28, %32 : vector<12x272xf32>
    %34 = vector.extract_strided_slice %2 {offsets = [0, 102], sizes = [6, 272], strides = [1, 1]} : vector<6x408xbf16> to vector<6x272xbf16>
    %c6 = arith.constant 6 : index
    %c0_21 = arith.constant 0 : index
    %c0_22 = arith.constant 0 : index
    %35 = vector.load %arg2[%c6, %c0_21, %c0_22] : memref<9x12x6xbf16, #tpu.memory_space<vmem>>, vector<1x12x6xbf16>
    %36 = vector.shape_cast %35 : vector<1x12x6xbf16> to vector<12x6xbf16>
    %cst_23 = arith.constant dense<0.000000e+00> : vector<12x272xf32>
    %37 = tpu.matmul %36, %34, %cst_23 {dimension_numbers = #tpu.dot_dimension_numbers<[1], [0], [0], [1], [0, 0, 1, 1], [], []>} : vector<12x6xbf16>, vector<6x272xbf16>, vector<12x272xf32> -> vector<12x272xf32>
    %38 = arith.addf %33, %37 : vector<12x272xf32>
    %39 = vector.extract_strided_slice %2 {offsets = [0, 103], sizes = [6, 272], strides = [1, 1]} : vector<6x408xbf16> to vector<6x272xbf16>
    %c7 = arith.constant 7 : index
    %c0_24 = arith.constant 0 : index
    %c0_25 = arith.constant 0 : index
    %40 = vector.load %arg2[%c7, %c0_24, %c0_25] : memref<9x12x6xbf16, #tpu.memory_space<vmem>>, vector<1x12x6xbf16>
    %41 = vector.shape_cast %40 : vector<1x12x6xbf16> to vector<12x6xbf16>
    %cst_26 = arith.constant dense<0.000000e+00> : vector<12x272xf32>
    %42 = tpu.matmul %41, %39, %cst_26 {dimension_numbers = #tpu.dot_dimension_numbers<[1], [0], [0], [1], [0, 0, 1, 1], [], []>} : vector<12x6xbf16>, vector<6x272xbf16>, vector<12x272xf32> -> vector<12x272xf32>
    %43 = arith.addf %38, %42 : vector<12x272xf32>
    %44 = vector.extract_strided_slice %2 {offsets = [0, 104], sizes = [6, 272], strides = [1, 1]} : vector<6x408xbf16> to vector<6x272xbf16>
    %c8 = arith.constant 8 : index
    %c0_27 = arith.constant 0 : index
    %c0_28 = arith.constant 0 : index
    %45 = vector.load %arg2[%c8, %c0_27, %c0_28] : memref<9x12x6xbf16, #tpu.memory_space<vmem>>, vector<1x12x6xbf16>
    %46 = vector.shape_cast %45 : vector<1x12x6xbf16> to vector<12x6xbf16>
    %cst_29 = arith.constant dense<0.000000e+00> : vector<12x272xf32>
    %47 = tpu.matmul %46, %44, %cst_29 {dimension_numbers = #tpu.dot_dimension_numbers<[1], [0], [0], [1], [0, 0, 1, 1], [], []>} : vector<12x6xbf16>, vector<6x272xbf16>, vector<12x272xf32> -> vector<12x272xf32>
    %48 = arith.addf %43, %47 : vector<12x272xf32>
    %c0_30 = arith.constant 0 : index
    %c0_31 = arith.constant 0 : index
    %c0_32 = arith.constant 0 : index
    %49 = vector.load %arg3[%c0_30, %c0_31, %c0_32] : memref<1x12x272xf32, #tpu.memory_space<vmem>>, vector<1x12x272xf32>
    %50 = vector.shape_cast %49 : vector<1x12x272xf32> to vector<12x272xf32>
    %51 = vector.shape_cast %48 : vector<12x272xf32> to vector<1x12x272xf32>
    tpu.vector_store %arg3[%c0_30, %c0_31, %c0_32], %51 {strides = array<i32>} : memref<1x12x272xf32, #tpu.memory_space<vmem>>, vector<1x12x272xf32>,
    return
  }
  func.func @transform_0(%arg0: i32) -> (i32, i32, i32) {
    %c0_i32 = arith.constant 0 : i32
    %c0_i32_0 = arith.constant 0 : i32
    %c0_i32_1 = arith.constant 0 : i32
    return %arg0, %c0_i32, %c0_i32_0 : i32, i32, i32
  }
  func.func @transform_1(%arg0: i32) -> (i32, i32, i32) {
    %c0_i32 = arith.constant 0 : i32
    %c0_i32_0 = arith.constant 0 : i32
    %c0_i32_1 = arith.constant 0 : i32
    %c0_i32_2 = arith.constant 0 : i32
    return %c0_i32, %c0_i32_0, %c0_i32_1 : i32, i32, i32
  }
  func.func @transform_2(%arg0: i32) -> (i32, i32, i32) {
    %c0_i32 = arith.constant 0 : i32
    %c0_i32_0 = arith.constant 0 : i32
    %c0_i32_1 = arith.constant 0 : i32
    return %arg0, %c0_i32, %c0_i32_0 : i32, i32, i32
  }
}

module attributes {stable_mosaic.version = 11 : i64} {
  func.func @_ffn_kernel(%arg0: i32, %arg1: memref<2x1x8x34xf32, #tpu.memory_space<vmem>>, %arg2: memref<1x34x64xbf16, #tpu.memory_space<vmem>>, %arg3: memref<1x64x32xbf16, #tpu.memory_space<vmem>>, %arg4: memref<2x1x8x32xf32, #tpu.memory_space<vmem>>) attributes {dimension_semantics = [#tpu.dimension_semantics<parallel>], iteration_bounds = array<i64: 12>, scalar_prefetch = 0 : i64, scratch_operands = 0 : i64, tpu.core_type = #tpu.core_type<tc>, window_params = [{transform_indices = @transform_0, window_bounds = array<i64: 2, 1, 8, 34>}, {transform_indices = @transform_1, window_bounds = array<i64: 1, 34, 64>}, {transform_indices = @transform_2, window_bounds = array<i64: 1, 64, 32>}, {transform_indices = @transform_3, window_bounds = array<i64: 2, 1, 8, 32>}]} {
    %c0 = arith.constant 0 : index
    %c0_0 = arith.constant 0 : index
    %c0_1 = arith.constant 0 : index
    %0 = vector.load %arg2[%c0, %c0_0, %c0_1] : memref<1x34x64xbf16, #tpu.memory_space<vmem>>, vector<1x34x64xbf16>
    %1 = vector.shape_cast %0 : vector<1x34x64xbf16> to vector<34x64xbf16>
    %c0_2 = arith.constant 0 : index
    %c0_3 = arith.constant 0 : index
    %c0_4 = arith.constant 0 : index
    %2 = vector.load %arg3[%c0_2, %c0_3, %c0_4] : memref<1x64x32xbf16, #tpu.memory_space<vmem>>, vector<1x64x32xbf16>
    %3 = vector.shape_cast %2 : vector<1x64x32xbf16> to vector<64x32xbf16>
    %c0_5 = arith.constant 0 : index
    %c0_6 = arith.constant 0 : index
    %c0_7 = arith.constant 0 : index
    %c0_8 = arith.constant 0 : index
    %4 = vector.load %arg1[%c0_5, %c0_6, %c0_7, %c0_8] : memref<2x1x8x34xf32, #tpu.memory_space<vmem>>, vector<1x1x8x34xf32>
    %5 = vector.shape_cast %4 : vector<1x1x8x34xf32> to vector<8x34xf32>
    %6 = arith.truncf %5 : vector<8x34xf32> to vector<8x34xbf16>
    %cst = arith.constant dense<0.000000e+00> : vector<8x64xf32>
    %7 = tpu.matmul %6, %1, %cst {dimension_numbers = #tpu.dot_dimension_numbers<[1], [0], [0], [1], [0, 0, 1, 1], [], []>} : vector<8x34xbf16>, vector<34x64xbf16>, vector<8x64xf32> -> vector<8x64xf32>
    %cst_9 = arith.constant 5.000000e-01 : f32
    %8 = vector.broadcast %cst_9 : f32 to vector<8x64xf32>
    %9 = arith.mulf %8, %7 : vector<8x64xf32>
    %cst_10 = arith.constant 0.707106769 : f32
    %10 = vector.broadcast %cst_10 : f32 to vector<8x64xf32>
    %11 = arith.mulf %7, %10 : vector<8x64xf32>
    %12 = math.erf %11 : vector<8x64xf32>
    %cst_11 = arith.constant 1.000000e+00 : f32
    %13 = vector.broadcast %cst_11 : f32 to vector<8x64xf32>
    %14 = arith.addf %13, %12 : vector<8x64xf32>
    %15 = arith.mulf %9, %14 : vector<8x64xf32>
    %16 = arith.truncf %15 : vector<8x64xf32> to vector<8x64xbf16>
    %cst_12 = arith.constant dense<0.000000e+00> : vector<8x32xf32>
    %17 = tpu.matmul %16, %3, %cst_12 {dimension_numbers = #tpu.dot_dimension_numbers<[1], [0], [0], [1], [0, 0, 1, 1], [], []>} : vector<8x64xbf16>, vector<64x32xbf16>, vector<8x32xf32> -> vector<8x32xf32>
    %c0_13 = arith.constant 0 : index
    %c0_14 = arith.constant 0 : index
    %c0_15 = arith.constant 0 : index
    %c0_16 = arith.constant 0 : index
    %18 = vector.load %arg4[%c0_13, %c0_14, %c0_15, %c0_16] : memref<2x1x8x32xf32, #tpu.memory_space<vmem>>, vector<1x1x8x32xf32>
    %19 = vector.shape_cast %18 : vector<1x1x8x32xf32> to vector<8x32xf32>
    %20 = vector.shape_cast %17 : vector<8x32xf32> to vector<1x1x8x32xf32>
    tpu.vector_store %arg4[%c0_13, %c0_14, %c0_15, %c0_16], %20 {strides = array<i32>} : memref<2x1x8x32xf32, #tpu.memory_space<vmem>>, vector<1x1x8x32xf32>,
    %c1 = arith.constant 1 : index
    %c0_17 = arith.constant 0 : index
    %c0_18 = arith.constant 0 : index
    %c0_19 = arith.constant 0 : index
    %21 = vector.load %arg1[%c1, %c0_17, %c0_18, %c0_19] : memref<2x1x8x34xf32, #tpu.memory_space<vmem>>, vector<1x1x8x34xf32>
    %22 = vector.shape_cast %21 : vector<1x1x8x34xf32> to vector<8x34xf32>
    %23 = arith.truncf %22 : vector<8x34xf32> to vector<8x34xbf16>
    %cst_20 = arith.constant dense<0.000000e+00> : vector<8x64xf32>
    %24 = tpu.matmul %23, %1, %cst_20 {dimension_numbers = #tpu.dot_dimension_numbers<[1], [0], [0], [1], [0, 0, 1, 1], [], []>} : vector<8x34xbf16>, vector<34x64xbf16>, vector<8x64xf32> -> vector<8x64xf32>
    %cst_21 = arith.constant 5.000000e-01 : f32
    %25 = vector.broadcast %cst_21 : f32 to vector<8x64xf32>
    %26 = arith.mulf %25, %24 : vector<8x64xf32>
    %cst_22 = arith.constant 0.707106769 : f32
    %27 = vector.broadcast %cst_22 : f32 to vector<8x64xf32>
    %28 = arith.mulf %24, %27 : vector<8x64xf32>
    %29 = math.erf %28 : vector<8x64xf32>
    %cst_23 = arith.constant 1.000000e+00 : f32
    %30 = vector.broadcast %cst_23 : f32 to vector<8x64xf32>
    %31 = arith.addf %30, %29 : vector<8x64xf32>
    %32 = arith.mulf %26, %31 : vector<8x64xf32>
    %33 = arith.truncf %32 : vector<8x64xf32> to vector<8x64xbf16>
    %cst_24 = arith.constant dense<0.000000e+00> : vector<8x32xf32>
    %34 = tpu.matmul %33, %3, %cst_24 {dimension_numbers = #tpu.dot_dimension_numbers<[1], [0], [0], [1], [0, 0, 1, 1], [], []>} : vector<8x64xbf16>, vector<64x32xbf16>, vector<8x32xf32> -> vector<8x32xf32>
    %c1_25 = arith.constant 1 : index
    %c0_26 = arith.constant 0 : index
    %c0_27 = arith.constant 0 : index
    %c0_28 = arith.constant 0 : index
    %35 = vector.load %arg4[%c1_25, %c0_26, %c0_27, %c0_28] : memref<2x1x8x32xf32, #tpu.memory_space<vmem>>, vector<1x1x8x32xf32>
    %36 = vector.shape_cast %35 : vector<1x1x8x32xf32> to vector<8x32xf32>
    %37 = vector.shape_cast %34 : vector<8x32xf32> to vector<1x1x8x32xf32>
    tpu.vector_store %arg4[%c1_25, %c0_26, %c0_27, %c0_28], %37 {strides = array<i32>} : memref<2x1x8x32xf32, #tpu.memory_space<vmem>>, vector<1x1x8x32xf32>,
    return
  }
  func.func @transform_0(%arg0: i32) -> (i32, i32, i32, i32) {
    %c0_i32 = arith.constant 0 : i32
    %c0_i32_0 = arith.constant 0 : i32
    %c0_i32_1 = arith.constant 0 : i32
    %c0_i32_2 = arith.constant 0 : i32
    return %c0_i32, %arg0, %c0_i32_0, %c0_i32_1 : i32, i32, i32, i32
  }
  func.func @transform_1(%arg0: i32) -> (i32, i32, i32) {
    %c0_i32 = arith.constant 0 : i32
    %c0_i32_0 = arith.constant 0 : i32
    %c0_i32_1 = arith.constant 0 : i32
    return %arg0, %c0_i32, %c0_i32_0 : i32, i32, i32
  }
  func.func @transform_2(%arg0: i32) -> (i32, i32, i32) {
    %c0_i32 = arith.constant 0 : i32
    %c0_i32_0 = arith.constant 0 : i32
    %c0_i32_1 = arith.constant 0 : i32
    return %arg0, %c0_i32, %c0_i32_0 : i32, i32, i32
  }
  func.func @transform_3(%arg0: i32) -> (i32, i32, i32, i32) {
    %c0_i32 = arith.constant 0 : i32
    %c0_i32_0 = arith.constant 0 : i32
    %c0_i32_1 = arith.constant 0 : i32
    %c0_i32_2 = arith.constant 0 : i32
    return %c0_i32, %arg0, %c0_i32_0, %c0_i32_1 : i32, i32, i32, i32
  }
}

module attributes {stable_mosaic.version = 11 : i64} {
  func.func @_conv3x3_kernel(%arg0: i32, %arg1: memref<1x12x408xf32, #tpu.memory_space<vmem>>, %arg2: memref<9x5x12xbf16, #tpu.memory_space<vmem>>, %arg3: memref<1x5x272xf32, #tpu.memory_space<vmem>>) attributes {dimension_semantics = [#tpu.dimension_semantics<parallel>], iteration_bounds = array<i64: 2>, scalar_prefetch = 0 : i64, scratch_operands = 0 : i64, tpu.core_type = #tpu.core_type<tc>, window_params = [{transform_indices = @transform_0, window_bounds = array<i64: 1, 12, 408>}, {pipeline_mode = #tpu.pipeline_mode<synchronous>, transform_indices = @transform_1, window_bounds = array<i64: 9, 5, 12>}, {transform_indices = @transform_2, window_bounds = array<i64: 1, 5, 272>}]} {
    %c0 = arith.constant 0 : index
    %c0_0 = arith.constant 0 : index
    %c0_1 = arith.constant 0 : index
    %0 = vector.load %arg1[%c0, %c0_0, %c0_1] : memref<1x12x408xf32, #tpu.memory_space<vmem>>, vector<1x12x408xf32>
    %1 = vector.shape_cast %0 : vector<1x12x408xf32> to vector<12x408xf32>
    %2 = arith.truncf %1 : vector<12x408xf32> to vector<12x408xbf16>
    %cst = arith.constant 0.000000e+00 : f32
    %3 = vector.broadcast %cst : f32 to vector<5x272xf32>
    %4 = vector.extract_strided_slice %2 {offsets = [0, 34], sizes = [12, 272], strides = [1, 1]} : vector<12x408xbf16> to vector<12x272xbf16>
    %c0_2 = arith.constant 0 : index
    %c0_3 = arith.constant 0 : index
    %c0_4 = arith.constant 0 : index
    %5 = vector.load %arg2[%c0_2, %c0_3, %c0_4] : memref<9x5x12xbf16, #tpu.memory_space<vmem>>, vector<1x5x12xbf16>
    %6 = vector.shape_cast %5 : vector<1x5x12xbf16> to vector<5x12xbf16>
    %cst_5 = arith.constant dense<0.000000e+00> : vector<5x272xf32>
    %7 = tpu.matmul %6, %4, %cst_5 {dimension_numbers = #tpu.dot_dimension_numbers<[1], [0], [0], [1], [0, 0, 1, 1], [], []>} : vector<5x12xbf16>, vector<12x272xbf16>, vector<5x272xf32> -> vector<5x272xf32>
    %8 = arith.addf %3, %7 : vector<5x272xf32>
    %9 = vector.extract_strided_slice %2 {offsets = [0, 35], sizes = [12, 272], strides = [1, 1]} : vector<12x408xbf16> to vector<12x272xbf16>
    %c1 = arith.constant 1 : index
    %c0_6 = arith.constant 0 : index
    %c0_7 = arith.constant 0 : index
    %10 = vector.load %arg2[%c1, %c0_6, %c0_7] : memref<9x5x12xbf16, #tpu.memory_space<vmem>>, vector<1x5x12xbf16>
    %11 = vector.shape_cast %10 : vector<1x5x12xbf16> to vector<5x12xbf16>
    %cst_8 = arith.constant dense<0.000000e+00> : vector<5x272xf32>
    %12 = tpu.matmul %11, %9, %cst_8 {dimension_numbers = #tpu.dot_dimension_numbers<[1], [0], [0], [1], [0, 0, 1, 1], [], []>} : vector<5x12xbf16>, vector<12x272xbf16>, vector<5x272xf32> -> vector<5x272xf32>
    %13 = arith.addf %8, %12 : vector<5x272xf32>
    %14 = vector.extract_strided_slice %2 {offsets = [0, 36], sizes = [12, 272], strides = [1, 1]} : vector<12x408xbf16> to vector<12x272xbf16>
    %c2 = arith.constant 2 : index
    %c0_9 = arith.constant 0 : index
    %c0_10 = arith.constant 0 : index
    %15 = vector.load %arg2[%c2, %c0_9, %c0_10] : memref<9x5x12xbf16, #tpu.memory_space<vmem>>, vector<1x5x12xbf16>
    %16 = vector.shape_cast %15 : vector<1x5x12xbf16> to vector<5x12xbf16>
    %cst_11 = arith.constant dense<0.000000e+00> : vector<5x272xf32>
    %17 = tpu.matmul %16, %14, %cst_11 {dimension_numbers = #tpu.dot_dimension_numbers<[1], [0], [0], [1], [0, 0, 1, 1], [], []>} : vector<5x12xbf16>, vector<12x272xbf16>, vector<5x272xf32> -> vector<5x272xf32>
    %18 = arith.addf %13, %17 : vector<5x272xf32>
    %19 = vector.extract_strided_slice %2 {offsets = [0, 68], sizes = [12, 272], strides = [1, 1]} : vector<12x408xbf16> to vector<12x272xbf16>
    %c3 = arith.constant 3 : index
    %c0_12 = arith.constant 0 : index
    %c0_13 = arith.constant 0 : index
    %20 = vector.load %arg2[%c3, %c0_12, %c0_13] : memref<9x5x12xbf16, #tpu.memory_space<vmem>>, vector<1x5x12xbf16>
    %21 = vector.shape_cast %20 : vector<1x5x12xbf16> to vector<5x12xbf16>
    %cst_14 = arith.constant dense<0.000000e+00> : vector<5x272xf32>
    %22 = tpu.matmul %21, %19, %cst_14 {dimension_numbers = #tpu.dot_dimension_numbers<[1], [0], [0], [1], [0, 0, 1, 1], [], []>} : vector<5x12xbf16>, vector<12x272xbf16>, vector<5x272xf32> -> vector<5x272xf32>
    %23 = arith.addf %18, %22 : vector<5x272xf32>
    %24 = vector.extract_strided_slice %2 {offsets = [0, 69], sizes = [12, 272], strides = [1, 1]} : vector<12x408xbf16> to vector<12x272xbf16>
    %c4 = arith.constant 4 : index
    %c0_15 = arith.constant 0 : index
    %c0_16 = arith.constant 0 : index
    %25 = vector.load %arg2[%c4, %c0_15, %c0_16] : memref<9x5x12xbf16, #tpu.memory_space<vmem>>, vector<1x5x12xbf16>
    %26 = vector.shape_cast %25 : vector<1x5x12xbf16> to vector<5x12xbf16>
    %cst_17 = arith.constant dense<0.000000e+00> : vector<5x272xf32>
    %27 = tpu.matmul %26, %24, %cst_17 {dimension_numbers = #tpu.dot_dimension_numbers<[1], [0], [0], [1], [0, 0, 1, 1], [], []>} : vector<5x12xbf16>, vector<12x272xbf16>, vector<5x272xf32> -> vector<5x272xf32>
    %28 = arith.addf %23, %27 : vector<5x272xf32>
    %29 = vector.extract_strided_slice %2 {offsets = [0, 70], sizes = [12, 272], strides = [1, 1]} : vector<12x408xbf16> to vector<12x272xbf16>
    %c5 = arith.constant 5 : index
    %c0_18 = arith.constant 0 : index
    %c0_19 = arith.constant 0 : index
    %30 = vector.load %arg2[%c5, %c0_18, %c0_19] : memref<9x5x12xbf16, #tpu.memory_space<vmem>>, vector<1x5x12xbf16>
    %31 = vector.shape_cast %30 : vector<1x5x12xbf16> to vector<5x12xbf16>
    %cst_20 = arith.constant dense<0.000000e+00> : vector<5x272xf32>
    %32 = tpu.matmul %31, %29, %cst_20 {dimension_numbers = #tpu.dot_dimension_numbers<[1], [0], [0], [1], [0, 0, 1, 1], [], []>} : vector<5x12xbf16>, vector<12x272xbf16>, vector<5x272xf32> -> vector<5x272xf32>
    %33 = arith.addf %28, %32 : vector<5x272xf32>
    %34 = vector.extract_strided_slice %2 {offsets = [0, 102], sizes = [12, 272], strides = [1, 1]} : vector<12x408xbf16> to vector<12x272xbf16>
    %c6 = arith.constant 6 : index
    %c0_21 = arith.constant 0 : index
    %c0_22 = arith.constant 0 : index
    %35 = vector.load %arg2[%c6, %c0_21, %c0_22] : memref<9x5x12xbf16, #tpu.memory_space<vmem>>, vector<1x5x12xbf16>
    %36 = vector.shape_cast %35 : vector<1x5x12xbf16> to vector<5x12xbf16>
    %cst_23 = arith.constant dense<0.000000e+00> : vector<5x272xf32>
    %37 = tpu.matmul %36, %34, %cst_23 {dimension_numbers = #tpu.dot_dimension_numbers<[1], [0], [0], [1], [0, 0, 1, 1], [], []>} : vector<5x12xbf16>, vector<12x272xbf16>, vector<5x272xf32> -> vector<5x272xf32>
    %38 = arith.addf %33, %37 : vector<5x272xf32>
    %39 = vector.extract_strided_slice %2 {offsets = [0, 103], sizes = [12, 272], strides = [1, 1]} : vector<12x408xbf16> to vector<12x272xbf16>
    %c7 = arith.constant 7 : index
    %c0_24 = arith.constant 0 : index
    %c0_25 = arith.constant 0 : index
    %40 = vector.load %arg2[%c7, %c0_24, %c0_25] : memref<9x5x12xbf16, #tpu.memory_space<vmem>>, vector<1x5x12xbf16>
    %41 = vector.shape_cast %40 : vector<1x5x12xbf16> to vector<5x12xbf16>
    %cst_26 = arith.constant dense<0.000000e+00> : vector<5x272xf32>
    %42 = tpu.matmul %41, %39, %cst_26 {dimension_numbers = #tpu.dot_dimension_numbers<[1], [0], [0], [1], [0, 0, 1, 1], [], []>} : vector<5x12xbf16>, vector<12x272xbf16>, vector<5x272xf32> -> vector<5x272xf32>
    %43 = arith.addf %38, %42 : vector<5x272xf32>
    %44 = vector.extract_strided_slice %2 {offsets = [0, 104], sizes = [12, 272], strides = [1, 1]} : vector<12x408xbf16> to vector<12x272xbf16>
    %c8 = arith.constant 8 : index
    %c0_27 = arith.constant 0 : index
    %c0_28 = arith.constant 0 : index
    %45 = vector.load %arg2[%c8, %c0_27, %c0_28] : memref<9x5x12xbf16, #tpu.memory_space<vmem>>, vector<1x5x12xbf16>
    %46 = vector.shape_cast %45 : vector<1x5x12xbf16> to vector<5x12xbf16>
    %cst_29 = arith.constant dense<0.000000e+00> : vector<5x272xf32>
    %47 = tpu.matmul %46, %44, %cst_29 {dimension_numbers = #tpu.dot_dimension_numbers<[1], [0], [0], [1], [0, 0, 1, 1], [], []>} : vector<5x12xbf16>, vector<12x272xbf16>, vector<5x272xf32> -> vector<5x272xf32>
    %48 = arith.addf %43, %47 : vector<5x272xf32>
    %c0_30 = arith.constant 0 : index
    %c0_31 = arith.constant 0 : index
    %c0_32 = arith.constant 0 : index
    %49 = vector.load %arg3[%c0_30, %c0_31, %c0_32] : memref<1x5x272xf32, #tpu.memory_space<vmem>>, vector<1x5x272xf32>
    %50 = vector.shape_cast %49 : vector<1x5x272xf32> to vector<5x272xf32>
    %51 = vector.shape_cast %48 : vector<5x272xf32> to vector<1x5x272xf32>
    tpu.vector_store %arg3[%c0_30, %c0_31, %c0_32], %51 {strides = array<i32>} : memref<1x5x272xf32, #tpu.memory_space<vmem>>, vector<1x5x272xf32>,
    return
  }
  func.func @transform_0(%arg0: i32) -> (i32, i32, i32) {
    %c0_i32 = arith.constant 0 : i32
    %c0_i32_0 = arith.constant 0 : i32
    %c0_i32_1 = arith.constant 0 : i32
    return %arg0, %c0_i32, %c0_i32_0 : i32, i32, i32
  }
  func.func @transform_1(%arg0: i32) -> (i32, i32, i32) {
    %c0_i32 = arith.constant 0 : i32
    %c0_i32_0 = arith.constant 0 : i32
    %c0_i32_1 = arith.constant 0 : i32
    %c0_i32_2 = arith.constant 0 : i32
    return %c0_i32, %c0_i32_0, %c0_i32_1 : i32, i32, i32
  }
  func.func @transform_2(%arg0: i32) -> (i32, i32, i32) {
    %c0_i32 = arith.constant 0 : i32
    %c0_i32_0 = arith.constant 0 : i32
    %c0_i32_1 = arith.constant 0 : i32
    return %arg0, %c0_i32, %c0_i32_0 : i32, i32, i32
  }
}

module attributes {stable_mosaic.version = 11 : i64} {
  func.func @_conv3x3_kernel(%arg0: i32, %arg1: memref<1x6x408xf32, #tpu.memory_space<vmem>>, %arg2: memref<9x3x6xbf16, #tpu.memory_space<vmem>>, %arg3: memref<1x3x272xf32, #tpu.memory_space<vmem>>) attributes {dimension_semantics = [#tpu.dimension_semantics<parallel>], iteration_bounds = array<i64: 2>, scalar_prefetch = 0 : i64, scratch_operands = 0 : i64, tpu.core_type = #tpu.core_type<tc>, window_params = [{transform_indices = @transform_0, window_bounds = array<i64: 1, 6, 408>}, {pipeline_mode = #tpu.pipeline_mode<synchronous>, transform_indices = @transform_1, window_bounds = array<i64: 9, 3, 6>}, {transform_indices = @transform_2, window_bounds = array<i64: 1, 3, 272>}]} {
    %c0 = arith.constant 0 : index
    %c0_0 = arith.constant 0 : index
    %c0_1 = arith.constant 0 : index
    %0 = vector.load %arg1[%c0, %c0_0, %c0_1] : memref<1x6x408xf32, #tpu.memory_space<vmem>>, vector<1x6x408xf32>
    %1 = vector.shape_cast %0 : vector<1x6x408xf32> to vector<6x408xf32>
    %2 = arith.truncf %1 : vector<6x408xf32> to vector<6x408xbf16>
    %cst = arith.constant 0.000000e+00 : f32
    %3 = vector.broadcast %cst : f32 to vector<3x272xf32>
    %4 = vector.extract_strided_slice %2 {offsets = [0, 34], sizes = [6, 272], strides = [1, 1]} : vector<6x408xbf16> to vector<6x272xbf16>
    %c0_2 = arith.constant 0 : index
    %c0_3 = arith.constant 0 : index
    %c0_4 = arith.constant 0 : index
    %5 = vector.load %arg2[%c0_2, %c0_3, %c0_4] : memref<9x3x6xbf16, #tpu.memory_space<vmem>>, vector<1x3x6xbf16>
    %6 = vector.shape_cast %5 : vector<1x3x6xbf16> to vector<3x6xbf16>
    %cst_5 = arith.constant dense<0.000000e+00> : vector<3x272xf32>
    %7 = tpu.matmul %6, %4, %cst_5 {dimension_numbers = #tpu.dot_dimension_numbers<[1], [0], [0], [1], [0, 0, 1, 1], [], []>} : vector<3x6xbf16>, vector<6x272xbf16>, vector<3x272xf32> -> vector<3x272xf32>
    %8 = arith.addf %3, %7 : vector<3x272xf32>
    %9 = vector.extract_strided_slice %2 {offsets = [0, 35], sizes = [6, 272], strides = [1, 1]} : vector<6x408xbf16> to vector<6x272xbf16>
    %c1 = arith.constant 1 : index
    %c0_6 = arith.constant 0 : index
    %c0_7 = arith.constant 0 : index
    %10 = vector.load %arg2[%c1, %c0_6, %c0_7] : memref<9x3x6xbf16, #tpu.memory_space<vmem>>, vector<1x3x6xbf16>
    %11 = vector.shape_cast %10 : vector<1x3x6xbf16> to vector<3x6xbf16>
    %cst_8 = arith.constant dense<0.000000e+00> : vector<3x272xf32>
    %12 = tpu.matmul %11, %9, %cst_8 {dimension_numbers = #tpu.dot_dimension_numbers<[1], [0], [0], [1], [0, 0, 1, 1], [], []>} : vector<3x6xbf16>, vector<6x272xbf16>, vector<3x272xf32> -> vector<3x272xf32>
    %13 = arith.addf %8, %12 : vector<3x272xf32>
    %14 = vector.extract_strided_slice %2 {offsets = [0, 36], sizes = [6, 272], strides = [1, 1]} : vector<6x408xbf16> to vector<6x272xbf16>
    %c2 = arith.constant 2 : index
    %c0_9 = arith.constant 0 : index
    %c0_10 = arith.constant 0 : index
    %15 = vector.load %arg2[%c2, %c0_9, %c0_10] : memref<9x3x6xbf16, #tpu.memory_space<vmem>>, vector<1x3x6xbf16>
    %16 = vector.shape_cast %15 : vector<1x3x6xbf16> to vector<3x6xbf16>
    %cst_11 = arith.constant dense<0.000000e+00> : vector<3x272xf32>
    %17 = tpu.matmul %16, %14, %cst_11 {dimension_numbers = #tpu.dot_dimension_numbers<[1], [0], [0], [1], [0, 0, 1, 1], [], []>} : vector<3x6xbf16>, vector<6x272xbf16>, vector<3x272xf32> -> vector<3x272xf32>
    %18 = arith.addf %13, %17 : vector<3x272xf32>
    %19 = vector.extract_strided_slice %2 {offsets = [0, 68], sizes = [6, 272], strides = [1, 1]} : vector<6x408xbf16> to vector<6x272xbf16>
    %c3 = arith.constant 3 : index
    %c0_12 = arith.constant 0 : index
    %c0_13 = arith.constant 0 : index
    %20 = vector.load %arg2[%c3, %c0_12, %c0_13] : memref<9x3x6xbf16, #tpu.memory_space<vmem>>, vector<1x3x6xbf16>
    %21 = vector.shape_cast %20 : vector<1x3x6xbf16> to vector<3x6xbf16>
    %cst_14 = arith.constant dense<0.000000e+00> : vector<3x272xf32>
    %22 = tpu.matmul %21, %19, %cst_14 {dimension_numbers = #tpu.dot_dimension_numbers<[1], [0], [0], [1], [0, 0, 1, 1], [], []>} : vector<3x6xbf16>, vector<6x272xbf16>, vector<3x272xf32> -> vector<3x272xf32>
    %23 = arith.addf %18, %22 : vector<3x272xf32>
    %24 = vector.extract_strided_slice %2 {offsets = [0, 69], sizes = [6, 272], strides = [1, 1]} : vector<6x408xbf16> to vector<6x272xbf16>
    %c4 = arith.constant 4 : index
    %c0_15 = arith.constant 0 : index
    %c0_16 = arith.constant 0 : index
    %25 = vector.load %arg2[%c4, %c0_15, %c0_16] : memref<9x3x6xbf16, #tpu.memory_space<vmem>>, vector<1x3x6xbf16>
    %26 = vector.shape_cast %25 : vector<1x3x6xbf16> to vector<3x6xbf16>
    %cst_17 = arith.constant dense<0.000000e+00> : vector<3x272xf32>
    %27 = tpu.matmul %26, %24, %cst_17 {dimension_numbers = #tpu.dot_dimension_numbers<[1], [0], [0], [1], [0, 0, 1, 1], [], []>} : vector<3x6xbf16>, vector<6x272xbf16>, vector<3x272xf32> -> vector<3x272xf32>
    %28 = arith.addf %23, %27 : vector<3x272xf32>
    %29 = vector.extract_strided_slice %2 {offsets = [0, 70], sizes = [6, 272], strides = [1, 1]} : vector<6x408xbf16> to vector<6x272xbf16>
    %c5 = arith.constant 5 : index
    %c0_18 = arith.constant 0 : index
    %c0_19 = arith.constant 0 : index
    %30 = vector.load %arg2[%c5, %c0_18, %c0_19] : memref<9x3x6xbf16, #tpu.memory_space<vmem>>, vector<1x3x6xbf16>
    %31 = vector.shape_cast %30 : vector<1x3x6xbf16> to vector<3x6xbf16>
    %cst_20 = arith.constant dense<0.000000e+00> : vector<3x272xf32>
    %32 = tpu.matmul %31, %29, %cst_20 {dimension_numbers = #tpu.dot_dimension_numbers<[1], [0], [0], [1], [0, 0, 1, 1], [], []>} : vector<3x6xbf16>, vector<6x272xbf16>, vector<3x272xf32> -> vector<3x272xf32>
    %33 = arith.addf %28, %32 : vector<3x272xf32>
    %34 = vector.extract_strided_slice %2 {offsets = [0, 102], sizes = [6, 272], strides = [1, 1]} : vector<6x408xbf16> to vector<6x272xbf16>
    %c6 = arith.constant 6 : index
    %c0_21 = arith.constant 0 : index
    %c0_22 = arith.constant 0 : index
    %35 = vector.load %arg2[%c6, %c0_21, %c0_22] : memref<9x3x6xbf16, #tpu.memory_space<vmem>>, vector<1x3x6xbf16>
    %36 = vector.shape_cast %35 : vector<1x3x6xbf16> to vector<3x6xbf16>
    %cst_23 = arith.constant dense<0.000000e+00> : vector<3x272xf32>
    %37 = tpu.matmul %36, %34, %cst_23 {dimension_numbers = #tpu.dot_dimension_numbers<[1], [0], [0], [1], [0, 0, 1, 1], [], []>} : vector<3x6xbf16>, vector<6x272xbf16>, vector<3x272xf32> -> vector<3x272xf32>
    %38 = arith.addf %33, %37 : vector<3x272xf32>
    %39 = vector.extract_strided_slice %2 {offsets = [0, 103], sizes = [6, 272], strides = [1, 1]} : vector<6x408xbf16> to vector<6x272xbf16>
    %c7 = arith.constant 7 : index
    %c0_24 = arith.constant 0 : index
    %c0_25 = arith.constant 0 : index
    %40 = vector.load %arg2[%c7, %c0_24, %c0_25] : memref<9x3x6xbf16, #tpu.memory_space<vmem>>, vector<1x3x6xbf16>
    %41 = vector.shape_cast %40 : vector<1x3x6xbf16> to vector<3x6xbf16>
    %cst_26 = arith.constant dense<0.000000e+00> : vector<3x272xf32>
    %42 = tpu.matmul %41, %39, %cst_26 {dimension_numbers = #tpu.dot_dimension_numbers<[1], [0], [0], [1], [0, 0, 1, 1], [], []>} : vector<3x6xbf16>, vector<6x272xbf16>, vector<3x272xf32> -> vector<3x272xf32>
    %43 = arith.addf %38, %42 : vector<3x272xf32>
    %44 = vector.extract_strided_slice %2 {offsets = [0, 104], sizes = [6, 272], strides = [1, 1]} : vector<6x408xbf16> to vector<6x272xbf16>
    %c8 = arith.constant 8 : index
    %c0_27 = arith.constant 0 : index
    %c0_28 = arith.constant 0 : index
    %45 = vector.load %arg2[%c8, %c0_27, %c0_28] : memref<9x3x6xbf16, #tpu.memory_space<vmem>>, vector<1x3x6xbf16>
    %46 = vector.shape_cast %45 : vector<1x3x6xbf16> to vector<3x6xbf16>
    %cst_29 = arith.constant dense<0.000000e+00> : vector<3x272xf32>
    %47 = tpu.matmul %46, %44, %cst_29 {dimension_numbers = #tpu.dot_dimension_numbers<[1], [0], [0], [1], [0, 0, 1, 1], [], []>} : vector<3x6xbf16>, vector<6x272xbf16>, vector<3x272xf32> -> vector<3x272xf32>
    %48 = arith.addf %43, %47 : vector<3x272xf32>
    %c0_30 = arith.constant 0 : index
    %c0_31 = arith.constant 0 : index
    %c0_32 = arith.constant 0 : index
    %49 = vector.load %arg3[%c0_30, %c0_31, %c0_32] : memref<1x3x272xf32, #tpu.memory_space<vmem>>, vector<1x3x272xf32>
    %50 = vector.shape_cast %49 : vector<1x3x272xf32> to vector<3x272xf32>
    %51 = vector.shape_cast %48 : vector<3x272xf32> to vector<1x3x272xf32>
    tpu.vector_store %arg3[%c0_30, %c0_31, %c0_32], %51 {strides = array<i32>} : memref<1x3x272xf32, #tpu.memory_space<vmem>>, vector<1x3x272xf32>,
    return
  }
  func.func @transform_0(%arg0: i32) -> (i32, i32, i32) {
    %c0_i32 = arith.constant 0 : i32
    %c0_i32_0 = arith.constant 0 : i32
    %c0_i32_1 = arith.constant 0 : i32
    return %arg0, %c0_i32, %c0_i32_0 : i32, i32, i32
  }
  func.func @transform_1(%arg0: i32) -> (i32, i32, i32) {
    %c0_i32 = arith.constant 0 : i32
    %c0_i32_0 = arith.constant 0 : i32
    %c0_i32_1 = arith.constant 0 : i32
    %c0_i32_2 = arith.constant 0 : i32
    return %c0_i32, %c0_i32_0, %c0_i32_1 : i32, i32, i32
  }
  func.func @transform_2(%arg0: i32) -> (i32, i32, i32) {
    %c0_i32 = arith.constant 0 : i32
    %c0_i32_0 = arith.constant 0 : i32
    %c0_i32_1 = arith.constant 0 : i32
    return %arg0, %c0_i32, %c0_i32_0 : i32, i32, i32
  }
}

module attributes {stable_mosaic.version = 11 : i64} {
  func.func @_attn_kernel(%arg0: i32, %arg1: i32, %arg2: memref<1x3x8x34xf32, #tpu.memory_space<vmem>>, %arg3: memref<1x4x8x8xf32, #tpu.memory_space<vmem>>, %arg4: memref<1x1x8x32xf32, #tpu.memory_space<vmem>>, %arg5: memref<1x4x8x8xf32, #tpu.memory_space<vmem>>) attributes {dimension_semantics = [#tpu.dimension_semantics<parallel>, #tpu.dimension_semantics<parallel>], iteration_bounds = array<i64: 2, 1>, scalar_prefetch = 0 : i64, scratch_operands = 0 : i64, tpu.core_type = #tpu.core_type<tc>, window_params = [{transform_indices = @transform_0, window_bounds = array<i64: 1, 3, 8, 34>}, {transform_indices = @transform_1, window_bounds = array<i64: 1, 4, 8, 8>}, {transform_indices = @transform_2, window_bounds = array<i64: 1, 1, 8, 32>}, {transform_indices = @transform_3, window_bounds = array<i64: 1, 4, 8, 8>}]} {
    %c0 = arith.constant 0 : index
    %c0_0 = arith.constant 0 : index
    %c0_1 = arith.constant 0 : index
    %c0_2 = arith.constant 0 : index
    %0 = vector.load %arg2[%c0, %c0_0, %c0_1, %c0_2] : memref<1x3x8x34xf32, #tpu.memory_space<vmem>>, vector<1x1x8x34xf32>
    %1 = vector.shape_cast %0 : vector<1x1x8x34xf32> to vector<8x34xf32>
    %2 = arith.truncf %1 : vector<8x34xf32> to vector<8x34xbf16>
    %c0_3 = arith.constant 0 : index
    %c1 = arith.constant 1 : index
    %c0_4 = arith.constant 0 : index
    %c0_5 = arith.constant 0 : index
    %3 = vector.load %arg2[%c0_3, %c1, %c0_4, %c0_5] : memref<1x3x8x34xf32, #tpu.memory_space<vmem>>, vector<1x1x8x34xf32>
    %4 = vector.shape_cast %3 : vector<1x1x8x34xf32> to vector<8x34xf32>
    %5 = arith.truncf %4 : vector<8x34xf32> to vector<8x34xbf16>
    %c0_6 = arith.constant 0 : index
    %c2 = arith.constant 2 : index
    %c0_7 = arith.constant 0 : index
    %c0_8 = arith.constant 0 : index
    %6 = vector.load %arg2[%c0_6, %c2, %c0_7, %c0_8] : memref<1x3x8x34xf32, #tpu.memory_space<vmem>>, vector<1x1x8x34xf32>
    %7 = vector.shape_cast %6 : vector<1x1x8x34xf32> to vector<8x34xf32>
    %8 = arith.truncf %7 : vector<8x34xf32> to vector<8x34xbf16>
    %9 = vector.extract_strided_slice %2 {offsets = [0, 0], sizes = [8, 8], strides = [1, 1]} : vector<8x34xbf16> to vector<8x8xbf16>
    %10 = vector.extract_strided_slice %5 {offsets = [0, 0], sizes = [8, 8], strides = [1, 1]} : vector<8x34xbf16> to vector<8x8xbf16>
    %cst = arith.constant dense<0.000000e+00> : vector<8x8xf32>
    %11 = tpu.matmul %9, %10, %cst {dimension_numbers = #tpu.dot_dimension_numbers<[1], [1], [0], [0], [0, 0, 1, 0], [], []>} : vector<8x8xbf16>, vector<8x8xbf16>, vector<8x8xf32> -> vector<8x8xf32>
    %cst_9 = arith.constant 0.353553385 : f32
    %12 = vector.broadcast %cst_9 : f32 to vector<8x8xf32>
    %13 = arith.mulf %11, %12 : vector<8x8xf32>
    %c0_10 = arith.constant 0 : index
    %c0_11 = arith.constant 0 : index
    %c0_12 = arith.constant 0 : index
    %c0_13 = arith.constant 0 : index
    %14 = vector.load %arg3[%c0_10, %c0_11, %c0_12, %c0_13] : memref<1x4x8x8xf32, #tpu.memory_space<vmem>>, vector<1x1x8x8xf32>
    %15 = vector.shape_cast %14 : vector<1x1x8x8xf32> to vector<8x8xf32>
    %16 = arith.addf %13, %15 : vector<8x8xf32>
    %c0_14 = arith.constant 0 : index
    %c0_15 = arith.constant 0 : index
    %c0_16 = arith.constant 0 : index
    %c0_17 = arith.constant 0 : index
    %17 = vector.load %arg5[%c0_14, %c0_15, %c0_16, %c0_17] : memref<1x4x8x8xf32, #tpu.memory_space<vmem>>, vector<1x1x8x8xf32>
    %18 = vector.shape_cast %17 : vector<1x1x8x8xf32> to vector<8x8xf32>
    %19 = vector.shape_cast %16 : vector<8x8xf32> to vector<1x1x8x8xf32>
    tpu.vector_store %arg5[%c0_14, %c0_15, %c0_16, %c0_17], %19 {strides = array<i32>} : memref<1x4x8x8xf32, #tpu.memory_space<vmem>>, vector<1x1x8x8xf32>,
    %cst_18 = arith.constant dense<0xFF800000> : vector<8xf32>
    %20 = vector.multi_reduction <maximumf>, %16, %cst_18 [1] : vector<8x8xf32> to vector<8xf32>
    %21 = vector.shape_cast %20 : vector<8xf32> to vector<8x1xf32>
    %22 = vector.broadcast %21 : vector<8x1xf32> to vector<8x8xf32>
    %23 = arith.subf %16, %22 : vector<8x8xf32>
    %24 = math.exp %23 : vector<8x8xf32>
    %cst_19 = arith.constant dense<0.000000e+00> : vector<8xf32>
    %25 = vector.multi_reduction <add>, %24, %cst_19 [1] : vector<8x8xf32> to vector<8xf32>
    %26 = vector.shape_cast %25 : vector<8xf32> to vector<8x1xf32>
    %27 = tpu.reciprocal %26 {approx = true} : vector<8x1xf32> -> vector<8x1xf32>
    %28 = vector.broadcast %27 : vector<8x1xf32> to vector<8x8xf32>
    %29 = arith.mulf %24, %28 : vector<8x8xf32>
    %30 = arith.truncf %29 : vector<8x8xf32> to vector<8x8xbf16>
    %31 = vector.extract_strided_slice %8 {offsets = [0, 0], sizes = [8, 8], strides = [1, 1]} : vector<8x34xbf16> to vector<8x8xbf16>
    %cst_20 = arith.constant dense<0.000000e+00> : vector<8x8xf32>
    %32 = tpu.matmul %30, %31, %cst_20 {dimension_numbers = #tpu.dot_dimension_numbers<[1], [0], [0], [1], [0, 0, 1, 1], [], []>} : vector<8x8xbf16>, vector<8x8xbf16>, vector<8x8xf32> -> vector<8x8xf32>
    %c0_21 = arith.constant 0 : index
    %c0_22 = arith.constant 0 : index
    %c0_23 = arith.constant 0 : index
    %c0_24 = arith.constant 0 : index
    %33 = vector.load %arg4[%c0_21, %c0_22, %c0_23, %c0_24] : memref<1x1x8x32xf32, #tpu.memory_space<vmem>>, vector<1x1x8x8xf32>
    %34 = vector.shape_cast %33 : vector<1x1x8x8xf32> to vector<8x8xf32>
    %35 = vector.shape_cast %32 : vector<8x8xf32> to vector<1x1x8x8xf32>
    tpu.vector_store %arg4[%c0_21, %c0_22, %c0_23, %c0_24], %35 {strides = array<i32>} : memref<1x1x8x32xf32, #tpu.memory_space<vmem>>, vector<1x1x8x8xf32>,
    %36 = vector.extract_strided_slice %2 {offsets = [0, 8], sizes = [8, 8], strides = [1, 1]} : vector<8x34xbf16> to vector<8x8xbf16>
    %37 = vector.extract_strided_slice %5 {offsets = [0, 8], sizes = [8, 8], strides = [1, 1]} : vector<8x34xbf16> to vector<8x8xbf16>
    %cst_25 = arith.constant dense<0.000000e+00> : vector<8x8xf32>
    %38 = tpu.matmul %36, %37, %cst_25 {dimension_numbers = #tpu.dot_dimension_numbers<[1], [1], [0], [0], [0, 0, 1, 0], [], []>} : vector<8x8xbf16>, vector<8x8xbf16>, vector<8x8xf32> -> vector<8x8xf32>
    %cst_26 = arith.constant 0.353553385 : f32
    %39 = vector.broadcast %cst_26 : f32 to vector<8x8xf32>
    %40 = arith.mulf %38, %39 : vector<8x8xf32>
    %c0_27 = arith.constant 0 : index
    %c1_28 = arith.constant 1 : index
    %c0_29 = arith.constant 0 : index
    %c0_30 = arith.constant 0 : index
    %41 = vector.load %arg3[%c0_27, %c1_28, %c0_29, %c0_30] : memref<1x4x8x8xf32, #tpu.memory_space<vmem>>, vector<1x1x8x8xf32>
    %42 = vector.shape_cast %41 : vector<1x1x8x8xf32> to vector<8x8xf32>
    %43 = arith.addf %40, %42 : vector<8x8xf32>
    %c0_31 = arith.constant 0 : index
    %c1_32 = arith.constant 1 : index
    %c0_33 = arith.constant 0 : index
    %c0_34 = arith.constant 0 : index
    %44 = vector.load %arg5[%c0_31, %c1_32, %c0_33, %c0_34] : memref<1x4x8x8xf32, #tpu.memory_space<vmem>>, vector<1x1x8x8xf32>
    %45 = vector.shape_cast %44 : vector<1x1x8x8xf32> to vector<8x8xf32>
    %46 = vector.shape_cast %43 : vector<8x8xf32> to vector<1x1x8x8xf32>
    tpu.vector_store %arg5[%c0_31, %c1_32, %c0_33, %c0_34], %46 {strides = array<i32>} : memref<1x4x8x8xf32, #tpu.memory_space<vmem>>, vector<1x1x8x8xf32>,
    %cst_35 = arith.constant dense<0xFF800000> : vector<8xf32>
    %47 = vector.multi_reduction <maximumf>, %43, %cst_35 [1] : vector<8x8xf32> to vector<8xf32>
    %48 = vector.shape_cast %47 : vector<8xf32> to vector<8x1xf32>
    %49 = vector.broadcast %48 : vector<8x1xf32> to vector<8x8xf32>
    %50 = arith.subf %43, %49 : vector<8x8xf32>
    %51 = math.exp %50 : vector<8x8xf32>
    %cst_36 = arith.constant dense<0.000000e+00> : vector<8xf32>
    %52 = vector.multi_reduction <add>, %51, %cst_36 [1] : vector<8x8xf32> to vector<8xf32>
    %53 = vector.shape_cast %52 : vector<8xf32> to vector<8x1xf32>
    %54 = tpu.reciprocal %53 {approx = true} : vector<8x1xf32> -> vector<8x1xf32>
    %55 = vector.broadcast %54 : vector<8x1xf32> to vector<8x8xf32>
    %56 = arith.mulf %51, %55 : vector<8x8xf32>
    %57 = arith.truncf %56 : vector<8x8xf32> to vector<8x8xbf16>
    %58 = vector.extract_strided_slice %8 {offsets = [0, 8], sizes = [8, 8], strides = [1, 1]} : vector<8x34xbf16> to vector<8x8xbf16>
    %cst_37 = arith.constant dense<0.000000e+00> : vector<8x8xf32>
    %59 = tpu.matmul %57, %58, %cst_37 {dimension_numbers = #tpu.dot_dimension_numbers<[1], [0], [0], [1], [0, 0, 1, 1], [], []>} : vector<8x8xbf16>, vector<8x8xbf16>, vector<8x8xf32> -> vector<8x8xf32>
    %c0_38 = arith.constant 0 : index
    %c0_39 = arith.constant 0 : index
    %c0_40 = arith.constant 0 : index
    %c8 = arith.constant 8 : index
    %60 = vector.load %arg4[%c0_38, %c0_39, %c0_40, %c8] : memref<1x1x8x32xf32, #tpu.memory_space<vmem>>, vector<1x1x8x8xf32>
    %61 = vector.shape_cast %60 : vector<1x1x8x8xf32> to vector<8x8xf32>
    %62 = vector.shape_cast %59 : vector<8x8xf32> to vector<1x1x8x8xf32>
    tpu.vector_store %arg4[%c0_38, %c0_39, %c0_40, %c8], %62 {strides = array<i32>} : memref<1x1x8x32xf32, #tpu.memory_space<vmem>>, vector<1x1x8x8xf32>,
    %63 = vector.extract_strided_slice %2 {offsets = [0, 16], sizes = [8, 8], strides = [1, 1]} : vector<8x34xbf16> to vector<8x8xbf16>
    %64 = vector.extract_strided_slice %5 {offsets = [0, 16], sizes = [8, 8], strides = [1, 1]} : vector<8x34xbf16> to vector<8x8xbf16>
    %cst_41 = arith.constant dense<0.000000e+00> : vector<8x8xf32>
    %65 = tpu.matmul %63, %64, %cst_41 {dimension_numbers = #tpu.dot_dimension_numbers<[1], [1], [0], [0], [0, 0, 1, 0], [], []>} : vector<8x8xbf16>, vector<8x8xbf16>, vector<8x8xf32> -> vector<8x8xf32>
    %cst_42 = arith.constant 0.353553385 : f32
    %66 = vector.broadcast %cst_42 : f32 to vector<8x8xf32>
    %67 = arith.mulf %65, %66 : vector<8x8xf32>
    %c0_43 = arith.constant 0 : index
    %c2_44 = arith.constant 2 : index
    %c0_45 = arith.constant 0 : index
    %c0_46 = arith.constant 0 : index
    %68 = vector.load %arg3[%c0_43, %c2_44, %c0_45, %c0_46] : memref<1x4x8x8xf32, #tpu.memory_space<vmem>>, vector<1x1x8x8xf32>
    %69 = vector.shape_cast %68 : vector<1x1x8x8xf32> to vector<8x8xf32>
    %70 = arith.addf %67, %69 : vector<8x8xf32>
    %c0_47 = arith.constant 0 : index
    %c2_48 = arith.constant 2 : index
    %c0_49 = arith.constant 0 : index
    %c0_50 = arith.constant 0 : index
    %71 = vector.load %arg5[%c0_47, %c2_48, %c0_49, %c0_50] : memref<1x4x8x8xf32, #tpu.memory_space<vmem>>, vector<1x1x8x8xf32>
    %72 = vector.shape_cast %71 : vector<1x1x8x8xf32> to vector<8x8xf32>
    %73 = vector.shape_cast %70 : vector<8x8xf32> to vector<1x1x8x8xf32>
    tpu.vector_store %arg5[%c0_47, %c2_48, %c0_49, %c0_50], %73 {strides = array<i32>} : memref<1x4x8x8xf32, #tpu.memory_space<vmem>>, vector<1x1x8x8xf32>,
    %cst_51 = arith.constant dense<0xFF800000> : vector<8xf32>
    %74 = vector.multi_reduction <maximumf>, %70, %cst_51 [1] : vector<8x8xf32> to vector<8xf32>
    %75 = vector.shape_cast %74 : vector<8xf32> to vector<8x1xf32>
    %76 = vector.broadcast %75 : vector<8x1xf32> to vector<8x8xf32>
    %77 = arith.subf %70, %76 : vector<8x8xf32>
    %78 = math.exp %77 : vector<8x8xf32>
    %cst_52 = arith.constant dense<0.000000e+00> : vector<8xf32>
    %79 = vector.multi_reduction <add>, %78, %cst_52 [1] : vector<8x8xf32> to vector<8xf32>
    %80 = vector.shape_cast %79 : vector<8xf32> to vector<8x1xf32>
    %81 = tpu.reciprocal %80 {approx = true} : vector<8x1xf32> -> vector<8x1xf32>
    %82 = vector.broadcast %81 : vector<8x1xf32> to vector<8x8xf32>
    %83 = arith.mulf %78, %82 : vector<8x8xf32>
    %84 = arith.truncf %83 : vector<8x8xf32> to vector<8x8xbf16>
    %85 = vector.extract_strided_slice %8 {offsets = [0, 16], sizes = [8, 8], strides = [1, 1]} : vector<8x34xbf16> to vector<8x8xbf16>
    %cst_53 = arith.constant dense<0.000000e+00> : vector<8x8xf32>
    %86 = tpu.matmul %84, %85, %cst_53 {dimension_numbers = #tpu.dot_dimension_numbers<[1], [0], [0], [1], [0, 0, 1, 1], [], []>} : vector<8x8xbf16>, vector<8x8xbf16>, vector<8x8xf32> -> vector<8x8xf32>
    %c0_54 = arith.constant 0 : index
    %c0_55 = arith.constant 0 : index
    %c0_56 = arith.constant 0 : index
    %c16 = arith.constant 16 : index
    %87 = vector.load %arg4[%c0_54, %c0_55, %c0_56, %c16] : memref<1x1x8x32xf32, #tpu.memory_space<vmem>>, vector<1x1x8x8xf32>
    %88 = vector.shape_cast %87 : vector<1x1x8x8xf32> to vector<8x8xf32>
    %89 = vector.shape_cast %86 : vector<8x8xf32> to vector<1x1x8x8xf32>
    tpu.vector_store %arg4[%c0_54, %c0_55, %c0_56, %c16], %89 {strides = array<i32>} : memref<1x1x8x32xf32, #tpu.memory_space<vmem>>, vector<1x1x8x8xf32>,
    %90 = vector.extract_strided_slice %2 {offsets = [0, 24], sizes = [8, 8], strides = [1, 1]} : vector<8x34xbf16> to vector<8x8xbf16>
    %91 = vector.extract_strided_slice %5 {offsets = [0, 24], sizes = [8, 8], strides = [1, 1]} : vector<8x34xbf16> to vector<8x8xbf16>
    %cst_57 = arith.constant dense<0.000000e+00> : vector<8x8xf32>
    %92 = tpu.matmul %90, %91, %cst_57 {dimension_numbers = #tpu.dot_dimension_numbers<[1], [1], [0], [0], [0, 0, 1, 0], [], []>} : vector<8x8xbf16>, vector<8x8xbf16>, vector<8x8xf32> -> vector<8x8xf32>
    %cst_58 = arith.constant 0.353553385 : f32
    %93 = vector.broadcast %cst_58 : f32 to vector<8x8xf32>
    %94 = arith.mulf %92, %93 : vector<8x8xf32>
    %c0_59 = arith.constant 0 : index
    %c3 = arith.constant 3 : index
    %c0_60 = arith.constant 0 : index
    %c0_61 = arith.constant 0 : index
    %95 = vector.load %arg3[%c0_59, %c3, %c0_60, %c0_61] : memref<1x4x8x8xf32, #tpu.memory_space<vmem>>, vector<1x1x8x8xf32>
    %96 = vector.shape_cast %95 : vector<1x1x8x8xf32> to vector<8x8xf32>
    %97 = arith.addf %94, %96 : vector<8x8xf32>
    %c0_62 = arith.constant 0 : index
    %c3_63 = arith.constant 3 : index
    %c0_64 = arith.constant 0 : index
    %c0_65 = arith.constant 0 : index
    %98 = vector.load %arg5[%c0_62, %c3_63, %c0_64, %c0_65] : memref<1x4x8x8xf32, #tpu.memory_space<vmem>>, vector<1x1x8x8xf32>
    %99 = vector.shape_cast %98 : vector<1x1x8x8xf32> to vector<8x8xf32>
    %100 = vector.shape_cast %97 : vector<8x8xf32> to vector<1x1x8x8xf32>
    tpu.vector_store %arg5[%c0_62, %c3_63, %c0_64, %c0_65], %100 {strides = array<i32>} : memref<1x4x8x8xf32, #tpu.memory_space<vmem>>, vector<1x1x8x8xf32>,
    %cst_66 = arith.constant dense<0xFF800000> : vector<8xf32>
    %101 = vector.multi_reduction <maximumf>, %97, %cst_66 [1] : vector<8x8xf32> to vector<8xf32>
    %102 = vector.shape_cast %101 : vector<8xf32> to vector<8x1xf32>
    %103 = vector.broadcast %102 : vector<8x1xf32> to vector<8x8xf32>
    %104 = arith.subf %97, %103 : vector<8x8xf32>
    %105 = math.exp %104 : vector<8x8xf32>
    %cst_67 = arith.constant dense<0.000000e+00> : vector<8xf32>
    %106 = vector.multi_reduction <add>, %105, %cst_67 [1] : vector<8x8xf32> to vector<8xf32>
    %107 = vector.shape_cast %106 : vector<8xf32> to vector<8x1xf32>
    %108 = tpu.reciprocal %107 {approx = true} : vector<8x1xf32> -> vector<8x1xf32>
    %109 = vector.broadcast %108 : vector<8x1xf32> to vector<8x8xf32>
    %110 = arith.mulf %105, %109 : vector<8x8xf32>
    %111 = arith.truncf %110 : vector<8x8xf32> to vector<8x8xbf16>
    %112 = vector.extract_strided_slice %8 {offsets = [0, 24], sizes = [8, 8], strides = [1, 1]} : vector<8x34xbf16> to vector<8x8xbf16>
    %cst_68 = arith.constant dense<0.000000e+00> : vector<8x8xf32>
    %113 = tpu.matmul %111, %112, %cst_68 {dimension_numbers = #tpu.dot_dimension_numbers<[1], [0], [0], [1], [0, 0, 1, 1], [], []>} : vector<8x8xbf16>, vector<8x8xbf16>, vector<8x8xf32> -> vector<8x8xf32>
    %c0_69 = arith.constant 0 : index
    %c0_70 = arith.constant 0 : index
    %c0_71 = arith.constant 0 : index
    %c24 = arith.constant 24 : index
    %114 = vector.load %arg4[%c0_69, %c0_70, %c0_71, %c24] : memref<1x1x8x32xf32, #tpu.memory_space<vmem>>, vector<1x1x8x8xf32>
    %115 = vector.shape_cast %114 : vector<1x1x8x8xf32> to vector<8x8xf32>
    %116 = vector.shape_cast %113 : vector<8x8xf32> to vector<1x1x8x8xf32>
    tpu.vector_store %arg4[%c0_69, %c0_70, %c0_71, %c24], %116 {strides = array<i32>} : memref<1x1x8x32xf32, #tpu.memory_space<vmem>>, vector<1x1x8x8xf32>,
    return
  }
  func.func @transform_0(%arg0: i32, %arg1: i32) -> (i32, i32, i32, i32) {
    %c0_i32 = arith.constant 0 : i32
    %c0_i32_0 = arith.constant 0 : i32
    %c0_i32_1 = arith.constant 0 : i32
    return %arg0, %arg1, %c0_i32, %c0_i32_0 : i32, i32, i32, i32
  }
  func.func @transform_1(%arg0: i32, %arg1: i32) -> (i32, i32, i32, i32) {
    %c1_i32 = arith.constant 1 : i32
    %0 = arith.muli %arg0, %c1_i32 : i32
    %1 = arith.addi %0, %arg1 : i32
    %c0_i32 = arith.constant 0 : i32
    %c0_i32_0 = arith.constant 0 : i32
    %c0_i32_1 = arith.constant 0 : i32
    %c0_i32_2 = arith.constant 0 : i32
    return %1, %c0_i32, %c0_i32_0, %c0_i32_1 : i32, i32, i32, i32
  }
  func.func @transform_2(%arg0: i32, %arg1: i32) -> (i32, i32, i32, i32) {
    %c0_i32 = arith.constant 0 : i32
    %c0_i32_0 = arith.constant 0 : i32
    %c0_i32_1 = arith.constant 0 : i32
    return %arg0, %arg1, %c0_i32, %c0_i32_0 : i32, i32, i32, i32
  }
  func.func @transform_3(%arg0: i32, %arg1: i32) -> (i32, i32, i32, i32) {
    %c1_i32 = arith.constant 1 : i32
    %0 = arith.muli %arg0, %c1_i32 : i32
    %1 = arith.addi %0, %arg1 : i32
    %c0_i32 = arith.constant 0 : i32
    %c0_i32_0 = arith.constant 0 : i32
    %c0_i32_1 = arith.constant 0 : i32
    %c0_i32_2 = arith.constant 0 : i32
    return %1, %c0_i32, %c0_i32_0, %c0_i32_1 : i32, i32, i32, i32
  }
}

module attributes {stable_mosaic.version = 11 : i64} {
  func.func @_conv3x3_kernel(%arg0: i32, %arg1: memref<1x7x408xf32, #tpu.memory_space<vmem>>, %arg2: memref<9x12x7xbf16, #tpu.memory_space<vmem>>, %arg3: memref<1x12x272xf32, #tpu.memory_space<vmem>>) attributes {dimension_semantics = [#tpu.dimension_semantics<parallel>], iteration_bounds = array<i64: 2>, scalar_prefetch = 0 : i64, scratch_operands = 0 : i64, tpu.core_type = #tpu.core_type<tc>, window_params = [{transform_indices = @transform_0, window_bounds = array<i64: 1, 7, 408>}, {pipeline_mode = #tpu.pipeline_mode<synchronous>, transform_indices = @transform_1, window_bounds = array<i64: 9, 12, 7>}, {transform_indices = @transform_2, window_bounds = array<i64: 1, 12, 272>}]} {
    %c0 = arith.constant 0 : index
    %c0_0 = arith.constant 0 : index
    %c0_1 = arith.constant 0 : index
    %0 = vector.load %arg1[%c0, %c0_0, %c0_1] : memref<1x7x408xf32, #tpu.memory_space<vmem>>, vector<1x7x408xf32>
    %1 = vector.shape_cast %0 : vector<1x7x408xf32> to vector<7x408xf32>
    %2 = arith.truncf %1 : vector<7x408xf32> to vector<7x408xbf16>
    %cst = arith.constant 0.000000e+00 : f32
    %3 = vector.broadcast %cst : f32 to vector<12x272xf32>
    %4 = vector.extract_strided_slice %2 {offsets = [0, 34], sizes = [7, 272], strides = [1, 1]} : vector<7x408xbf16> to vector<7x272xbf16>
    %c0_2 = arith.constant 0 : index
    %c0_3 = arith.constant 0 : index
    %c0_4 = arith.constant 0 : index
    %5 = vector.load %arg2[%c0_2, %c0_3, %c0_4] : memref<9x12x7xbf16, #tpu.memory_space<vmem>>, vector<1x12x7xbf16>
    %6 = vector.shape_cast %5 : vector<1x12x7xbf16> to vector<12x7xbf16>
    %cst_5 = arith.constant dense<0.000000e+00> : vector<12x272xf32>
    %7 = tpu.matmul %6, %4, %cst_5 {dimension_numbers = #tpu.dot_dimension_numbers<[1], [0], [0], [1], [0, 0, 1, 1], [], []>} : vector<12x7xbf16>, vector<7x272xbf16>, vector<12x272xf32> -> vector<12x272xf32>
    %8 = arith.addf %3, %7 : vector<12x272xf32>
    %9 = vector.extract_strided_slice %2 {offsets = [0, 35], sizes = [7, 272], strides = [1, 1]} : vector<7x408xbf16> to vector<7x272xbf16>
    %c1 = arith.constant 1 : index
    %c0_6 = arith.constant 0 : index
    %c0_7 = arith.constant 0 : index
    %10 = vector.load %arg2[%c1, %c0_6, %c0_7] : memref<9x12x7xbf16, #tpu.memory_space<vmem>>, vector<1x12x7xbf16>
    %11 = vector.shape_cast %10 : vector<1x12x7xbf16> to vector<12x7xbf16>
    %cst_8 = arith.constant dense<0.000000e+00> : vector<12x272xf32>
    %12 = tpu.matmul %11, %9, %cst_8 {dimension_numbers = #tpu.dot_dimension_numbers<[1], [0], [0], [1], [0, 0, 1, 1], [], []>} : vector<12x7xbf16>, vector<7x272xbf16>, vector<12x272xf32> -> vector<12x272xf32>
    %13 = arith.addf %8, %12 : vector<12x272xf32>
    %14 = vector.extract_strided_slice %2 {offsets = [0, 36], sizes = [7, 272], strides = [1, 1]} : vector<7x408xbf16> to vector<7x272xbf16>
    %c2 = arith.constant 2 : index
    %c0_9 = arith.constant 0 : index
    %c0_10 = arith.constant 0 : index
    %15 = vector.load %arg2[%c2, %c0_9, %c0_10] : memref<9x12x7xbf16, #tpu.memory_space<vmem>>, vector<1x12x7xbf16>
    %16 = vector.shape_cast %15 : vector<1x12x7xbf16> to vector<12x7xbf16>
    %cst_11 = arith.constant dense<0.000000e+00> : vector<12x272xf32>
    %17 = tpu.matmul %16, %14, %cst_11 {dimension_numbers = #tpu.dot_dimension_numbers<[1], [0], [0], [1], [0, 0, 1, 1], [], []>} : vector<12x7xbf16>, vector<7x272xbf16>, vector<12x272xf32> -> vector<12x272xf32>
    %18 = arith.addf %13, %17 : vector<12x272xf32>
    %19 = vector.extract_strided_slice %2 {offsets = [0, 68], sizes = [7, 272], strides = [1, 1]} : vector<7x408xbf16> to vector<7x272xbf16>
    %c3 = arith.constant 3 : index
    %c0_12 = arith.constant 0 : index
    %c0_13 = arith.constant 0 : index
    %20 = vector.load %arg2[%c3, %c0_12, %c0_13] : memref<9x12x7xbf16, #tpu.memory_space<vmem>>, vector<1x12x7xbf16>
    %21 = vector.shape_cast %20 : vector<1x12x7xbf16> to vector<12x7xbf16>
    %cst_14 = arith.constant dense<0.000000e+00> : vector<12x272xf32>
    %22 = tpu.matmul %21, %19, %cst_14 {dimension_numbers = #tpu.dot_dimension_numbers<[1], [0], [0], [1], [0, 0, 1, 1], [], []>} : vector<12x7xbf16>, vector<7x272xbf16>, vector<12x272xf32> -> vector<12x272xf32>
    %23 = arith.addf %18, %22 : vector<12x272xf32>
    %24 = vector.extract_strided_slice %2 {offsets = [0, 69], sizes = [7, 272], strides = [1, 1]} : vector<7x408xbf16> to vector<7x272xbf16>
    %c4 = arith.constant 4 : index
    %c0_15 = arith.constant 0 : index
    %c0_16 = arith.constant 0 : index
    %25 = vector.load %arg2[%c4, %c0_15, %c0_16] : memref<9x12x7xbf16, #tpu.memory_space<vmem>>, vector<1x12x7xbf16>
    %26 = vector.shape_cast %25 : vector<1x12x7xbf16> to vector<12x7xbf16>
    %cst_17 = arith.constant dense<0.000000e+00> : vector<12x272xf32>
    %27 = tpu.matmul %26, %24, %cst_17 {dimension_numbers = #tpu.dot_dimension_numbers<[1], [0], [0], [1], [0, 0, 1, 1], [], []>} : vector<12x7xbf16>, vector<7x272xbf16>, vector<12x272xf32> -> vector<12x272xf32>
    %28 = arith.addf %23, %27 : vector<12x272xf32>
    %29 = vector.extract_strided_slice %2 {offsets = [0, 70], sizes = [7, 272], strides = [1, 1]} : vector<7x408xbf16> to vector<7x272xbf16>
    %c5 = arith.constant 5 : index
    %c0_18 = arith.constant 0 : index
    %c0_19 = arith.constant 0 : index
    %30 = vector.load %arg2[%c5, %c0_18, %c0_19] : memref<9x12x7xbf16, #tpu.memory_space<vmem>>, vector<1x12x7xbf16>
    %31 = vector.shape_cast %30 : vector<1x12x7xbf16> to vector<12x7xbf16>
    %cst_20 = arith.constant dense<0.000000e+00> : vector<12x272xf32>
    %32 = tpu.matmul %31, %29, %cst_20 {dimension_numbers = #tpu.dot_dimension_numbers<[1], [0], [0], [1], [0, 0, 1, 1], [], []>} : vector<12x7xbf16>, vector<7x272xbf16>, vector<12x272xf32> -> vector<12x272xf32>
    %33 = arith.addf %28, %32 : vector<12x272xf32>
    %34 = vector.extract_strided_slice %2 {offsets = [0, 102], sizes = [7, 272], strides = [1, 1]} : vector<7x408xbf16> to vector<7x272xbf16>
    %c6 = arith.constant 6 : index
    %c0_21 = arith.constant 0 : index
    %c0_22 = arith.constant 0 : index
    %35 = vector.load %arg2[%c6, %c0_21, %c0_22] : memref<9x12x7xbf16, #tpu.memory_space<vmem>>, vector<1x12x7xbf16>
    %36 = vector.shape_cast %35 : vector<1x12x7xbf16> to vector<12x7xbf16>
    %cst_23 = arith.constant dense<0.000000e+00> : vector<12x272xf32>
    %37 = tpu.matmul %36, %34, %cst_23 {dimension_numbers = #tpu.dot_dimension_numbers<[1], [0], [0], [1], [0, 0, 1, 1], [], []>} : vector<12x7xbf16>, vector<7x272xbf16>, vector<12x272xf32> -> vector<12x272xf32>
    %38 = arith.addf %33, %37 : vector<12x272xf32>
    %39 = vector.extract_strided_slice %2 {offsets = [0, 103], sizes = [7, 272], strides = [1, 1]} : vector<7x408xbf16> to vector<7x272xbf16>
    %c7 = arith.constant 7 : index
    %c0_24 = arith.constant 0 : index
    %c0_25 = arith.constant 0 : index
    %40 = vector.load %arg2[%c7, %c0_24, %c0_25] : memref<9x12x7xbf16, #tpu.memory_space<vmem>>, vector<1x12x7xbf16>
    %41 = vector.shape_cast %40 : vector<1x12x7xbf16> to vector<12x7xbf16>
    %cst_26 = arith.constant dense<0.000000e+00> : vector<12x272xf32>
    %42 = tpu.matmul %41, %39, %cst_26 {dimension_numbers = #tpu.dot_dimension_numbers<[1], [0], [0], [1], [0, 0, 1, 1], [], []>} : vector<12x7xbf16>, vector<7x272xbf16>, vector<12x272xf32> -> vector<12x272xf32>
    %43 = arith.addf %38, %42 : vector<12x272xf32>
    %44 = vector.extract_strided_slice %2 {offsets = [0, 104], sizes = [7, 272], strides = [1, 1]} : vector<7x408xbf16> to vector<7x272xbf16>
    %c8 = arith.constant 8 : index
    %c0_27 = arith.constant 0 : index
    %c0_28 = arith.constant 0 : index
    %45 = vector.load %arg2[%c8, %c0_27, %c0_28] : memref<9x12x7xbf16, #tpu.memory_space<vmem>>, vector<1x12x7xbf16>
    %46 = vector.shape_cast %45 : vector<1x12x7xbf16> to vector<12x7xbf16>
    %cst_29 = arith.constant dense<0.000000e+00> : vector<12x272xf32>
    %47 = tpu.matmul %46, %44, %cst_29 {dimension_numbers = #tpu.dot_dimension_numbers<[1], [0], [0], [1], [0, 0, 1, 1], [], []>} : vector<12x7xbf16>, vector<7x272xbf16>, vector<12x272xf32> -> vector<12x272xf32>
    %48 = arith.addf %43, %47 : vector<12x272xf32>
    %c0_30 = arith.constant 0 : index
    %c0_31 = arith.constant 0 : index
    %c0_32 = arith.constant 0 : index
    %49 = vector.load %arg3[%c0_30, %c0_31, %c0_32] : memref<1x12x272xf32, #tpu.memory_space<vmem>>, vector<1x12x272xf32>
    %50 = vector.shape_cast %49 : vector<1x12x272xf32> to vector<12x272xf32>
    %51 = vector.shape_cast %48 : vector<12x272xf32> to vector<1x12x272xf32>
    tpu.vector_store %arg3[%c0_30, %c0_31, %c0_32], %51 {strides = array<i32>} : memref<1x12x272xf32, #tpu.memory_space<vmem>>, vector<1x12x272xf32>,
    return
  }
  func.func @transform_0(%arg0: i32) -> (i32, i32, i32) {
    %c0_i32 = arith.constant 0 : i32
    %c0_i32_0 = arith.constant 0 : i32
    %c0_i32_1 = arith.constant 0 : i32
    return %arg0, %c0_i32, %c0_i32_0 : i32, i32, i32
  }
  func.func @transform_1(%arg0: i32) -> (i32, i32, i32) {
    %c0_i32 = arith.constant 0 : i32
    %c0_i32_0 = arith.constant 0 : i32
    %c0_i32_1 = arith.constant 0 : i32
    %c0_i32_2 = arith.constant 0 : i32
    return %c0_i32, %c0_i32_0, %c0_i32_1 : i32, i32, i32
  }
  func.func @transform_2(%arg0: i32) -> (i32, i32, i32) {
    %c0_i32 = arith.constant 0 : i32
    %c0_i32_0 = arith.constant 0 : i32
    %c0_i32_1 = arith.constant 0 : i32
    return %arg0, %c0_i32, %c0_i32_0 : i32, i32, i32
  }
}

module attributes {stable_mosaic.version = 11 : i64} {
  func.func @_conv3x3_kernel(%arg0: i32, %arg1: memref<1x7x408xf32, #tpu.memory_space<vmem>>, %arg2: memref<9x3x7xbf16, #tpu.memory_space<vmem>>, %arg3: memref<1x3x272xf32, #tpu.memory_space<vmem>>) attributes {dimension_semantics = [#tpu.dimension_semantics<parallel>], iteration_bounds = array<i64: 2>, scalar_prefetch = 0 : i64, scratch_operands = 0 : i64, tpu.core_type = #tpu.core_type<tc>, window_params = [{transform_indices = @transform_0, window_bounds = array<i64: 1, 7, 408>}, {pipeline_mode = #tpu.pipeline_mode<synchronous>, transform_indices = @transform_1, window_bounds = array<i64: 9, 3, 7>}, {transform_indices = @transform_2, window_bounds = array<i64: 1, 3, 272>}]} {
    %c0 = arith.constant 0 : index
    %c0_0 = arith.constant 0 : index
    %c0_1 = arith.constant 0 : index
    %0 = vector.load %arg1[%c0, %c0_0, %c0_1] : memref<1x7x408xf32, #tpu.memory_space<vmem>>, vector<1x7x408xf32>
    %1 = vector.shape_cast %0 : vector<1x7x408xf32> to vector<7x408xf32>
    %2 = arith.truncf %1 : vector<7x408xf32> to vector<7x408xbf16>
    %cst = arith.constant 0.000000e+00 : f32
    %3 = vector.broadcast %cst : f32 to vector<3x272xf32>
    %4 = vector.extract_strided_slice %2 {offsets = [0, 34], sizes = [7, 272], strides = [1, 1]} : vector<7x408xbf16> to vector<7x272xbf16>
    %c0_2 = arith.constant 0 : index
    %c0_3 = arith.constant 0 : index
    %c0_4 = arith.constant 0 : index
    %5 = vector.load %arg2[%c0_2, %c0_3, %c0_4] : memref<9x3x7xbf16, #tpu.memory_space<vmem>>, vector<1x3x7xbf16>
    %6 = vector.shape_cast %5 : vector<1x3x7xbf16> to vector<3x7xbf16>
    %cst_5 = arith.constant dense<0.000000e+00> : vector<3x272xf32>
    %7 = tpu.matmul %6, %4, %cst_5 {dimension_numbers = #tpu.dot_dimension_numbers<[1], [0], [0], [1], [0, 0, 1, 1], [], []>} : vector<3x7xbf16>, vector<7x272xbf16>, vector<3x272xf32> -> vector<3x272xf32>
    %8 = arith.addf %3, %7 : vector<3x272xf32>
    %9 = vector.extract_strided_slice %2 {offsets = [0, 35], sizes = [7, 272], strides = [1, 1]} : vector<7x408xbf16> to vector<7x272xbf16>
    %c1 = arith.constant 1 : index
    %c0_6 = arith.constant 0 : index
    %c0_7 = arith.constant 0 : index
    %10 = vector.load %arg2[%c1, %c0_6, %c0_7] : memref<9x3x7xbf16, #tpu.memory_space<vmem>>, vector<1x3x7xbf16>
    %11 = vector.shape_cast %10 : vector<1x3x7xbf16> to vector<3x7xbf16>
    %cst_8 = arith.constant dense<0.000000e+00> : vector<3x272xf32>
    %12 = tpu.matmul %11, %9, %cst_8 {dimension_numbers = #tpu.dot_dimension_numbers<[1], [0], [0], [1], [0, 0, 1, 1], [], []>} : vector<3x7xbf16>, vector<7x272xbf16>, vector<3x272xf32> -> vector<3x272xf32>
    %13 = arith.addf %8, %12 : vector<3x272xf32>
    %14 = vector.extract_strided_slice %2 {offsets = [0, 36], sizes = [7, 272], strides = [1, 1]} : vector<7x408xbf16> to vector<7x272xbf16>
    %c2 = arith.constant 2 : index
    %c0_9 = arith.constant 0 : index
    %c0_10 = arith.constant 0 : index
    %15 = vector.load %arg2[%c2, %c0_9, %c0_10] : memref<9x3x7xbf16, #tpu.memory_space<vmem>>, vector<1x3x7xbf16>
    %16 = vector.shape_cast %15 : vector<1x3x7xbf16> to vector<3x7xbf16>
    %cst_11 = arith.constant dense<0.000000e+00> : vector<3x272xf32>
    %17 = tpu.matmul %16, %14, %cst_11 {dimension_numbers = #tpu.dot_dimension_numbers<[1], [0], [0], [1], [0, 0, 1, 1], [], []>} : vector<3x7xbf16>, vector<7x272xbf16>, vector<3x272xf32> -> vector<3x272xf32>
    %18 = arith.addf %13, %17 : vector<3x272xf32>
    %19 = vector.extract_strided_slice %2 {offsets = [0, 68], sizes = [7, 272], strides = [1, 1]} : vector<7x408xbf16> to vector<7x272xbf16>
    %c3 = arith.constant 3 : index
    %c0_12 = arith.constant 0 : index
    %c0_13 = arith.constant 0 : index
    %20 = vector.load %arg2[%c3, %c0_12, %c0_13] : memref<9x3x7xbf16, #tpu.memory_space<vmem>>, vector<1x3x7xbf16>
    %21 = vector.shape_cast %20 : vector<1x3x7xbf16> to vector<3x7xbf16>
    %cst_14 = arith.constant dense<0.000000e+00> : vector<3x272xf32>
    %22 = tpu.matmul %21, %19, %cst_14 {dimension_numbers = #tpu.dot_dimension_numbers<[1], [0], [0], [1], [0, 0, 1, 1], [], []>} : vector<3x7xbf16>, vector<7x272xbf16>, vector<3x272xf32> -> vector<3x272xf32>
    %23 = arith.addf %18, %22 : vector<3x272xf32>
    %24 = vector.extract_strided_slice %2 {offsets = [0, 69], sizes = [7, 272], strides = [1, 1]} : vector<7x408xbf16> to vector<7x272xbf16>
    %c4 = arith.constant 4 : index
    %c0_15 = arith.constant 0 : index
    %c0_16 = arith.constant 0 : index
    %25 = vector.load %arg2[%c4, %c0_15, %c0_16] : memref<9x3x7xbf16, #tpu.memory_space<vmem>>, vector<1x3x7xbf16>
    %26 = vector.shape_cast %25 : vector<1x3x7xbf16> to vector<3x7xbf16>
    %cst_17 = arith.constant dense<0.000000e+00> : vector<3x272xf32>
    %27 = tpu.matmul %26, %24, %cst_17 {dimension_numbers = #tpu.dot_dimension_numbers<[1], [0], [0], [1], [0, 0, 1, 1], [], []>} : vector<3x7xbf16>, vector<7x272xbf16>, vector<3x272xf32> -> vector<3x272xf32>
    %28 = arith.addf %23, %27 : vector<3x272xf32>
    %29 = vector.extract_strided_slice %2 {offsets = [0, 70], sizes = [7, 272], strides = [1, 1]} : vector<7x408xbf16> to vector<7x272xbf16>
    %c5 = arith.constant 5 : index
    %c0_18 = arith.constant 0 : index
    %c0_19 = arith.constant 0 : index
    %30 = vector.load %arg2[%c5, %c0_18, %c0_19] : memref<9x3x7xbf16, #tpu.memory_space<vmem>>, vector<1x3x7xbf16>
    %31 = vector.shape_cast %30 : vector<1x3x7xbf16> to vector<3x7xbf16>
    %cst_20 = arith.constant dense<0.000000e+00> : vector<3x272xf32>
    %32 = tpu.matmul %31, %29, %cst_20 {dimension_numbers = #tpu.dot_dimension_numbers<[1], [0], [0], [1], [0, 0, 1, 1], [], []>} : vector<3x7xbf16>, vector<7x272xbf16>, vector<3x272xf32> -> vector<3x272xf32>
    %33 = arith.addf %28, %32 : vector<3x272xf32>
    %34 = vector.extract_strided_slice %2 {offsets = [0, 102], sizes = [7, 272], strides = [1, 1]} : vector<7x408xbf16> to vector<7x272xbf16>
    %c6 = arith.constant 6 : index
    %c0_21 = arith.constant 0 : index
    %c0_22 = arith.constant 0 : index
    %35 = vector.load %arg2[%c6, %c0_21, %c0_22] : memref<9x3x7xbf16, #tpu.memory_space<vmem>>, vector<1x3x7xbf16>
    %36 = vector.shape_cast %35 : vector<1x3x7xbf16> to vector<3x7xbf16>
    %cst_23 = arith.constant dense<0.000000e+00> : vector<3x272xf32>
    %37 = tpu.matmul %36, %34, %cst_23 {dimension_numbers = #tpu.dot_dimension_numbers<[1], [0], [0], [1], [0, 0, 1, 1], [], []>} : vector<3x7xbf16>, vector<7x272xbf16>, vector<3x272xf32> -> vector<3x272xf32>
    %38 = arith.addf %33, %37 : vector<3x272xf32>
    %39 = vector.extract_strided_slice %2 {offsets = [0, 103], sizes = [7, 272], strides = [1, 1]} : vector<7x408xbf16> to vector<7x272xbf16>
    %c7 = arith.constant 7 : index
    %c0_24 = arith.constant 0 : index
    %c0_25 = arith.constant 0 : index
    %40 = vector.load %arg2[%c7, %c0_24, %c0_25] : memref<9x3x7xbf16, #tpu.memory_space<vmem>>, vector<1x3x7xbf16>
    %41 = vector.shape_cast %40 : vector<1x3x7xbf16> to vector<3x7xbf16>
    %cst_26 = arith.constant dense<0.000000e+00> : vector<3x272xf32>
    %42 = tpu.matmul %41, %39, %cst_26 {dimension_numbers = #tpu.dot_dimension_numbers<[1], [0], [0], [1], [0, 0, 1, 1], [], []>} : vector<3x7xbf16>, vector<7x272xbf16>, vector<3x272xf32> -> vector<3x272xf32>
    %43 = arith.addf %38, %42 : vector<3x272xf32>
    %44 = vector.extract_strided_slice %2 {offsets = [0, 104], sizes = [7, 272], strides = [1, 1]} : vector<7x408xbf16> to vector<7x272xbf16>
    %c8 = arith.constant 8 : index
    %c0_27 = arith.constant 0 : index
    %c0_28 = arith.constant 0 : index
    %45 = vector.load %arg2[%c8, %c0_27, %c0_28] : memref<9x3x7xbf16, #tpu.memory_space<vmem>>, vector<1x3x7xbf16>
    %46 = vector.shape_cast %45 : vector<1x3x7xbf16> to vector<3x7xbf16>
    %cst_29 = arith.constant dense<0.000000e+00> : vector<3x272xf32>
    %47 = tpu.matmul %46, %44, %cst_29 {dimension_numbers = #tpu.dot_dimension_numbers<[1], [0], [0], [1], [0, 0, 1, 1], [], []>} : vector<3x7xbf16>, vector<7x272xbf16>, vector<3x272xf32> -> vector<3x272xf32>
    %48 = arith.addf %43, %47 : vector<3x272xf32>
    %c0_30 = arith.constant 0 : index
    %c0_31 = arith.constant 0 : index
    %c0_32 = arith.constant 0 : index
    %49 = vector.load %arg3[%c0_30, %c0_31, %c0_32] : memref<1x3x272xf32, #tpu.memory_space<vmem>>, vector<1x3x272xf32>
    %50 = vector.shape_cast %49 : vector<1x3x272xf32> to vector<3x272xf32>
    %51 = vector.shape_cast %48 : vector<3x272xf32> to vector<1x3x272xf32>
    tpu.vector_store %arg3[%c0_30, %c0_31, %c0_32], %51 {strides = array<i32>} : memref<1x3x272xf32, #tpu.memory_space<vmem>>, vector<1x3x272xf32>,
    return
  }
  func.func @transform_0(%arg0: i32) -> (i32, i32, i32) {
    %c0_i32 = arith.constant 0 : i32
    %c0_i32_0 = arith.constant 0 : i32
    %c0_i32_1 = arith.constant 0 : i32
    return %arg0, %c0_i32, %c0_i32_0 : i32, i32, i32
  }
  func.func @transform_1(%arg0: i32) -> (i32, i32, i32) {
    %c0_i32 = arith.constant 0 : i32
    %c0_i32_0 = arith.constant 0 : i32
    %c0_i32_1 = arith.constant 0 : i32
    %c0_i32_2 = arith.constant 0 : i32
    return %c0_i32, %c0_i32_0, %c0_i32_1 : i32, i32, i32
  }
  func.func @transform_2(%arg0: i32) -> (i32, i32, i32) {
    %c0_i32 = arith.constant 0 : i32
    %c0_i32_0 = arith.constant 0 : i32
    %c0_i32_1 = arith.constant 0 : i32
    return %arg0, %c0_i32, %c0_i32_0 : i32, i32, i32
  }
}

module attributes {stable_mosaic.version = 11 : i64} {
  func.func @_attn_kernel(%arg0: i32, %arg1: i32, %arg2: memref<1x3x8x34xf32, #tpu.memory_space<vmem>>, %arg3: memref<1x4x8x8xf32, #tpu.memory_space<vmem>>, %arg4: memref<1x1x8x32xf32, #tpu.memory_space<vmem>>, %arg5: memref<1x4x8x8xf32, #tpu.memory_space<vmem>>) attributes {dimension_semantics = [#tpu.dimension_semantics<parallel>, #tpu.dimension_semantics<parallel>], iteration_bounds = array<i64: 2, 1>, scalar_prefetch = 0 : i64, scratch_operands = 0 : i64, tpu.core_type = #tpu.core_type<tc>, window_params = [{transform_indices = @transform_0, window_bounds = array<i64: 1, 3, 8, 34>}, {transform_indices = @transform_1, window_bounds = array<i64: 1, 4, 8, 8>}, {transform_indices = @transform_2, window_bounds = array<i64: 1, 1, 8, 32>}, {transform_indices = @transform_3, window_bounds = array<i64: 1, 4, 8, 8>}]} {
    %c0 = arith.constant 0 : index
    %c0_0 = arith.constant 0 : index
    %c0_1 = arith.constant 0 : index
    %c0_2 = arith.constant 0 : index
    %0 = vector.load %arg2[%c0, %c0_0, %c0_1, %c0_2] : memref<1x3x8x34xf32, #tpu.memory_space<vmem>>, vector<1x1x8x34xf32>
    %1 = vector.shape_cast %0 : vector<1x1x8x34xf32> to vector<8x34xf32>
    %2 = arith.truncf %1 : vector<8x34xf32> to vector<8x34xbf16>
    %c0_3 = arith.constant 0 : index
    %c1 = arith.constant 1 : index
    %c0_4 = arith.constant 0 : index
    %c0_5 = arith.constant 0 : index
    %3 = vector.load %arg2[%c0_3, %c1, %c0_4, %c0_5] : memref<1x3x8x34xf32, #tpu.memory_space<vmem>>, vector<1x1x8x34xf32>
    %4 = vector.shape_cast %3 : vector<1x1x8x34xf32> to vector<8x34xf32>
    %5 = arith.truncf %4 : vector<8x34xf32> to vector<8x34xbf16>
    %c0_6 = arith.constant 0 : index
    %c2 = arith.constant 2 : index
    %c0_7 = arith.constant 0 : index
    %c0_8 = arith.constant 0 : index
    %6 = vector.load %arg2[%c0_6, %c2, %c0_7, %c0_8] : memref<1x3x8x34xf32, #tpu.memory_space<vmem>>, vector<1x1x8x34xf32>
    %7 = vector.shape_cast %6 : vector<1x1x8x34xf32> to vector<8x34xf32>
    %8 = arith.truncf %7 : vector<8x34xf32> to vector<8x34xbf16>
    %9 = vector.extract_strided_slice %2 {offsets = [0, 0], sizes = [8, 8], strides = [1, 1]} : vector<8x34xbf16> to vector<8x8xbf16>
    %10 = vector.extract_strided_slice %5 {offsets = [0, 0], sizes = [8, 8], strides = [1, 1]} : vector<8x34xbf16> to vector<8x8xbf16>
    %cst = arith.constant dense<0.000000e+00> : vector<8x8xf32>
    %11 = tpu.matmul %9, %10, %cst {dimension_numbers = #tpu.dot_dimension_numbers<[1], [1], [0], [0], [0, 0, 1, 0], [], []>} : vector<8x8xbf16>, vector<8x8xbf16>, vector<8x8xf32> -> vector<8x8xf32>
    %cst_9 = arith.constant 0.353553385 : f32
    %12 = vector.broadcast %cst_9 : f32 to vector<8x8xf32>
    %13 = arith.mulf %11, %12 : vector<8x8xf32>
    %c0_10 = arith.constant 0 : index
    %c0_11 = arith.constant 0 : index
    %c0_12 = arith.constant 0 : index
    %c0_13 = arith.constant 0 : index
    %14 = vector.load %arg3[%c0_10, %c0_11, %c0_12, %c0_13] : memref<1x4x8x8xf32, #tpu.memory_space<vmem>>, vector<1x1x8x8xf32>
    %15 = vector.shape_cast %14 : vector<1x1x8x8xf32> to vector<8x8xf32>
    %16 = arith.addf %13, %15 : vector<8x8xf32>
    %c0_14 = arith.constant 0 : index
    %c0_15 = arith.constant 0 : index
    %c0_16 = arith.constant 0 : index
    %c0_17 = arith.constant 0 : index
    %17 = vector.load %arg5[%c0_14, %c0_15, %c0_16, %c0_17] : memref<1x4x8x8xf32, #tpu.memory_space<vmem>>, vector<1x1x8x8xf32>
    %18 = vector.shape_cast %17 : vector<1x1x8x8xf32> to vector<8x8xf32>
    %19 = vector.shape_cast %16 : vector<8x8xf32> to vector<1x1x8x8xf32>
    tpu.vector_store %arg5[%c0_14, %c0_15, %c0_16, %c0_17], %19 {strides = array<i32>} : memref<1x4x8x8xf32, #tpu.memory_space<vmem>>, vector<1x1x8x8xf32>,
    %cst_18 = arith.constant dense<0xFF800000> : vector<8xf32>
    %20 = vector.multi_reduction <maximumf>, %16, %cst_18 [1] : vector<8x8xf32> to vector<8xf32>
    %21 = vector.shape_cast %20 : vector<8xf32> to vector<8x1xf32>
    %22 = vector.broadcast %21 : vector<8x1xf32> to vector<8x8xf32>
    %23 = arith.subf %16, %22 : vector<8x8xf32>
    %24 = math.exp %23 : vector<8x8xf32>
    %cst_19 = arith.constant dense<0.000000e+00> : vector<8xf32>
    %25 = vector.multi_reduction <add>, %24, %cst_19 [1] : vector<8x8xf32> to vector<8xf32>
    %26 = vector.shape_cast %25 : vector<8xf32> to vector<8x1xf32>
    %27 = tpu.reciprocal %26 {approx = true} : vector<8x1xf32> -> vector<8x1xf32>
    %28 = vector.broadcast %27 : vector<8x1xf32> to vector<8x8xf32>
    %29 = arith.mulf %24, %28 : vector<8x8xf32>
    %30 = arith.truncf %29 : vector<8x8xf32> to vector<8x8xbf16>
    %31 = vector.extract_strided_slice %8 {offsets = [0, 0], sizes = [8, 8], strides = [1, 1]} : vector<8x34xbf16> to vector<8x8xbf16>
    %cst_20 = arith.constant dense<0.000000e+00> : vector<8x8xf32>
    %32 = tpu.matmul %30, %31, %cst_20 {dimension_numbers = #tpu.dot_dimension_numbers<[1], [0], [0], [1], [0, 0, 1, 1], [], []>} : vector<8x8xbf16>, vector<8x8xbf16>, vector<8x8xf32> -> vector<8x8xf32>
    %c0_21 = arith.constant 0 : index
    %c0_22 = arith.constant 0 : index
    %c0_23 = arith.constant 0 : index
    %c0_24 = arith.constant 0 : index
    %33 = vector.load %arg4[%c0_21, %c0_22, %c0_23, %c0_24] : memref<1x1x8x32xf32, #tpu.memory_space<vmem>>, vector<1x1x8x8xf32>
    %34 = vector.shape_cast %33 : vector<1x1x8x8xf32> to vector<8x8xf32>
    %35 = vector.shape_cast %32 : vector<8x8xf32> to vector<1x1x8x8xf32>
    tpu.vector_store %arg4[%c0_21, %c0_22, %c0_23, %c0_24], %35 {strides = array<i32>} : memref<1x1x8x32xf32, #tpu.memory_space<vmem>>, vector<1x1x8x8xf32>,
    %36 = vector.extract_strided_slice %2 {offsets = [0, 8], sizes = [8, 8], strides = [1, 1]} : vector<8x34xbf16> to vector<8x8xbf16>
    %37 = vector.extract_strided_slice %5 {offsets = [0, 8], sizes = [8, 8], strides = [1, 1]} : vector<8x34xbf16> to vector<8x8xbf16>
    %cst_25 = arith.constant dense<0.000000e+00> : vector<8x8xf32>
    %38 = tpu.matmul %36, %37, %cst_25 {dimension_numbers = #tpu.dot_dimension_numbers<[1], [1], [0], [0], [0, 0, 1, 0], [], []>} : vector<8x8xbf16>, vector<8x8xbf16>, vector<8x8xf32> -> vector<8x8xf32>
    %cst_26 = arith.constant 0.353553385 : f32
    %39 = vector.broadcast %cst_26 : f32 to vector<8x8xf32>
    %40 = arith.mulf %38, %39 : vector<8x8xf32>
    %c0_27 = arith.constant 0 : index
    %c1_28 = arith.constant 1 : index
    %c0_29 = arith.constant 0 : index
    %c0_30 = arith.constant 0 : index
    %41 = vector.load %arg3[%c0_27, %c1_28, %c0_29, %c0_30] : memref<1x4x8x8xf32, #tpu.memory_space<vmem>>, vector<1x1x8x8xf32>
    %42 = vector.shape_cast %41 : vector<1x1x8x8xf32> to vector<8x8xf32>
    %43 = arith.addf %40, %42 : vector<8x8xf32>
    %c0_31 = arith.constant 0 : index
    %c1_32 = arith.constant 1 : index
    %c0_33 = arith.constant 0 : index
    %c0_34 = arith.constant 0 : index
    %44 = vector.load %arg5[%c0_31, %c1_32, %c0_33, %c0_34] : memref<1x4x8x8xf32, #tpu.memory_space<vmem>>, vector<1x1x8x8xf32>
    %45 = vector.shape_cast %44 : vector<1x1x8x8xf32> to vector<8x8xf32>
    %46 = vector.shape_cast %43 : vector<8x8xf32> to vector<1x1x8x8xf32>
    tpu.vector_store %arg5[%c0_31, %c1_32, %c0_33, %c0_34], %46 {strides = array<i32>} : memref<1x4x8x8xf32, #tpu.memory_space<vmem>>, vector<1x1x8x8xf32>,
    %cst_35 = arith.constant dense<0xFF800000> : vector<8xf32>
    %47 = vector.multi_reduction <maximumf>, %43, %cst_35 [1] : vector<8x8xf32> to vector<8xf32>
    %48 = vector.shape_cast %47 : vector<8xf32> to vector<8x1xf32>
    %49 = vector.broadcast %48 : vector<8x1xf32> to vector<8x8xf32>
    %50 = arith.subf %43, %49 : vector<8x8xf32>
    %51 = math.exp %50 : vector<8x8xf32>
    %cst_36 = arith.constant dense<0.000000e+00> : vector<8xf32>
    %52 = vector.multi_reduction <add>, %51, %cst_36 [1] : vector<8x8xf32> to vector<8xf32>
    %53 = vector.shape_cast %52 : vector<8xf32> to vector<8x1xf32>
    %54 = tpu.reciprocal %53 {approx = true} : vector<8x1xf32> -> vector<8x1xf32>
    %55 = vector.broadcast %54 : vector<8x1xf32> to vector<8x8xf32>
    %56 = arith.mulf %51, %55 : vector<8x8xf32>
    %57 = arith.truncf %56 : vector<8x8xf32> to vector<8x8xbf16>
    %58 = vector.extract_strided_slice %8 {offsets = [0, 8], sizes = [8, 8], strides = [1, 1]} : vector<8x34xbf16> to vector<8x8xbf16>
    %cst_37 = arith.constant dense<0.000000e+00> : vector<8x8xf32>
    %59 = tpu.matmul %57, %58, %cst_37 {dimension_numbers = #tpu.dot_dimension_numbers<[1], [0], [0], [1], [0, 0, 1, 1], [], []>} : vector<8x8xbf16>, vector<8x8xbf16>, vector<8x8xf32> -> vector<8x8xf32>
    %c0_38 = arith.constant 0 : index
    %c0_39 = arith.constant 0 : index
    %c0_40 = arith.constant 0 : index
    %c8 = arith.constant 8 : index
    %60 = vector.load %arg4[%c0_38, %c0_39, %c0_40, %c8] : memref<1x1x8x32xf32, #tpu.memory_space<vmem>>, vector<1x1x8x8xf32>
    %61 = vector.shape_cast %60 : vector<1x1x8x8xf32> to vector<8x8xf32>
    %62 = vector.shape_cast %59 : vector<8x8xf32> to vector<1x1x8x8xf32>
    tpu.vector_store %arg4[%c0_38, %c0_39, %c0_40, %c8], %62 {strides = array<i32>} : memref<1x1x8x32xf32, #tpu.memory_space<vmem>>, vector<1x1x8x8xf32>,
    %63 = vector.extract_strided_slice %2 {offsets = [0, 16], sizes = [8, 8], strides = [1, 1]} : vector<8x34xbf16> to vector<8x8xbf16>
    %64 = vector.extract_strided_slice %5 {offsets = [0, 16], sizes = [8, 8], strides = [1, 1]} : vector<8x34xbf16> to vector<8x8xbf16>
    %cst_41 = arith.constant dense<0.000000e+00> : vector<8x8xf32>
    %65 = tpu.matmul %63, %64, %cst_41 {dimension_numbers = #tpu.dot_dimension_numbers<[1], [1], [0], [0], [0, 0, 1, 0], [], []>} : vector<8x8xbf16>, vector<8x8xbf16>, vector<8x8xf32> -> vector<8x8xf32>
    %cst_42 = arith.constant 0.353553385 : f32
    %66 = vector.broadcast %cst_42 : f32 to vector<8x8xf32>
    %67 = arith.mulf %65, %66 : vector<8x8xf32>
    %c0_43 = arith.constant 0 : index
    %c2_44 = arith.constant 2 : index
    %c0_45 = arith.constant 0 : index
    %c0_46 = arith.constant 0 : index
    %68 = vector.load %arg3[%c0_43, %c2_44, %c0_45, %c0_46] : memref<1x4x8x8xf32, #tpu.memory_space<vmem>>, vector<1x1x8x8xf32>
    %69 = vector.shape_cast %68 : vector<1x1x8x8xf32> to vector<8x8xf32>
    %70 = arith.addf %67, %69 : vector<8x8xf32>
    %c0_47 = arith.constant 0 : index
    %c2_48 = arith.constant 2 : index
    %c0_49 = arith.constant 0 : index
    %c0_50 = arith.constant 0 : index
    %71 = vector.load %arg5[%c0_47, %c2_48, %c0_49, %c0_50] : memref<1x4x8x8xf32, #tpu.memory_space<vmem>>, vector<1x1x8x8xf32>
    %72 = vector.shape_cast %71 : vector<1x1x8x8xf32> to vector<8x8xf32>
    %73 = vector.shape_cast %70 : vector<8x8xf32> to vector<1x1x8x8xf32>
    tpu.vector_store %arg5[%c0_47, %c2_48, %c0_49, %c0_50], %73 {strides = array<i32>} : memref<1x4x8x8xf32, #tpu.memory_space<vmem>>, vector<1x1x8x8xf32>,
    %cst_51 = arith.constant dense<0xFF800000> : vector<8xf32>
    %74 = vector.multi_reduction <maximumf>, %70, %cst_51 [1] : vector<8x8xf32> to vector<8xf32>
    %75 = vector.shape_cast %74 : vector<8xf32> to vector<8x1xf32>
    %76 = vector.broadcast %75 : vector<8x1xf32> to vector<8x8xf32>
    %77 = arith.subf %70, %76 : vector<8x8xf32>
    %78 = math.exp %77 : vector<8x8xf32>
    %cst_52 = arith.constant dense<0.000000e+00> : vector<8xf32>
    %79 = vector.multi_reduction <add>, %78, %cst_52 [1] : vector<8x8xf32> to vector<8xf32>
    %80 = vector.shape_cast %79 : vector<8xf32> to vector<8x1xf32>
    %81 = tpu.reciprocal %80 {approx = true} : vector<8x1xf32> -> vector<8x1xf32>
    %82 = vector.broadcast %81 : vector<8x1xf32> to vector<8x8xf32>
    %83 = arith.mulf %78, %82 : vector<8x8xf32>
    %84 = arith.truncf %83 : vector<8x8xf32> to vector<8x8xbf16>
    %85 = vector.extract_strided_slice %8 {offsets = [0, 16], sizes = [8, 8], strides = [1, 1]} : vector<8x34xbf16> to vector<8x8xbf16>
    %cst_53 = arith.constant dense<0.000000e+00> : vector<8x8xf32>
    %86 = tpu.matmul %84, %85, %cst_53 {dimension_numbers = #tpu.dot_dimension_numbers<[1], [0], [0], [1], [0, 0, 1, 1], [], []>} : vector<8x8xbf16>, vector<8x8xbf16>, vector<8x8xf32> -> vector<8x8xf32>
    %c0_54 = arith.constant 0 : index
    %c0_55 = arith.constant 0 : index
    %c0_56 = arith.constant 0 : index
    %c16 = arith.constant 16 : index
    %87 = vector.load %arg4[%c0_54, %c0_55, %c0_56, %c16] : memref<1x1x8x32xf32, #tpu.memory_space<vmem>>, vector<1x1x8x8xf32>
    %88 = vector.shape_cast %87 : vector<1x1x8x8xf32> to vector<8x8xf32>
    %89 = vector.shape_cast %86 : vector<8x8xf32> to vector<1x1x8x8xf32>
    tpu.vector_store %arg4[%c0_54, %c0_55, %c0_56, %c16], %89 {strides = array<i32>} : memref<1x1x8x32xf32, #tpu.memory_space<vmem>>, vector<1x1x8x8xf32>,
    %90 = vector.extract_strided_slice %2 {offsets = [0, 24], sizes = [8, 8], strides = [1, 1]} : vector<8x34xbf16> to vector<8x8xbf16>
    %91 = vector.extract_strided_slice %5 {offsets = [0, 24], sizes = [8, 8], strides = [1, 1]} : vector<8x34xbf16> to vector<8x8xbf16>
    %cst_57 = arith.constant dense<0.000000e+00> : vector<8x8xf32>
    %92 = tpu.matmul %90, %91, %cst_57 {dimension_numbers = #tpu.dot_dimension_numbers<[1], [1], [0], [0], [0, 0, 1, 0], [], []>} : vector<8x8xbf16>, vector<8x8xbf16>, vector<8x8xf32> -> vector<8x8xf32>
    %cst_58 = arith.constant 0.353553385 : f32
    %93 = vector.broadcast %cst_58 : f32 to vector<8x8xf32>
    %94 = arith.mulf %92, %93 : vector<8x8xf32>
    %c0_59 = arith.constant 0 : index
    %c3 = arith.constant 3 : index
    %c0_60 = arith.constant 0 : index
    %c0_61 = arith.constant 0 : index
    %95 = vector.load %arg3[%c0_59, %c3, %c0_60, %c0_61] : memref<1x4x8x8xf32, #tpu.memory_space<vmem>>, vector<1x1x8x8xf32>
    %96 = vector.shape_cast %95 : vector<1x1x8x8xf32> to vector<8x8xf32>
    %97 = arith.addf %94, %96 : vector<8x8xf32>
    %c0_62 = arith.constant 0 : index
    %c3_63 = arith.constant 3 : index
    %c0_64 = arith.constant 0 : index
    %c0_65 = arith.constant 0 : index
    %98 = vector.load %arg5[%c0_62, %c3_63, %c0_64, %c0_65] : memref<1x4x8x8xf32, #tpu.memory_space<vmem>>, vector<1x1x8x8xf32>
    %99 = vector.shape_cast %98 : vector<1x1x8x8xf32> to vector<8x8xf32>
    %100 = vector.shape_cast %97 : vector<8x8xf32> to vector<1x1x8x8xf32>
    tpu.vector_store %arg5[%c0_62, %c3_63, %c0_64, %c0_65], %100 {strides = array<i32>} : memref<1x4x8x8xf32, #tpu.memory_space<vmem>>, vector<1x1x8x8xf32>,
    %cst_66 = arith.constant dense<0xFF800000> : vector<8xf32>
    %101 = vector.multi_reduction <maximumf>, %97, %cst_66 [1] : vector<8x8xf32> to vector<8xf32>
    %102 = vector.shape_cast %101 : vector<8xf32> to vector<8x1xf32>
    %103 = vector.broadcast %102 : vector<8x1xf32> to vector<8x8xf32>
    %104 = arith.subf %97, %103 : vector<8x8xf32>
    %105 = math.exp %104 : vector<8x8xf32>
    %cst_67 = arith.constant dense<0.000000e+00> : vector<8xf32>
    %106 = vector.multi_reduction <add>, %105, %cst_67 [1] : vector<8x8xf32> to vector<8xf32>
    %107 = vector.shape_cast %106 : vector<8xf32> to vector<8x1xf32>
    %108 = tpu.reciprocal %107 {approx = true} : vector<8x1xf32> -> vector<8x1xf32>
    %109 = vector.broadcast %108 : vector<8x1xf32> to vector<8x8xf32>
    %110 = arith.mulf %105, %109 : vector<8x8xf32>
    %111 = arith.truncf %110 : vector<8x8xf32> to vector<8x8xbf16>
    %112 = vector.extract_strided_slice %8 {offsets = [0, 24], sizes = [8, 8], strides = [1, 1]} : vector<8x34xbf16> to vector<8x8xbf16>
    %cst_68 = arith.constant dense<0.000000e+00> : vector<8x8xf32>
    %113 = tpu.matmul %111, %112, %cst_68 {dimension_numbers = #tpu.dot_dimension_numbers<[1], [0], [0], [1], [0, 0, 1, 1], [], []>} : vector<8x8xbf16>, vector<8x8xbf16>, vector<8x8xf32> -> vector<8x8xf32>
    %c0_69 = arith.constant 0 : index
    %c0_70 = arith.constant 0 : index
    %c0_71 = arith.constant 0 : index
    %c24 = arith.constant 24 : index
    %114 = vector.load %arg4[%c0_69, %c0_70, %c0_71, %c24] : memref<1x1x8x32xf32, #tpu.memory_space<vmem>>, vector<1x1x8x8xf32>
    %115 = vector.shape_cast %114 : vector<1x1x8x8xf32> to vector<8x8xf32>
    %116 = vector.shape_cast %113 : vector<8x8xf32> to vector<1x1x8x8xf32>
    tpu.vector_store %arg4[%c0_69, %c0_70, %c0_71, %c24], %116 {strides = array<i32>} : memref<1x1x8x32xf32, #tpu.memory_space<vmem>>, vector<1x1x8x8xf32>,
    return
  }
  func.func @transform_0(%arg0: i32, %arg1: i32) -> (i32, i32, i32, i32) {
    %c0_i32 = arith.constant 0 : i32
    %c0_i32_0 = arith.constant 0 : i32
    %c0_i32_1 = arith.constant 0 : i32
    return %arg0, %arg1, %c0_i32, %c0_i32_0 : i32, i32, i32, i32
  }
  func.func @transform_1(%arg0: i32, %arg1: i32) -> (i32, i32, i32, i32) {
    %c1_i32 = arith.constant 1 : i32
    %0 = arith.muli %arg0, %c1_i32 : i32
    %1 = arith.addi %0, %arg1 : i32
    %c0_i32 = arith.constant 0 : i32
    %c0_i32_0 = arith.constant 0 : i32
    %c0_i32_1 = arith.constant 0 : i32
    %c0_i32_2 = arith.constant 0 : i32
    return %1, %c0_i32, %c0_i32_0, %c0_i32_1 : i32, i32, i32, i32
  }
  func.func @transform_2(%arg0: i32, %arg1: i32) -> (i32, i32, i32, i32) {
    %c0_i32 = arith.constant 0 : i32
    %c0_i32_0 = arith.constant 0 : i32
    %c0_i32_1 = arith.constant 0 : i32
    return %arg0, %arg1, %c0_i32, %c0_i32_0 : i32, i32, i32, i32
  }
  func.func @transform_3(%arg0: i32, %arg1: i32) -> (i32, i32, i32, i32) {
    %c1_i32 = arith.constant 1 : i32
    %0 = arith.muli %arg0, %c1_i32 : i32
    %1 = arith.addi %0, %arg1 : i32
    %c0_i32 = arith.constant 0 : i32
    %c0_i32_0 = arith.constant 0 : i32
    %c0_i32_1 = arith.constant 0 : i32
    %c0_i32_2 = arith.constant 0 : i32
    return %1, %c0_i32, %c0_i32_0, %c0_i32_1 : i32, i32, i32, i32
  }
}

module attributes {stable_mosaic.version = 11 : i64} {
  func.func @_conv3x3_kernel(%arg0: i32, %arg1: memref<1x8x408xf32, #tpu.memory_space<vmem>>, %arg2: memref<9x12x8xbf16, #tpu.memory_space<vmem>>, %arg3: memref<1x12x272xf32, #tpu.memory_space<vmem>>) attributes {dimension_semantics = [#tpu.dimension_semantics<parallel>], iteration_bounds = array<i64: 2>, scalar_prefetch = 0 : i64, scratch_operands = 0 : i64, tpu.core_type = #tpu.core_type<tc>, window_params = [{transform_indices = @transform_0, window_bounds = array<i64: 1, 8, 408>}, {pipeline_mode = #tpu.pipeline_mode<synchronous>, transform_indices = @transform_1, window_bounds = array<i64: 9, 12, 8>}, {transform_indices = @transform_2, window_bounds = array<i64: 1, 12, 272>}]} {
    %c0 = arith.constant 0 : index
    %c0_0 = arith.constant 0 : index
    %c0_1 = arith.constant 0 : index
    %0 = vector.load %arg1[%c0, %c0_0, %c0_1] : memref<1x8x408xf32, #tpu.memory_space<vmem>>, vector<1x8x408xf32>
    %1 = vector.shape_cast %0 : vector<1x8x408xf32> to vector<8x408xf32>
    %2 = arith.truncf %1 : vector<8x408xf32> to vector<8x408xbf16>
    %cst = arith.constant 0.000000e+00 : f32
    %3 = vector.broadcast %cst : f32 to vector<12x272xf32>
    %4 = vector.extract_strided_slice %2 {offsets = [0, 34], sizes = [8, 272], strides = [1, 1]} : vector<8x408xbf16> to vector<8x272xbf16>
    %c0_2 = arith.constant 0 : index
    %c0_3 = arith.constant 0 : index
    %c0_4 = arith.constant 0 : index
    %5 = vector.load %arg2[%c0_2, %c0_3, %c0_4] : memref<9x12x8xbf16, #tpu.memory_space<vmem>>, vector<1x12x8xbf16>
    %6 = vector.shape_cast %5 : vector<1x12x8xbf16> to vector<12x8xbf16>
    %cst_5 = arith.constant dense<0.000000e+00> : vector<12x272xf32>
    %7 = tpu.matmul %6, %4, %cst_5 {dimension_numbers = #tpu.dot_dimension_numbers<[1], [0], [0], [1], [0, 0, 1, 1], [], []>} : vector<12x8xbf16>, vector<8x272xbf16>, vector<12x272xf32> -> vector<12x272xf32>
    %8 = arith.addf %3, %7 : vector<12x272xf32>
    %9 = vector.extract_strided_slice %2 {offsets = [0, 35], sizes = [8, 272], strides = [1, 1]} : vector<8x408xbf16> to vector<8x272xbf16>
    %c1 = arith.constant 1 : index
    %c0_6 = arith.constant 0 : index
    %c0_7 = arith.constant 0 : index
    %10 = vector.load %arg2[%c1, %c0_6, %c0_7] : memref<9x12x8xbf16, #tpu.memory_space<vmem>>, vector<1x12x8xbf16>
    %11 = vector.shape_cast %10 : vector<1x12x8xbf16> to vector<12x8xbf16>
    %cst_8 = arith.constant dense<0.000000e+00> : vector<12x272xf32>
    %12 = tpu.matmul %11, %9, %cst_8 {dimension_numbers = #tpu.dot_dimension_numbers<[1], [0], [0], [1], [0, 0, 1, 1], [], []>} : vector<12x8xbf16>, vector<8x272xbf16>, vector<12x272xf32> -> vector<12x272xf32>
    %13 = arith.addf %8, %12 : vector<12x272xf32>
    %14 = vector.extract_strided_slice %2 {offsets = [0, 36], sizes = [8, 272], strides = [1, 1]} : vector<8x408xbf16> to vector<8x272xbf16>
    %c2 = arith.constant 2 : index
    %c0_9 = arith.constant 0 : index
    %c0_10 = arith.constant 0 : index
    %15 = vector.load %arg2[%c2, %c0_9, %c0_10] : memref<9x12x8xbf16, #tpu.memory_space<vmem>>, vector<1x12x8xbf16>
    %16 = vector.shape_cast %15 : vector<1x12x8xbf16> to vector<12x8xbf16>
    %cst_11 = arith.constant dense<0.000000e+00> : vector<12x272xf32>
    %17 = tpu.matmul %16, %14, %cst_11 {dimension_numbers = #tpu.dot_dimension_numbers<[1], [0], [0], [1], [0, 0, 1, 1], [], []>} : vector<12x8xbf16>, vector<8x272xbf16>, vector<12x272xf32> -> vector<12x272xf32>
    %18 = arith.addf %13, %17 : vector<12x272xf32>
    %19 = vector.extract_strided_slice %2 {offsets = [0, 68], sizes = [8, 272], strides = [1, 1]} : vector<8x408xbf16> to vector<8x272xbf16>
    %c3 = arith.constant 3 : index
    %c0_12 = arith.constant 0 : index
    %c0_13 = arith.constant 0 : index
    %20 = vector.load %arg2[%c3, %c0_12, %c0_13] : memref<9x12x8xbf16, #tpu.memory_space<vmem>>, vector<1x12x8xbf16>
    %21 = vector.shape_cast %20 : vector<1x12x8xbf16> to vector<12x8xbf16>
    %cst_14 = arith.constant dense<0.000000e+00> : vector<12x272xf32>
    %22 = tpu.matmul %21, %19, %cst_14 {dimension_numbers = #tpu.dot_dimension_numbers<[1], [0], [0], [1], [0, 0, 1, 1], [], []>} : vector<12x8xbf16>, vector<8x272xbf16>, vector<12x272xf32> -> vector<12x272xf32>
    %23 = arith.addf %18, %22 : vector<12x272xf32>
    %24 = vector.extract_strided_slice %2 {offsets = [0, 69], sizes = [8, 272], strides = [1, 1]} : vector<8x408xbf16> to vector<8x272xbf16>
    %c4 = arith.constant 4 : index
    %c0_15 = arith.constant 0 : index
    %c0_16 = arith.constant 0 : index
    %25 = vector.load %arg2[%c4, %c0_15, %c0_16] : memref<9x12x8xbf16, #tpu.memory_space<vmem>>, vector<1x12x8xbf16>
    %26 = vector.shape_cast %25 : vector<1x12x8xbf16> to vector<12x8xbf16>
    %cst_17 = arith.constant dense<0.000000e+00> : vector<12x272xf32>
    %27 = tpu.matmul %26, %24, %cst_17 {dimension_numbers = #tpu.dot_dimension_numbers<[1], [0], [0], [1], [0, 0, 1, 1], [], []>} : vector<12x8xbf16>, vector<8x272xbf16>, vector<12x272xf32> -> vector<12x272xf32>
    %28 = arith.addf %23, %27 : vector<12x272xf32>
    %29 = vector.extract_strided_slice %2 {offsets = [0, 70], sizes = [8, 272], strides = [1, 1]} : vector<8x408xbf16> to vector<8x272xbf16>
    %c5 = arith.constant 5 : index
    %c0_18 = arith.constant 0 : index
    %c0_19 = arith.constant 0 : index
    %30 = vector.load %arg2[%c5, %c0_18, %c0_19] : memref<9x12x8xbf16, #tpu.memory_space<vmem>>, vector<1x12x8xbf16>
    %31 = vector.shape_cast %30 : vector<1x12x8xbf16> to vector<12x8xbf16>
    %cst_20 = arith.constant dense<0.000000e+00> : vector<12x272xf32>
    %32 = tpu.matmul %31, %29, %cst_20 {dimension_numbers = #tpu.dot_dimension_numbers<[1], [0], [0], [1], [0, 0, 1, 1], [], []>} : vector<12x8xbf16>, vector<8x272xbf16>, vector<12x272xf32> -> vector<12x272xf32>
    %33 = arith.addf %28, %32 : vector<12x272xf32>
    %34 = vector.extract_strided_slice %2 {offsets = [0, 102], sizes = [8, 272], strides = [1, 1]} : vector<8x408xbf16> to vector<8x272xbf16>
    %c6 = arith.constant 6 : index
    %c0_21 = arith.constant 0 : index
    %c0_22 = arith.constant 0 : index
    %35 = vector.load %arg2[%c6, %c0_21, %c0_22] : memref<9x12x8xbf16, #tpu.memory_space<vmem>>, vector<1x12x8xbf16>
    %36 = vector.shape_cast %35 : vector<1x12x8xbf16> to vector<12x8xbf16>
    %cst_23 = arith.constant dense<0.000000e+00> : vector<12x272xf32>
    %37 = tpu.matmul %36, %34, %cst_23 {dimension_numbers = #tpu.dot_dimension_numbers<[1], [0], [0], [1], [0, 0, 1, 1], [], []>} : vector<12x8xbf16>, vector<8x272xbf16>, vector<12x272xf32> -> vector<12x272xf32>
    %38 = arith.addf %33, %37 : vector<12x272xf32>
    %39 = vector.extract_strided_slice %2 {offsets = [0, 103], sizes = [8, 272], strides = [1, 1]} : vector<8x408xbf16> to vector<8x272xbf16>
    %c7 = arith.constant 7 : index
    %c0_24 = arith.constant 0 : index
    %c0_25 = arith.constant 0 : index
    %40 = vector.load %arg2[%c7, %c0_24, %c0_25] : memref<9x12x8xbf16, #tpu.memory_space<vmem>>, vector<1x12x8xbf16>
    %41 = vector.shape_cast %40 : vector<1x12x8xbf16> to vector<12x8xbf16>
    %cst_26 = arith.constant dense<0.000000e+00> : vector<12x272xf32>
    %42 = tpu.matmul %41, %39, %cst_26 {dimension_numbers = #tpu.dot_dimension_numbers<[1], [0], [0], [1], [0, 0, 1, 1], [], []>} : vector<12x8xbf16>, vector<8x272xbf16>, vector<12x272xf32> -> vector<12x272xf32>
    %43 = arith.addf %38, %42 : vector<12x272xf32>
    %44 = vector.extract_strided_slice %2 {offsets = [0, 104], sizes = [8, 272], strides = [1, 1]} : vector<8x408xbf16> to vector<8x272xbf16>
    %c8 = arith.constant 8 : index
    %c0_27 = arith.constant 0 : index
    %c0_28 = arith.constant 0 : index
    %45 = vector.load %arg2[%c8, %c0_27, %c0_28] : memref<9x12x8xbf16, #tpu.memory_space<vmem>>, vector<1x12x8xbf16>
    %46 = vector.shape_cast %45 : vector<1x12x8xbf16> to vector<12x8xbf16>
    %cst_29 = arith.constant dense<0.000000e+00> : vector<12x272xf32>
    %47 = tpu.matmul %46, %44, %cst_29 {dimension_numbers = #tpu.dot_dimension_numbers<[1], [0], [0], [1], [0, 0, 1, 1], [], []>} : vector<12x8xbf16>, vector<8x272xbf16>, vector<12x272xf32> -> vector<12x272xf32>
    %48 = arith.addf %43, %47 : vector<12x272xf32>
    %c0_30 = arith.constant 0 : index
    %c0_31 = arith.constant 0 : index
    %c0_32 = arith.constant 0 : index
    %49 = vector.load %arg3[%c0_30, %c0_31, %c0_32] : memref<1x12x272xf32, #tpu.memory_space<vmem>>, vector<1x12x272xf32>
    %50 = vector.shape_cast %49 : vector<1x12x272xf32> to vector<12x272xf32>
    %51 = vector.shape_cast %48 : vector<12x272xf32> to vector<1x12x272xf32>
    tpu.vector_store %arg3[%c0_30, %c0_31, %c0_32], %51 {strides = array<i32>} : memref<1x12x272xf32, #tpu.memory_space<vmem>>, vector<1x12x272xf32>,
    return
  }
  func.func @transform_0(%arg0: i32) -> (i32, i32, i32) {
    %c0_i32 = arith.constant 0 : i32
    %c0_i32_0 = arith.constant 0 : i32
    %c0_i32_1 = arith.constant 0 : i32
    return %arg0, %c0_i32, %c0_i32_0 : i32, i32, i32
  }
  func.func @transform_1(%arg0: i32) -> (i32, i32, i32) {
    %c0_i32 = arith.constant 0 : i32
    %c0_i32_0 = arith.constant 0 : i32
    %c0_i32_1 = arith.constant 0 : i32
    %c0_i32_2 = arith.constant 0 : i32
    return %c0_i32, %c0_i32_0, %c0_i32_1 : i32, i32, i32
  }
  func.func @transform_2(%arg0: i32) -> (i32, i32, i32) {
    %c0_i32 = arith.constant 0 : i32
    %c0_i32_0 = arith.constant 0 : i32
    %c0_i32_1 = arith.constant 0 : i32
    return %arg0, %c0_i32, %c0_i32_0 : i32, i32, i32
  }
}

</mosaic_0001>

<bundles_post_ra>
// kernel: frame_transformer_forward.20
= control target key start
LH: loop header
LB: loop body
LE: loop exit
PB: predicated region body
PF: predicated region fallthrough
CT: control target
= control target key end

     0   :  { %s487_s12 = smov 0   ;;  %s489_s13 = smov 0   ;;  %s555_s0 = inlined_call_operand.vmem [shape: f32[2,5,8,32], index: 0, kind: input, shape index: {}]   ;;  %s556_s1 = inlined_call_operand.vmem [shape: f32[5,1,32], index: 1, kind: input, shape index: {}]   ;;  %s557_s2 = inlined_call_operand.vmem [shape: f32[5,1,32], index: 2, kind: input, shape index: {}]   ;;  %s558_s3 = inlined_call_operand.vmem [shape: f32[2,5,8,32], index: 3, kind: output, shape index: {}]  }
   0x1   :  { %s491_s14 = smov 0  }
   0x2 LB: > { %s500_s15 = sadd.s32 4294967295, %s465_s14   ;;  %s502_s16 = sadd.s32 1, %s465_s14   ;;  %s465_s14 = sphi %s491_s14, %s562_s14   ;;  %s461_s13 = sphi %s489_s13, %s561_s13   ;;  %s457_s12 = sphi %s487_s12, %s560_s12  }
   0x3   : > { %s17_s17 = ssub.s32 %s465_s14, %s502_s16  ;;  %s20_s18 = sadd.s32 1, %s461_s13 }
   0x4   : > { %p18_p0 = scmp.eq.s32.totalorder %s17_s17, 0  ;;  %p27_p1 = scmp.ne.s32.totalorder %s461_s13, %s457_s12 }
   0x5   : > { %p28_p2 = scmp.eq.s32.totalorder %s465_s14, 0  ;;  %p109_p3 = scmp.eq.s32.totalorder %s500_s15, 4 }
   0x6   : > { %s510_s19 = scalar_select %p18_p0, %s461_s13, %s20_s18  }
   0x7   : > { %p29_p4 = por %p28_p2, %p27_p1  ;;  %p512_p5 = por %p109_p3, %p27_p1 }
   0x8   : > { %p403_p6 = scmp.ge.s32.totalorder %s465_s14, 5 }
   0xa   : > { %131 = sbr.rel (%p403_p6) target bundleno = 24 (0x18), region = 16 }
  0x11   : > { %134 = sbr.rel (!%p29_p4) target bundleno = 24 (0x18), region = 20  ;;  %s136_s21 = sand.u32 (%p29_p4), 1, %s461_s13  }
  0x12   : > { %s405_s22 = sshll.u32 (%p29_p4), %s465_s14, 3  ;;  %s404_s23 = sshll.u32 (%p29_p4), %s136_s21, 4 }
  0x13   : > { %s140_s26 = scalar_lea.vmem (%p29_p4), %s555_s0, %s405_s22  ;;  %s138_s27 = scalar_lea.vmem (%p29_p4), [#allocation2], %s404_s23 }
  0x14   : > { %v170_v0 = vld [vmem:[%s140_s26] sm:$0xff] (%p29_p4)  ;;  %v172_v1 = vld [vmem:[%s140_s26 + $0x28] sm:$0xff] (%p29_p4) }
  0x15   : > { %171 = vst [vmem:[%s138_s27] sm:$0xff] (%p29_p4), %v170_v0  ;;  %173 = vst [vmem:[%s138_s27 + $0x8] sm:$0xff] (%p29_p4), %v172_v1 }
  0x18 PF: > { %p406_p7 = scmp.ge.s32.totalorder %s465_s14, 1  ;;  %p190_p8 = scmp.lt.s32.totalorder %s465_s14, 6 }
  0x1a   : > { %p191_p9 = pnand %p406_p7, %p190_p8 }
  0x1b   : > { %s197_s28 = sand.u32 (!%p191_p9), 1, %s457_s12   ;;  %vm233_vm0 = vcmask (!%p191_p9), 261120   ;;  %p225_p10 = scmp.lt.s32.totalorder (!%p191_p9), %s500_s15, 4 }
  0x1c   : > { %194 = sbr.rel (%p191_p9) target bundleno = 357 (0x165), region = 66  ;;  %s521_s29 = sshll.u32 (!%p191_p9), %s197_s28, 4 }
  0x1d   : > { %s199_s30 = scalar_lea.vmem (!%p191_p9), [#allocation2], %s521_s29  ;;  %s224_s11 = scalar_lea.vmem (!%p191_p9), [#allocation3], %s521_s29 }
  0x1e   : > { %v231_v2 = vld [vmem:[%s199_s30] sm:$0xff] (!%p191_p9)  ;;  %v232_v3 = vld [vmem:[%s199_s30 + $0x8] sm:$0xff] (!%p191_p9) }
  0x1f   : > { %v234_v4 = vsel (!%p191_p9), %vm233_vm0, %v231_v2, 0.0  ;;  %v237_v5 = vsel (!%p191_p9), %vm233_vm0, %v232_v3, 0.0 }
  0x20   : > { %235 = vadd.xlane.f32.xlu0 (!%p191_p9), %v234_v4 }
  0x23   : > { %s226_s4 = scalar_select %p225_p10, %s500_s15, 4 }
  0x24   : > { %238 = vadd.xlane.f32.xlu0 %v237_v5  ;;  %s412_s12 = sshll.u32 (%p512_p5), %s500_s15, 3 }
  0x25   : > { %s227_s7 = scalar_lea.vmem %s556_s1, %s226_s4  ;;  %s230_s10 = scalar_lea.vmem %s557_s2, %s226_s4 }
  0x26   : > { %v409_v23 = vld [vmem:[%s227_s7] ss:$0 sm:$0xff]  ;;  %s289_s18 = scalar_lea.vmem (%p512_p5), %s558_s3, %s412_s12 }
  0x27   : > { %v410_v25 = vld [vmem:[%s230_s10] ss:$0 sm:$0xff] }
  0xad   : > { %v236_v6 = vpop.xlane.xlu0 %235 }
  0xae   : > { %v241_v7 = vmul.f32 0.03125, %v236_v6 }
  0xb0   : > { %v243_v8 = vsub.f32 %v231_v2, %v241_v7 }
  0xb1   : > { %v239_v9 = vpop.xlane.xlu0 %238 }
  0xb2   : > { %v242_v10 = vmul.f32 0.03125, %v239_v9  ;;  %v245_v11 = vmul.f32 %v243_v8, %v243_v8 }
  0xb4   : > { %v244_v12 = vsub.f32 %v232_v3, %v242_v10  ;;  %v247_v13 = vsel %vm233_vm0, %v245_v11, 0.0 }
  0xb5   : > { %248 = vadd.xlane.f32.xlu1 %v247_v13 }
  0xb6   : > { %v246_v14 = vmul.f32 %v244_v12, %v244_v12 }
  0xb8   : > { %v250_v15 = vsel %vm233_vm0, %v246_v14, 0.0 }
  0xb9   : > { %251 = vadd.xlane.f32.xlu1 %v250_v15 }
 0x142   : > { %v249_v16 = vpop.xlane.xlu1 %248 }
 0x143   : > { %v253_v17 = vmul.f32 0.03125, %v249_v16 }
 0x145   : > { %v255_v18 = vadd.f32 1e-05, %v253_v17 }
 0x146   : > { %v252_v19 = vpop.xlane.xlu1 %251 }
 0x147   : > { %439 = vrsqrt.f32 %v255_v18  ;;  %v254_v20 = vmul.f32 0.03125, %v252_v19 }
 0x149   : > { %v256_v21 = vadd.f32 1e-05, %v254_v20 }
 0x14b   : > { %441 = vrsqrt.f32 %v256_v21 }
 0x151   : > { %v440_v22 = vpop.eup %439 }
 0x152   : > { %v259_v24 = vmul.f32 %v440_v22, %v243_v8 }
 0x154   : > { %v268_v26 = vmul.f32 %v409_v23, %v259_v24 }
 0x155   : > { %v442_v27 = vpop.eup %441 }
 0x156   : > { %v277_v28 = vadd.f32 %v410_v25, %v268_v26  ;;  %v260_v29 = vmul.f32 %v442_v27, %v244_v12  ;;  %287 = sbr.rel (!%p512_p5) target bundleno = 357 (0x165), region = 74 }
 0x158   : > { %279 = vst.msk [vmem:[%s224_s11] sm:$0xff] %vm233_vm0, %v277_v28  ;;  %v269_v30 = vmul.f32 %v409_v23, %v260_v29 }
 0x15a   : > { %v278_v31 = vadd.f32 %v410_v25, %v269_v30 }
 0x15c   : > { %280 = vst.msk [vmem:[%s224_s11 + $0x8] sm:$0xff] %vm233_vm0, %v278_v31 }
 0x15f   : > { %v319_v32 = vld [vmem:[%s224_s11] sm:$0xff] }
 0x160   : > { %320 = vst [vmem:[%s289_s18] sm:$0xff] %v319_v32 }
 0x163   : > { %v321_v33 = vld [vmem:[%s224_s11 + $0x8] sm:$0xff] }
 0x164   : > { %322 = vst [vmem:[%s289_s18 + $0x28] sm:$0xff] %v321_v33 }
 0x165 PF: > { %p10_p11 = scmp.ge.s32.totalorder %s502_s16, 7   ;;  %s560_s12 = smov %s461_s13 }
 0x166   : > { %s561_s13 = smov %s510_s19  ;;  %s562_s14 = smov %s502_s16 }
 0x167   :  { %12 = sbr.rel (!%p10_p11) target bundleno = 2 (0x2), region = 149 }

// kernel: frame_transformer_forward.19
= control target key start
LH: loop header
LB: loop body
LE: loop exit
PB: predicated region body
PF: predicated region fallthrough
CT: control target
= control target key end

     0   :  { %s1455_s9 = smov 0   ;;  %s1590_s0 = inlined_call_operand.vmem [shape: f32[2,2,408], index: 0, kind: input, shape index: {}]   ;;  %s1591_s1 = inlined_call_operand.vmem [shape: bf16[9,1,2], index: 1, kind: input, shape index: {}]   ;;  %s1592_s2 = inlined_call_operand.vmem [shape: f32[2,1,272], index: 2, kind: output, shape index: {}]  }
   0x1 LB: > { %s1213_s10 = sadd.s32 4294967295, %s1424_s9   ;;  %p1217_p0 = scmp.ge.s32.totalorder %s1424_s9, 1  ;;  %s1424_s9 = sphi %s1455_s9, %s12_s9  }
   0x2   : > { %p112_p1 = scmp.lt.s32.totalorder %s1424_s9, 3 }
   0x4   : > { %p113_p2 = pnand %p1217_p0, %p112_p1 }
   0x5   : > { %p133_p3 = scmp.lt.s32.totalorder (!%p113_p2), %s1213_s10, 1  ;;  %v149_v0 = vlaneseq (!%p113_p2)  ;;  %v1426_v1 = vmov (!%p113_p2), 1983009808   ;;  %v1427_v3 = vmov (!%p113_p2), 0.0   ;;  %vm1428_vm0 = vmmov (!%p113_p2), 0   ;;  %s1430_s15 = smov (!%p113_p2), 93  }
   0x6   : > { %116 = sbr.rel (%p113_p2) target bundleno = 463 (0x1cf), region = 28  ;;  %v147_v2 = vunpack.c.l.s4 (!%p113_p2), %v1426_v1  ;;  %1276 = vmatprep.subr.bf16.mxu1 (!%p113_p2), %v1427_v3  ;;  %1278 = vmatprep.mubr.msk.bf16.mxu1 (!%p113_p2), %vm1428_vm0, %v1427_v3  ;;  %v1429_v8 = vmov (!%p113_p2), 0   ;;  %s1431_s16 = smov (!%p113_p2), 94   ;;  %vm186_vm1 = vcmask (!%p113_p2), 1040384   ;;  %vm179_vm2 = vcmask (!%p113_p2), 760832  }
   0x7   : > { %v1467_v4 = vshrl.u32 (!%p113_p2), %v149_v0, 7  ;;  %228 = vmatprep.mubr.bf16.mxu0 (!%p113_p2), %v1429_v8  ;;  %s1432_s17 = smov (!%p113_p2), 92   ;;  %s1433_s18 = smov (!%p113_p2), 60   ;;  %v1220_v20 = vld [vmem:[%s1591_s1 + $0x1] sm:$0x1] (!%p113_p2)  ;;  %vm182_vm3 = vcmask (!%p113_p2), 15360  }
   0x8   : > { %v148_v5 = vunpack.c.0.s8 (!%p113_p2), %v147_v2  ;;  %s1434_s19 = smov (!%p113_p2), 59   ;;  %s1435_s20 = smov (!%p113_p2), 58   ;;  %vm283_vm4 = vcmask (!%p113_p2), 769024   ;;  %vm387_vm5 = vcmask (!%p113_p2), 752640   ;;  %v167_v34 = vld [vmem:[%s1591_s1] sm:$0x1] (!%p113_p2) }
   0x9   : > { %s1436_s21 = smov (!%p113_p2), 26   ;;  %s1437_s22 = smov (!%p113_p2), 25   ;;  %vm494_vm6 = vcmask (!%p113_p2), 490496   ;;  %v1227_v44 = vld [vmem:[%s1591_s1 + $0x2] sm:$0x1] (!%p113_p2)  ;;  %vm601_vm7 = vcmask (!%p113_p2), 482304  }
   0xa   : > { %v151_v6 = vsub.s32 (!%p113_p2), %v148_v5, %v1467_v4  ;;  %s1438_s23 = smov (!%p113_p2), 24   ;;  %v1231_v52 = vld [vmem:[%s1591_s1 + $0x3] sm:$0x1] (!%p113_p2)  ;;  %vm708_vm8 = vcmask (!%p113_p2), 474112   ;;  %v1235_v60 = vld [vmem:[%s1591_s1 + $0x4] sm:$0x1] (!%p113_p2) }
   0xb   : > { %vm815_vm9 = vcmask (!%p113_p2), 211968   ;;  %vm922_vm10 = vcmask (!%p113_p2), 203776   ;;  %vm1029_vm11 = vcmask (!%p113_p2), 195584   ;;  %vm1157_vm12 = vcmp.lt.s32.totalorder (!%p113_p2), %v149_v0, 272 }
   0xd   : > { %s1594_s10 = smov (!%p133_p3, %s1213_s10), 1 }
   0xe   : > { %s1257_s11 = sshll.u32 %s1594_s10, 3 }
   0xf   : > { %s137_s14 = scalar_lea.vmem %s1590_s0, %s1257_s11 }
  0x10   : > { %v143_v7 = vld [vmem:[%s137_s14] sm:$0xff] }
  0x11   : > { %v152_v9 = vrot.slane %v143_v7, %v151_v6  ;;  %v145_v10 = vcombine.high %v143_v7, %v143_v7  ;;  %v1239_v7 = vld [vmem:[%s1591_s1 + $0x5] sm:$0x1] }
  0x13   : > { %v164_v11 = vpack.c.bf16 %v152_v9, %v152_v9  ;;  %v159_v12 = vrot.slane %v145_v10, %v151_v6  ;;  %v160_v13 = vcombine.high %v152_v9, %v152_v9 }
  0x15   : > { %173 = vrot.lane.b32.xlu0 %v164_v11, %s1430_s15  ;;  %v166_v14 = vpack.c.bf16 %v159_v12, %v159_v12  ;;  %v165_v15 = vpack.c.bf16 %v160_v13, %v160_v13 }
  0x17   : > { %177 = vrot.lane.b32.xlu1 %v166_v14, %s1430_s15 }
  0x19   : > { %175 = vrot.lane.b32.xlu0 %v165_v15, %s1430_s15 }
  0x1b   : > { %277 = vrot.lane.b32.xlu1 %v164_v11, %s1431_s16 }
  0x1d   : > { %279 = vrot.lane.b32.xlu0 %v165_v15, %s1431_s16 }
  0x1f   : > { %281 = vrot.lane.b32.xlu1 %v166_v14, %s1431_s16  ;;  %s1394_s16 = smul.u32 3, %s1594_s10 }
  0x21   : > { %381 = vrot.lane.b32.xlu0 %v164_v11, %s1432_s17 }
  0x23   : > { %383 = vrot.lane.b32.xlu1 %v165_v15, %s1432_s17 }
  0x25   : > { %385 = vrot.lane.b32.xlu0 %v166_v14, %s1432_s17 }
  0x27   : > { %488 = vrot.lane.b32.xlu1 %v164_v11, %s1433_s18 }
  0x29   : > { %490 = vrot.lane.b32.xlu0 %v165_v15, %s1433_s18 }
  0x2b   : > { %492 = vrot.lane.b32.xlu1 %v166_v14, %s1433_s18 }
  0x2d   : > { %595 = vrot.lane.b32.xlu0 %v164_v11, %s1434_s19 }
  0x2f   : > { %597 = vrot.lane.b32.xlu1 %v165_v15, %s1434_s19 }
  0x31   : > { %599 = vrot.lane.b32.xlu0 %v166_v14, %s1434_s19  ;;  %s141_s19 = scalar_lea.vmem %s1592_s2, %s1394_s16 }
  0x33   : > { %702 = vrot.lane.b32.xlu1 %v164_v11, %s1435_s20 }
  0x35   : > { %704 = vrot.lane.b32.xlu0 %v165_v15, %s1435_s20 }
  0x37   : > { %706 = vrot.lane.b32.xlu1 %v166_v14, %s1435_s20 }
  0x39   : > { %809 = vrot.lane.b32.xlu0 %v164_v11, %s1436_s21 }
  0x3b   : > { %811 = vrot.lane.b32.xlu1 %v165_v15, %s1436_s21 }
  0x3d   : > { %813 = vrot.lane.b32.xlu0 %v166_v14, %s1436_s21 }
  0x3f   : > { %916 = vrot.lane.b32.xlu1 %v164_v11, %s1437_s22 }
  0x41   : > { %918 = vrot.lane.b32.xlu0 %v165_v15, %s1437_s22 }
  0x43   : > { %920 = vrot.lane.b32.xlu1 %v166_v14, %s1437_s22 }
  0x45   : > { %1023 = vrot.lane.b32.xlu0 %v164_v11, %s1438_s23 }
  0x47   : > { %1025 = vrot.lane.b32.xlu1 %v165_v15, %s1438_s23 }
  0x49   : > { %1027 = vrot.lane.b32.xlu0 %v166_v14, %s1438_s23 }
  0x87   : > { %v174_v16 = vpop.permute.xlu0 %173 }
  0x89   : > { %v178_v17 = vpop.permute.xlu1 %177 }
  0x8a   : > { %v194_v18 = vsel %vm186_vm1, %v178_v17, 0 }
  0x8b   : > { %v176_v19 = vpop.permute.xlu0 %175  ;;  %1277 = vmatpush3.bf16.msra.mxu1 %v194_v18 }
  0x8c   : > { %v181_v21 = vsel %vm179_vm2, %v176_v19, %v178_v17  ;;  %v180_v22 = vsel %vm179_vm2, %v174_v16, %v176_v19  ;;  %1282 = vmatprep.subr.bf16.mxu1 %v1427_v3  ;;  %v1243_v16 = vld [vmem:[%s1591_s1 + $0x6] sm:$0x1] }
  0x8d   : > { %1221 = vmatprep.subr.msk.bf16.mxu0 %vm186_vm1, %v181_v21  ;;  %v278_v23 = vpop.permute.xlu1 %277  ;;  %v188_v24 = vsel %vm186_vm1, %v180_v22, 0 }
  0x8e   : > { %197 = vmatpush1.bf16.msra.mxu0 %v188_v24  ;;  %1279 = vmatmul.mubr.msk.bf16.vlgmr.msra.gmra.mrb[0].mxu1 %vm182_vm3, %v1220_v20 }
  0x8f   : > { %v280_v25 = vpop.permute.xlu0 %279  ;;  %1284 = vmatprep.mubr.msk.bf16.mxu1 %vm1428_vm0, %v1427_v3 }
  0x90   : > { %v284_v26 = vsel %vm283_vm4, %v278_v23, %v280_v25  ;;  %v1247_v23 = vld [vmem:[%s1591_s1 + $0x7] sm:$0x1] }
  0x91   : > { %v290_v27 = vsel %vm186_vm1, %v284_v26, 0  ;;  %1222 = vmatmul.mubr.msk.bf16.vlgmr.msra.gmra.mrb[0].mxu0 %vm182_vm3, %v1220_v20  ;;  %v282_v28 = vpop.permute.xlu1 %281 }
  0x92   : > { %v285_v29 = vsel %vm283_vm4, %v280_v25, %v282_v28  ;;  %v296_v30 = vsel %vm186_vm1, %v282_v28, 0  ;;  %330 = vmatprep.mubr.bf16.mxu0 %v1429_v8  ;;  %v1439_v28 = vmov 1966171168  }
  0x93   : > { %1224 = vmatprep.subr.msk.bf16.mxu0 %vm186_vm1, %v285_v29  ;;  %1283 = vmatpush3.bf16.msra.mxu1 %v296_v30  ;;  %v382_v31 = vpop.permute.xlu0 %381  ;;  %v1133_v29 = vunpack.c.l.s4 %v1439_v28 }
  0x94   : > { %299 = vmatpush1.bf16.msra.mxu0 %v290_v27  ;;  %1288 = vmatprep.subr.bf16.mxu1 %v1427_v3  ;;  %v1251_v27 = vld [vmem:[%s1591_s1 + $0x8] sm:$0x1] }
  0x95   : > { %v384_v32 = vpop.permute.xlu1 %383  ;;  %v1134_v30 = vunpack.c.0.s8 %v1133_v29 }
  0x96   : > { %v388_v35 = vsel %vm387_vm5, %v382_v31, %v384_v32 }
  0x97   : > { %v386_v33 = vpop.permute.xlu0 %385  ;;  %v394_v39 = vsel %vm186_vm1, %v388_v35, 0 }
  0x98   : > { %v389_v36 = vsel %vm387_vm5, %v384_v32, %v386_v33  ;;  %v400_v37 = vsel %vm186_vm1, %v386_v33, 0  ;;  %v1137_v33 = vsub.s32 %v1134_v30, %v1467_v4 }
  0x99   : > { %1228 = vmatprep.subr.msk.bf16.mxu0 %vm186_vm1, %v389_v36  ;;  %v489_v38 = vpop.permute.xlu1 %488 }
  0x9a   : > { %1285 = vmatmul.mubr.msk.bf16.vlgmr.msra.gmra.mrb[0].mxu1 %vm182_vm3, %v167_v34 }
  0x9b   : > { %1289 = vmatpush3.bf16.msra.mxu1 %v400_v37  ;;  %v491_v40 = vpop.permute.xlu0 %490  ;;  %1290 = vmatprep.mubr.msk.bf16.mxu1 %vm1428_vm0, %v1427_v3 }
  0x9c   : > { %1294 = vmatprep.subr.bf16.mxu1 %v1427_v3  ;;  %v495_v45 = vsel %vm494_vm6, %v489_v38, %v491_v40 }
  0x9d   : > { %1225 = vmatmul.mubr.msk.bf16.vlgmr.msra.gmra.mrb[0].mxu0 %vm182_vm3, %v167_v34  ;;  %v493_v41 = vpop.permute.xlu1 %492  ;;  %v501_v49 = vsel %vm186_vm1, %v495_v45, 0 }
  0x9e   : > { %403 = vmatpush1.bf16.msra.mxu0 %v394_v39  ;;  %v496_v42 = vsel %vm494_vm6, %v491_v40, %v493_v41  ;;  %434 = vmatprep.mubr.bf16.mxu0 %v1429_v8  ;;  %v507_v46 = vsel %vm186_vm1, %v493_v41, 0 }
  0x9f   : > { %1232 = vmatprep.subr.msk.bf16.mxu0 %vm186_vm1, %v496_v42  ;;  %v596_v43 = vpop.permute.xlu0 %595 }
  0xa1   : > { %v598_v47 = vpop.permute.xlu1 %597 }
  0xa2   : > { %v602_v53 = vsel %vm601_vm7, %v596_v43, %v598_v47 }
  0xa3   : > { %v600_v48 = vpop.permute.xlu0 %599  ;;  %v608_v57 = vsel %vm186_vm1, %v602_v53, 0 }
  0xa4   : > { %v603_v50 = vsel %vm601_vm7, %v598_v47, %v600_v48  ;;  %v614_v54 = vsel %vm186_vm1, %v600_v48, 0 }
  0xa5   : > { %v703_v51 = vpop.permute.xlu1 %702 }
  0xa6   : > { %1291 = vmatmul.mubr.msk.bf16.vlgmr.msra.gmra.mrb[0].mxu1 %vm182_vm3, %v1227_v44 }
  0xa7   : > { %1295 = vmatpush3.bf16.msra.mxu1 %v507_v46  ;;  %1296 = vmatprep.mubr.msk.bf16.mxu1 %vm1428_vm0, %v1427_v3  ;;  %v705_v55 = vpop.permute.xlu0 %704 }
  0xa8   : > { %1300 = vmatprep.subr.bf16.mxu1 %v1427_v3  ;;  %v709_v61 = vsel %vm708_vm8, %v703_v51, %v705_v55 }
  0xa9   : > { %1229 = vmatmul.mubr.msk.bf16.vlgmr.msra.gmra.mrb[0].mxu0 %vm182_vm3, %v1227_v44  ;;  %v707_v56 = vpop.permute.xlu1 %706  ;;  %v715_v2 = vsel %vm186_vm1, %v709_v61, 0 }
  0xaa   : > { %510 = vmatpush1.bf16.msra.mxu0 %v501_v49  ;;  %541 = vmatprep.mubr.bf16.mxu0 %v1429_v8  ;;  %v710_v58 = vsel %vm708_vm8, %v705_v55, %v707_v56  ;;  %v721_v62 = vsel %vm186_vm1, %v707_v56, 0 }
  0xab   : > { %1236 = vmatprep.subr.msk.bf16.mxu0 %vm186_vm1, %v603_v50  ;;  %v810_v59 = vpop.permute.xlu0 %809 }
  0xad   : > { %v812_v63 = vpop.permute.xlu1 %811 }
  0xae   : > { %v816_v9 = vsel %vm815_vm9, %v810_v59, %v812_v63 }
  0xaf   : > { %v814_v1 = vpop.permute.xlu0 %813  ;;  %v822_v13 = vsel %vm186_vm1, %v816_v9, 0 }
  0xb0   : > { %v817_v5 = vsel %vm815_vm9, %v812_v63, %v814_v1  ;;  %v828_v10 = vsel %vm186_vm1, %v814_v1, 0 }
  0xb1   : > { %v917_v6 = vpop.permute.xlu1 %916 }
  0xb2   : > { %1297 = vmatmul.mubr.msk.bf16.vlgmr.msra.gmra.mrb[0].mxu1 %vm182_vm3, %v1231_v52 }
  0xb3   : > { %1301 = vmatpush3.bf16.msra.mxu1 %v614_v54  ;;  %1302 = vmatprep.mubr.msk.bf16.mxu1 %vm1428_vm0, %v1427_v3  ;;  %v919_v11 = vpop.permute.xlu0 %918 }
  0xb4   : > { %1306 = vmatprep.subr.bf16.mxu1 %v1427_v3  ;;  %v923_v17 = vsel %vm922_vm10, %v917_v6, %v919_v11 }
  0xb5   : > { %1233 = vmatmul.mubr.msk.bf16.vlgmr.msra.gmra.mrb[0].mxu0 %vm182_vm3, %v1231_v52  ;;  %v921_v12 = vpop.permute.xlu1 %920  ;;  %v929_v21 = vsel %vm186_vm1, %v923_v17, 0 }
  0xb6   : > { %617 = vmatpush1.bf16.msra.mxu0 %v608_v57  ;;  %648 = vmatprep.mubr.bf16.mxu0 %v1429_v8  ;;  %v924_v14 = vsel %vm922_vm10, %v919_v11, %v921_v12  ;;  %v935_v18 = vsel %vm186_vm1, %v921_v12, 0 }
  0xb7   : > { %1240 = vmatprep.subr.msk.bf16.mxu0 %vm186_vm1, %v710_v58  ;;  %v1024_v15 = vpop.permute.xlu0 %1023 }
  0xb9   : > { %v1026_v19 = vpop.permute.xlu1 %1025 }
  0xba   : > { %v1030_v24 = vsel %vm1029_vm11, %v1024_v15, %v1026_v19 }
  0xbb   : > { %v1028_v20 = vpop.permute.xlu0 %1027  ;;  %v1036_v26 = vsel %vm186_vm1, %v1030_v24, 0 }
  0xbc   : > { %v1031_v22 = vsel %vm1029_vm11, %v1026_v19, %v1028_v20  ;;  %v1042_v25 = vsel %vm186_vm1, %v1028_v20, 0 }
  0xbe   : > { %1303 = vmatmul.mubr.msk.bf16.vlgmr.msra.gmra.mrb[0].mxu1 %vm182_vm3, %v1235_v60 }
  0xbf   : > { %1307 = vmatpush3.bf16.msra.mxu1 %v721_v62  ;;  %1308 = vmatprep.mubr.msk.bf16.mxu1 %vm1428_vm0, %v1427_v3 }
  0xc0   : > { %1312 = vmatprep.subr.bf16.mxu1 %v1427_v3 }
  0xc1   : > { %1237 = vmatmul.mubr.msk.bf16.vlgmr.msra.gmra.mrb[0].mxu0 %vm182_vm3, %v1235_v60 }
  0xc2   : > { %724 = vmatpush1.bf16.msra.mxu0 %v715_v2  ;;  %755 = vmatprep.mubr.bf16.mxu0 %v1429_v8 }
  0xc3   : > { %1244 = vmatprep.subr.msk.bf16.mxu0 %vm186_vm1, %v817_v5 }
  0xca   : > { %1309 = vmatmul.mubr.msk.bf16.vlgmr.msra.gmra.mrb[0].mxu1 %vm182_vm3, %v1239_v7 }
  0xcb   : > { %1313 = vmatpush3.bf16.msra.mxu1 %v828_v10  ;;  %1314 = vmatprep.mubr.msk.bf16.mxu1 %vm1428_vm0, %v1427_v3 }
  0xcc   : > { %1318 = vmatprep.subr.bf16.mxu1 %v1427_v3 }
  0xcd   : > { %1241 = vmatmul.mubr.msk.bf16.vlgmr.msra.gmra.mrb[0].mxu0 %vm182_vm3, %v1239_v7 }
  0xce   : > { %831 = vmatpush1.bf16.msra.mxu0 %v822_v13  ;;  %862 = vmatprep.mubr.bf16.mxu0 %v1429_v8 }
  0xcf   : > { %1248 = vmatprep.subr.msk.bf16.mxu0 %vm186_vm1, %v924_v14 }
  0xd6   : > { %1315 = vmatmul.mubr.msk.bf16.vlgmr.msra.gmra.mrb[0].mxu1 %vm182_vm3, %v1243_v16 }
  0xd7   : > { %1319 = vmatpush3.bf16.msra.mxu1 %v935_v18  ;;  %1320 = vmatprep.mubr.msk.bf16.mxu1 %vm1428_vm0, %v1427_v3 }
  0xd8   : > { %1324 = vmatprep.subr.bf16.mxu1 %v1427_v3 }
  0xd9   : > { %1245 = vmatmul.mubr.msk.bf16.vlgmr.msra.gmra.mrb[0].mxu0 %vm182_vm3, %v1243_v16 }
  0xda   : > { %938 = vmatpush1.bf16.msra.mxu0 %v929_v21  ;;  %969 = vmatprep.mubr.bf16.mxu0 %v1429_v8 }
  0xdb   : > { %1252 = vmatprep.subr.msk.bf16.mxu0 %vm186_vm1, %v1031_v22 }
  0xe2   : > { %1321 = vmatmul.mubr.msk.bf16.vlgmr.msra.gmra.mrb[0].mxu1 %vm182_vm3, %v1247_v23 }
  0xe3   : > { %1325 = vmatpush3.bf16.msra.mxu1 %v1042_v25  ;;  %1326 = vmatprep.mubr.msk.bf16.mxu1 %vm1428_vm0, %v1427_v3 }
  0xe5   : > { %1249 = vmatmul.mubr.msk.bf16.vlgmr.msra.gmra.mrb[0].mxu0 %vm182_vm3, %v1247_v23 }
  0xe6   : > { %1045 = vmatpush1.bf16.msra.mxu0 %v1036_v26  ;;  %1076 = vmatprep.mubr.bf16.mxu0 %v1429_v8 }
  0xee   : > { %1327 = vmatmul.mubr.msk.bf16.vlgmr.msra.gmra.mrb[0].mxu1 %vm182_vm3, %v1251_v27 }
  0xf1   : > { %1253 = vmatmul.mubr.msk.bf16.vlgmr.msra.gmra.mrb[0].mxu0 %vm182_vm3, %v1251_v27 }
 0x1c1   : > { %v1119_v31 = vpop.f32.mrb[0].mxu1 }
 0x1c2   : > { %v1328_v32 = vpop.f32.mrb[1].mxu1  ;;  %v1145_v39 = vrot.slane %v1119_v31, %v1137_v33 }
 0x1c3   : > { %v1122_v3 = vpop.f32.mrb[2].mxu1 }
 0x1c4   : > { %v1078_v34 = vpop.f32.mrb[0].mxu0  ;;  %v1329_v35 = vpop.f32.mrb[3].mxu1 }
 0x1c5   : > { %v1080_v8 = vpop.f32.mrb[1].mxu0 }
 0x1c6   : > { %v1131_v36 = vcombine.low %v1078_v34, %v1080_v8  ;;  %v1082_v37 = vpop.f32.mrb[2].mxu0 }
 0x1c7   : > { %v1083_v38 = vpop.f32.mrb[3].mxu0 }
 0x1c8   : > { %v1138_v40 = vrot.slane %v1131_v36, %v1137_v33 }
 0x1ca   : > { %v1146_v41 = vcombine.low %v1138_v40, %v1145_v39 }
 0x1cc   : > { %v1153_v42 = vrot.slane %v1146_v41, %v1137_v33 }
 0x1ce   : > { %1159 = vst.msk [vmem:[%s141_s19] sm:$0x7] %vm1157_vm12, %v1153_v42 }
 0x1cf PF: > { %s12_s9 = sadd.s32 1, %s1424_s9  }
 0x1d0   : > { %p9_p4 = scmp.ge.s32.totalorder %s12_s9, 4  }
 0x1d2   :  { %11 = sbr.rel (!%p9_p4) target bundleno = 1 (0x1), region = 66 }

// kernel: frame_transformer_forward.21
= control target key start
LH: loop header
LB: loop body
LE: loop exit
PB: predicated region body
PF: predicated region fallthrough
CT: control target
= control target key end

     0   :  { %s1408_s9 = smov 0   ;;  %s1551_s0 = inlined_call_operand.vmem [shape: f32[2,5,408], index: 0, kind: input, shape index: {}]   ;;  %s1552_s1 = inlined_call_operand.vmem [shape: bf16[9,3,5], index: 1, kind: input, shape index: {}]   ;;  %s1553_s2 = inlined_call_operand.vmem [shape: f32[2,3,272], index: 2, kind: output, shape index: {}]  }
   0x1 LB: > { %s1177_s10 = sadd.s32 4294967295, %s1378_s9   ;;  %p1181_p0 = scmp.ge.s32.totalorder %s1378_s9, 1  ;;  %s1378_s9 = sphi %s1408_s9, %s12_s9  }
   0x2   : > { %p112_p1 = scmp.lt.s32.totalorder %s1378_s9, 3 }
   0x4   : > { %p113_p2 = pnand %p1181_p0, %p112_p1 }
   0x5   : > { %p134_p3 = scmp.lt.s32.totalorder (!%p113_p2), %s1177_s10, 1  ;;  %v1380_v0 = vmov (!%p113_p2), 0.0   ;;  %vm1381_vm0 = vmmov (!%p113_p2), 0   ;;  %v1382_v4 = vmov (!%p113_p2), 0   ;;  %s1383_s15 = smov (!%p113_p2), 93   ;;  %vm170_vm1 = vcmask (!%p113_p2), 1041408  }
   0x6   : > { %116 = sbr.rel (%p113_p2) target bundleno = 457 (0x1c9), region = 28  ;;  %1232 = vmatprep.subr.bf16.mxu1 (!%p113_p2), %v1380_v0  ;;  %1234 = vmatprep.mubr.msk.bf16.mxu1 (!%p113_p2), %vm1381_vm0, %v1380_v0  ;;  %s1384_s16 = smov (!%p113_p2), 94   ;;  %vm163_vm2 = vcmask (!%p113_p2), 760832   ;;  %vm171_vm3 = vcmask (!%p113_p2), 1042432   ;;  %v1392_v10 = vmov (!%p113_p2), 65535   ;;  %vm270_vm4 = vcmask (!%p113_p2), 769024  }
   0x7   : > { %215 = vmatprep.mubr.bf16.mxu0 (!%p113_p2), %v1382_v4  ;;  %s1385_s17 = smov (!%p113_p2), 92   ;;  %s1386_s18 = smov (!%p113_p2), 60   ;;  %v172_v11 = vsel (!%p113_p2), %vm170_vm1, 4294967295, %v1392_v10  ;;  %v1185_v20 = vld [vmem:[%s1552_s1 + $0x2] sm:$0x3] (!%p113_p2)  ;;  %vm166_vm5 = vcmask (!%p113_p2), 39936  }
   0x8   : > { %s1387_s19 = smov (!%p113_p2), 59   ;;  %s1388_s20 = smov (!%p113_p2), 58   ;;  %v1426_v15 = vsel (!%p113_p2), %vm171_vm3, %v172_v11, 0  ;;  %vm374_vm6 = vcmask (!%p113_p2), 752640   ;;  %vm481_vm7 = vcmask (!%p113_p2), 490496   ;;  %vm588_vm8 = vcmask (!%p113_p2), 482304  }
   0x9   : > { %s1389_s21 = smov (!%p113_p2), 26   ;;  %s1390_s22 = smov (!%p113_p2), 25   ;;  %v151_v36 = vld [vmem:[%s1552_s1] sm:$0x3] (!%p113_p2)  ;;  %v1190_v46 = vld [vmem:[%s1552_s1 + $0x4] sm:$0x3] (!%p113_p2) }
   0xa   : > { %s1391_s23 = smov (!%p113_p2), 24   ;;  %vm695_vm9 = vcmask (!%p113_p2), 474112   ;;  %v1193_v55 = vld [vmem:[%s1552_s1 + $0x6] sm:$0x3] (!%p113_p2)  ;;  %vm802_vm10 = vcmask (!%p113_p2), 211968   ;;  %vm909_vm11 = vcmask (!%p113_p2), 203776  }
   0xb   : > { %v1199_v11 = vld [vmem:[%s1552_s1 + $0xa] sm:$0x3] (!%p113_p2)  ;;  %vm1016_vm12 = vcmask (!%p113_p2), 195584   ;;  %vm1120_vm13 = vcmask (!%p113_p2), 124928  }
   0xd   : > { %s1555_s10 = smov (!%p134_p3, %s1177_s10), 1 }
   0xe   : > { %s1213_s11 = sshll.u32 %s1555_s10, 5 }
   0xf   : > { %s138_s14 = scalar_lea.vmem %s1551_s0, %s1213_s11 }
  0x10   : > { %v146_v1 = vld [vmem:[%s138_s14 + $0x8] sm:$0x1f]  ;;  %v145_v2 = vld [vmem:[%s138_s14] sm:$0x1f]  ;;  %v147_v3 = vld [vmem:[%s138_s14 + $0x10] sm:$0x1f] }
  0x11   : > { %v149_v5 = vpack.c.bf16 %v146_v1, %v146_v1  ;;  %v148_v6 = vpack.c.bf16 %v145_v2, %v145_v2  ;;  %v150_v7 = vpack.c.bf16 %v147_v3, %v147_v3  ;;  %v1196_v1 = vld [vmem:[%s1552_s1 + $0x8] sm:$0x3] }
  0x13   : > { %159 = vrot.lane.b32.xlu0 %v149_v5, %s1383_s15  ;;  %157 = vrot.lane.b32.xlu1 %v148_v6, %s1383_s15 }
  0x17   : > { %161 = vrot.lane.b32.xlu0 %v150_v7, %s1383_s15  ;;  %266 = vrot.lane.b32.xlu1 %v149_v5, %s1384_s16 }
  0x1b   : > { %268 = vrot.lane.b32.xlu0 %v150_v7, %s1384_s16  ;;  %264 = vrot.lane.b32.xlu1 %v148_v6, %s1384_s16  ;;  %s1350_s16 = smul.u32 12, %s1555_s10 }
  0x1f   : > { %370 = vrot.lane.b32.xlu0 %v149_v5, %s1385_s17  ;;  %372 = vrot.lane.b32.xlu1 %v150_v7, %s1385_s17 }
  0x23   : > { %368 = vrot.lane.b32.xlu0 %v148_v6, %s1385_s17  ;;  %477 = vrot.lane.b32.xlu1 %v149_v5, %s1386_s18 }
  0x27   : > { %479 = vrot.lane.b32.xlu0 %v150_v7, %s1386_s18  ;;  %475 = vrot.lane.b32.xlu1 %v148_v6, %s1386_s18 }
  0x2b   : > { %584 = vrot.lane.b32.xlu0 %v149_v5, %s1387_s19  ;;  %586 = vrot.lane.b32.xlu1 %v150_v7, %s1387_s19 }
  0x2f   : > { %582 = vrot.lane.b32.xlu0 %v148_v6, %s1387_s19  ;;  %691 = vrot.lane.b32.xlu1 %v149_v5, %s1388_s20  ;;  %s143_s19 = scalar_lea.vmem %s1553_s2, %s1350_s16 }
  0x33   : > { %693 = vrot.lane.b32.xlu0 %v150_v7, %s1388_s20  ;;  %689 = vrot.lane.b32.xlu1 %v148_v6, %s1388_s20 }
  0x37   : > { %798 = vrot.lane.b32.xlu0 %v149_v5, %s1389_s21  ;;  %800 = vrot.lane.b32.xlu1 %v150_v7, %s1389_s21 }
  0x3b   : > { %796 = vrot.lane.b32.xlu0 %v148_v6, %s1389_s21  ;;  %905 = vrot.lane.b32.xlu1 %v149_v5, %s1390_s22 }
  0x3f   : > { %907 = vrot.lane.b32.xlu0 %v150_v7, %s1390_s22  ;;  %903 = vrot.lane.b32.xlu1 %v148_v6, %s1390_s22 }
  0x43   : > { %1012 = vrot.lane.b32.xlu0 %v149_v5, %s1391_s23  ;;  %1014 = vrot.lane.b32.xlu1 %v150_v7, %s1391_s23 }
  0x47   : > { %1010 = vrot.lane.b32.xlu0 %v148_v6, %s1391_s23 }
  0x85   : > { %v160_v8 = vpop.permute.xlu0 %159  ;;  %v158_v9 = vpop.permute.xlu1 %157 }
  0x86   : > { %v164_v12 = vsel %vm163_vm2, %v158_v9, %v160_v8 }
  0x87   : > { %v175_v19 = vand.u32 %v1426_v15, %v164_v12 }
  0x89   : > { %v162_v13 = vpop.permute.xlu0 %161  ;;  %v267_v14 = vpop.permute.xlu1 %266 }
  0x8a   : > { %v181_v16 = vand.u32 %v1426_v15, %v162_v13  ;;  %v165_v17 = vsel %vm163_vm2, %v160_v8, %v162_v13 }
  0x8b   : > { %v178_v18 = vand.u32 %v1426_v15, %v165_v17 }
  0x8c   : > { %1233 = vmatpush3.bf16.msra.mxu1 %v181_v16 }
  0x8d   : > { %183 = vmatprep.subr.bf16.mxu0 %v178_v18  ;;  %v269_v21 = vpop.permute.xlu0 %268  ;;  %v265_v22 = vpop.permute.xlu1 %264  ;;  %1238 = vmatprep.subr.bf16.mxu1 %v1380_v0 }
  0x8e   : > { %v272_v23 = vsel %vm270_vm4, %v267_v14, %v269_v21  ;;  %v283_v24 = vand.u32 %v269_v21, %v1426_v15  ;;  %v271_v25 = vsel %vm270_vm4, %v265_v22, %v267_v14  ;;  %184 = vmatpush1.bf16.msra.mxu0 %v175_v19  ;;  %v1202_v21 = vld [vmem:[%s1552_s1 + $0xc] sm:$0x3] }
  0x8f   : > { %v280_v26 = vand.u32 %v272_v23, %v1426_v15  ;;  %v277_v27 = vand.u32 %v271_v25, %v1426_v15  ;;  %1235 = vmatmul.mubr.msk.bf16.vlgmr.msra.gmra.mrb[0].mxu1 %vm166_vm5, %v1185_v20 }
  0x90   : > { %1239 = vmatpush3.bf16.msra.mxu1 %v283_v24  ;;  %1240 = vmatprep.mubr.msk.bf16.mxu1 %vm1381_vm0, %v1380_v0 }
  0x91   : > { %1186 = vmatmul.mubr.msk.bf16.vlgmr.msra.gmra.mrb[0].mxu0 %vm166_vm5, %v1185_v20  ;;  %285 = vmatprep.subr.bf16.mxu0 %v280_v26  ;;  %v371_v28 = vpop.permute.xlu0 %370  ;;  %v373_v29 = vpop.permute.xlu1 %372 }
  0x92   : > { %286 = vmatpush1.bf16.msra.mxu0 %v277_v27  ;;  %v376_v30 = vsel %vm374_vm6, %v371_v28, %v373_v29  ;;  %1244 = vmatprep.subr.bf16.mxu1 %v1380_v0  ;;  %v387_v35 = vand.u32 %v373_v29, %v1426_v15 }
  0x93   : > { %v384_v31 = vand.u32 %v376_v30, %v1426_v15  ;;  %317 = vmatprep.mubr.bf16.mxu0 %v1382_v4  ;;  %v1208_v30 = vld [vmem:[%s1552_s1 + $0x10] sm:$0x3] }
  0x95   : > { %v369_v32 = vpop.permute.xlu0 %368  ;;  %389 = vmatprep.subr.bf16.mxu0 %v384_v31  ;;  %v478_v34 = vpop.permute.xlu1 %477 }
  0x96   : > { %v375_v33 = vsel %vm374_vm6, %v369_v32, %v371_v28  ;;  %v1205_v28 = vld [vmem:[%s1552_s1 + $0xe] sm:$0x3] }
  0x97   : > { %v381_v38 = vand.u32 %v375_v33, %v1426_v15 }
  0x99   : > { %v480_v37 = vpop.permute.xlu0 %479  ;;  %v476_v41 = vpop.permute.xlu1 %475 }
  0x9a   : > { %v483_v39 = vsel %vm481_vm7, %v478_v34, %v480_v37  ;;  %v482_v43 = vsel %vm481_vm7, %v476_v41, %v478_v34  ;;  %v494_v45 = vand.u32 %v480_v37, %v1426_v15 }
  0x9b   : > { %1241 = vmatmul.mubr.msk.bf16.vlgmr.msra.gmra.mrb[0].mxu1 %vm166_vm5, %v151_v36  ;;  %v491_v40 = vand.u32 %v483_v39, %v1426_v15  ;;  %v488_v48 = vand.u32 %v482_v43, %v1426_v15 }
  0x9c   : > { %1245 = vmatpush3.bf16.msra.mxu1 %v387_v35  ;;  %1246 = vmatprep.mubr.msk.bf16.mxu1 %vm1381_vm0, %v1380_v0 }
  0x9d   : > { %1188 = vmatmul.mubr.msk.bf16.vlgmr.msra.gmra.mrb[0].mxu0 %vm166_vm5, %v151_v36  ;;  %1250 = vmatprep.subr.bf16.mxu1 %v1380_v0  ;;  %v587_v42 = vpop.permute.xlu1 %586  ;;  %v585_v44 = vpop.permute.xlu0 %584 }
  0x9e   : > { %390 = vmatpush1.bf16.msra.mxu0 %v381_v38  ;;  %421 = vmatprep.mubr.bf16.mxu0 %v1382_v4  ;;  %v590_v47 = vsel %vm588_vm8, %v585_v44, %v587_v42  ;;  %v601_v54 = vand.u32 %v587_v42, %v1426_v15 }
  0x9f   : > { %496 = vmatprep.subr.bf16.mxu0 %v491_v40  ;;  %v598_v49 = vand.u32 %v590_v47, %v1426_v15 }
  0xa1   : > { %v583_v50 = vpop.permute.xlu0 %582  ;;  %v692_v53 = vpop.permute.xlu1 %691 }
  0xa2   : > { %v589_v52 = vsel %vm588_vm8, %v583_v50, %v585_v44 }
  0xa3   : > { %v595_v57 = vand.u32 %v589_v52, %v1426_v15 }
  0xa5   : > { %v694_v51 = vpop.permute.xlu0 %693  ;;  %v690_v59 = vpop.permute.xlu1 %689 }
  0xa6   : > { %v697_v56 = vsel %vm695_vm9, %v692_v53, %v694_v51  ;;  %v696_v61 = vsel %vm695_vm9, %v690_v59, %v692_v53  ;;  %v708_v63 = vand.u32 %v694_v51, %v1426_v15 }
  0xa7   : > { %1247 = vmatmul.mubr.msk.bf16.vlgmr.msra.gmra.mrb[0].mxu1 %vm166_vm5, %v1190_v46  ;;  %v705_v58 = vand.u32 %v697_v56, %v1426_v15  ;;  %v702_v3 = vand.u32 %v696_v61, %v1426_v15 }
  0xa8   : > { %1251 = vmatpush3.bf16.msra.mxu1 %v494_v45  ;;  %1252 = vmatprep.mubr.msk.bf16.mxu1 %vm1381_vm0, %v1380_v0 }
  0xa9   : > { %1191 = vmatmul.mubr.msk.bf16.vlgmr.msra.gmra.mrb[0].mxu0 %vm166_vm5, %v1190_v46  ;;  %1256 = vmatprep.subr.bf16.mxu1 %v1380_v0  ;;  %v801_v60 = vpop.permute.xlu1 %800  ;;  %v799_v62 = vpop.permute.xlu0 %798 }
  0xaa   : > { %497 = vmatpush1.bf16.msra.mxu0 %v488_v48  ;;  %528 = vmatprep.mubr.bf16.mxu0 %v1382_v4  ;;  %v804_v2 = vsel %vm802_vm10, %v799_v62, %v801_v60  ;;  %v815_v10 = vand.u32 %v801_v60, %v1426_v15 }
  0xab   : > { %603 = vmatprep.subr.bf16.mxu0 %v598_v49  ;;  %v812_v5 = vand.u32 %v804_v2, %v1426_v15 }
  0xad   : > { %v797_v6 = vpop.permute.xlu0 %796  ;;  %v906_v9 = vpop.permute.xlu1 %905 }
  0xae   : > { %v803_v8 = vsel %vm802_vm10, %v797_v6, %v799_v62 }
  0xaf   : > { %v809_v13 = vand.u32 %v803_v8, %v1426_v15 }
  0xb1   : > { %v908_v7 = vpop.permute.xlu0 %907  ;;  %v904_v16 = vpop.permute.xlu1 %903 }
  0xb2   : > { %v911_v12 = vsel %vm909_vm11, %v906_v9, %v908_v7  ;;  %v910_v18 = vsel %vm909_vm11, %v904_v16, %v906_v9  ;;  %v922_v20 = vand.u32 %v908_v7, %v1426_v15 }
  0xb3   : > { %1253 = vmatmul.mubr.msk.bf16.vlgmr.msra.gmra.mrb[0].mxu1 %vm166_vm5, %v1193_v55  ;;  %v919_v14 = vand.u32 %v911_v12, %v1426_v15  ;;  %v916_v23 = vand.u32 %v910_v18, %v1426_v15 }
  0xb4   : > { %1257 = vmatpush3.bf16.msra.mxu1 %v601_v54  ;;  %1258 = vmatprep.mubr.msk.bf16.mxu1 %vm1381_vm0, %v1380_v0 }
  0xb5   : > { %1194 = vmatmul.mubr.msk.bf16.vlgmr.msra.gmra.mrb[0].mxu0 %vm166_vm5, %v1193_v55  ;;  %1262 = vmatprep.subr.bf16.mxu1 %v1380_v0  ;;  %v1015_v17 = vpop.permute.xlu1 %1014  ;;  %v1013_v19 = vpop.permute.xlu0 %1012 }
  0xb6   : > { %604 = vmatpush1.bf16.msra.mxu0 %v595_v57  ;;  %635 = vmatprep.mubr.bf16.mxu0 %v1382_v4  ;;  %v1018_v22 = vsel %vm1016_vm12, %v1013_v19, %v1015_v17  ;;  %v1029_v27 = vand.u32 %v1015_v17, %v1426_v15 }
  0xb7   : > { %710 = vmatprep.subr.bf16.mxu0 %v705_v58  ;;  %v1026_v24 = vand.u32 %v1018_v22, %v1426_v15 }
  0xb9   : > { %v1011_v25 = vpop.permute.xlu0 %1010 }
  0xba   : > { %v1017_v26 = vsel %vm1016_vm12, %v1011_v25, %v1013_v19 }
  0xbb   : > { %v1023_v29 = vand.u32 %v1017_v26, %v1426_v15 }
  0xbf   : > { %1259 = vmatmul.mubr.msk.bf16.vlgmr.msra.gmra.mrb[0].mxu1 %vm166_vm5, %v1196_v1 }
  0xc0   : > { %1263 = vmatpush3.bf16.msra.mxu1 %v708_v63  ;;  %1264 = vmatprep.mubr.msk.bf16.mxu1 %vm1381_vm0, %v1380_v0 }
  0xc1   : > { %1197 = vmatmul.mubr.msk.bf16.vlgmr.msra.gmra.mrb[0].mxu0 %vm166_vm5, %v1196_v1  ;;  %1268 = vmatprep.subr.bf16.mxu1 %v1380_v0 }
  0xc2   : > { %711 = vmatpush1.bf16.msra.mxu0 %v702_v3  ;;  %742 = vmatprep.mubr.bf16.mxu0 %v1382_v4 }
  0xc3   : > { %817 = vmatprep.subr.bf16.mxu0 %v812_v5 }
  0xcb   : > { %1265 = vmatmul.mubr.msk.bf16.vlgmr.msra.gmra.mrb[0].mxu1 %vm166_vm5, %v1199_v11 }
  0xcc   : > { %1269 = vmatpush3.bf16.msra.mxu1 %v815_v10  ;;  %1270 = vmatprep.mubr.msk.bf16.mxu1 %vm1381_vm0, %v1380_v0 }
  0xcd   : > { %1200 = vmatmul.mubr.msk.bf16.vlgmr.msra.gmra.mrb[0].mxu0 %vm166_vm5, %v1199_v11  ;;  %1274 = vmatprep.subr.bf16.mxu1 %v1380_v0 }
  0xce   : > { %818 = vmatpush1.bf16.msra.mxu0 %v809_v13  ;;  %849 = vmatprep.mubr.bf16.mxu0 %v1382_v4 }
  0xcf   : > { %924 = vmatprep.subr.bf16.mxu0 %v919_v14 }
  0xd7   : > { %1271 = vmatmul.mubr.msk.bf16.vlgmr.msra.gmra.mrb[0].mxu1 %vm166_vm5, %v1202_v21 }
  0xd8   : > { %1275 = vmatpush3.bf16.msra.mxu1 %v922_v20  ;;  %1276 = vmatprep.mubr.msk.bf16.mxu1 %vm1381_vm0, %v1380_v0 }
  0xd9   : > { %1203 = vmatmul.mubr.msk.bf16.vlgmr.msra.gmra.mrb[0].mxu0 %vm166_vm5, %v1202_v21  ;;  %1280 = vmatprep.subr.bf16.mxu1 %v1380_v0 }
  0xda   : > { %925 = vmatpush1.bf16.msra.mxu0 %v916_v23  ;;  %956 = vmatprep.mubr.bf16.mxu0 %v1382_v4 }
  0xdb   : > { %1031 = vmatprep.subr.bf16.mxu0 %v1026_v24 }
  0xe3   : > { %1277 = vmatmul.mubr.msk.bf16.vlgmr.msra.gmra.mrb[0].mxu1 %vm166_vm5, %v1205_v28 }
  0xe4   : > { %1281 = vmatpush3.bf16.msra.mxu1 %v1029_v27  ;;  %1282 = vmatprep.mubr.msk.bf16.mxu1 %vm1381_vm0, %v1380_v0 }
  0xe5   : > { %1206 = vmatmul.mubr.msk.bf16.vlgmr.msra.gmra.mrb[0].mxu0 %vm166_vm5, %v1205_v28 }
  0xe6   : > { %1032 = vmatpush1.bf16.msra.mxu0 %v1023_v29  ;;  %1063 = vmatprep.mubr.bf16.mxu0 %v1382_v4 }
  0xef   : > { %1283 = vmatmul.mubr.msk.bf16.vlgmr.msra.gmra.mrb[0].mxu1 %vm166_vm5, %v1208_v30 }
  0xf1   : > { %1209 = vmatmul.mubr.msk.bf16.vlgmr.msra.gmra.mrb[0].mxu0 %vm166_vm5, %v1208_v30 }
 0x1c2   : > { %v1106_v0 = vpop.f32.mrb[0].mxu1 }
 0x1c3   : > { %1121 = vst.msk [vmem:[%s143_s19 + $0x8] sm:$0x7] %vm1120_vm13, %v1106_v0  ;;  %v1284_v15 = vpop.f32.mrb[1].mxu1 }
 0x1c4   : > { %v1065_v31 = vpop.f32.mrb[0].mxu0  ;;  %v1109_v32 = vpop.f32.mrb[2].mxu1 }
 0x1c5   : > { %v1067_v4 = vpop.f32.mrb[1].mxu0  ;;  %v1285_v33 = vpop.f32.mrb[3].mxu1 }
 0x1c6   : > { %v1117_v34 = vcombine.low %v1065_v31, %v1067_v4  ;;  %v1069_v35 = vpop.f32.mrb[2].mxu0 }
 0x1c7   : > { %v1070_v36 = vpop.f32.mrb[3].mxu0 }
 0x1c8   : > { %1119 = vst [vmem:[%s143_s19] sm:$0x77] %v1117_v34 }
 0x1c9 PF: > { %s12_s9 = sadd.s32 1, %s1378_s9  }
 0x1ca   : > { %p9_p4 = scmp.ge.s32.totalorder %s12_s9, 4  }
 0x1cc   :  { %11 = sbr.rel (!%p9_p4) target bundleno = 1 (0x1), region = 66 }

// kernel: frame_transformer_forward.22
= control target key start
LH: loop header
LB: loop body
LE: loop exit
PB: predicated region body
PF: predicated region fallthrough
CT: control target
= control target key end

     0   :  { %s973_s9 = smov 0   ;;  %s975_s10 = smov 0   ;;  %s1099_s0 = inlined_call_operand.vmem [shape: f32[2,3,8,34], index: 0, kind: input, shape index: {}]   ;;  %s1100_s1 = inlined_call_operand.vmem [shape: f32[2,1,8,32], index: 1, kind: output, shape index: {0}]   ;;  %s1101_s2 = inlined_call_operand.vmem [shape: f32[2,4,8,8], index: 2, kind: output, shape index: {1}]  }
   0x1   :  { %s977_s11 = smov 0  }
   0x2 LB: > { %s25_s12 = sadd.s32 1, %s944_s10  ;;  %p792_p0 = scmp.ge.s32.totalorder %s948_s11, 1  ;;  %s948_s11 = sphi %s977_s11, %s13_s11   ;;  %s944_s10 = sphi %s975_s10, %s1103_s10   ;;  %s940_s9 = sphi %s973_s9, %s1102_s9  }
   0x3   : > { %p27_p1 = scmp.ge.s32.totalorder %s25_s12, 2  ;;  %p138_p2 = scmp.lt.s32.totalorder %s948_s11, 3 }
   0x5   : > { %s1105_s12 = smov (%p27_p1, %s25_s12), 0  ;;  %p139_p3 = pnand %p792_p0, %p138_p2 }
   0x6   : > { %p173_p4 = scmp.lt.s32.totalorder (!%p139_p3), %s940_s9, 1  ;;  %v950_v0 = vmov (!%p139_p3), 0.0   ;;  %vm951_vm0 = vmmov (!%p139_p3), 0   ;;  %vm205_vm1 = vcmask (!%p139_p3), 64512   ;;  %s952_s21 = smov (!%p139_p3), 120   ;;  %vm269_vm2 = vcmask (!%p139_p3), 1043456  }
   0x7   : > { %142 = sbr.rel (%p139_p3) target bundleno = 1478 (0x5c6), region = 24  ;;  %829 = vmatprep.subr.bf16.mxu0 (!%p139_p3), %v950_v0  ;;  %831 = vmatprep.mubr.msk.bf16.mxu0 (!%p139_p3), %vm951_vm0, %v950_v0  ;;  %s953_s22 = smov (!%p139_p3), 112   ;;  %vm434_vm3 = vcmask (!%p139_p3), 130112   ;;  %vm553_vm4 = vcmask (!%p139_p3), 195712   ;;  %vm672_vm5 = vcmask (!%p139_p3), 261312  }
   0x8   : > { %835 = vmatprep.subr.bf16.mxu1 (!%p139_p3), %v950_v0  ;;  %837 = vmatprep.mubr.msk.bf16.mxu1 (!%p139_p3), %vm951_vm0, %v950_v0  ;;  %s954_s23 = smov (!%p139_p3), 104   ;;  %s955_s28 = smov (!%p139_p3), 8  }
   0x9   : > { %s956_s29 = smov (!%p139_p3), 16   ;;  %s957_s30 = smov (!%p139_p3), 24  }
   0xe   : > { %s1107_s9 = smov (!%p173_p4, %s940_s9), 1 }
   0xf   : > { %s877_s13 = smul.u32 24, %s1107_s9  ;;  %s812_s17 = sshll.u32 %s1107_s9, 5 }
  0x10   : > { %s1016_s20 = scalar_lea.vmem %s1101_s2, %s812_s17  ;;  %s794_s24 = sshll.u32 %s1107_s9, 3 }
  0x11   : > { %s1003_s16 = scalar_lea.vmem %s1099_s0, %s877_s13  ;;  %s1053_s27 = scalar_lea.vmem %s1100_s1, %s794_s24 }
  0x12   : > { %v797_v1 = vld [vmem:[%s1003_s16 + $0x8] sm:$0xff]  ;;  %v197_v4 = vld [vmem:[%s1003_s16] sm:$0xff]  ;;  %v798_v17 = vld [vmem:[%s1003_s16 + $0x10] sm:$0xff] }
  0x13   : > { %v201_v2 = vpack.c.bf16 %v797_v1, %v797_v1  ;;  %v198_v5 = vpack.c.bf16 %v197_v4, %v197_v4  ;;  %v1028_v18 = vpack.c.bf16 %v798_v17, %v798_v17 }
  0x15   : > { %v210_v3 = vsel %vm205_vm1, %v201_v2, 0  ;;  %318 = vrot.lane.b32.xlu1 %v201_v2, %s952_s21  ;;  %v271_v19 = vsel %vm269_vm2, %v1028_v18, 0 }
  0x16   : > { %830 = vmatpush3.bf16.xpose.msra.mxu0 %v210_v3  ;;  %836 = vmatpush3.bf16.msra.mxu1 %v271_v19 }
  0x17   : > { %847 = vmatprep.subr.bf16.mxu0 %v950_v0  ;;  %841 = vmatprep.subr.bf16.mxu1 %v950_v0 }
  0x19   : > { %315 = vrot.lane.b32.xlu1 %v198_v5, %s952_s21 }
  0x1d   : > { %832 = vmatmul.mubr.msk.bf16.vlgmr.msra.gmra.mrb[0].mxu0 %vm205_vm1, %v198_v5  ;;  %436 = vrot.lane.b32.xlu1 %v198_v5, %s953_s22 }
  0x1e   : > { %849 = vmatprep.mubr.msk.bf16.mxu0 %vm951_vm0, %v950_v0 }
  0x21   : > { %557 = vrot.lane.b32.xlu1 %v201_v2, %s954_s23 }
  0x25   : > { %555 = vrot.lane.b32.xlu1 %v198_v5, %s954_s23 }
  0x87   : > { %v319_v22 = vpop.permute.xlu1 %318 }
  0x88   : > { %v324_v24 = vsel %vm205_vm1, %v319_v22, 0 }
  0x8b   : > { %v316_v26 = vpop.permute.xlu1 %315 }
  0x8f   : > { %v437_v28 = vpop.permute.xlu1 %436 }
  0x93   : > { %v558_v30 = vpop.permute.xlu1 %557 }
  0x94   : > { %v563_v31 = vsel %vm205_vm1, %v558_v30, 0 }
  0x97   : > { %v556_v32 = vpop.permute.xlu1 %555 }
  0xf0   : > { %v246_v6 = vpop.f32.mrb[0].mxu0 }
  0xf1   : > { %v252_v7 = vmul.f32 0.35355338, %v246_v6  ;;  %v833_v8 = vpop.f32.mrb[1].mxu0 }
  0xf2   : > { %v249_v9 = vpop.f32.mrb[2].mxu0 }
  0xf3   : > { %253 = vst.msk [vmem:[%s1016_s20] sm:$0xff] %vm205_vm1, %v252_v7  ;;  %v834_v10 = vpop.f32.mrb[3].mxu0  ;;  %v254_v11 = vsel %vm205_vm1, %v252_v7, -inf }
  0xf4   : > { %255 = vmax.xlane.f32.xlu0 %v254_v11 }
 0x181   : > { %v256_v12 = vpop.xlane.xlu0 %255 }
 0x182   : > { %v257_v13 = vsub.f32 %v252_v7, %v256_v12 }
 0x184   : > { %v258_v14 = vmul.f32 1.442695, %v257_v13 }
 0x186   : > { %910 = vpow2.f32 %v258_v14 }
 0x190   : > { %v911_v15 = vpop.eup %910 }
 0x191   : > { %v260_v16 = vsel %vm205_vm1, %v911_v15, 0.0 }
 0x192   : > { %261 = vadd.xlane.f32.xlu0 %v260_v16 }
 0x1a8   : > { %438 = vrot.lane.b32.xlu0 %v201_v2, %s953_s22 }
 0x21f   : > { %v262_v20 = vpop.xlane.xlu0 %261 }
 0x220   : > { %912 = vrcp.f32 %v262_v20 }
 0x223   : > { %v439_v27 = vpop.permute.xlu0 %438 }
 0x224   : > { %v444_v29 = vsel %vm205_vm1, %v439_v27, 0 }
 0x22a   : > { %v913_v21 = vpop.eup %912 }
 0x22b   : > { %v264_v23 = vmul.f32 %v913_v21, %v911_v15 }
 0x22d   : > { %v265_v25 = vpack.c.bf16 %v264_v23, %v264_v23 }
 0x22f   : > { %838 = vmatmul.mubr.msk.bf16.vlgmr.msra.gmra.mrb[0].mxu1 %vm205_vm1, %v265_v25 }
 0x230   : > { %842 = vmatpush3.bf16.xpose.msra.mxu1 %v324_v24  ;;  %843 = vmatprep.mubr.msk.bf16.mxu1 %vm951_vm0, %v950_v0 }
 0x231   : > { %853 = vmatprep.subr.bf16.mxu1 %v950_v0 }
 0x237   : > { %844 = vmatmul.mubr.msk.bf16.vlgmr.msra.gmra.mrb[4].mxu1 %vm205_vm1, %v316_v26 }
 0x238   : > { %854 = vmatpush3.bf16.xpose.msra.mxu1 %v444_v29  ;;  %855 = vmatprep.mubr.msk.bf16.mxu1 %vm951_vm0, %v950_v0 }
 0x239   : > { %865 = vmatprep.subr.bf16.mxu1 %v950_v0 }
 0x23f   : > { %856 = vmatmul.mubr.msk.bf16.vlgmr.msra.gmra.mrb[8].mxu1 %vm205_vm1, %v437_v28 }
 0x240   : > { %866 = vmatpush3.bf16.xpose.msra.mxu1 %v563_v31  ;;  %867 = vmatprep.mubr.msk.bf16.mxu1 %vm951_vm0, %v950_v0 }
 0x247   : > { %868 = vmatmul.mubr.msk.bf16.vlgmr.msra.gmra.mrb[12].mxu1 %vm205_vm1, %v556_v32 }
 0x302   : > { %v307_v33 = vpop.f32.mrb[0].mxu1 }
 0x303   : > { %313 = vst.msk [vmem:[%s1053_s27] sm:$0xff] %vm205_vm1, %v307_v33  ;;  %v839_v34 = vpop.f32.mrb[1].mxu1 }
 0x304   : > { %v310_v35 = vpop.f32.mrb[2].mxu1 }
 0x305   : > { %v840_v36 = vpop.f32.mrb[3].mxu1 }
 0x30a   : > { %v360_v37 = vpop.f32.mrb[4].mxu1 }
 0x30b   : > { %v366_v38 = vmul.f32 0.35355338, %v360_v37  ;;  %v845_v39 = vpop.f32.mrb[5].mxu1 }
 0x30c   : > { %v363_v40 = vpop.f32.mrb[6].mxu1 }
 0x30d   : > { %802 = vst.msk [vmem:[%s1016_s20 + $0x8] sm:$0xff] %vm205_vm1, %v366_v38  ;;  %v846_v41 = vpop.f32.mrb[7].mxu1  ;;  %v369_v42 = vsel %vm205_vm1, %v366_v38, -inf }
 0x30e   : > { %370 = vmax.xlane.f32.xlu1 %v369_v42 }
 0x312   : > { %v480_v43 = vpop.f32.mrb[8].mxu1 }
 0x313   : > { %v486_v44 = vmul.f32 0.35355338, %v480_v43  ;;  %v857_v45 = vpop.f32.mrb[9].mxu1 }
 0x314   : > { %v483_v46 = vpop.f32.mrb[10].mxu1 }
 0x315   : > { %805 = vst.msk [vmem:[%s1016_s20 + $0x10] sm:$0xff] %vm205_vm1, %v486_v44  ;;  %v489_v47 = vsel %vm205_vm1, %v486_v44, -inf  ;;  %v858_v48 = vpop.f32.mrb[11].mxu1 }
 0x316   : > { %490 = vmax.xlane.f32.xlu0 %v489_v47 }
 0x31a   : > { %v599_v49 = vpop.f32.mrb[12].mxu1 }
 0x31b   : > { %v605_v50 = vmul.f32 0.35355338, %v599_v49  ;;  %v869_v51 = vpop.f32.mrb[13].mxu1 }
 0x31c   : > { %v602_v52 = vpop.f32.mrb[14].mxu1 }
 0x31d   : > { %808 = vst.msk [vmem:[%s1016_s20 + $0x18] sm:$0xff] %vm205_vm1, %v605_v50  ;;  %v608_v53 = vsel %vm205_vm1, %v605_v50, -inf  ;;  %v870_v54 = vpop.f32.mrb[15].mxu1 }
 0x31e   : > { %609 = vmax.xlane.f32.xlu1 %v608_v53 }
 0x39b   : > { %v371_v55 = vpop.xlane.xlu1 %370 }
 0x39c   : > { %v372_v56 = vsub.f32 %v366_v38, %v371_v55 }
 0x39e   : > { %v373_v57 = vmul.f32 1.442695, %v372_v56 }
 0x3a0   : > { %914 = vpow2.f32 %v373_v57 }
 0x3a3   : > { %v491_v58 = vpop.xlane.xlu0 %490 }
 0x3a4   : > { %v492_v59 = vsub.f32 %v486_v44, %v491_v58 }
 0x3a6   : > { %v493_v60 = vmul.f32 1.442695, %v492_v59 }
 0x3a8   : > { %916 = vpow2.f32 %v493_v60 }
 0x3aa   : > { %v915_v61 = vpop.eup %914 }
 0x3ab   : > { %v375_v62 = vsel %vm205_vm1, %v915_v61, 0.0  ;;  %v610_v2 = vpop.xlane.xlu1 %609 }
 0x3ac   : > { %376 = vadd.xlane.f32.xlu1 %v375_v62  ;;  %v611_v3 = vsub.f32 %v605_v50, %v610_v2 }
 0x3ae   : > { %v612_v4 = vmul.f32 1.442695, %v611_v3 }
 0x3b0   : > { %918 = vpow2.f32 %v612_v4 }
 0x3b2   : > { %v917_v63 = vpop.eup %916 }
 0x3b3   : > { %v495_v1 = vsel %vm205_vm1, %v917_v63, 0.0 }
 0x3b4   : > { %496 = vadd.xlane.f32.xlu0 %v495_v1 }
 0x3ba   : > { %v919_v5 = vpop.eup %918 }
 0x3bb   : > { %v614_v6 = vsel %vm205_vm1, %v919_v5, 0.0 }
 0x3bd   : > { %501 = vrot.lane.b32.xlu1 %v1028_v18, %s953_s22 }
 0x3ca   : > { %382 = vrot.lane.b32.xlu0 %v1028_v18, %s952_s21 }
 0x3e1   : > { %615 = vadd.xlane.f32.xlu1 %v614_v6 }
 0x3f2   : > { %620 = vrot.lane.b32.xlu1 %v1028_v18, %s954_s23 }
 0x439   : > { %v377_v7 = vpop.xlane.xlu1 %376 }
 0x43a   : > { %920 = vrcp.f32 %v377_v7 }
 0x43d   : > { %v502_v13 = vpop.permute.xlu1 %501 }
 0x43e   : > { %v507_v15 = vsel %vm269_vm2, %v502_v13, 0 }
 0x441   : > { %v497_v8 = vpop.xlane.xlu0 %496 }
 0x442   : > { %922 = vrcp.f32 %v497_v8 }
 0x444   : > { %v921_v9 = vpop.eup %920 }
 0x445   : > { %v379_v10 = vmul.f32 %v921_v9, %v915_v61  ;;  %v383_v11 = vpop.permute.xlu0 %382 }
 0x446   : > { %v388_v12 = vsel %vm269_vm2, %v383_v11, 0 }
 0x447   : > { %848 = vmatpush3.bf16.msra.mxu0 %v388_v12  ;;  %v380_v14 = vpack.c.bf16 %v379_v10, %v379_v10 }
 0x448   : > { %859 = vmatprep.subr.bf16.mxu0 %v950_v0 }
 0x44a   : > { %850 = vmatmul.mubr.msk.bf16.vlgmr.msra.gmra.mrb[4].mxu0 %vm205_vm1, %v380_v14 }
 0x44b   : > { %860 = vmatpush3.bf16.msra.mxu0 %v507_v15  ;;  %861 = vmatprep.mubr.msk.bf16.mxu0 %vm951_vm0, %v950_v0 }
 0x44c   : > { %v923_v16 = vpop.eup %922  ;;  %871 = vmatprep.subr.bf16.mxu0 %v950_v0 }
 0x44d   : > { %v499_v17 = vmul.f32 %v923_v16, %v917_v63 }
 0x44f   : > { %v500_v18 = vpack.c.bf16 %v499_v17, %v499_v17 }
 0x452   : > { %862 = vmatmul.mubr.msk.bf16.vlgmr.msra.gmra.mrb[8].mxu0 %vm205_vm1, %v500_v18 }
 0x453   : > { %873 = vmatprep.mubr.msk.bf16.mxu0 %vm951_vm0, %v950_v0 }
 0x46e   : > { %v616_v19 = vpop.xlane.xlu1 %615 }
 0x46f   : > { %924 = vrcp.f32 %v616_v19 }
 0x472   : > { %v621_v20 = vpop.permute.xlu1 %620 }
 0x473   : > { %v626_v21 = vsel %vm269_vm2, %v621_v20, 0 }
 0x474   : > { %872 = vmatpush3.bf16.msra.mxu0 %v626_v21 }
 0x479   : > { %v925_v22 = vpop.eup %924 }
 0x47a   : > { %v618_v23 = vmul.f32 %v925_v22, %v919_v5 }
 0x47c   : > { %v619_v24 = vpack.c.bf16 %v618_v23, %v618_v23 }
 0x47e   : > { %874 = vmatmul.mubr.msk.bf16.vlgmr.msra.gmra.mrb[12].mxu0 %vm205_vm1, %v619_v24 }
 0x51d   : > { %v424_v25 = vpop.f32.mrb[4].mxu0 }
 0x51e   : > { %431 = vrot.lane.b32.xlu0 %v424_v25, %s955_s28  ;;  %v851_v26 = vpop.f32.mrb[5].mxu0 }
 0x51f   : > { %v427_v27 = vpop.f32.mrb[6].mxu0 }
 0x520   : > { %v852_v28 = vpop.f32.mrb[7].mxu0 }
 0x525   : > { %v543_v29 = vpop.f32.mrb[8].mxu0 }
 0x526   : > { %550 = vrot.lane.b32.xlu1 %v543_v29, %s956_s29  ;;  %v863_v0 = vpop.f32.mrb[9].mxu0 }
 0x527   : > { %v546_v30 = vpop.f32.mrb[10].mxu0 }
 0x528   : > { %v864_v31 = vpop.f32.mrb[11].mxu0 }
 0x551   : > { %v662_v32 = vpop.f32.mrb[12].mxu0 }
 0x552   : > { %669 = vrot.lane.b32.xlu0 %v662_v32, %s957_s30  ;;  %v875_v33 = vpop.f32.mrb[13].mxu0 }
 0x553   : > { %v665_v34 = vpop.f32.mrb[14].mxu0 }
 0x554   : > { %v876_v35 = vpop.f32.mrb[15].mxu0 }
 0x590   : > { %v432_v36 = vpop.permute.xlu0 %431 }
 0x591   : > { %435 = vst.msk [vmem:[%s1053_s27] sm:$0xff] %vm434_vm3, %v432_v36 }
 0x598   : > { %v551_v37 = vpop.permute.xlu1 %550 }
 0x599   : > { %554 = vst.msk [vmem:[%s1053_s27] sm:$0xff] %vm553_vm4, %v551_v37 }
 0x5c4   : > { %v670_v38 = vpop.permute.xlu0 %669 }
 0x5c5   : > { %673 = vst.msk [vmem:[%s1053_s27] sm:$0xff] %vm672_vm5, %v670_v38 }
 0x5c6 PF: > { %s13_s11 = sadd.s32 1, %s948_s11   ;;  %s1102_s9 = smov %s944_s10 }
 0x5c7   : > { %p10_p5 = scmp.ge.s32.totalorder %s13_s11, 4   ;;  %s1103_s10 = smov %s1105_s12 }
 0x5c9   :  { %12 = sbr.rel (!%p10_p5) target bundleno = 2 (0x2), region = 71 }

// kernel: frame_transformer_forward.23
= control target key start
LH: loop header
LB: loop body
LE: loop exit
PB: predicated region body
PF: predicated region fallthrough
CT: control target
= control target key end

     0   :  { %s1541_s9 = smov 0   ;;  %s1670_s0 = inlined_call_operand.vmem [shape: f32[2,6,408], index: 0, kind: input, shape index: {}]   ;;  %s1671_s1 = inlined_call_operand.vmem [shape: bf16[9,12,6], index: 1, kind: input, shape index: {}]   ;;  %s1672_s2 = inlined_call_operand.vmem [shape: f32[2,12,272], index: 2, kind: output, shape index: {}]  }
   0x1 LB: > { %s1277_s10 = sadd.s32 4294967295, %s1512_s9   ;;  %p1281_p0 = scmp.ge.s32.totalorder %s1512_s9, 1  ;;  %s1512_s9 = sphi %s1541_s9, %s12_s9  }
   0x2   : > { %p112_p1 = scmp.lt.s32.totalorder %s1512_s9, 3 }
   0x4   : > { %p113_p2 = pnand %p1281_p0, %p112_p1 }
   0x5   : > { %p134_p3 = scmp.lt.s32.totalorder (!%p113_p2), %s1277_s10, 1  ;;  %v1514_v0 = vmov (!%p113_p2), 0.0   ;;  %vm1515_vm0 = vmmov (!%p113_p2), 0   ;;  %v1516_v1 = vmov (!%p113_p2), 0   ;;  %s1517_s15 = smov (!%p113_p2), 93   ;;  %vm177_vm1 = vcmask (!%p113_p2), 1042432  }
   0x6   : > { %116 = sbr.rel (%p113_p2) target bundleno = 455 (0x1c7), region = 28  ;;  %1358 = vmatprep.subr.bf16.mxu1 (!%p113_p2), %v1514_v0  ;;  %1360 = vmatprep.mubr.msk.bf16.mxu1 (!%p113_p2), %vm1515_vm0, %v1514_v0  ;;  %s1518_s16 = smov (!%p113_p2), 94   ;;  %v1497_v11 = vld [vmem:[%s1671_s1 + $0x8] sm:$0x3f] (!%p113_p2)   ;;  %vm173_vm2 = vcmask (!%p113_p2), 48128   ;;  %vm170_vm3 = vcmask (!%p113_p2), 760832  }
   0x7   : > { %219 = vmatprep.mubr.bf16.mxu0 (!%p113_p2), %v1516_v1  ;;  %s1519_s17 = smov (!%p113_p2), 92   ;;  %s1520_s18 = smov (!%p113_p2), 60   ;;  %vm282_vm4 = vcmask (!%p113_p2), 769024   ;;  %v1498_v25 = vld [vmem:[%s1671_s1] sm:$0x3f] (!%p113_p2)   ;;  %vm395_vm5 = vcmask (!%p113_p2), 752640  }
   0x8   : > { %s1521_s19 = smov (!%p113_p2), 59   ;;  %s1522_s20 = smov (!%p113_p2), 58   ;;  %vm514_vm6 = vcmask (!%p113_p2), 490496   ;;  %v1499_v36 = vld [vmem:[%s1671_s1 + $0x10] sm:$0x3f] (!%p113_p2)   ;;  %vm633_vm7 = vcmask (!%p113_p2), 482304  }
   0x9   : > { %s1523_s21 = smov (!%p113_p2), 26   ;;  %s1524_s22 = smov (!%p113_p2), 25   ;;  %v1500_v44 = vld [vmem:[%s1671_s1 + $0x18] sm:$0x3f] (!%p113_p2)   ;;  %vm752_vm8 = vcmask (!%p113_p2), 474112   ;;  %vm871_vm9 = vcmask (!%p113_p2), 211968  }
   0xa   : > { %s1525_s23 = smov (!%p113_p2), 24   ;;  %v1501_v52 = vld [vmem:[%s1671_s1 + $0x20] sm:$0x3f] (!%p113_p2)   ;;  %v1502_v60 = vld [vmem:[%s1671_s1 + $0x28] sm:$0x3f] (!%p113_p2)   ;;  %vm990_vm10 = vcmask (!%p113_p2), 203776  }
   0xb   : > { %vm1109_vm11 = vcmask (!%p113_p2), 195584   ;;  %vm1216_vm12 = vcmask (!%p113_p2), 130048   ;;  %vm1220_vm13 = vcmask (!%p113_p2), 125952  }
   0xd   : > { %s1674_s10 = smov (!%p134_p3, %s1277_s10), 1 }
   0xe   : > { %s1339_s11 = sshll.u32 %s1674_s10, 5 }
   0xf   : > { %s138_s14 = scalar_lea.vmem %s1670_s0, %s1339_s11 }
  0x10   : > { %v147_v2 = vld [vmem:[%s138_s14 + $0x10] sm:$0x3f]  ;;  %v145_v3 = vld [vmem:[%s138_s14] sm:$0x3f]  ;;  %v146_v4 = vld [vmem:[%s138_s14 + $0x8] sm:$0x3f] }
  0x11   : > { %v150_v5 = vpack.c.bf16 %v147_v2, %v147_v2  ;;  %v148_v6 = vpack.c.bf16 %v145_v3, %v145_v3  ;;  %v149_v7 = vpack.c.bf16 %v146_v4, %v146_v4 }
  0x13   : > { %168 = vrot.lane.b32.xlu1 %v150_v5, %s1517_s15  ;;  %164 = vrot.lane.b32.xlu0 %v148_v6, %s1517_s15 }
  0x17   : > { %276 = vrot.lane.b32.xlu1 %v148_v6, %s1518_s16  ;;  %166 = vrot.lane.b32.xlu0 %v149_v7, %s1517_s15 }
  0x1b   : > { %280 = vrot.lane.b32.xlu1 %v150_v5, %s1518_s16  ;;  %278 = vrot.lane.b32.xlu0 %v149_v7, %s1518_s16  ;;  %s1476_s16 = smul.u32 48, %s1674_s10 }
  0x1f   : > { %389 = vrot.lane.b32.xlu0 %v148_v6, %s1519_s17  ;;  %391 = vrot.lane.b32.xlu1 %v149_v7, %s1519_s17 }
  0x23   : > { %393 = vrot.lane.b32.xlu0 %v150_v5, %s1519_s17  ;;  %508 = vrot.lane.b32.xlu1 %v148_v6, %s1520_s18 }
  0x27   : > { %510 = vrot.lane.b32.xlu0 %v149_v7, %s1520_s18  ;;  %512 = vrot.lane.b32.xlu1 %v150_v5, %s1520_s18 }
  0x2b   : > { %627 = vrot.lane.b32.xlu0 %v148_v6, %s1521_s19  ;;  %629 = vrot.lane.b32.xlu1 %v149_v7, %s1521_s19 }
  0x2f   : > { %631 = vrot.lane.b32.xlu0 %v150_v5, %s1521_s19  ;;  %746 = vrot.lane.b32.xlu1 %v148_v6, %s1522_s20  ;;  %s143_s19 = scalar_lea.vmem %s1672_s2, %s1476_s16 }
  0x33   : > { %748 = vrot.lane.b32.xlu0 %v149_v7, %s1522_s20  ;;  %750 = vrot.lane.b32.xlu1 %v150_v5, %s1522_s20 }
  0x37   : > { %865 = vrot.lane.b32.xlu0 %v148_v6, %s1523_s21  ;;  %867 = vrot.lane.b32.xlu1 %v149_v7, %s1523_s21 }
  0x3b   : > { %869 = vrot.lane.b32.xlu0 %v150_v5, %s1523_s21  ;;  %984 = vrot.lane.b32.xlu1 %v148_v6, %s1524_s22 }
  0x3f   : > { %986 = vrot.lane.b32.xlu0 %v149_v7, %s1524_s22  ;;  %988 = vrot.lane.b32.xlu1 %v150_v5, %s1524_s22 }
  0x43   : > { %1103 = vrot.lane.b32.xlu0 %v148_v6, %s1525_s23  ;;  %1105 = vrot.lane.b32.xlu1 %v149_v7, %s1525_s23  ;;  %v1503_v6 = vld [vmem:[%s1671_s1 + $0x30] sm:$0x3f]  }
  0x47   : > { %1107 = vrot.lane.b32.xlu0 %v150_v5, %s1525_s23 }
  0x85   : > { %v169_v8 = vpop.permute.xlu1 %168  ;;  %v165_v9 = vpop.permute.xlu0 %164 }
  0x86   : > { %v185_v10 = vsel %vm177_vm1, %v169_v8, 0 }
  0x87   : > { %1359 = vmatpush3.bf16.msra.mxu1 %v185_v10 }
  0x88   : > { %1364 = vmatprep.subr.bf16.mxu1 %v1514_v0 }
  0x89   : > { %v277_v12 = vpop.permute.xlu1 %276  ;;  %v167_v13 = vpop.permute.xlu0 %166 }
  0x8a   : > { %1361 = vmatmul.mubr.msk.bf16.vlgmr.msra.gmra.mrb[0].mxu1 %vm173_vm2, %v1497_v11  ;;  %v172_v14 = vsel %vm170_vm3, %v167_v13, %v169_v8  ;;  %v171_v15 = vsel %vm170_vm3, %v165_v9, %v167_v13  ;;  %v1504_v13 = vld [vmem:[%s1671_s1 + $0x38] sm:$0x3f]  }
  0x8b   : > { %1288 = vmatprep.subr.msk.bf16.mxu0 %vm177_vm1, %v172_v14  ;;  %v179_v16 = vsel %vm177_vm1, %v171_v15, 0  ;;  %1366 = vmatprep.mubr.msk.bf16.mxu1 %vm1515_vm0, %v1514_v0 }
  0x8c   : > { %188 = vmatpush1.bf16.msra.mxu0 %v179_v16 }
  0x8d   : > { %v281_v17 = vpop.permute.xlu1 %280  ;;  %v279_v18 = vpop.permute.xlu0 %278 }
  0x8e   : > { %v295_v19 = vsel %vm177_vm1, %v281_v17, 0  ;;  %v283_v20 = vsel %vm282_vm4, %v277_v12, %v279_v18  ;;  %v284_v21 = vsel %vm282_vm4, %v279_v18, %v281_v17  ;;  %v1505_v17 = vld [vmem:[%s1671_s1 + $0x40] sm:$0x3f]  }
  0x8f   : > { %v289_v22 = vsel %vm177_vm1, %v283_v20, 0  ;;  %1289 = vmatmul.mubr.msk.bf16.vlgmr.msra.gmra.mrb[0].mxu0 %vm173_vm2, %v1497_v11  ;;  %1292 = vmatprep.subr.msk.bf16.mxu0 %vm177_vm1, %v284_v21 }
  0x90   : > { %1365 = vmatpush3.bf16.msra.mxu1 %v295_v19  ;;  %298 = vmatpush1.bf16.msra.mxu0 %v289_v22 }
  0x91   : > { %v390_v23 = vpop.permute.xlu0 %389  ;;  %v392_v24 = vpop.permute.xlu1 %391  ;;  %329 = vmatprep.mubr.bf16.mxu0 %v1516_v1  ;;  %1370 = vmatprep.subr.bf16.mxu1 %v1514_v0 }
  0x92   : > { %v396_v28 = vsel %vm395_vm5, %v390_v23, %v392_v24 }
  0x93   : > { %v402_v31 = vsel %vm177_vm1, %v396_v28, 0 }
  0x95   : > { %v394_v26 = vpop.permute.xlu0 %393  ;;  %v509_v27 = vpop.permute.xlu1 %508 }
  0x96   : > { %1367 = vmatmul.mubr.msk.bf16.vlgmr.msra.gmra.mrb[0].mxu1 %vm173_vm2, %v1498_v25  ;;  %v397_v29 = vsel %vm395_vm5, %v392_v24, %v394_v26  ;;  %v408_v30 = vsel %vm177_vm1, %v394_v26, 0 }
  0x97   : > { %1298 = vmatprep.subr.msk.bf16.mxu0 %vm177_vm1, %v397_v29  ;;  %1371 = vmatpush3.bf16.msra.mxu1 %v408_v30 }
  0x98   : > { %1372 = vmatprep.mubr.msk.bf16.mxu1 %vm1515_vm0, %v1514_v0  ;;  %1376 = vmatprep.subr.bf16.mxu1 %v1514_v0 }
  0x99   : > { %v511_v32 = vpop.permute.xlu0 %510  ;;  %v513_v33 = vpop.permute.xlu1 %512 }
  0x9a   : > { %v516_v34 = vsel %vm514_vm6, %v511_v32, %v513_v33  ;;  %v527_v37 = vsel %vm177_vm1, %v513_v33, 0  ;;  %v515_v38 = vsel %vm514_vm6, %v509_v27, %v511_v32 }
  0x9b   : > { %1293 = vmatmul.mubr.msk.bf16.vlgmr.msra.gmra.mrb[0].mxu0 %vm173_vm2, %v1498_v25  ;;  %v521_v41 = vsel %vm177_vm1, %v515_v38, 0 }
  0x9c   : > { %411 = vmatpush1.bf16.msra.mxu0 %v402_v31  ;;  %442 = vmatprep.mubr.bf16.mxu0 %v1516_v1 }
  0x9d   : > { %1304 = vmatprep.subr.msk.bf16.mxu0 %vm177_vm1, %v516_v34  ;;  %v628_v35 = vpop.permute.xlu0 %627  ;;  %v630_v39 = vpop.permute.xlu1 %629 }
  0x9e   : > { %v634_v46 = vsel %vm633_vm7, %v628_v35, %v630_v39 }
  0x9f   : > { %v640_v49 = vsel %vm177_vm1, %v634_v46, 0 }
  0xa1   : > { %v632_v40 = vpop.permute.xlu0 %631  ;;  %v747_v43 = vpop.permute.xlu1 %746 }
  0xa2   : > { %1373 = vmatmul.mubr.msk.bf16.vlgmr.msra.gmra.mrb[0].mxu1 %vm173_vm2, %v1499_v36  ;;  %v635_v42 = vsel %vm633_vm7, %v630_v39, %v632_v40  ;;  %v646_v45 = vsel %vm177_vm1, %v632_v40, 0 }
  0xa3   : > { %1377 = vmatpush3.bf16.msra.mxu1 %v527_v37  ;;  %1378 = vmatprep.mubr.msk.bf16.mxu1 %vm1515_vm0, %v1514_v0 }
  0xa4   : > { %1382 = vmatprep.subr.bf16.mxu1 %v1514_v0 }
  0xa5   : > { %v749_v47 = vpop.permute.xlu0 %748  ;;  %v751_v48 = vpop.permute.xlu1 %750 }
  0xa6   : > { %v754_v50 = vsel %vm752_vm8, %v749_v47, %v751_v48  ;;  %v765_v53 = vsel %vm177_vm1, %v751_v48, 0  ;;  %v753_v54 = vsel %vm752_vm8, %v747_v43, %v749_v47 }
  0xa7   : > { %1299 = vmatmul.mubr.msk.bf16.vlgmr.msra.gmra.mrb[0].mxu0 %vm173_vm2, %v1499_v36  ;;  %v759_v57 = vsel %vm177_vm1, %v753_v54, 0 }
  0xa8   : > { %530 = vmatpush1.bf16.msra.mxu0 %v521_v41  ;;  %561 = vmatprep.mubr.bf16.mxu0 %v1516_v1 }
  0xa9   : > { %1310 = vmatprep.subr.msk.bf16.mxu0 %vm177_vm1, %v635_v42  ;;  %v866_v51 = vpop.permute.xlu0 %865  ;;  %v868_v55 = vpop.permute.xlu1 %867 }
  0xaa   : > { %v872_v62 = vsel %vm871_vm9, %v866_v51, %v868_v55 }
  0xab   : > { %v878_v3 = vsel %vm177_vm1, %v872_v62, 0 }
  0xad   : > { %v870_v56 = vpop.permute.xlu0 %869  ;;  %v985_v59 = vpop.permute.xlu1 %984 }
  0xae   : > { %1379 = vmatmul.mubr.msk.bf16.vlgmr.msra.gmra.mrb[0].mxu1 %vm173_vm2, %v1500_v44  ;;  %v873_v58 = vsel %vm871_vm9, %v868_v55, %v870_v56  ;;  %v884_v61 = vsel %vm177_vm1, %v870_v56, 0 }
  0xaf   : > { %1383 = vmatpush3.bf16.msra.mxu1 %v646_v45  ;;  %1384 = vmatprep.mubr.msk.bf16.mxu1 %vm1515_vm0, %v1514_v0 }
  0xb0   : > { %1388 = vmatprep.subr.bf16.mxu1 %v1514_v0 }
  0xb1   : > { %v987_v63 = vpop.permute.xlu0 %986  ;;  %v989_v2 = vpop.permute.xlu1 %988 }
  0xb2   : > { %v992_v4 = vsel %vm990_vm10, %v987_v63, %v989_v2  ;;  %v1003_v7 = vsel %vm177_vm1, %v989_v2, 0  ;;  %v991_v8 = vsel %vm990_vm10, %v985_v59, %v987_v63 }
  0xb3   : > { %1305 = vmatmul.mubr.msk.bf16.vlgmr.msra.gmra.mrb[0].mxu0 %vm173_vm2, %v1500_v44  ;;  %v997_v11 = vsel %vm177_vm1, %v991_v8, 0 }
  0xb4   : > { %649 = vmatpush1.bf16.msra.mxu0 %v640_v49  ;;  %680 = vmatprep.mubr.bf16.mxu0 %v1516_v1 }
  0xb5   : > { %1316 = vmatprep.subr.msk.bf16.mxu0 %vm177_vm1, %v754_v50  ;;  %v1104_v5 = vpop.permute.xlu0 %1103  ;;  %v1106_v9 = vpop.permute.xlu1 %1105 }
  0xb6   : > { %v1110_v15 = vsel %vm1109_vm11, %v1104_v5, %v1106_v9 }
  0xb7   : > { %v1116_v16 = vsel %vm177_vm1, %v1110_v15, 0 }
  0xb9   : > { %v1108_v10 = vpop.permute.xlu0 %1107 }
  0xba   : > { %1385 = vmatmul.mubr.msk.bf16.vlgmr.msra.gmra.mrb[0].mxu1 %vm173_vm2, %v1501_v52  ;;  %v1111_v12 = vsel %vm1109_vm11, %v1106_v9, %v1108_v10  ;;  %v1122_v14 = vsel %vm177_vm1, %v1108_v10, 0 }
  0xbb   : > { %1389 = vmatpush3.bf16.msra.mxu1 %v765_v53  ;;  %1390 = vmatprep.mubr.msk.bf16.mxu1 %vm1515_vm0, %v1514_v0 }
  0xbc   : > { %1394 = vmatprep.subr.bf16.mxu1 %v1514_v0 }
  0xbf   : > { %1311 = vmatmul.mubr.msk.bf16.vlgmr.msra.gmra.mrb[0].mxu0 %vm173_vm2, %v1501_v52 }
  0xc0   : > { %768 = vmatpush1.bf16.msra.mxu0 %v759_v57  ;;  %799 = vmatprep.mubr.bf16.mxu0 %v1516_v1 }
  0xc1   : > { %1322 = vmatprep.subr.msk.bf16.mxu0 %vm177_vm1, %v873_v58 }
  0xc6   : > { %1391 = vmatmul.mubr.msk.bf16.vlgmr.msra.gmra.mrb[0].mxu1 %vm173_vm2, %v1502_v60 }
  0xc7   : > { %1395 = vmatpush3.bf16.msra.mxu1 %v884_v61  ;;  %1396 = vmatprep.mubr.msk.bf16.mxu1 %vm1515_vm0, %v1514_v0 }
  0xc8   : > { %1400 = vmatprep.subr.bf16.mxu1 %v1514_v0 }
  0xcb   : > { %1317 = vmatmul.mubr.msk.bf16.vlgmr.msra.gmra.mrb[0].mxu0 %vm173_vm2, %v1502_v60 }
  0xcc   : > { %887 = vmatpush1.bf16.msra.mxu0 %v878_v3  ;;  %918 = vmatprep.mubr.bf16.mxu0 %v1516_v1 }
  0xcd   : > { %1328 = vmatprep.subr.msk.bf16.mxu0 %vm177_vm1, %v992_v4 }
  0xd2   : > { %1397 = vmatmul.mubr.msk.bf16.vlgmr.msra.gmra.mrb[0].mxu1 %vm173_vm2, %v1503_v6 }
  0xd3   : > { %1401 = vmatpush3.bf16.msra.mxu1 %v1003_v7  ;;  %1402 = vmatprep.mubr.msk.bf16.mxu1 %vm1515_vm0, %v1514_v0 }
  0xd4   : > { %1406 = vmatprep.subr.bf16.mxu1 %v1514_v0 }
  0xd7   : > { %1323 = vmatmul.mubr.msk.bf16.vlgmr.msra.gmra.mrb[0].mxu0 %vm173_vm2, %v1503_v6 }
  0xd8   : > { %1006 = vmatpush1.bf16.msra.mxu0 %v997_v11  ;;  %1037 = vmatprep.mubr.bf16.mxu0 %v1516_v1 }
  0xd9   : > { %1334 = vmatprep.subr.msk.bf16.mxu0 %vm177_vm1, %v1111_v12 }
  0xde   : > { %1403 = vmatmul.mubr.msk.bf16.vlgmr.msra.gmra.mrb[0].mxu1 %vm173_vm2, %v1504_v13 }
  0xdf   : > { %1407 = vmatpush3.bf16.msra.mxu1 %v1122_v14  ;;  %1408 = vmatprep.mubr.msk.bf16.mxu1 %vm1515_vm0, %v1514_v0 }
  0xe3   : > { %1329 = vmatmul.mubr.msk.bf16.vlgmr.msra.gmra.mrb[0].mxu0 %vm173_vm2, %v1504_v13 }
  0xe4   : > { %1125 = vmatpush1.bf16.msra.mxu0 %v1116_v16  ;;  %1156 = vmatprep.mubr.bf16.mxu0 %v1516_v1 }
  0xea   : > { %1409 = vmatmul.mubr.msk.bf16.vlgmr.msra.gmra.mrb[0].mxu1 %vm173_vm2, %v1505_v17 }
  0xef   : > { %1335 = vmatmul.mubr.msk.bf16.vlgmr.msra.gmra.mrb[0].mxu0 %vm173_vm2, %v1505_v17 }
 0x1bd   : > { %v1201_v0 = vpop.f32.mrb[0].mxu1 }
 0x1be   : > { %1217 = vst.msk [vmem:[%s143_s19 + $0x10] sm:$0xff] %vm1216_vm12, %v1201_v0  ;;  %v1410_v18 = vpop.f32.mrb[1].mxu1 }
 0x1bf   : > { %v1204_v19 = vpop.f32.mrb[2].mxu1 }
 0x1c0   : > { %1221 = vst.msk [vmem:[%s143_s19 + $0x28] sm:$0xf] %vm1220_vm13, %v1204_v19  ;;  %v1411_v1 = vpop.f32.mrb[3].mxu1 }
 0x1c2   : > { %v1158_v20 = vpop.f32.mrb[0].mxu0 }
 0x1c3   : > { %1214 = vst [vmem:[%s143_s19] sm:$0xff] %v1158_v20  ;;  %v1160_v21 = vpop.f32.mrb[1].mxu0 }
 0x1c4   : > { %1215 = vst [vmem:[%s143_s19 + $0x8] sm:$0xff] %v1160_v21  ;;  %v1162_v22 = vpop.f32.mrb[2].mxu0 }
 0x1c5   : > { %1218 = vst [vmem:[%s143_s19 + $0x18] sm:$0xf] %v1162_v22  ;;  %v1164_v23 = vpop.f32.mrb[3].mxu0 }
 0x1c6   : > { %1219 = vst [vmem:[%s143_s19 + $0x20] sm:$0xf] %v1164_v23 }
 0x1c7 PF: > { %s12_s9 = sadd.s32 1, %s1512_s9  }
 0x1c8   : > { %p9_p4 = scmp.ge.s32.totalorder %s12_s9, 4  }
 0x1ca   :  { %11 = sbr.rel (!%p9_p4) target bundleno = 1 (0x1), region = 66 }

// kernel: frame_transformer_forward.24
= control target key start
LH: loop header
LB: loop body
LE: loop exit
PB: predicated region body
PF: predicated region fallthrough
CT: control target
= control target key end

     0   :  { %s796_s12 = smov 0   ;;  %s798_s13 = smov 0   ;;  %s888_s0 = inlined_call_operand.vmem [shape: f32[2,12,8,34], index: 0, kind: input, shape index: {}]   ;;  %s889_s1 = inlined_call_operand.vmem [shape: bf16[12,34,64], index: 1, kind: input, shape index: {}]   ;;  %s890_s2 = inlined_call_operand.vmem [shape: bf16[12,64,32], index: 2, kind: input, shape index: {}]   ;;  %s891_s3 = inlined_call_operand.vmem [shape: f32[2,12,8,32], index: 3, kind: output, shape index: {}]  }
   0x1   :  { %s800_s14 = smov 0  }
   0x2 LB: > { %s809_s15 = sadd.s32 4294967295, %s772_s14   ;;  %s811_s16 = sadd.s32 1, %s772_s14   ;;  %s772_s14 = sphi %s800_s14, %s895_s14   ;;  %s768_s13 = sphi %s798_s13, %s894_s13   ;;  %s764_s12 = sphi %s796_s12, %s893_s12  }
   0x3   : > { %s17_s17 = ssub.s32 %s772_s14, %s811_s16  ;;  %s20_s18 = sadd.s32 1, %s768_s13 }
   0x4   : > { %p18_p0 = scmp.eq.s32.totalorder %s17_s17, 0  ;;  %p27_p1 = scmp.ne.s32.totalorder %s768_s13, %s764_s12 }
   0x5   : > { %p28_p2 = scmp.eq.s32.totalorder %s772_s14, 0  ;;  %p109_p3 = scmp.eq.s32.totalorder %s809_s15, 11 }
   0x6   : > { %s819_s19 = scalar_select %p18_p0, %s768_s13, %s20_s18  }
   0x7   : > { %p29_p4 = por %p28_p2, %p27_p1  ;;  %p821_p5 = por %p109_p3, %p27_p1 }
   0x8   : > { %p623_p6 = scmp.ge.s32.totalorder %s772_s14, 12 }
   0xa   : > { %131 = sbr.rel (%p623_p6) target bundleno = 24 (0x18), region = 16 }
  0x11   : > { %134 = sbr.rel (!%p29_p4) target bundleno = 24 (0x18), region = 20  ;;  %s136_s21 = sand.u32 (%p29_p4), 1, %s768_s13  }
  0x12   : > { %s625_s22 = sshll.u32 (%p29_p4), %s772_s14, 3  ;;  %s624_s23 = sshll.u32 (%p29_p4), %s136_s21, 4 }
  0x13   : > { %s140_s26 = scalar_lea.vmem (%p29_p4), %s888_s0, %s625_s22  ;;  %s138_s27 = scalar_lea.vmem (%p29_p4), [#allocation2], %s624_s23 }
  0x14   : > { %v170_v0 = vld [vmem:[%s140_s26] sm:$0xff] (%p29_p4) }
  0x15   : > { %v172_v1 = vld [vmem:[%s140_s26 + $0x60] sm:$0xff] (%p29_p4)  ;;  %171 = vst [vmem:[%s138_s27] sm:$0xff] (%p29_p4), %v170_v0 }
  0x16   : > { %173 = vst [vmem:[%s138_s27 + $0x8] sm:$0xff] (%p29_p4), %v172_v1 }
  0x18 PF: > { %p626_p7 = scmp.ge.s32.totalorder %s772_s14, 1  ;;  %p194_p8 = scmp.lt.s32.totalorder %s772_s14, 13 }
  0x1a   : > { %p195_p9 = pnand %p626_p7, %p194_p8 }
  0x1b   : > { %p233_p10 = scmp.lt.s32.totalorder (!%p195_p9), %s809_s15, 11  ;;  %v774_v2 = vmov (!%p195_p9), 0.0   ;;  %vm775_vm0 = vmmov (!%p195_p9), 0   ;;  %s201_s28 = sand.u32 (!%p195_p9), 1, %s764_s12   ;;  %vm278_vm1 = vcmask (!%p195_p9), 1040384   ;;  %vm274_vm2 = vcmask (!%p195_p9), 277504  }
  0x1c   : > { %198 = sbr.rel (%p195_p9) target bundleno = 520 (0x208), region = 66  ;;  %668 = vmatprep.subr.bf16.mxu0 (!%p195_p9), %v774_v2  ;;  %674 = vmatprep.mubr.msk.bf16.mxu0 (!%p195_p9), %vm775_vm0, %v774_v2  ;;  %s843_s8 = sshll.u32 (!%p195_p9), %s201_s28, 4  ;;  %vm352_vm3 = vcmask (!%p195_p9), 523264   ;;  %vm396_vm4 = vcmask (!%p195_p9), 261120  }
  0x1d   : > { %678 = vmatprep.subr.bf16.mxu1 (!%p195_p9), %v774_v2  ;;  %686 = vmatprep.mubr.msk.bf16.mxu1 (!%p195_p9), %vm775_vm0, %v774_v2  ;;  %s203_s12 = scalar_lea.vmem (!%p195_p9), [#allocation2], %s843_s8  ;;  %s232_s14 = scalar_lea.vmem (!%p195_p9), [#allocation3], %s843_s8 }
  0x1e   : > { %v257_v6 = vld [vmem:[%s203_s12] sm:$0xff] (!%p195_p9)  ;;  %v641_v9 = vld [vmem:[%s203_s12 + $0x8] sm:$0xff] (!%p195_p9) }
  0x1f   : > { %v258_v8 = vpack.c.bf16 (!%p195_p9), %v257_v6, %v257_v6  ;;  %v400_v10 = vpack.c.bf16 (!%p195_p9), %v641_v9, %v641_v9 }
  0x23   : > { %s234_s29 = scalar_select %p233_p10, %s809_s15, 11 }
  0x24   : > { %s646_s17 = sshll.u32 (%p821_p5), %s809_s15, 3 }
  0x25   : > { %s712_s30 = smul.u32 20, %s234_s29  ;;  %s649_s4 = sshll.u32 %s234_s29, 5 }
  0x26   : > { %s841_s7 = scalar_lea.vmem %s890_s2, %s649_s4  ;;  %s503_s22 = scalar_lea.vmem (%p821_p5), %s891_s3, %s646_s17 }
  0x27   : > { %s237_s11 = scalar_lea.vmem %s889_s1, %s712_s30  ;;  %v742_v11 = vld [vmem:[%s841_s7] sm:$0xff]   ;;  %v743_v12 = vld [vmem:[%s841_s7 + $0x8] sm:$0xff]   ;;  %v744_v13 = vld [vmem:[%s841_s7 + $0x10] sm:$0xff]  }
  0x28   : > { %v739_v3 = vld [vmem:[%s237_s11] sm:$0xff]   ;;  %v740_v4 = vld [vmem:[%s237_s11 + $0x8] sm:$0xff]   ;;  %v741_v5 = vld [vmem:[%s237_s11 + $0x10] ss:$0 sps:$4 sm:$0x11]   ;;  %679 = vmatpush3.bf16.msra.mxu1 %v742_v11 }
  0x29   : > { %669 = vmatpush3.bf16.msra.mxu0 %v739_v3  ;;  %v280_v7 = vsel %vm278_vm1, %v741_v5, 0  ;;  %680 = vmatprep.subr.bf16.mxu1 %v774_v2  ;;  %v745_v14 = vld [vmem:[%s841_s7 + $0x18] sm:$0xff]  }
  0x2a   : > { %670 = vmatprep.subr.bf16.mxu0 %v774_v2 }
  0x2c   : > { %681 = vmatpush3.bf16.msra.mxu1 %v743_v12 }
  0x2d   : > { %671 = vmatpush3.bf16.msra.mxu0 %v740_v4  ;;  %682 = vmatprep.subr.bf16.mxu1 %v774_v2 }
  0x2e   : > { %672 = vmatprep.subr.bf16.mxu0 %v774_v2 }
  0x30   : > { %683 = vmatpush3.bf16.msra.mxu1 %v744_v13 }
  0x31   : > { %673 = vmatpush3.bf16.msra.mxu0 %v280_v7  ;;  %684 = vmatprep.subr.bf16.mxu1 %v774_v2 }
  0x32   : > { %690 = vmatprep.subr.bf16.mxu0 %v774_v2 }
  0x34   : > { %675 = vmatmul.mubr.msk.bf16.vlgmr.msra.gmra.mrb[0].mxu0 %vm274_vm2, %v258_v8  ;;  %685 = vmatpush3.bf16.msra.mxu1 %v745_v14 }
  0x35   : > { %691 = vmatpush3.bf16.msra.mxu0 %v739_v3  ;;  %696 = vmatprep.mubr.msk.bf16.mxu0 %vm775_vm0, %v774_v2 }
  0x36   : > { %692 = vmatprep.subr.bf16.mxu0 %v774_v2  ;;  %700 = vmatprep.subr.bf16.mxu1 %v774_v2 }
  0x39   : > { %693 = vmatpush3.bf16.msra.mxu0 %v740_v4 }
  0x3a   : > { %694 = vmatprep.subr.bf16.mxu0 %v774_v2 }
  0x3d   : > { %695 = vmatpush3.bf16.msra.mxu0 %v280_v7 }
  0x40   : > { %697 = vmatmul.mubr.msk.bf16.vlgmr.msra.gmra.mrb[4].mxu0 %vm274_vm2, %v400_v10 }
 0x107   : > { %v316_v15 = vpop.f32.mrb[0].mxu0 }
 0x108   : > { %v323_v16 = vmul.f32 0.70710677, %v316_v15  ;;  %v676_v17 = vpop.f32.mrb[1].mxu0  ;;  %v322_v24 = vmul.f32 0.5, %v316_v15 }
 0x109   : > { %v319_v18 = vpop.f32.mrb[2].mxu0 }
 0x10a   : > { %746 = verf.f32 %v323_v16  ;;  %v677_v19 = vpop.f32.mrb[3].mxu0 }
 0x113   : > { %v438_v20 = vpop.f32.mrb[4].mxu0 }
 0x114   : > { %v747_v21 = vpop.eup %746  ;;  %v445_v22 = vmul.f32 0.70710677, %v438_v20  ;;  %v698_v23 = vpop.f32.mrb[5].mxu0  ;;  %v444_v32 = vmul.f32 0.5, %v438_v20 }
 0x115   : > { %v325_v25 = vadd.f32 1.0, %v747_v21  ;;  %v441_v26 = vpop.f32.mrb[6].mxu0 }
 0x116   : > { %748 = verf.f32 %v445_v22  ;;  %v699_v27 = vpop.f32.mrb[7].mxu0 }
 0x117   : > { %v326_v28 = vmul.f32 %v325_v25, %v322_v24 }
 0x119   : > { %v327_v29 = vpack.c.bf16 %v326_v28, %v326_v28 }
 0x11b   : > { %687 = vmatmul.mubr.msk.bf16.vlgmr.msra.gmra.mrb[0].mxu1 %vm352_vm3, %v327_v29 }
 0x11c   : > { %701 = vmatpush3.bf16.msra.mxu1 %v742_v11  ;;  %708 = vmatprep.mubr.msk.bf16.mxu1 %vm775_vm0, %v774_v2 }
 0x11d   : > { %702 = vmatprep.subr.bf16.mxu1 %v774_v2 }
 0x120   : > { %v749_v30 = vpop.eup %748  ;;  %703 = vmatpush3.bf16.msra.mxu1 %v743_v12 }
 0x121   : > { %v447_v31 = vadd.f32 1.0, %v749_v30  ;;  %704 = vmatprep.subr.bf16.mxu1 %v774_v2 }
 0x123   : > { %v448_v33 = vmul.f32 %v447_v31, %v444_v32 }
 0x124   : > { %705 = vmatpush3.bf16.msra.mxu1 %v744_v13 }
 0x125   : > { %706 = vmatprep.subr.bf16.mxu1 %v774_v2  ;;  %v449_v34 = vpack.c.bf16 %v448_v33, %v448_v33 }
 0x128   : > { %707 = vmatpush3.bf16.msra.mxu1 %v745_v14 }
 0x12b   : > { %709 = vmatmul.mubr.msk.bf16.vlgmr.msra.gmra.mrb[4].mxu1 %vm352_vm3, %v449_v34 }
 0x1ee   : > { %v390_v35 = vpop.f32.mrb[0].mxu1 }
 0x1ef   : > { %397 = vst.msk [vmem:[%s232_s14] sm:$0xff] %vm396_vm4, %v390_v35  ;;  %v688_v36 = vpop.f32.mrb[1].mxu1 }
 0x1f0   : > { %v393_v37 = vpop.f32.mrb[2].mxu1 }
 0x1f1   : > { %v689_v38 = vpop.f32.mrb[3].mxu1 }
 0x1f6   : > { %v533_v43 = vld [vmem:[%s232_s14] sm:$0xff] (%p821_p5) }
 0x1f7   : > { %534 = vst [vmem:[%s503_s22] sm:$0xff] (%p821_p5), %v533_v43 }
 0x1fb   : > { %501 = sbr.rel (!%p821_p5) target bundleno = 520 (0x208), region = 74 }
 0x1fe   : > { %v487_v39 = vpop.f32.mrb[4].mxu1 }
 0x1ff   : > { %644 = vst.msk [vmem:[%s232_s14 + $0x8] sm:$0xff] %vm396_vm4, %v487_v39  ;;  %v710_v40 = vpop.f32.mrb[5].mxu1 }
 0x200   : > { %v490_v41 = vpop.f32.mrb[6].mxu1 }
 0x201   : > { %v711_v42 = vpop.f32.mrb[7].mxu1 }
 0x206   : > { %v535_v44 = vld [vmem:[%s232_s14 + $0x8] sm:$0xff] }
 0x207   : > { %536 = vst [vmem:[%s503_s22 + $0x60] sm:$0xff] %v535_v44 }
 0x208 PF: > { %p10_p11 = scmp.ge.s32.totalorder %s811_s16, 14   ;;  %s893_s12 = smov %s768_s13 }
 0x209   : > { %s894_s13 = smov %s819_s19  ;;  %s895_s14 = smov %s811_s16 }
 0x20a   :  { %12 = sbr.rel (!%p10_p11) target bundleno = 2 (0x2), region = 151 }

// kernel: frame_transformer_forward.25
= control target key start
LH: loop header
LB: loop body
LE: loop exit
PB: predicated region body
PF: predicated region fallthrough
CT: control target
= control target key end

     0   :  { %s1412_s9 = smov 0   ;;  %s1541_s0 = inlined_call_operand.vmem [shape: f32[2,12,408], index: 0, kind: input, shape index: {}]   ;;  %s1542_s1 = inlined_call_operand.vmem [shape: bf16[9,5,12], index: 1, kind: input, shape index: {}]   ;;  %s1543_s2 = inlined_call_operand.vmem [shape: f32[2,5,272], index: 2, kind: output, shape index: {}]  }
   0x1 LB: > { %s1174_s10 = sadd.s32 4294967295, %s1383_s9   ;;  %p1178_p0 = scmp.ge.s32.totalorder %s1383_s9, 1  ;;  %s1383_s9 = sphi %s1412_s9, %s12_s9  }
   0x2   : > { %p112_p1 = scmp.lt.s32.totalorder %s1383_s9, 3 }
   0x4   : > { %p113_p2 = pnand %p1178_p0, %p112_p1 }
   0x5   : > { %p134_p3 = scmp.lt.s32.totalorder (!%p113_p2), %s1174_s10, 1  ;;  %v1385_v0 = vmov (!%p113_p2), 0.0   ;;  %vm1386_vm0 = vmmov (!%p113_p2), 0   ;;  %v1387_v1 = vmov (!%p113_p2), 0   ;;  %s1388_s15 = smov (!%p113_p2), 93   ;;  %vm173_vm1 = vcmask (!%p113_p2), 1045504  }
   0x6   : > { %116 = sbr.rel (%p113_p2) target bundleno = 455 (0x1c7), region = 28  ;;  %1238 = vmatprep.subr.bf16.mxu1 (!%p113_p2), %v1385_v0  ;;  %1240 = vmatprep.mubr.msk.bf16.mxu1 (!%p113_p2), %vm1386_vm0, %v1385_v0  ;;  %s1389_s16 = smov (!%p113_p2), 94   ;;  %v1182_v14 = vld [vmem:[%s1542_s1 + $0x4] sm:$0x7] (!%p113_p2)  ;;  %vm169_vm2 = vcmask (!%p113_p2), 97280   ;;  %vm166_vm3 = vcmask (!%p113_p2), 760832  }
   0x7   : > { %215 = vmatprep.mubr.bf16.mxu0 (!%p113_p2), %v1387_v1  ;;  %s1390_s17 = smov (!%p113_p2), 92   ;;  %s1391_s18 = smov (!%p113_p2), 60   ;;  %vm270_vm4 = vcmask (!%p113_p2), 769024   ;;  %v154_v28 = vld [vmem:[%s1542_s1] sm:$0x7] (!%p113_p2)  ;;  %vm374_vm5 = vcmask (!%p113_p2), 752640  }
   0x8   : > { %s1392_s19 = smov (!%p113_p2), 59   ;;  %s1393_s20 = smov (!%p113_p2), 58   ;;  %vm481_vm6 = vcmask (!%p113_p2), 490496   ;;  %v1189_v39 = vld [vmem:[%s1542_s1 + $0x8] sm:$0x7] (!%p113_p2)  ;;  %vm588_vm7 = vcmask (!%p113_p2), 482304  }
   0x9   : > { %s1394_s21 = smov (!%p113_p2), 26   ;;  %s1395_s22 = smov (!%p113_p2), 25   ;;  %v1193_v47 = vld [vmem:[%s1542_s1 + $0xc] sm:$0x7] (!%p113_p2)  ;;  %vm695_vm8 = vcmask (!%p113_p2), 474112   ;;  %vm802_vm9 = vcmask (!%p113_p2), 211968  }
   0xa   : > { %s1396_s23 = smov (!%p113_p2), 24   ;;  %v1197_v55 = vld [vmem:[%s1542_s1 + $0x10] sm:$0x7] (!%p113_p2)  ;;  %v1201_v63 = vld [vmem:[%s1542_s1 + $0x14] sm:$0x7] (!%p113_p2)  ;;  %vm909_vm10 = vcmask (!%p113_p2), 203776  }
   0xb   : > { %vm1016_vm11 = vcmask (!%p113_p2), 195584   ;;  %vm1117_vm12 = vcmask (!%p113_p2), 126976  }
   0xd   : > { %s1545_s10 = smov (!%p134_p3, %s1174_s10), 1 }
   0xe   : > { %s1219_s11 = sshll.u32 %s1545_s10, 6 }
   0xf   : > { %s138_s14 = scalar_lea.vmem %s1541_s0, %s1219_s11 }
  0x10   : > { %v147_v2 = vld [vmem:[%s138_s14 + $0x10] sm:$0xff]  ;;  %v145_v4 = vld [vmem:[%s138_s14] sm:$0xff]  ;;  %v146_v7 = vld [vmem:[%s138_s14 + $0x8] sm:$0xff] }
  0x11   : > { %v150_v3 = vld [vmem:[%s138_s14 + $0x30] sm:$0xf]  ;;  %v148_v6 = vld [vmem:[%s138_s14 + $0x20] sm:$0xf]  ;;  %v149_v8 = vld [vmem:[%s138_s14 + $0x28] sm:$0xf] }
  0x12   : > { %v153_v5 = vpack.c.bf16 %v150_v3, %v147_v2  ;;  %v151_v9 = vpack.c.bf16 %v148_v6, %v145_v4  ;;  %v152_v10 = vpack.c.bf16 %v149_v8, %v146_v7 }
  0x14   : > { %164 = vrot.lane.b32.xlu1 %v153_v5, %s1388_s15  ;;  %160 = vrot.lane.b32.xlu0 %v151_v9, %s1388_s15 }
  0x18   : > { %264 = vrot.lane.b32.xlu1 %v151_v9, %s1389_s16  ;;  %162 = vrot.lane.b32.xlu0 %v152_v10, %s1388_s15 }
  0x1c   : > { %268 = vrot.lane.b32.xlu1 %v153_v5, %s1389_s16  ;;  %266 = vrot.lane.b32.xlu0 %v152_v10, %s1389_s16  ;;  %s1356_s16 = smul.u32 24, %s1545_s10 }
  0x20   : > { %370 = vrot.lane.b32.xlu1 %v152_v10, %s1390_s17  ;;  %368 = vrot.lane.b32.xlu0 %v151_v9, %s1390_s17 }
  0x24   : > { %475 = vrot.lane.b32.xlu1 %v151_v9, %s1391_s18  ;;  %372 = vrot.lane.b32.xlu0 %v153_v5, %s1390_s17 }
  0x28   : > { %479 = vrot.lane.b32.xlu1 %v153_v5, %s1391_s18  ;;  %477 = vrot.lane.b32.xlu0 %v152_v10, %s1391_s18 }
  0x2c   : > { %584 = vrot.lane.b32.xlu1 %v152_v10, %s1392_s19  ;;  %582 = vrot.lane.b32.xlu0 %v151_v9, %s1392_s19 }
  0x30   : > { %689 = vrot.lane.b32.xlu1 %v151_v9, %s1393_s20  ;;  %586 = vrot.lane.b32.xlu0 %v153_v5, %s1392_s19  ;;  %s143_s19 = scalar_lea.vmem %s1543_s2, %s1356_s16 }
  0x34   : > { %693 = vrot.lane.b32.xlu1 %v153_v5, %s1393_s20  ;;  %691 = vrot.lane.b32.xlu0 %v152_v10, %s1393_s20 }
  0x38   : > { %798 = vrot.lane.b32.xlu1 %v152_v10, %s1394_s21  ;;  %796 = vrot.lane.b32.xlu0 %v151_v9, %s1394_s21 }
  0x3c   : > { %903 = vrot.lane.b32.xlu1 %v151_v9, %s1395_s22  ;;  %800 = vrot.lane.b32.xlu0 %v153_v5, %s1394_s21 }
  0x40   : > { %907 = vrot.lane.b32.xlu1 %v153_v5, %s1395_s22  ;;  %905 = vrot.lane.b32.xlu0 %v152_v10, %s1395_s22 }
  0x44   : > { %1012 = vrot.lane.b32.xlu1 %v152_v10, %s1396_s23  ;;  %1010 = vrot.lane.b32.xlu0 %v151_v9, %s1396_s23  ;;  %v1205_v9 = vld [vmem:[%s1542_s1 + $0x18] sm:$0x7] }
  0x48   : > { %1014 = vrot.lane.b32.xlu0 %v153_v5, %s1396_s23 }
  0x86   : > { %v165_v11 = vpop.permute.xlu1 %164  ;;  %v161_v12 = vpop.permute.xlu0 %160 }
  0x87   : > { %v181_v13 = vsel %vm173_vm1, %v165_v11, 0 }
  0x88   : > { %1239 = vmatpush3.bf16.msra.mxu1 %v181_v13 }
  0x89   : > { %1244 = vmatprep.subr.bf16.mxu1 %v1385_v0 }
  0x8a   : > { %v265_v15 = vpop.permute.xlu1 %264  ;;  %v163_v16 = vpop.permute.xlu0 %162 }
  0x8b   : > { %1241 = vmatmul.mubr.msk.bf16.vlgmr.msra.gmra.mrb[0].mxu1 %vm169_vm2, %v1182_v14  ;;  %v168_v17 = vsel %vm166_vm3, %v163_v16, %v165_v11  ;;  %v167_v18 = vsel %vm166_vm3, %v161_v12, %v163_v16  ;;  %v1209_v16 = vld [vmem:[%s1542_s1 + $0x1c] sm:$0x7] }
  0x8c   : > { %1246 = vmatprep.mubr.msk.bf16.mxu1 %vm1386_vm0, %v1385_v0  ;;  %1183 = vmatprep.subr.msk.bf16.mxu0 %vm173_vm1, %v168_v17  ;;  %v175_v19 = vsel %vm173_vm1, %v167_v18, 0 }
  0x8d   : > { %184 = vmatpush1.bf16.msra.mxu0 %v175_v19 }
  0x8e   : > { %v269_v20 = vpop.permute.xlu1 %268  ;;  %v267_v22 = vpop.permute.xlu0 %266 }
  0x8f   : > { %v283_v21 = vsel %vm173_vm1, %v269_v20, 0  ;;  %v271_v23 = vsel %vm270_vm4, %v265_v15, %v267_v22  ;;  %v272_v24 = vsel %vm270_vm4, %v267_v22, %v269_v20  ;;  %v1213_v20 = vld [vmem:[%s1542_s1 + $0x20] sm:$0x7] }
  0x90   : > { %1245 = vmatpush3.bf16.msra.mxu1 %v283_v21  ;;  %v277_v25 = vsel %vm173_vm1, %v271_v23, 0  ;;  %1184 = vmatmul.mubr.msk.bf16.vlgmr.msra.gmra.mrb[0].mxu0 %vm169_vm2, %v1182_v14 }
  0x91   : > { %1186 = vmatprep.subr.msk.bf16.mxu0 %vm173_vm1, %v272_v24  ;;  %317 = vmatprep.mubr.bf16.mxu0 %v1387_v1 }
  0x92   : > { %286 = vmatpush1.bf16.msra.mxu0 %v277_v25  ;;  %v371_v26 = vpop.permute.xlu1 %370  ;;  %v369_v27 = vpop.permute.xlu0 %368  ;;  %1250 = vmatprep.subr.bf16.mxu1 %v1385_v0 }
  0x93   : > { %v375_v31 = vsel %vm374_vm5, %v369_v27, %v371_v26 }
  0x94   : > { %v381_v35 = vsel %vm173_vm1, %v375_v31, 0 }
  0x96   : > { %v476_v29 = vpop.permute.xlu1 %475  ;;  %v373_v30 = vpop.permute.xlu0 %372 }
  0x97   : > { %1247 = vmatmul.mubr.msk.bf16.vlgmr.msra.gmra.mrb[0].mxu1 %vm169_vm2, %v154_v28  ;;  %v376_v32 = vsel %vm374_vm5, %v371_v26, %v373_v30  ;;  %v387_v33 = vsel %vm173_vm1, %v373_v30, 0 }
  0x98   : > { %1252 = vmatprep.mubr.msk.bf16.mxu1 %vm1386_vm0, %v1385_v0  ;;  %1190 = vmatprep.subr.msk.bf16.mxu0 %vm173_vm1, %v376_v32 }
  0x99   : > { %1251 = vmatpush3.bf16.msra.mxu1 %v387_v33 }
  0x9a   : > { %v480_v34 = vpop.permute.xlu1 %479  ;;  %1256 = vmatprep.subr.bf16.mxu1 %v1385_v0  ;;  %v478_v36 = vpop.permute.xlu0 %477 }
  0x9b   : > { %v483_v37 = vsel %vm481_vm6, %v478_v36, %v480_v34  ;;  %v494_v40 = vsel %vm173_vm1, %v480_v34, 0  ;;  %v482_v41 = vsel %vm481_vm6, %v476_v29, %v478_v36 }
  0x9c   : > { %1187 = vmatmul.mubr.msk.bf16.vlgmr.msra.gmra.mrb[0].mxu0 %vm169_vm2, %v154_v28  ;;  %v488_v44 = vsel %vm173_vm1, %v482_v41, 0 }
  0x9d   : > { %390 = vmatpush1.bf16.msra.mxu0 %v381_v35  ;;  %421 = vmatprep.mubr.bf16.mxu0 %v1387_v1 }
  0x9e   : > { %1194 = vmatprep.subr.msk.bf16.mxu0 %vm173_vm1, %v483_v37  ;;  %v583_v38 = vpop.permute.xlu0 %582  ;;  %v585_v42 = vpop.permute.xlu1 %584 }
  0x9f   : > { %v589_v49 = vsel %vm588_vm7, %v583_v38, %v585_v42 }
  0xa0   : > { %v595_v52 = vsel %vm173_vm1, %v589_v49, 0 }
  0xa2   : > { %v587_v43 = vpop.permute.xlu0 %586  ;;  %v690_v46 = vpop.permute.xlu1 %689 }
  0xa3   : > { %1253 = vmatmul.mubr.msk.bf16.vlgmr.msra.gmra.mrb[0].mxu1 %vm169_vm2, %v1189_v39  ;;  %v590_v45 = vsel %vm588_vm7, %v585_v42, %v587_v43  ;;  %v601_v48 = vsel %vm173_vm1, %v587_v43, 0 }
  0xa4   : > { %1257 = vmatpush3.bf16.msra.mxu1 %v494_v40  ;;  %1258 = vmatprep.mubr.msk.bf16.mxu1 %vm1386_vm0, %v1385_v0 }
  0xa5   : > { %1262 = vmatprep.subr.bf16.mxu1 %v1385_v0 }
  0xa6   : > { %v692_v50 = vpop.permute.xlu0 %691  ;;  %v694_v51 = vpop.permute.xlu1 %693 }
  0xa7   : > { %v697_v53 = vsel %vm695_vm8, %v692_v50, %v694_v51  ;;  %v708_v56 = vsel %vm173_vm1, %v694_v51, 0  ;;  %v696_v57 = vsel %vm695_vm8, %v690_v46, %v692_v50 }
  0xa8   : > { %1191 = vmatmul.mubr.msk.bf16.vlgmr.msra.gmra.mrb[0].mxu0 %vm169_vm2, %v1189_v39  ;;  %v702_v60 = vsel %vm173_vm1, %v696_v57, 0 }
  0xa9   : > { %497 = vmatpush1.bf16.msra.mxu0 %v488_v44  ;;  %528 = vmatprep.mubr.bf16.mxu0 %v1387_v1 }
  0xaa   : > { %1198 = vmatprep.subr.msk.bf16.mxu0 %vm173_vm1, %v590_v45  ;;  %v797_v54 = vpop.permute.xlu0 %796  ;;  %v799_v58 = vpop.permute.xlu1 %798 }
  0xab   : > { %v803_v3 = vsel %vm802_vm9, %v797_v54, %v799_v58 }
  0xac   : > { %v809_v6 = vsel %vm173_vm1, %v803_v3, 0 }
  0xae   : > { %v801_v59 = vpop.permute.xlu0 %800  ;;  %v904_v62 = vpop.permute.xlu1 %903 }
  0xaf   : > { %1259 = vmatmul.mubr.msk.bf16.vlgmr.msra.gmra.mrb[0].mxu1 %vm169_vm2, %v1193_v47  ;;  %v804_v61 = vsel %vm802_vm9, %v799_v58, %v801_v59  ;;  %v815_v2 = vsel %vm173_vm1, %v801_v59, 0 }
  0xb0   : > { %1263 = vmatpush3.bf16.msra.mxu1 %v601_v48  ;;  %1264 = vmatprep.mubr.msk.bf16.mxu1 %vm1386_vm0, %v1385_v0 }
  0xb1   : > { %1268 = vmatprep.subr.bf16.mxu1 %v1385_v0 }
  0xb2   : > { %v906_v4 = vpop.permute.xlu0 %905  ;;  %v908_v5 = vpop.permute.xlu1 %907 }
  0xb3   : > { %v911_v7 = vsel %vm909_vm10, %v906_v4, %v908_v5  ;;  %v922_v10 = vsel %vm173_vm1, %v908_v5, 0  ;;  %v910_v11 = vsel %vm909_vm10, %v904_v62, %v906_v4 }
  0xb4   : > { %1195 = vmatmul.mubr.msk.bf16.vlgmr.msra.gmra.mrb[0].mxu0 %vm169_vm2, %v1193_v47  ;;  %v916_v14 = vsel %vm173_vm1, %v910_v11, 0 }
  0xb5   : > { %604 = vmatpush1.bf16.msra.mxu0 %v595_v52  ;;  %635 = vmatprep.mubr.bf16.mxu0 %v1387_v1 }
  0xb6   : > { %1202 = vmatprep.subr.msk.bf16.mxu0 %vm173_vm1, %v697_v53  ;;  %v1011_v8 = vpop.permute.xlu0 %1010  ;;  %v1013_v12 = vpop.permute.xlu1 %1012 }
  0xb7   : > { %v1017_v18 = vsel %vm1016_vm11, %v1011_v8, %v1013_v12 }
  0xb8   : > { %v1023_v19 = vsel %vm173_vm1, %v1017_v18, 0 }
  0xba   : > { %v1015_v13 = vpop.permute.xlu0 %1014 }
  0xbb   : > { %1265 = vmatmul.mubr.msk.bf16.vlgmr.msra.gmra.mrb[0].mxu1 %vm169_vm2, %v1197_v55  ;;  %v1018_v15 = vsel %vm1016_vm11, %v1013_v12, %v1015_v13  ;;  %v1029_v17 = vsel %vm173_vm1, %v1015_v13, 0 }
  0xbc   : > { %1269 = vmatpush3.bf16.msra.mxu1 %v708_v56  ;;  %1270 = vmatprep.mubr.msk.bf16.mxu1 %vm1386_vm0, %v1385_v0 }
  0xbd   : > { %1274 = vmatprep.subr.bf16.mxu1 %v1385_v0 }
  0xc0   : > { %1199 = vmatmul.mubr.msk.bf16.vlgmr.msra.gmra.mrb[0].mxu0 %vm169_vm2, %v1197_v55 }
  0xc1   : > { %711 = vmatpush1.bf16.msra.mxu0 %v702_v60  ;;  %742 = vmatprep.mubr.bf16.mxu0 %v1387_v1 }
  0xc2   : > { %1206 = vmatprep.subr.msk.bf16.mxu0 %vm173_vm1, %v804_v61 }
  0xc7   : > { %1271 = vmatmul.mubr.msk.bf16.vlgmr.msra.gmra.mrb[0].mxu1 %vm169_vm2, %v1201_v63 }
  0xc8   : > { %1275 = vmatpush3.bf16.msra.mxu1 %v815_v2  ;;  %1276 = vmatprep.mubr.msk.bf16.mxu1 %vm1386_vm0, %v1385_v0 }
  0xc9   : > { %1280 = vmatprep.subr.bf16.mxu1 %v1385_v0 }
  0xcc   : > { %1203 = vmatmul.mubr.msk.bf16.vlgmr.msra.gmra.mrb[0].mxu0 %vm169_vm2, %v1201_v63 }
  0xcd   : > { %818 = vmatpush1.bf16.msra.mxu0 %v809_v6  ;;  %849 = vmatprep.mubr.bf16.mxu0 %v1387_v1 }
  0xce   : > { %1210 = vmatprep.subr.msk.bf16.mxu0 %vm173_vm1, %v911_v7 }
  0xd3   : > { %1277 = vmatmul.mubr.msk.bf16.vlgmr.msra.gmra.mrb[0].mxu1 %vm169_vm2, %v1205_v9 }
  0xd4   : > { %1281 = vmatpush3.bf16.msra.mxu1 %v922_v10  ;;  %1282 = vmatprep.mubr.msk.bf16.mxu1 %vm1386_vm0, %v1385_v0 }
  0xd5   : > { %1286 = vmatprep.subr.bf16.mxu1 %v1385_v0 }
  0xd8   : > { %1207 = vmatmul.mubr.msk.bf16.vlgmr.msra.gmra.mrb[0].mxu0 %vm169_vm2, %v1205_v9 }
  0xd9   : > { %925 = vmatpush1.bf16.msra.mxu0 %v916_v14  ;;  %956 = vmatprep.mubr.bf16.mxu0 %v1387_v1 }
  0xda   : > { %1214 = vmatprep.subr.msk.bf16.mxu0 %vm173_vm1, %v1018_v15 }
  0xdf   : > { %1283 = vmatmul.mubr.msk.bf16.vlgmr.msra.gmra.mrb[0].mxu1 %vm169_vm2, %v1209_v16 }
  0xe0   : > { %1287 = vmatpush3.bf16.msra.mxu1 %v1029_v17  ;;  %1288 = vmatprep.mubr.msk.bf16.mxu1 %vm1386_vm0, %v1385_v0 }
  0xe4   : > { %1211 = vmatmul.mubr.msk.bf16.vlgmr.msra.gmra.mrb[0].mxu0 %vm169_vm2, %v1209_v16 }
  0xe5   : > { %1032 = vmatpush1.bf16.msra.mxu0 %v1023_v19  ;;  %1063 = vmatprep.mubr.bf16.mxu0 %v1387_v1 }
  0xeb   : > { %1289 = vmatmul.mubr.msk.bf16.vlgmr.msra.gmra.mrb[0].mxu1 %vm169_vm2, %v1213_v20 }
  0xf0   : > { %1215 = vmatmul.mubr.msk.bf16.vlgmr.msra.gmra.mrb[0].mxu0 %vm169_vm2, %v1213_v20 }
 0x1be   : > { %v1106_v0 = vpop.f32.mrb[0].mxu1 }
 0x1bf   : > { %1118 = vst.msk [vmem:[%s143_s19 + $0x10] sm:$0x1f] %vm1117_vm12, %v1106_v0  ;;  %v1290_v21 = vpop.f32.mrb[1].mxu1 }
 0x1c0   : > { %v1109_v22 = vpop.f32.mrb[2].mxu1 }
 0x1c1   : > { %v1291_v23 = vpop.f32.mrb[3].mxu1 }
 0x1c3   : > { %v1065_v1 = vpop.f32.mrb[0].mxu0 }
 0x1c4   : > { %1115 = vst [vmem:[%s143_s19] sm:$0x1f] %v1065_v1  ;;  %v1067_v24 = vpop.f32.mrb[1].mxu0 }
 0x1c5   : > { %1116 = vst [vmem:[%s143_s19 + $0x8] sm:$0x1f] %v1067_v24  ;;  %v1069_v25 = vpop.f32.mrb[2].mxu0 }
 0x1c6   : > { %v1070_v26 = vpop.f32.mrb[3].mxu0 }
 0x1c7 PF: > { %s12_s9 = sadd.s32 1, %s1383_s9  }
 0x1c8   : > { %p9_p4 = scmp.ge.s32.totalorder %s12_s9, 4  }
 0x1ca   :  { %11 = sbr.rel (!%p9_p4) target bundleno = 1 (0x1), region = 66 }

// kernel: frame_transformer_forward.27
= control target key start
LH: loop header
LB: loop body
LE: loop exit
PB: predicated region body
PF: predicated region fallthrough
CT: control target
= control target key end

     0   :  { %s1412_s9 = smov 0   ;;  %s1541_s0 = inlined_call_operand.vmem [shape: f32[2,6,408], index: 0, kind: input, shape index: {}]   ;;  %s1542_s1 = inlined_call_operand.vmem [shape: bf16[9,3,6], index: 1, kind: input, shape index: {}]   ;;  %s1543_s2 = inlined_call_operand.vmem [shape: f32[2,3,272], index: 2, kind: output, shape index: {}]  }
   0x1 LB: > { %s1174_s10 = sadd.s32 4294967295, %s1383_s9   ;;  %p1178_p0 = scmp.ge.s32.totalorder %s1383_s9, 1  ;;  %s1383_s9 = sphi %s1412_s9, %s12_s9  }
   0x2   : > { %p112_p1 = scmp.lt.s32.totalorder %s1383_s9, 3 }
   0x4   : > { %p113_p2 = pnand %p1178_p0, %p112_p1 }
   0x5   : > { %p134_p3 = scmp.lt.s32.totalorder (!%p113_p2), %s1174_s10, 1  ;;  %v1385_v0 = vmov (!%p113_p2), 0.0   ;;  %vm1386_vm0 = vmmov (!%p113_p2), 0   ;;  %v1387_v1 = vmov (!%p113_p2), 0   ;;  %s1388_s15 = smov (!%p113_p2), 93   ;;  %vm170_vm1 = vcmask (!%p113_p2), 1042432  }
   0x6   : > { %116 = sbr.rel (%p113_p2) target bundleno = 455 (0x1c7), region = 28  ;;  %1238 = vmatprep.subr.bf16.mxu1 (!%p113_p2), %v1385_v0  ;;  %1240 = vmatprep.mubr.msk.bf16.mxu1 (!%p113_p2), %vm1386_vm0, %v1385_v0  ;;  %s1389_s16 = smov (!%p113_p2), 94   ;;  %v1182_v11 = vld [vmem:[%s1542_s1 + $0x2] sm:$0x3] (!%p113_p2)  ;;  %vm166_vm2 = vcmask (!%p113_p2), 48128   ;;  %vm163_vm3 = vcmask (!%p113_p2), 760832  }
   0x7   : > { %212 = vmatprep.mubr.bf16.mxu0 (!%p113_p2), %v1387_v1  ;;  %s1390_s17 = smov (!%p113_p2), 92   ;;  %s1391_s18 = smov (!%p113_p2), 60   ;;  %vm267_vm4 = vcmask (!%p113_p2), 769024   ;;  %vm371_vm5 = vcmask (!%p113_p2), 752640   ;;  %v151_v25 = vld [vmem:[%s1542_s1] sm:$0x3] (!%p113_p2) }
   0x8   : > { %s1392_s19 = smov (!%p113_p2), 59   ;;  %s1393_s20 = smov (!%p113_p2), 58   ;;  %vm478_vm6 = vcmask (!%p113_p2), 490496   ;;  %v1189_v36 = vld [vmem:[%s1542_s1 + $0x4] sm:$0x3] (!%p113_p2)  ;;  %vm585_vm7 = vcmask (!%p113_p2), 482304  }
   0x9   : > { %s1394_s21 = smov (!%p113_p2), 26   ;;  %s1395_s22 = smov (!%p113_p2), 25   ;;  %v1193_v44 = vld [vmem:[%s1542_s1 + $0x6] sm:$0x3] (!%p113_p2)  ;;  %vm692_vm8 = vcmask (!%p113_p2), 474112   ;;  %vm799_vm9 = vcmask (!%p113_p2), 211968  }
   0xa   : > { %s1396_s23 = smov (!%p113_p2), 24   ;;  %v1197_v52 = vld [vmem:[%s1542_s1 + $0x8] sm:$0x3] (!%p113_p2)  ;;  %v1201_v60 = vld [vmem:[%s1542_s1 + $0xa] sm:$0x3] (!%p113_p2)  ;;  %vm906_vm10 = vcmask (!%p113_p2), 203776  }
   0xb   : > { %vm1013_vm11 = vcmask (!%p113_p2), 195584   ;;  %vm1117_vm12 = vcmask (!%p113_p2), 124928  }
   0xd   : > { %s1545_s10 = smov (!%p134_p3, %s1174_s10), 1 }
   0xe   : > { %s1219_s11 = sshll.u32 %s1545_s10, 5 }
   0xf   : > { %s138_s14 = scalar_lea.vmem %s1541_s0, %s1219_s11 }
  0x10   : > { %v147_v2 = vld [vmem:[%s138_s14 + $0x10] sm:$0x3f]  ;;  %v145_v3 = vld [vmem:[%s138_s14] sm:$0x3f]  ;;  %v146_v4 = vld [vmem:[%s138_s14 + $0x8] sm:$0x3f] }
  0x11   : > { %v150_v5 = vpack.c.bf16 %v147_v2, %v147_v2  ;;  %v148_v6 = vpack.c.bf16 %v145_v3, %v145_v3  ;;  %v149_v7 = vpack.c.bf16 %v146_v4, %v146_v4 }
  0x13   : > { %161 = vrot.lane.b32.xlu1 %v150_v5, %s1388_s15  ;;  %157 = vrot.lane.b32.xlu0 %v148_v6, %s1388_s15 }
  0x17   : > { %261 = vrot.lane.b32.xlu1 %v148_v6, %s1389_s16  ;;  %159 = vrot.lane.b32.xlu0 %v149_v7, %s1388_s15 }
  0x1b   : > { %265 = vrot.lane.b32.xlu1 %v150_v5, %s1389_s16  ;;  %263 = vrot.lane.b32.xlu0 %v149_v7, %s1389_s16  ;;  %s1356_s16 = smul.u32 12, %s1545_s10 }
  0x1f   : > { %365 = vrot.lane.b32.xlu0 %v148_v6, %s1390_s17  ;;  %367 = vrot.lane.b32.xlu1 %v149_v7, %s1390_s17 }
  0x23   : > { %369 = vrot.lane.b32.xlu0 %v150_v5, %s1390_s17  ;;  %472 = vrot.lane.b32.xlu1 %v148_v6, %s1391_s18 }
  0x27   : > { %474 = vrot.lane.b32.xlu0 %v149_v7, %s1391_s18  ;;  %476 = vrot.lane.b32.xlu1 %v150_v5, %s1391_s18 }
  0x2b   : > { %579 = vrot.lane.b32.xlu0 %v148_v6, %s1392_s19  ;;  %581 = vrot.lane.b32.xlu1 %v149_v7, %s1392_s19 }
  0x2f   : > { %583 = vrot.lane.b32.xlu0 %v150_v5, %s1392_s19  ;;  %686 = vrot.lane.b32.xlu1 %v148_v6, %s1393_s20  ;;  %s143_s19 = scalar_lea.vmem %s1543_s2, %s1356_s16 }
  0x33   : > { %688 = vrot.lane.b32.xlu0 %v149_v7, %s1393_s20  ;;  %690 = vrot.lane.b32.xlu1 %v150_v5, %s1393_s20 }
  0x37   : > { %793 = vrot.lane.b32.xlu0 %v148_v6, %s1394_s21  ;;  %795 = vrot.lane.b32.xlu1 %v149_v7, %s1394_s21 }
  0x3b   : > { %797 = vrot.lane.b32.xlu0 %v150_v5, %s1394_s21  ;;  %900 = vrot.lane.b32.xlu1 %v148_v6, %s1395_s22 }
  0x3f   : > { %902 = vrot.lane.b32.xlu0 %v149_v7, %s1395_s22  ;;  %904 = vrot.lane.b32.xlu1 %v150_v5, %s1395_s22 }
  0x43   : > { %1007 = vrot.lane.b32.xlu0 %v148_v6, %s1396_s23  ;;  %1009 = vrot.lane.b32.xlu1 %v149_v7, %s1396_s23  ;;  %v1205_v6 = vld [vmem:[%s1542_s1 + $0xc] sm:$0x3] }
  0x47   : > { %1011 = vrot.lane.b32.xlu0 %v150_v5, %s1396_s23 }
  0x85   : > { %v162_v8 = vpop.permute.xlu1 %161  ;;  %v158_v9 = vpop.permute.xlu0 %157 }
  0x86   : > { %v178_v10 = vsel %vm170_vm1, %v162_v8, 0 }
  0x87   : > { %1239 = vmatpush3.bf16.msra.mxu1 %v178_v10 }
  0x88   : > { %1244 = vmatprep.subr.bf16.mxu1 %v1385_v0 }
  0x89   : > { %v262_v12 = vpop.permute.xlu1 %261  ;;  %v160_v13 = vpop.permute.xlu0 %159 }
  0x8a   : > { %1241 = vmatmul.mubr.msk.bf16.vlgmr.msra.gmra.mrb[0].mxu1 %vm166_vm2, %v1182_v11  ;;  %v165_v14 = vsel %vm163_vm3, %v160_v13, %v162_v8  ;;  %v164_v15 = vsel %vm163_vm3, %v158_v9, %v160_v13  ;;  %v1209_v13 = vld [vmem:[%s1542_s1 + $0xe] sm:$0x3] }
  0x8b   : > { %1183 = vmatprep.subr.msk.bf16.mxu0 %vm170_vm1, %v165_v14  ;;  %v172_v16 = vsel %vm170_vm1, %v164_v15, 0  ;;  %1246 = vmatprep.mubr.msk.bf16.mxu1 %vm1386_vm0, %v1385_v0 }
  0x8c   : > { %181 = vmatpush1.bf16.msra.mxu0 %v172_v16 }
  0x8d   : > { %v266_v17 = vpop.permute.xlu1 %265  ;;  %v264_v18 = vpop.permute.xlu0 %263 }
  0x8e   : > { %v280_v19 = vsel %vm170_vm1, %v266_v17, 0  ;;  %v268_v20 = vsel %vm267_vm4, %v262_v12, %v264_v18  ;;  %v269_v21 = vsel %vm267_vm4, %v264_v18, %v266_v17  ;;  %v1213_v17 = vld [vmem:[%s1542_s1 + $0x10] sm:$0x3] }
  0x8f   : > { %v274_v22 = vsel %vm170_vm1, %v268_v20, 0  ;;  %1184 = vmatmul.mubr.msk.bf16.vlgmr.msra.gmra.mrb[0].mxu0 %vm166_vm2, %v1182_v11  ;;  %1186 = vmatprep.subr.msk.bf16.mxu0 %vm170_vm1, %v269_v21 }
  0x90   : > { %1245 = vmatpush3.bf16.msra.mxu1 %v280_v19  ;;  %283 = vmatpush1.bf16.msra.mxu0 %v274_v22 }
  0x91   : > { %v366_v23 = vpop.permute.xlu0 %365  ;;  %v368_v24 = vpop.permute.xlu1 %367  ;;  %314 = vmatprep.mubr.bf16.mxu0 %v1387_v1  ;;  %1250 = vmatprep.subr.bf16.mxu1 %v1385_v0 }
  0x92   : > { %v372_v28 = vsel %vm371_vm5, %v366_v23, %v368_v24 }
  0x93   : > { %v378_v31 = vsel %vm170_vm1, %v372_v28, 0 }
  0x95   : > { %v370_v26 = vpop.permute.xlu0 %369  ;;  %v473_v27 = vpop.permute.xlu1 %472 }
  0x96   : > { %1247 = vmatmul.mubr.msk.bf16.vlgmr.msra.gmra.mrb[0].mxu1 %vm166_vm2, %v151_v25  ;;  %v373_v29 = vsel %vm371_vm5, %v368_v24, %v370_v26  ;;  %v384_v30 = vsel %vm170_vm1, %v370_v26, 0 }
  0x97   : > { %1190 = vmatprep.subr.msk.bf16.mxu0 %vm170_vm1, %v373_v29  ;;  %1251 = vmatpush3.bf16.msra.mxu1 %v384_v30 }
  0x98   : > { %1252 = vmatprep.mubr.msk.bf16.mxu1 %vm1386_vm0, %v1385_v0  ;;  %1256 = vmatprep.subr.bf16.mxu1 %v1385_v0 }
  0x99   : > { %v475_v32 = vpop.permute.xlu0 %474  ;;  %v477_v33 = vpop.permute.xlu1 %476 }
  0x9a   : > { %v480_v34 = vsel %vm478_vm6, %v475_v32, %v477_v33  ;;  %v491_v37 = vsel %vm170_vm1, %v477_v33, 0  ;;  %v479_v38 = vsel %vm478_vm6, %v473_v27, %v475_v32 }
  0x9b   : > { %1187 = vmatmul.mubr.msk.bf16.vlgmr.msra.gmra.mrb[0].mxu0 %vm166_vm2, %v151_v25  ;;  %v485_v41 = vsel %vm170_vm1, %v479_v38, 0 }
  0x9c   : > { %387 = vmatpush1.bf16.msra.mxu0 %v378_v31  ;;  %418 = vmatprep.mubr.bf16.mxu0 %v1387_v1 }
  0x9d   : > { %1194 = vmatprep.subr.msk.bf16.mxu0 %vm170_vm1, %v480_v34  ;;  %v580_v35 = vpop.permute.xlu0 %579  ;;  %v582_v39 = vpop.permute.xlu1 %581 }
  0x9e   : > { %v586_v46 = vsel %vm585_vm7, %v580_v35, %v582_v39 }
  0x9f   : > { %v592_v49 = vsel %vm170_vm1, %v586_v46, 0 }
  0xa1   : > { %v584_v40 = vpop.permute.xlu0 %583  ;;  %v687_v43 = vpop.permute.xlu1 %686 }
  0xa2   : > { %1253 = vmatmul.mubr.msk.bf16.vlgmr.msra.gmra.mrb[0].mxu1 %vm166_vm2, %v1189_v36  ;;  %v587_v42 = vsel %vm585_vm7, %v582_v39, %v584_v40  ;;  %v598_v45 = vsel %vm170_vm1, %v584_v40, 0 }
  0xa3   : > { %1257 = vmatpush3.bf16.msra.mxu1 %v491_v37  ;;  %1258 = vmatprep.mubr.msk.bf16.mxu1 %vm1386_vm0, %v1385_v0 }
  0xa4   : > { %1262 = vmatprep.subr.bf16.mxu1 %v1385_v0 }
  0xa5   : > { %v689_v47 = vpop.permute.xlu0 %688  ;;  %v691_v48 = vpop.permute.xlu1 %690 }
  0xa6   : > { %v694_v50 = vsel %vm692_vm8, %v689_v47, %v691_v48  ;;  %v705_v53 = vsel %vm170_vm1, %v691_v48, 0  ;;  %v693_v54 = vsel %vm692_vm8, %v687_v43, %v689_v47 }
  0xa7   : > { %1191 = vmatmul.mubr.msk.bf16.vlgmr.msra.gmra.mrb[0].mxu0 %vm166_vm2, %v1189_v36  ;;  %v699_v57 = vsel %vm170_vm1, %v693_v54, 0 }
  0xa8   : > { %494 = vmatpush1.bf16.msra.mxu0 %v485_v41  ;;  %525 = vmatprep.mubr.bf16.mxu0 %v1387_v1 }
  0xa9   : > { %1198 = vmatprep.subr.msk.bf16.mxu0 %vm170_vm1, %v587_v42  ;;  %v794_v51 = vpop.permute.xlu0 %793  ;;  %v796_v55 = vpop.permute.xlu1 %795 }
  0xaa   : > { %v800_v62 = vsel %vm799_vm9, %v794_v51, %v796_v55 }
  0xab   : > { %v806_v3 = vsel %vm170_vm1, %v800_v62, 0 }
  0xad   : > { %v798_v56 = vpop.permute.xlu0 %797  ;;  %v901_v59 = vpop.permute.xlu1 %900 }
  0xae   : > { %1259 = vmatmul.mubr.msk.bf16.vlgmr.msra.gmra.mrb[0].mxu1 %vm166_vm2, %v1193_v44  ;;  %v801_v58 = vsel %vm799_vm9, %v796_v55, %v798_v56  ;;  %v812_v61 = vsel %vm170_vm1, %v798_v56, 0 }
  0xaf   : > { %1263 = vmatpush3.bf16.msra.mxu1 %v598_v45  ;;  %1264 = vmatprep.mubr.msk.bf16.mxu1 %vm1386_vm0, %v1385_v0 }
  0xb0   : > { %1268 = vmatprep.subr.bf16.mxu1 %v1385_v0 }
  0xb1   : > { %v903_v63 = vpop.permute.xlu0 %902  ;;  %v905_v2 = vpop.permute.xlu1 %904 }
  0xb2   : > { %v908_v4 = vsel %vm906_vm10, %v903_v63, %v905_v2  ;;  %v919_v7 = vsel %vm170_vm1, %v905_v2, 0  ;;  %v907_v8 = vsel %vm906_vm10, %v901_v59, %v903_v63 }
  0xb3   : > { %1195 = vmatmul.mubr.msk.bf16.vlgmr.msra.gmra.mrb[0].mxu0 %vm166_vm2, %v1193_v44  ;;  %v913_v11 = vsel %vm170_vm1, %v907_v8, 0 }
  0xb4   : > { %601 = vmatpush1.bf16.msra.mxu0 %v592_v49  ;;  %632 = vmatprep.mubr.bf16.mxu0 %v1387_v1 }
  0xb5   : > { %1202 = vmatprep.subr.msk.bf16.mxu0 %vm170_vm1, %v694_v50  ;;  %v1008_v5 = vpop.permute.xlu0 %1007  ;;  %v1010_v9 = vpop.permute.xlu1 %1009 }
  0xb6   : > { %v1014_v15 = vsel %vm1013_vm11, %v1008_v5, %v1010_v9 }
  0xb7   : > { %v1020_v16 = vsel %vm170_vm1, %v1014_v15, 0 }
  0xb9   : > { %v1012_v10 = vpop.permute.xlu0 %1011 }
  0xba   : > { %1265 = vmatmul.mubr.msk.bf16.vlgmr.msra.gmra.mrb[0].mxu1 %vm166_vm2, %v1197_v52  ;;  %v1015_v12 = vsel %vm1013_vm11, %v1010_v9, %v1012_v10  ;;  %v1026_v14 = vsel %vm170_vm1, %v1012_v10, 0 }
  0xbb   : > { %1269 = vmatpush3.bf16.msra.mxu1 %v705_v53  ;;  %1270 = vmatprep.mubr.msk.bf16.mxu1 %vm1386_vm0, %v1385_v0 }
  0xbc   : > { %1274 = vmatprep.subr.bf16.mxu1 %v1385_v0 }
  0xbf   : > { %1199 = vmatmul.mubr.msk.bf16.vlgmr.msra.gmra.mrb[0].mxu0 %vm166_vm2, %v1197_v52 }
  0xc0   : > { %708 = vmatpush1.bf16.msra.mxu0 %v699_v57  ;;  %739 = vmatprep.mubr.bf16.mxu0 %v1387_v1 }
  0xc1   : > { %1206 = vmatprep.subr.msk.bf16.mxu0 %vm170_vm1, %v801_v58 }
  0xc6   : > { %1271 = vmatmul.mubr.msk.bf16.vlgmr.msra.gmra.mrb[0].mxu1 %vm166_vm2, %v1201_v60 }
  0xc7   : > { %1275 = vmatpush3.bf16.msra.mxu1 %v812_v61  ;;  %1276 = vmatprep.mubr.msk.bf16.mxu1 %vm1386_vm0, %v1385_v0 }
  0xc8   : > { %1280 = vmatprep.subr.bf16.mxu1 %v1385_v0 }
  0xcb   : > { %1203 = vmatmul.mubr.msk.bf16.vlgmr.msra.gmra.mrb[0].mxu0 %vm166_vm2, %v1201_v60 }
  0xcc   : > { %815 = vmatpush1.bf16.msra.mxu0 %v806_v3  ;;  %846 = vmatprep.mubr.bf16.mxu0 %v1387_v1 }
  0xcd   : > { %1210 = vmatprep.subr.msk.bf16.mxu0 %vm170_vm1, %v908_v4 }
  0xd2   : > { %1277 = vmatmul.mubr.msk.bf16.vlgmr.msra.gmra.mrb[0].mxu1 %vm166_vm2, %v1205_v6 }
  0xd3   : > { %1281 = vmatpush3.bf16.msra.mxu1 %v919_v7  ;;  %1282 = vmatprep.mubr.msk.bf16.mxu1 %vm1386_vm0, %v1385_v0 }
  0xd4   : > { %1286 = vmatprep.subr.bf16.mxu1 %v1385_v0 }
  0xd7   : > { %1207 = vmatmul.mubr.msk.bf16.vlgmr.msra.gmra.mrb[0].mxu0 %vm166_vm2, %v1205_v6 }
  0xd8   : > { %922 = vmatpush1.bf16.msra.mxu0 %v913_v11  ;;  %953 = vmatprep.mubr.bf16.mxu0 %v1387_v1 }
  0xd9   : > { %1214 = vmatprep.subr.msk.bf16.mxu0 %vm170_vm1, %v1015_v12 }
  0xde   : > { %1283 = vmatmul.mubr.msk.bf16.vlgmr.msra.gmra.mrb[0].mxu1 %vm166_vm2, %v1209_v13 }
  0xdf   : > { %1287 = vmatpush3.bf16.msra.mxu1 %v1026_v14  ;;  %1288 = vmatprep.mubr.msk.bf16.mxu1 %vm1386_vm0, %v1385_v0 }
  0xe3   : > { %1211 = vmatmul.mubr.msk.bf16.vlgmr.msra.gmra.mrb[0].mxu0 %vm166_vm2, %v1209_v13 }
  0xe4   : > { %1029 = vmatpush1.bf16.msra.mxu0 %v1020_v16  ;;  %1060 = vmatprep.mubr.bf16.mxu0 %v1387_v1 }
  0xea   : > { %1289 = vmatmul.mubr.msk.bf16.vlgmr.msra.gmra.mrb[0].mxu1 %vm166_vm2, %v1213_v17 }
  0xef   : > { %1215 = vmatmul.mubr.msk.bf16.vlgmr.msra.gmra.mrb[0].mxu0 %vm166_vm2, %v1213_v17 }
 0x1bd   : > { %v1103_v0 = vpop.f32.mrb[0].mxu1 }
 0x1be   : > { %1118 = vst.msk [vmem:[%s143_s19 + $0x8] sm:$0x7] %vm1117_vm12, %v1103_v0  ;;  %v1290_v18 = vpop.f32.mrb[1].mxu1 }
 0x1bf   : > { %v1106_v19 = vpop.f32.mrb[2].mxu1 }
 0x1c0   : > { %v1291_v20 = vpop.f32.mrb[3].mxu1 }
 0x1c2   : > { %v1062_v1 = vpop.f32.mrb[0].mxu0 }
 0x1c3   : > { %v1064_v21 = vpop.f32.mrb[1].mxu0 }
 0x1c4   : > { %v1114_v22 = vcombine.low %v1062_v1, %v1064_v21  ;;  %v1066_v23 = vpop.f32.mrb[2].mxu0 }
 0x1c5   : > { %v1067_v24 = vpop.f32.mrb[3].mxu0 }
 0x1c6   : > { %1116 = vst [vmem:[%s143_s19] sm:$0x77] %v1114_v22 }
 0x1c7 PF: > { %s12_s9 = sadd.s32 1, %s1383_s9  }
 0x1c8   : > { %p9_p4 = scmp.ge.s32.totalorder %s12_s9, 4  }
 0x1ca   :  { %11 = sbr.rel (!%p9_p4) target bundleno = 1 (0x1), region = 66 }

// kernel: frame_transformer_forward.28
= control target key start
LH: loop header
LB: loop body
LE: loop exit
PB: predicated region body
PF: predicated region fallthrough
CT: control target
= control target key end

     0   :  { %s1061_s12 = smov 0   ;;  %s1063_s13 = smov 0   ;;  %s1196_s0 = inlined_call_operand.vmem [shape: f32[2,3,8,34], index: 0, kind: input, shape index: {}]   ;;  %s1197_s1 = inlined_call_operand.vmem [shape: f32[2,4,8,8], index: 1, kind: input, shape index: {}]   ;;  %s1198_s2 = inlined_call_operand.vmem [shape: f32[2,1,8,32], index: 2, kind: output, shape index: {0}]   ;;  %s1199_s3 = inlined_call_operand.vmem [shape: f32[2,4,8,8], index: 3, kind: output, shape index: {1}]  }
   0x1   :  { %s1065_s14 = smov 0  }
   0x2 LB: > { %s26_s15 = sadd.s32 1, %s1027_s13  ;;  %p869_p0 = scmp.ge.s32.totalorder %s1031_s14, 1  ;;  %s1031_s14 = sphi %s1065_s14, %s14_s14   ;;  %s1027_s13 = sphi %s1063_s13, %s1201_s13   ;;  %s1023_s12 = sphi %s1061_s12, %s1200_s12  }
   0x3   : > { %p28_p1 = scmp.ge.s32.totalorder %s26_s15, 2  ;;  %p177_p2 = scmp.lt.s32.totalorder %s1031_s14, 3 }
   0x5   : > { %s1203_s15 = smov (%p28_p1, %s26_s15), 0  ;;  %p178_p3 = pnand %p869_p0, %p177_p2 }
   0x6   : > { %p220_p4 = scmp.lt.s32.totalorder (!%p178_p3), %s1023_s12, 1  ;;  %v1033_v0 = vmov (!%p178_p3), 0.0   ;;  %vm1034_vm0 = vmmov (!%p178_p3), 0   ;;  %vm259_vm1 = vcmask (!%p178_p3), 64512   ;;  %s1035_s27 = smov (!%p178_p3), 120   ;;  %vm325_vm2 = vcmask (!%p178_p3), 1043456  }
   0x7   : > { %181 = sbr.rel (%p178_p3) target bundleno = 1482 (0x5ca), region = 28  ;;  %912 = vmatprep.subr.bf16.mxu0 (!%p178_p3), %v1033_v0  ;;  %914 = vmatprep.mubr.msk.bf16.mxu0 (!%p178_p3), %vm1034_vm0, %v1033_v0  ;;  %s1036_s28 = smov (!%p178_p3), 112   ;;  %vm493_vm3 = vcmask (!%p178_p3), 130112   ;;  %vm615_vm4 = vcmask (!%p178_p3), 195712   ;;  %vm737_vm5 = vcmask (!%p178_p3), 261312  }
   0x8   : > { %918 = vmatprep.subr.bf16.mxu1 (!%p178_p3), %v1033_v0  ;;  %920 = vmatprep.mubr.msk.bf16.mxu1 (!%p178_p3), %vm1034_vm0, %v1033_v0  ;;  %s1037_s29 = smov (!%p178_p3), 104   ;;  %s1038_s7 = smov (!%p178_p3), 8  }
   0x9   : > { %s1039_s8 = smov (!%p178_p3), 16   ;;  %s1040_s9 = smov (!%p178_p3), 24  }
   0xe   : > { %s1205_s12 = smov (!%p220_p4, %s1023_s12), 1 }
   0xf   : > { %s960_s16 = smul.u32 24, %s1205_s12  ;;  %s894_s20 = sshll.u32 %s1205_s12, 5 }
  0x10   : > { %s1104_s23 = scalar_lea.vmem %s1197_s1, %s894_s20  ;;  %s1110_s26 = scalar_lea.vmem %s1199_s3, %s894_s20 }
  0x11   : > { %s1091_s19 = scalar_lea.vmem %s1196_s0, %s960_s16  ;;  %v307_v7 = vld [vmem:[%s1104_s23] sm:$0xff]  ;;  %s873_s30 = sshll.u32 %s1205_s12, 3  ;;  %v881_v40 = vld [vmem:[%s1104_s23 + $0x8] sm:$0xff]  ;;  %v885_v48 = vld [vmem:[%s1104_s23 + $0x10] sm:$0xff] }
  0x12   : > { %v876_v1 = vld [vmem:[%s1091_s19 + $0x8] sm:$0xff]  ;;  %v251_v4 = vld [vmem:[%s1091_s19] sm:$0xff]  ;;  %v877_v19 = vld [vmem:[%s1091_s19 + $0x10] sm:$0xff]  ;;  %s1147_s6 = scalar_lea.vmem %s1198_s2, %s873_s30 }
  0x13   : > { %v255_v2 = vpack.c.bf16 %v876_v1, %v876_v1  ;;  %v252_v5 = vpack.c.bf16 %v251_v4, %v251_v4  ;;  %v1122_v20 = vpack.c.bf16 %v877_v19, %v877_v19  ;;  %v889_v56 = vld [vmem:[%s1104_s23 + $0x18] sm:$0xff] }
  0x15   : > { %v264_v3 = vsel %vm259_vm1, %v255_v2, 0  ;;  %374 = vrot.lane.b32.xlu1 %v255_v2, %s1035_s27  ;;  %v327_v21 = vsel %vm325_vm2, %v1122_v20, 0 }
  0x16   : > { %913 = vmatpush3.bf16.xpose.msra.mxu0 %v264_v3  ;;  %919 = vmatpush3.bf16.msra.mxu1 %v327_v21 }
  0x17   : > { %930 = vmatprep.subr.bf16.mxu0 %v1033_v0  ;;  %924 = vmatprep.subr.bf16.mxu1 %v1033_v0 }
  0x19   : > { %371 = vrot.lane.b32.xlu1 %v252_v5, %s1035_s27 }
  0x1d   : > { %915 = vmatmul.mubr.msk.bf16.vlgmr.msra.gmra.mrb[0].mxu0 %vm259_vm1, %v252_v5  ;;  %495 = vrot.lane.b32.xlu1 %v252_v5, %s1036_s28 }
  0x1e   : > { %932 = vmatprep.mubr.msk.bf16.mxu0 %vm1034_vm0, %v1033_v0 }
  0x21   : > { %619 = vrot.lane.b32.xlu1 %v255_v2, %s1037_s29 }
  0x25   : > { %617 = vrot.lane.b32.xlu1 %v252_v5, %s1037_s29 }
  0x87   : > { %v375_v24 = vpop.permute.xlu1 %374 }
  0x88   : > { %v380_v26 = vsel %vm259_vm1, %v375_v24, 0 }
  0x8b   : > { %v372_v28 = vpop.permute.xlu1 %371 }
  0x8f   : > { %v496_v30 = vpop.permute.xlu1 %495 }
  0x93   : > { %v620_v32 = vpop.permute.xlu1 %619 }
  0x94   : > { %v625_v33 = vsel %vm259_vm1, %v620_v32, 0 }
  0x97   : > { %v618_v34 = vpop.permute.xlu1 %617 }
  0xf0   : > { %v300_v6 = vpop.f32.mrb[0].mxu0 }
  0xf1   : > { %v306_v8 = vmul.f32 0.35355338, %v300_v6  ;;  %v916_v9 = vpop.f32.mrb[1].mxu0 }
  0xf2   : > { %v303_v10 = vpop.f32.mrb[2].mxu0 }
  0xf3   : > { %v308_v11 = vadd.f32 %v307_v7, %v306_v8  ;;  %v917_v12 = vpop.f32.mrb[3].mxu0 }
  0xf5   : > { %309 = vst.msk [vmem:[%s1110_s26] sm:$0xff] %vm259_vm1, %v308_v11  ;;  %v310_v13 = vsel %vm259_vm1, %v308_v11, -inf }
  0xf6   : > { %311 = vmax.xlane.f32.xlu0 %v310_v13 }
 0x183   : > { %v312_v14 = vpop.xlane.xlu0 %311 }
 0x184   : > { %v313_v15 = vsub.f32 %v308_v11, %v312_v14 }
 0x186   : > { %v314_v16 = vmul.f32 1.442695, %v313_v15 }
 0x188   : > { %993 = vpow2.f32 %v314_v16 }
 0x192   : > { %v994_v17 = vpop.eup %993 }
 0x193   : > { %v316_v18 = vsel %vm259_vm1, %v994_v17, 0.0 }
 0x194   : > { %317 = vadd.xlane.f32.xlu0 %v316_v18 }
 0x1aa   : > { %497 = vrot.lane.b32.xlu0 %v255_v2, %s1036_s28 }
 0x221   : > { %v318_v22 = vpop.xlane.xlu0 %317 }
 0x222   : > { %995 = vrcp.f32 %v318_v22 }
 0x225   : > { %v498_v29 = vpop.permute.xlu0 %497 }
 0x226   : > { %v503_v31 = vsel %vm259_vm1, %v498_v29, 0 }
 0x22c   : > { %v996_v23 = vpop.eup %995 }
 0x22d   : > { %v320_v25 = vmul.f32 %v996_v23, %v994_v17 }
 0x22f   : > { %v321_v27 = vpack.c.bf16 %v320_v25, %v320_v25 }
 0x231   : > { %921 = vmatmul.mubr.msk.bf16.vlgmr.msra.gmra.mrb[0].mxu1 %vm259_vm1, %v321_v27 }
 0x232   : > { %925 = vmatpush3.bf16.xpose.msra.mxu1 %v380_v26  ;;  %926 = vmatprep.mubr.msk.bf16.mxu1 %vm1034_vm0, %v1033_v0 }
 0x233   : > { %936 = vmatprep.subr.bf16.mxu1 %v1033_v0 }
 0x239   : > { %927 = vmatmul.mubr.msk.bf16.vlgmr.msra.gmra.mrb[4].mxu1 %vm259_vm1, %v372_v28 }
 0x23a   : > { %937 = vmatpush3.bf16.xpose.msra.mxu1 %v503_v31  ;;  %938 = vmatprep.mubr.msk.bf16.mxu1 %vm1034_vm0, %v1033_v0 }
 0x23b   : > { %948 = vmatprep.subr.bf16.mxu1 %v1033_v0 }
 0x241   : > { %939 = vmatmul.mubr.msk.bf16.vlgmr.msra.gmra.mrb[8].mxu1 %vm259_vm1, %v496_v30 }
 0x242   : > { %949 = vmatpush3.bf16.xpose.msra.mxu1 %v625_v33  ;;  %950 = vmatprep.mubr.msk.bf16.mxu1 %vm1034_vm0, %v1033_v0 }
 0x249   : > { %951 = vmatmul.mubr.msk.bf16.vlgmr.msra.gmra.mrb[12].mxu1 %vm259_vm1, %v618_v34 }
 0x304   : > { %v363_v35 = vpop.f32.mrb[0].mxu1 }
 0x305   : > { %369 = vst.msk [vmem:[%s1147_s6] sm:$0xff] %vm259_vm1, %v363_v35  ;;  %v922_v36 = vpop.f32.mrb[1].mxu1 }
 0x306   : > { %v366_v37 = vpop.f32.mrb[2].mxu1 }
 0x307   : > { %v923_v38 = vpop.f32.mrb[3].mxu1 }
 0x30c   : > { %v416_v39 = vpop.f32.mrb[4].mxu1 }
 0x30d   : > { %v422_v41 = vmul.f32 0.35355338, %v416_v39  ;;  %v928_v42 = vpop.f32.mrb[5].mxu1 }
 0x30e   : > { %v419_v43 = vpop.f32.mrb[6].mxu1 }
 0x30f   : > { %v425_v44 = vadd.f32 %v881_v40, %v422_v41  ;;  %v929_v45 = vpop.f32.mrb[7].mxu1 }
 0x311   : > { %882 = vst.msk [vmem:[%s1110_s26 + $0x8] sm:$0xff] %vm259_vm1, %v425_v44  ;;  %v428_v46 = vsel %vm259_vm1, %v425_v44, -inf }
 0x312   : > { %429 = vmax.xlane.f32.xlu1 %v428_v46 }
 0x314   : > { %v539_v47 = vpop.f32.mrb[8].mxu1 }
 0x315   : > { %v545_v49 = vmul.f32 0.35355338, %v539_v47  ;;  %v940_v50 = vpop.f32.mrb[9].mxu1 }
 0x316   : > { %v542_v51 = vpop.f32.mrb[10].mxu1 }
 0x317   : > { %v548_v52 = vadd.f32 %v885_v48, %v545_v49  ;;  %v941_v53 = vpop.f32.mrb[11].mxu1 }
 0x319   : > { %886 = vst.msk [vmem:[%s1110_s26 + $0x10] sm:$0xff] %vm259_vm1, %v548_v52  ;;  %v551_v54 = vsel %vm259_vm1, %v548_v52, -inf }
 0x31a   : > { %552 = vmax.xlane.f32.xlu0 %v551_v54 }
 0x31c   : > { %v661_v55 = vpop.f32.mrb[12].mxu1 }
 0x31d   : > { %v667_v57 = vmul.f32 0.35355338, %v661_v55  ;;  %v952_v58 = vpop.f32.mrb[13].mxu1 }
 0x31e   : > { %v664_v59 = vpop.f32.mrb[14].mxu1 }
 0x31f   : > { %v670_v60 = vadd.f32 %v889_v56, %v667_v57  ;;  %v953_v61 = vpop.f32.mrb[15].mxu1 }
 0x321   : > { %890 = vst.msk [vmem:[%s1110_s26 + $0x18] sm:$0xff] %vm259_vm1, %v670_v60  ;;  %v673_v62 = vsel %vm259_vm1, %v670_v60, -inf }
 0x322   : > { %674 = vmax.xlane.f32.xlu1 %v673_v62 }
 0x39f   : > { %v430_v63 = vpop.xlane.xlu1 %429 }
 0x3a0   : > { %v431_v1 = vsub.f32 %v425_v44, %v430_v63 }
 0x3a2   : > { %v432_v2 = vmul.f32 1.442695, %v431_v1 }
 0x3a4   : > { %997 = vpow2.f32 %v432_v2 }
 0x3a7   : > { %v553_v3 = vpop.xlane.xlu0 %552 }
 0x3a8   : > { %v554_v4 = vsub.f32 %v548_v52, %v553_v3 }
 0x3aa   : > { %v555_v5 = vmul.f32 1.442695, %v554_v4 }
 0x3ac   : > { %999 = vpow2.f32 %v555_v5 }
 0x3ae   : > { %v998_v6 = vpop.eup %997 }
 0x3af   : > { %v434_v7 = vsel %vm259_vm1, %v998_v6, 0.0  ;;  %v675_v10 = vpop.xlane.xlu1 %674 }
 0x3b0   : > { %435 = vadd.xlane.f32.xlu1 %v434_v7  ;;  %v676_v11 = vsub.f32 %v670_v60, %v675_v10 }
 0x3b2   : > { %v677_v12 = vmul.f32 1.442695, %v676_v11 }
 0x3b4   : > { %1001 = vpow2.f32 %v677_v12 }
 0x3b6   : > { %v1000_v8 = vpop.eup %999 }
 0x3b7   : > { %v557_v9 = vsel %vm259_vm1, %v1000_v8, 0.0 }
 0x3b8   : > { %558 = vadd.xlane.f32.xlu0 %v557_v9 }
 0x3be   : > { %v1002_v13 = vpop.eup %1001 }
 0x3bf   : > { %v679_v14 = vsel %vm259_vm1, %v1002_v13, 0.0 }
 0x3c1   : > { %563 = vrot.lane.b32.xlu1 %v1122_v20, %s1036_s28 }
 0x3ce   : > { %441 = vrot.lane.b32.xlu0 %v1122_v20, %s1035_s27 }
 0x3e5   : > { %680 = vadd.xlane.f32.xlu1 %v679_v14 }
 0x3f6   : > { %685 = vrot.lane.b32.xlu1 %v1122_v20, %s1037_s29 }
 0x43d   : > { %v436_v15 = vpop.xlane.xlu1 %435 }
 0x43e   : > { %1003 = vrcp.f32 %v436_v15 }
 0x441   : > { %v564_v22 = vpop.permute.xlu1 %563 }
 0x442   : > { %v569_v24 = vsel %vm325_vm2, %v564_v22, 0 }
 0x445   : > { %v559_v16 = vpop.xlane.xlu0 %558 }
 0x446   : > { %1005 = vrcp.f32 %v559_v16 }
 0x448   : > { %v1004_v17 = vpop.eup %1003 }
 0x449   : > { %v438_v18 = vmul.f32 %v1004_v17, %v998_v6  ;;  %v442_v19 = vpop.permute.xlu0 %441 }
 0x44a   : > { %v447_v21 = vsel %vm325_vm2, %v442_v19, 0 }
 0x44b   : > { %931 = vmatpush3.bf16.msra.mxu0 %v447_v21  ;;  %v439_v23 = vpack.c.bf16 %v438_v18, %v438_v18 }
 0x44c   : > { %942 = vmatprep.subr.bf16.mxu0 %v1033_v0 }
 0x44e   : > { %933 = vmatmul.mubr.msk.bf16.vlgmr.msra.gmra.mrb[4].mxu0 %vm259_vm1, %v439_v23 }
 0x44f   : > { %943 = vmatpush3.bf16.msra.mxu0 %v569_v24  ;;  %944 = vmatprep.mubr.msk.bf16.mxu0 %vm1034_vm0, %v1033_v0 }
 0x450   : > { %v1006_v20 = vpop.eup %1005  ;;  %954 = vmatprep.subr.bf16.mxu0 %v1033_v0 }
 0x451   : > { %v561_v25 = vmul.f32 %v1006_v20, %v1000_v8 }
 0x453   : > { %v562_v26 = vpack.c.bf16 %v561_v25, %v561_v25 }
 0x456   : > { %945 = vmatmul.mubr.msk.bf16.vlgmr.msra.gmra.mrb[8].mxu0 %vm259_vm1, %v562_v26 }
 0x457   : > { %956 = vmatprep.mubr.msk.bf16.mxu0 %vm1034_vm0, %v1033_v0 }
 0x472   : > { %v681_v27 = vpop.xlane.xlu1 %680 }
 0x473   : > { %1007 = vrcp.f32 %v681_v27 }
 0x476   : > { %v686_v28 = vpop.permute.xlu1 %685 }
 0x477   : > { %v691_v29 = vsel %vm325_vm2, %v686_v28, 0 }
 0x478   : > { %955 = vmatpush3.bf16.msra.mxu0 %v691_v29 }
 0x47d   : > { %v1008_v30 = vpop.eup %1007 }
 0x47e   : > { %v683_v31 = vmul.f32 %v1008_v30, %v1002_v13 }
 0x480   : > { %v684_v32 = vpack.c.bf16 %v683_v31, %v683_v31 }
 0x482   : > { %957 = vmatmul.mubr.msk.bf16.vlgmr.msra.gmra.mrb[12].mxu0 %vm259_vm1, %v684_v32 }
 0x521   : > { %v483_v33 = vpop.f32.mrb[4].mxu0 }
 0x522   : > { %490 = vrot.lane.b32.xlu0 %v483_v33, %s1038_s7  ;;  %v934_v34 = vpop.f32.mrb[5].mxu0 }
 0x523   : > { %v486_v35 = vpop.f32.mrb[6].mxu0 }
 0x524   : > { %v935_v36 = vpop.f32.mrb[7].mxu0 }
 0x529   : > { %v605_v37 = vpop.f32.mrb[8].mxu0 }
 0x52a   : > { %612 = vrot.lane.b32.xlu1 %v605_v37, %s1039_s8  ;;  %v946_v0 = vpop.f32.mrb[9].mxu0 }
 0x52b   : > { %v608_v38 = vpop.f32.mrb[10].mxu0 }
 0x52c   : > { %v947_v39 = vpop.f32.mrb[11].mxu0 }
 0x555   : > { %v727_v40 = vpop.f32.mrb[12].mxu0 }
 0x556   : > { %734 = vrot.lane.b32.xlu0 %v727_v40, %s1040_s9  ;;  %v958_v41 = vpop.f32.mrb[13].mxu0 }
 0x557   : > { %v730_v42 = vpop.f32.mrb[14].mxu0 }
 0x558   : > { %v959_v43 = vpop.f32.mrb[15].mxu0 }
 0x594   : > { %v491_v44 = vpop.permute.xlu0 %490 }
 0x595   : > { %494 = vst.msk [vmem:[%s1147_s6] sm:$0xff] %vm493_vm3, %v491_v44 }
 0x59c   : > { %v613_v45 = vpop.permute.xlu1 %612 }
 0x59d   : > { %616 = vst.msk [vmem:[%s1147_s6] sm:$0xff] %vm615_vm4, %v613_v45 }
 0x5c8   : > { %v735_v46 = vpop.permute.xlu0 %734 }
 0x5c9   : > { %738 = vst.msk [vmem:[%s1147_s6] sm:$0xff] %vm737_vm5, %v735_v46 }
 0x5ca PF: > { %s14_s14 = sadd.s32 1, %s1031_s14   ;;  %s1200_s12 = smov %s1027_s13 }
 0x5cb   : > { %p11_p5 = scmp.ge.s32.totalorder %s14_s14, 4   ;;  %s1201_s13 = smov %s1203_s15 }
 0x5cd   :  { %13 = sbr.rel (!%p11_p5) target bundleno = 2 (0x2), region = 81 }

// kernel: frame_transformer_forward.29
= control target key start
LH: loop header
LB: loop body
LE: loop exit
PB: predicated region body
PF: predicated region fallthrough
CT: control target
= control target key end

     0   :  { %s1537_s9 = smov 0   ;;  %s1680_s0 = inlined_call_operand.vmem [shape: f32[2,7,408], index: 0, kind: input, shape index: {}]   ;;  %s1681_s1 = inlined_call_operand.vmem [shape: bf16[9,12,7], index: 1, kind: input, shape index: {}]   ;;  %s1682_s2 = inlined_call_operand.vmem [shape: f32[2,12,272], index: 2, kind: output, shape index: {}]  }
   0x1 LB: > { %s1280_s10 = sadd.s32 4294967295, %s1507_s9   ;;  %p1284_p0 = scmp.ge.s32.totalorder %s1507_s9, 1  ;;  %s1507_s9 = sphi %s1537_s9, %s12_s9  }
   0x2   : > { %p112_p1 = scmp.lt.s32.totalorder %s1507_s9, 3 }
   0x4   : > { %p113_p2 = pnand %p1284_p0, %p112_p1 }
   0x5   : > { %p134_p3 = scmp.lt.s32.totalorder (!%p113_p2), %s1280_s10, 1  ;;  %v1509_v0 = vmov (!%p113_p2), 0.0   ;;  %vm1510_vm0 = vmmov (!%p113_p2), 0   ;;  %v1511_v4 = vmov (!%p113_p2), 0   ;;  %s1512_s15 = smov (!%p113_p2), 93   ;;  %vm177_vm1 = vcmask (!%p113_p2), 1042432  }
   0x6   : > { %116 = sbr.rel (%p113_p2) target bundleno = 457 (0x1c9), region = 28  ;;  %1352 = vmatprep.subr.bf16.mxu1 (!%p113_p2), %v1509_v0  ;;  %1354 = vmatprep.mubr.msk.bf16.mxu1 (!%p113_p2), %vm1510_vm0, %v1509_v0  ;;  %s1513_s16 = smov (!%p113_p2), 94   ;;  %vm170_vm2 = vcmask (!%p113_p2), 760832   ;;  %vm178_vm3 = vcmask (!%p113_p2), 1043456   ;;  %v1521_v10 = vmov (!%p113_p2), 65535   ;;  %vm285_vm4 = vcmask (!%p113_p2), 769024  }
   0x7   : > { %222 = vmatprep.mubr.bf16.mxu0 (!%p113_p2), %v1511_v4  ;;  %s1514_s17 = smov (!%p113_p2), 92   ;;  %s1515_s18 = smov (!%p113_p2), 60   ;;  %v179_v11 = vsel (!%p113_p2), %vm177_vm1, 4294967295, %v1521_v10  ;;  %v1492_v19 = vld [vmem:[%s1681_s1 + $0x8] sm:$0x3f] (!%p113_p2)   ;;  %vm173_vm5 = vcmask (!%p113_p2), 56320  }
   0x8   : > { %s1516_s19 = smov (!%p113_p2), 59   ;;  %s1517_s20 = smov (!%p113_p2), 58   ;;  %v1555_v15 = vsel (!%p113_p2), %vm178_vm3, %v179_v11, 0  ;;  %vm398_vm6 = vcmask (!%p113_p2), 752640   ;;  %v1493_v34 = vld [vmem:[%s1681_s1] sm:$0x3f] (!%p113_p2)  }
   0x9   : > { %s1518_s21 = smov (!%p113_p2), 26   ;;  %s1519_s22 = smov (!%p113_p2), 25   ;;  %vm517_vm7 = vcmask (!%p113_p2), 490496   ;;  %vm636_vm8 = vcmask (!%p113_p2), 482304   ;;  %v1494_v44 = vld [vmem:[%s1681_s1 + $0x10] sm:$0x3f] (!%p113_p2)  }
   0xa   : > { %s1520_s23 = smov (!%p113_p2), 24   ;;  %vm755_vm9 = vcmask (!%p113_p2), 474112   ;;  %v1495_v53 = vld [vmem:[%s1681_s1 + $0x18] sm:$0x3f] (!%p113_p2)   ;;  %vm874_vm10 = vcmask (!%p113_p2), 211968   ;;  %vm993_vm11 = vcmask (!%p113_p2), 203776  }
   0xb   : > { %v1496_v62 = vld [vmem:[%s1681_s1 + $0x20] sm:$0x3f] (!%p113_p2)   ;;  %vm1112_vm12 = vcmask (!%p113_p2), 195584   ;;  %vm1219_vm13 = vcmask (!%p113_p2), 130048   ;;  %vm1223_vm14 = vcmask (!%p113_p2), 125952  }
   0xd   : > { %s1684_s10 = smov (!%p134_p3, %s1280_s10), 1 }
   0xe   : > { %s1333_s11 = sshll.u32 %s1684_s10, 5 }
   0xf   : > { %s138_s14 = scalar_lea.vmem %s1680_s0, %s1333_s11 }
  0x10   : > { %v146_v1 = vld [vmem:[%s138_s14 + $0x8] sm:$0x7f]  ;;  %v145_v2 = vld [vmem:[%s138_s14] sm:$0x7f]  ;;  %v147_v3 = vld [vmem:[%s138_s14 + $0x10] sm:$0x7f] }
  0x11   : > { %v149_v5 = vpack.c.bf16 %v146_v1, %v146_v1  ;;  %v148_v6 = vpack.c.bf16 %v145_v2, %v145_v2  ;;  %v150_v7 = vpack.c.bf16 %v147_v3, %v147_v3 }
  0x13   : > { %166 = vrot.lane.b32.xlu0 %v149_v5, %s1512_s15  ;;  %164 = vrot.lane.b32.xlu1 %v148_v6, %s1512_s15 }
  0x17   : > { %168 = vrot.lane.b32.xlu0 %v150_v7, %s1512_s15  ;;  %281 = vrot.lane.b32.xlu1 %v149_v5, %s1513_s16 }
  0x1b   : > { %283 = vrot.lane.b32.xlu0 %v150_v7, %s1513_s16  ;;  %279 = vrot.lane.b32.xlu1 %v148_v6, %s1513_s16  ;;  %s1470_s16 = smul.u32 48, %s1684_s10 }
  0x1f   : > { %394 = vrot.lane.b32.xlu0 %v149_v5, %s1514_s17  ;;  %396 = vrot.lane.b32.xlu1 %v150_v7, %s1514_s17 }
  0x23   : > { %392 = vrot.lane.b32.xlu0 %v148_v6, %s1514_s17  ;;  %513 = vrot.lane.b32.xlu1 %v149_v5, %s1515_s18 }
  0x27   : > { %515 = vrot.lane.b32.xlu0 %v150_v7, %s1515_s18  ;;  %511 = vrot.lane.b32.xlu1 %v148_v6, %s1515_s18 }
  0x2b   : > { %632 = vrot.lane.b32.xlu0 %v149_v5, %s1516_s19  ;;  %634 = vrot.lane.b32.xlu1 %v150_v7, %s1516_s19 }
  0x2f   : > { %630 = vrot.lane.b32.xlu0 %v148_v6, %s1516_s19  ;;  %751 = vrot.lane.b32.xlu1 %v149_v5, %s1517_s20  ;;  %s143_s19 = scalar_lea.vmem %s1682_s2, %s1470_s16 }
  0x33   : > { %753 = vrot.lane.b32.xlu0 %v150_v7, %s1517_s20  ;;  %749 = vrot.lane.b32.xlu1 %v148_v6, %s1517_s20 }
  0x37   : > { %870 = vrot.lane.b32.xlu0 %v149_v5, %s1518_s21  ;;  %872 = vrot.lane.b32.xlu1 %v150_v7, %s1518_s21 }
  0x3b   : > { %868 = vrot.lane.b32.xlu0 %v148_v6, %s1518_s21  ;;  %989 = vrot.lane.b32.xlu1 %v149_v5, %s1519_s22 }
  0x3f   : > { %991 = vrot.lane.b32.xlu0 %v150_v7, %s1519_s22  ;;  %987 = vrot.lane.b32.xlu1 %v148_v6, %s1519_s22 }
  0x43   : > { %1108 = vrot.lane.b32.xlu0 %v149_v5, %s1520_s23  ;;  %1110 = vrot.lane.b32.xlu1 %v150_v7, %s1520_s23 }
  0x47   : > { %1106 = vrot.lane.b32.xlu0 %v148_v6, %s1520_s23 }
  0x85   : > { %v167_v8 = vpop.permute.xlu0 %166  ;;  %v165_v9 = vpop.permute.xlu1 %164 }
  0x86   : > { %v171_v12 = vsel %vm170_vm2, %v165_v9, %v167_v8  ;;  %v1497_v9 = vld [vmem:[%s1681_s1 + $0x28] sm:$0x3f]  }
  0x87   : > { %v182_v20 = vand.u32 %v1555_v15, %v171_v12 }
  0x89   : > { %v169_v13 = vpop.permute.xlu0 %168  ;;  %v282_v14 = vpop.permute.xlu1 %281 }
  0x8a   : > { %v188_v16 = vand.u32 %v1555_v15, %v169_v13  ;;  %v172_v17 = vsel %vm170_vm2, %v167_v8, %v169_v13 }
  0x8b   : > { %v185_v18 = vand.u32 %v1555_v15, %v172_v17 }
  0x8c   : > { %1353 = vmatpush3.bf16.msra.mxu1 %v188_v16 }
  0x8d   : > { %190 = vmatprep.subr.bf16.mxu0 %v185_v18  ;;  %v284_v21 = vpop.permute.xlu0 %283  ;;  %v280_v22 = vpop.permute.xlu1 %279  ;;  %1358 = vmatprep.subr.bf16.mxu1 %v1509_v0 }
  0x8e   : > { %v287_v23 = vsel %vm285_vm4, %v282_v14, %v284_v21  ;;  %v298_v24 = vand.u32 %v284_v21, %v1555_v15  ;;  %v286_v25 = vsel %vm285_vm4, %v280_v22, %v282_v14  ;;  %191 = vmatpush1.bf16.msra.mxu0 %v182_v20 }
  0x8f   : > { %v295_v26 = vand.u32 %v287_v23, %v1555_v15  ;;  %v292_v27 = vand.u32 %v286_v25, %v1555_v15  ;;  %1355 = vmatmul.mubr.msk.bf16.vlgmr.msra.gmra.mrb[0].mxu1 %vm173_vm5, %v1492_v19 }
  0x90   : > { %1359 = vmatpush3.bf16.msra.mxu1 %v298_v24  ;;  %1360 = vmatprep.mubr.msk.bf16.mxu1 %vm1510_vm0, %v1509_v0 }
  0x91   : > { %1291 = vmatmul.mubr.msk.bf16.vlgmr.msra.gmra.mrb[0].mxu0 %vm173_vm5, %v1492_v19  ;;  %300 = vmatprep.subr.bf16.mxu0 %v295_v26  ;;  %v395_v28 = vpop.permute.xlu0 %394  ;;  %v397_v29 = vpop.permute.xlu1 %396  ;;  %v1498_v19 = vld [vmem:[%s1681_s1 + $0x30] sm:$0x3f]  }
  0x92   : > { %301 = vmatpush1.bf16.msra.mxu0 %v292_v27  ;;  %v400_v30 = vsel %vm398_vm6, %v395_v28, %v397_v29  ;;  %1364 = vmatprep.subr.bf16.mxu1 %v1509_v0  ;;  %v411_v36 = vand.u32 %v397_v29, %v1555_v15  ;;  %v1499_v27 = vld [vmem:[%s1681_s1 + $0x38] sm:$0x3f]  }
  0x93   : > { %v408_v31 = vand.u32 %v400_v30, %v1555_v15  ;;  %332 = vmatprep.mubr.bf16.mxu0 %v1511_v4  ;;  %v1500_v30 = vld [vmem:[%s1681_s1 + $0x40] sm:$0x3f]  }
  0x95   : > { %v393_v32 = vpop.permute.xlu0 %392  ;;  %413 = vmatprep.subr.bf16.mxu0 %v408_v31  ;;  %v514_v35 = vpop.permute.xlu1 %513 }
  0x96   : > { %v399_v33 = vsel %vm398_vm6, %v393_v32, %v395_v28 }
  0x97   : > { %v405_v38 = vand.u32 %v399_v33, %v1555_v15 }
  0x99   : > { %v516_v37 = vpop.permute.xlu0 %515  ;;  %v512_v41 = vpop.permute.xlu1 %511 }
  0x9a   : > { %v519_v39 = vsel %vm517_vm7, %v514_v35, %v516_v37  ;;  %v518_v43 = vsel %vm517_vm7, %v512_v41, %v514_v35  ;;  %v530_v46 = vand.u32 %v516_v37, %v1555_v15 }
  0x9b   : > { %1361 = vmatmul.mubr.msk.bf16.vlgmr.msra.gmra.mrb[0].mxu1 %vm173_vm5, %v1493_v34  ;;  %v527_v40 = vand.u32 %v519_v39, %v1555_v15  ;;  %v524_v48 = vand.u32 %v518_v43, %v1555_v15 }
  0x9c   : > { %1365 = vmatpush3.bf16.msra.mxu1 %v411_v36  ;;  %1366 = vmatprep.mubr.msk.bf16.mxu1 %vm1510_vm0, %v1509_v0 }
  0x9d   : > { %1294 = vmatmul.mubr.msk.bf16.vlgmr.msra.gmra.mrb[0].mxu0 %vm173_vm5, %v1493_v34  ;;  %1370 = vmatprep.subr.bf16.mxu1 %v1509_v0  ;;  %v635_v42 = vpop.permute.xlu1 %634  ;;  %v633_v45 = vpop.permute.xlu0 %632 }
  0x9e   : > { %414 = vmatpush1.bf16.msra.mxu0 %v405_v38  ;;  %445 = vmatprep.mubr.bf16.mxu0 %v1511_v4  ;;  %v638_v47 = vsel %vm636_vm8, %v633_v45, %v635_v42  ;;  %v649_v55 = vand.u32 %v635_v42, %v1555_v15 }
  0x9f   : > { %532 = vmatprep.subr.bf16.mxu0 %v527_v40  ;;  %v646_v49 = vand.u32 %v638_v47, %v1555_v15 }
  0xa1   : > { %v631_v50 = vpop.permute.xlu0 %630  ;;  %v752_v54 = vpop.permute.xlu1 %751 }
  0xa2   : > { %v637_v52 = vsel %vm636_vm8, %v631_v50, %v633_v45 }
  0xa3   : > { %v643_v57 = vand.u32 %v637_v52, %v1555_v15 }
  0xa5   : > { %v754_v51 = vpop.permute.xlu0 %753  ;;  %v750_v59 = vpop.permute.xlu1 %749 }
  0xa6   : > { %v757_v56 = vsel %vm755_vm9, %v752_v54, %v754_v51  ;;  %v756_v61 = vsel %vm755_vm9, %v750_v59, %v752_v54  ;;  %v768_v1 = vand.u32 %v754_v51, %v1555_v15 }
  0xa7   : > { %1367 = vmatmul.mubr.msk.bf16.vlgmr.msra.gmra.mrb[0].mxu1 %vm173_vm5, %v1494_v44  ;;  %v765_v58 = vand.u32 %v757_v56, %v1555_v15  ;;  %v762_v3 = vand.u32 %v756_v61, %v1555_v15 }
  0xa8   : > { %1371 = vmatpush3.bf16.msra.mxu1 %v530_v46  ;;  %1372 = vmatprep.mubr.msk.bf16.mxu1 %vm1510_vm0, %v1509_v0 }
  0xa9   : > { %1299 = vmatmul.mubr.msk.bf16.vlgmr.msra.gmra.mrb[0].mxu0 %vm173_vm5, %v1494_v44  ;;  %1376 = vmatprep.subr.bf16.mxu1 %v1509_v0  ;;  %v873_v60 = vpop.permute.xlu1 %872  ;;  %v871_v63 = vpop.permute.xlu0 %870 }
  0xaa   : > { %533 = vmatpush1.bf16.msra.mxu0 %v524_v48  ;;  %564 = vmatprep.mubr.bf16.mxu0 %v1511_v4  ;;  %v876_v2 = vsel %vm874_vm10, %v871_v63, %v873_v60  ;;  %v887_v11 = vand.u32 %v873_v60, %v1555_v15 }
  0xab   : > { %651 = vmatprep.subr.bf16.mxu0 %v646_v49  ;;  %v884_v5 = vand.u32 %v876_v2, %v1555_v15 }
  0xad   : > { %v869_v6 = vpop.permute.xlu0 %868  ;;  %v990_v10 = vpop.permute.xlu1 %989 }
  0xae   : > { %v875_v8 = vsel %vm874_vm10, %v869_v6, %v871_v63 }
  0xaf   : > { %v881_v13 = vand.u32 %v875_v8, %v1555_v15 }
  0xb1   : > { %v992_v7 = vpop.permute.xlu0 %991  ;;  %v988_v16 = vpop.permute.xlu1 %987 }
  0xb2   : > { %v995_v12 = vsel %vm993_vm11, %v990_v10, %v992_v7  ;;  %v994_v18 = vsel %vm993_vm11, %v988_v16, %v990_v10  ;;  %v1006_v21 = vand.u32 %v992_v7, %v1555_v15 }
  0xb3   : > { %1373 = vmatmul.mubr.msk.bf16.vlgmr.msra.gmra.mrb[0].mxu1 %vm173_vm5, %v1495_v53  ;;  %v1003_v14 = vand.u32 %v995_v12, %v1555_v15  ;;  %v1000_v23 = vand.u32 %v994_v18, %v1555_v15 }
  0xb4   : > { %1377 = vmatpush3.bf16.msra.mxu1 %v649_v55  ;;  %1378 = vmatprep.mubr.msk.bf16.mxu1 %vm1510_vm0, %v1509_v0 }
  0xb5   : > { %1304 = vmatmul.mubr.msk.bf16.vlgmr.msra.gmra.mrb[0].mxu0 %vm173_vm5, %v1495_v53  ;;  %1382 = vmatprep.subr.bf16.mxu1 %v1509_v0  ;;  %v1111_v17 = vpop.permute.xlu1 %1110  ;;  %v1109_v20 = vpop.permute.xlu0 %1108 }
  0xb6   : > { %652 = vmatpush1.bf16.msra.mxu0 %v643_v57  ;;  %683 = vmatprep.mubr.bf16.mxu0 %v1511_v4  ;;  %v1114_v22 = vsel %vm1112_vm12, %v1109_v20, %v1111_v17  ;;  %v1125_v28 = vand.u32 %v1111_v17, %v1555_v15 }
  0xb7   : > { %770 = vmatprep.subr.bf16.mxu0 %v765_v58  ;;  %v1122_v24 = vand.u32 %v1114_v22, %v1555_v15 }
  0xb9   : > { %v1107_v25 = vpop.permute.xlu0 %1106 }
  0xba   : > { %v1113_v26 = vsel %vm1112_vm12, %v1107_v25, %v1109_v20 }
  0xbb   : > { %v1119_v29 = vand.u32 %v1113_v26, %v1555_v15 }
  0xbf   : > { %1379 = vmatmul.mubr.msk.bf16.vlgmr.msra.gmra.mrb[0].mxu1 %vm173_vm5, %v1496_v62 }
  0xc0   : > { %1383 = vmatpush3.bf16.msra.mxu1 %v768_v1  ;;  %1384 = vmatprep.mubr.msk.bf16.mxu1 %vm1510_vm0, %v1509_v0 }
  0xc1   : > { %1309 = vmatmul.mubr.msk.bf16.vlgmr.msra.gmra.mrb[0].mxu0 %vm173_vm5, %v1496_v62  ;;  %1388 = vmatprep.subr.bf16.mxu1 %v1509_v0 }
  0xc2   : > { %771 = vmatpush1.bf16.msra.mxu0 %v762_v3  ;;  %802 = vmatprep.mubr.bf16.mxu0 %v1511_v4 }
  0xc3   : > { %889 = vmatprep.subr.bf16.mxu0 %v884_v5 }
  0xcb   : > { %1385 = vmatmul.mubr.msk.bf16.vlgmr.msra.gmra.mrb[0].mxu1 %vm173_vm5, %v1497_v9 }
  0xcc   : > { %1389 = vmatpush3.bf16.msra.mxu1 %v887_v11  ;;  %1390 = vmatprep.mubr.msk.bf16.mxu1 %vm1510_vm0, %v1509_v0 }
  0xcd   : > { %1314 = vmatmul.mubr.msk.bf16.vlgmr.msra.gmra.mrb[0].mxu0 %vm173_vm5, %v1497_v9  ;;  %1394 = vmatprep.subr.bf16.mxu1 %v1509_v0 }
  0xce   : > { %890 = vmatpush1.bf16.msra.mxu0 %v881_v13  ;;  %921 = vmatprep.mubr.bf16.mxu0 %v1511_v4 }
  0xcf   : > { %1008 = vmatprep.subr.bf16.mxu0 %v1003_v14 }
  0xd7   : > { %1391 = vmatmul.mubr.msk.bf16.vlgmr.msra.gmra.mrb[0].mxu1 %vm173_vm5, %v1498_v19 }
  0xd8   : > { %1395 = vmatpush3.bf16.msra.mxu1 %v1006_v21  ;;  %1396 = vmatprep.mubr.msk.bf16.mxu1 %vm1510_vm0, %v1509_v0 }
  0xd9   : > { %1319 = vmatmul.mubr.msk.bf16.vlgmr.msra.gmra.mrb[0].mxu0 %vm173_vm5, %v1498_v19  ;;  %1400 = vmatprep.subr.bf16.mxu1 %v1509_v0 }
  0xda   : > { %1009 = vmatpush1.bf16.msra.mxu0 %v1000_v23  ;;  %1040 = vmatprep.mubr.bf16.mxu0 %v1511_v4 }
  0xdb   : > { %1127 = vmatprep.subr.bf16.mxu0 %v1122_v24 }
  0xe3   : > { %1397 = vmatmul.mubr.msk.bf16.vlgmr.msra.gmra.mrb[0].mxu1 %vm173_vm5, %v1499_v27 }
  0xe4   : > { %1401 = vmatpush3.bf16.msra.mxu1 %v1125_v28  ;;  %1402 = vmatprep.mubr.msk.bf16.mxu1 %vm1510_vm0, %v1509_v0 }
  0xe5   : > { %1324 = vmatmul.mubr.msk.bf16.vlgmr.msra.gmra.mrb[0].mxu0 %vm173_vm5, %v1499_v27 }
  0xe6   : > { %1128 = vmatpush1.bf16.msra.mxu0 %v1119_v29  ;;  %1159 = vmatprep.mubr.bf16.mxu0 %v1511_v4 }
  0xef   : > { %1403 = vmatmul.mubr.msk.bf16.vlgmr.msra.gmra.mrb[0].mxu1 %vm173_vm5, %v1500_v30 }
  0xf1   : > { %1329 = vmatmul.mubr.msk.bf16.vlgmr.msra.gmra.mrb[0].mxu0 %vm173_vm5, %v1500_v30 }
 0x1c2   : > { %v1204_v0 = vpop.f32.mrb[0].mxu1 }
 0x1c3   : > { %1220 = vst.msk [vmem:[%s143_s19 + $0x10] sm:$0xff] %vm1219_vm13, %v1204_v0  ;;  %v1404_v15 = vpop.f32.mrb[1].mxu1 }
 0x1c4   : > { %v1161_v31 = vpop.f32.mrb[0].mxu0  ;;  %v1207_v4 = vpop.f32.mrb[2].mxu1 }
 0x1c5   : > { %1217 = vst [vmem:[%s143_s19] sm:$0xff] %v1161_v31  ;;  %1224 = vst.msk [vmem:[%s143_s19 + $0x28] sm:$0xf] %vm1223_vm14, %v1207_v4  ;;  %v1163_v32 = vpop.f32.mrb[1].mxu0  ;;  %v1405_v33 = vpop.f32.mrb[3].mxu1 }
 0x1c6   : > { %1218 = vst [vmem:[%s143_s19 + $0x8] sm:$0xff] %v1163_v32  ;;  %v1165_v34 = vpop.f32.mrb[2].mxu0 }
 0x1c7   : > { %1221 = vst [vmem:[%s143_s19 + $0x18] sm:$0xf] %v1165_v34  ;;  %v1167_v35 = vpop.f32.mrb[3].mxu0 }
 0x1c8   : > { %1222 = vst [vmem:[%s143_s19 + $0x20] sm:$0xf] %v1167_v35 }
 0x1c9 PF: > { %s12_s9 = sadd.s32 1, %s1507_s9  }
 0x1ca   : > { %p9_p4 = scmp.ge.s32.totalorder %s12_s9, 4  }
 0x1cc   :  { %11 = sbr.rel (!%p9_p4) target bundleno = 1 (0x1), region = 66 }

// kernel: frame_transformer_forward.33
= control target key start
LH: loop header
LB: loop body
LE: loop exit
PB: predicated region body
PF: predicated region fallthrough
CT: control target
= control target key end

     0   :  { %s1408_s9 = smov 0   ;;  %s1551_s0 = inlined_call_operand.vmem [shape: f32[2,7,408], index: 0, kind: input, shape index: {}]   ;;  %s1552_s1 = inlined_call_operand.vmem [shape: bf16[9,3,7], index: 1, kind: input, shape index: {}]   ;;  %s1553_s2 = inlined_call_operand.vmem [shape: f32[2,3,272], index: 2, kind: output, shape index: {}]  }
   0x1 LB: > { %s1177_s10 = sadd.s32 4294967295, %s1378_s9   ;;  %p1181_p0 = scmp.ge.s32.totalorder %s1378_s9, 1  ;;  %s1378_s9 = sphi %s1408_s9, %s12_s9  }
   0x2   : > { %p112_p1 = scmp.lt.s32.totalorder %s1378_s9, 3 }
   0x4   : > { %p113_p2 = pnand %p1181_p0, %p112_p1 }
   0x5   : > { %p134_p3 = scmp.lt.s32.totalorder (!%p113_p2), %s1177_s10, 1  ;;  %v1380_v0 = vmov (!%p113_p2), 0.0   ;;  %vm1381_vm0 = vmmov (!%p113_p2), 0   ;;  %v1382_v4 = vmov (!%p113_p2), 0   ;;  %s1383_s15 = smov (!%p113_p2), 93   ;;  %vm170_vm1 = vcmask (!%p113_p2), 1042432  }
   0x6   : > { %116 = sbr.rel (%p113_p2) target bundleno = 457 (0x1c9), region = 28  ;;  %1232 = vmatprep.subr.bf16.mxu1 (!%p113_p2), %v1380_v0  ;;  %1234 = vmatprep.mubr.msk.bf16.mxu1 (!%p113_p2), %vm1381_vm0, %v1380_v0  ;;  %s1384_s16 = smov (!%p113_p2), 94   ;;  %vm163_vm2 = vcmask (!%p113_p2), 760832   ;;  %vm171_vm3 = vcmask (!%p113_p2), 1043456   ;;  %v1392_v10 = vmov (!%p113_p2), 65535   ;;  %vm270_vm4 = vcmask (!%p113_p2), 769024  }
   0x7   : > { %215 = vmatprep.mubr.bf16.mxu0 (!%p113_p2), %v1382_v4  ;;  %s1385_s17 = smov (!%p113_p2), 92   ;;  %s1386_s18 = smov (!%p113_p2), 60   ;;  %v172_v11 = vsel (!%p113_p2), %vm170_vm1, 4294967295, %v1392_v10  ;;  %v1185_v20 = vld [vmem:[%s1552_s1 + $0x2] sm:$0x3] (!%p113_p2)  ;;  %vm166_vm5 = vcmask (!%p113_p2), 56320  }
   0x8   : > { %s1387_s19 = smov (!%p113_p2), 59   ;;  %s1388_s20 = smov (!%p113_p2), 58   ;;  %v1426_v15 = vsel (!%p113_p2), %vm171_vm3, %v172_v11, 0  ;;  %vm374_vm6 = vcmask (!%p113_p2), 752640   ;;  %vm481_vm7 = vcmask (!%p113_p2), 490496   ;;  %vm588_vm8 = vcmask (!%p113_p2), 482304  }
   0x9   : > { %s1389_s21 = smov (!%p113_p2), 26   ;;  %s1390_s22 = smov (!%p113_p2), 25   ;;  %v151_v36 = vld [vmem:[%s1552_s1] sm:$0x3] (!%p113_p2)  ;;  %v1190_v46 = vld [vmem:[%s1552_s1 + $0x4] sm:$0x3] (!%p113_p2) }
   0xa   : > { %s1391_s23 = smov (!%p113_p2), 24   ;;  %vm695_vm9 = vcmask (!%p113_p2), 474112   ;;  %v1193_v55 = vld [vmem:[%s1552_s1 + $0x6] sm:$0x3] (!%p113_p2)  ;;  %vm802_vm10 = vcmask (!%p113_p2), 211968   ;;  %vm909_vm11 = vcmask (!%p113_p2), 203776  }
   0xb   : > { %v1199_v11 = vld [vmem:[%s1552_s1 + $0xa] sm:$0x3] (!%p113_p2)  ;;  %vm1016_vm12 = vcmask (!%p113_p2), 195584   ;;  %vm1120_vm13 = vcmask (!%p113_p2), 124928  }
   0xd   : > { %s1555_s10 = smov (!%p134_p3, %s1177_s10), 1 }
   0xe   : > { %s1213_s11 = sshll.u32 %s1555_s10, 5 }
   0xf   : > { %s138_s14 = scalar_lea.vmem %s1551_s0, %s1213_s11 }
  0x10   : > { %v146_v1 = vld [vmem:[%s138_s14 + $0x8] sm:$0x7f]  ;;  %v145_v2 = vld [vmem:[%s138_s14] sm:$0x7f]  ;;  %v147_v3 = vld [vmem:[%s138_s14 + $0x10] sm:$0x7f] }
  0x11   : > { %v149_v5 = vpack.c.bf16 %v146_v1, %v146_v1  ;;  %v148_v6 = vpack.c.bf16 %v145_v2, %v145_v2  ;;  %v150_v7 = vpack.c.bf16 %v147_v3, %v147_v3  ;;  %v1196_v1 = vld [vmem:[%s1552_s1 + $0x8] sm:$0x3] }
  0x13   : > { %159 = vrot.lane.b32.xlu0 %v149_v5, %s1383_s15  ;;  %157 = vrot.lane.b32.xlu1 %v148_v6, %s1383_s15 }
  0x17   : > { %161 = vrot.lane.b32.xlu0 %v150_v7, %s1383_s15  ;;  %266 = vrot.lane.b32.xlu1 %v149_v5, %s1384_s16 }
  0x1b   : > { %268 = vrot.lane.b32.xlu0 %v150_v7, %s1384_s16  ;;  %264 = vrot.lane.b32.xlu1 %v148_v6, %s1384_s16  ;;  %s1350_s16 = smul.u32 12, %s1555_s10 }
  0x1f   : > { %370 = vrot.lane.b32.xlu0 %v149_v5, %s1385_s17  ;;  %372 = vrot.lane.b32.xlu1 %v150_v7, %s1385_s17 }
  0x23   : > { %368 = vrot.lane.b32.xlu0 %v148_v6, %s1385_s17  ;;  %477 = vrot.lane.b32.xlu1 %v149_v5, %s1386_s18 }
  0x27   : > { %479 = vrot.lane.b32.xlu0 %v150_v7, %s1386_s18  ;;  %475 = vrot.lane.b32.xlu1 %v148_v6, %s1386_s18 }
  0x2b   : > { %584 = vrot.lane.b32.xlu0 %v149_v5, %s1387_s19  ;;  %586 = vrot.lane.b32.xlu1 %v150_v7, %s1387_s19 }
  0x2f   : > { %582 = vrot.lane.b32.xlu0 %v148_v6, %s1387_s19  ;;  %691 = vrot.lane.b32.xlu1 %v149_v5, %s1388_s20  ;;  %s143_s19 = scalar_lea.vmem %s1553_s2, %s1350_s16 }
  0x33   : > { %693 = vrot.lane.b32.xlu0 %v150_v7, %s1388_s20  ;;  %689 = vrot.lane.b32.xlu1 %v148_v6, %s1388_s20 }
  0x37   : > { %798 = vrot.lane.b32.xlu0 %v149_v5, %s1389_s21  ;;  %800 = vrot.lane.b32.xlu1 %v150_v7, %s1389_s21 }
  0x3b   : > { %796 = vrot.lane.b32.xlu0 %v148_v6, %s1389_s21  ;;  %905 = vrot.lane.b32.xlu1 %v149_v5, %s1390_s22 }
  0x3f   : > { %907 = vrot.lane.b32.xlu0 %v150_v7, %s1390_s22  ;;  %903 = vrot.lane.b32.xlu1 %v148_v6, %s1390_s22 }
  0x43   : > { %1012 = vrot.lane.b32.xlu0 %v149_v5, %s1391_s23  ;;  %1014 = vrot.lane.b32.xlu1 %v150_v7, %s1391_s23 }
  0x47   : > { %1010 = vrot.lane.b32.xlu0 %v148_v6, %s1391_s23 }
  0x85   : > { %v160_v8 = vpop.permute.xlu0 %159  ;;  %v158_v9 = vpop.permute.xlu1 %157 }
  0x86   : > { %v164_v12 = vsel %vm163_vm2, %v158_v9, %v160_v8 }
  0x87   : > { %v175_v19 = vand.u32 %v1426_v15, %v164_v12 }
  0x89   : > { %v162_v13 = vpop.permute.xlu0 %161  ;;  %v267_v14 = vpop.permute.xlu1 %266 }
  0x8a   : > { %v181_v16 = vand.u32 %v1426_v15, %v162_v13  ;;  %v165_v17 = vsel %vm163_vm2, %v160_v8, %v162_v13 }
  0x8b   : > { %v178_v18 = vand.u32 %v1426_v15, %v165_v17 }
  0x8c   : > { %1233 = vmatpush3.bf16.msra.mxu1 %v181_v16 }
  0x8d   : > { %183 = vmatprep.subr.bf16.mxu0 %v178_v18  ;;  %v269_v21 = vpop.permute.xlu0 %268  ;;  %v265_v22 = vpop.permute.xlu1 %264  ;;  %1238 = vmatprep.subr.bf16.mxu1 %v1380_v0 }
  0x8e   : > { %v272_v23 = vsel %vm270_vm4, %v267_v14, %v269_v21  ;;  %v283_v24 = vand.u32 %v269_v21, %v1426_v15  ;;  %v271_v25 = vsel %vm270_vm4, %v265_v22, %v267_v14  ;;  %184 = vmatpush1.bf16.msra.mxu0 %v175_v19  ;;  %v1202_v21 = vld [vmem:[%s1552_s1 + $0xc] sm:$0x3] }
  0x8f   : > { %v280_v26 = vand.u32 %v272_v23, %v1426_v15  ;;  %v277_v27 = vand.u32 %v271_v25, %v1426_v15  ;;  %1235 = vmatmul.mubr.msk.bf16.vlgmr.msra.gmra.mrb[0].mxu1 %vm166_vm5, %v1185_v20 }
  0x90   : > { %1239 = vmatpush3.bf16.msra.mxu1 %v283_v24  ;;  %1240 = vmatprep.mubr.msk.bf16.mxu1 %vm1381_vm0, %v1380_v0 }
  0x91   : > { %1186 = vmatmul.mubr.msk.bf16.vlgmr.msra.gmra.mrb[0].mxu0 %vm166_vm5, %v1185_v20  ;;  %285 = vmatprep.subr.bf16.mxu0 %v280_v26  ;;  %v371_v28 = vpop.permute.xlu0 %370  ;;  %v373_v29 = vpop.permute.xlu1 %372 }
  0x92   : > { %286 = vmatpush1.bf16.msra.mxu0 %v277_v27  ;;  %v376_v30 = vsel %vm374_vm6, %v371_v28, %v373_v29  ;;  %1244 = vmatprep.subr.bf16.mxu1 %v1380_v0  ;;  %v387_v35 = vand.u32 %v373_v29, %v1426_v15 }
  0x93   : > { %v384_v31 = vand.u32 %v376_v30, %v1426_v15  ;;  %317 = vmatprep.mubr.bf16.mxu0 %v1382_v4  ;;  %v1208_v30 = vld [vmem:[%s1552_s1 + $0x10] sm:$0x3] }
  0x95   : > { %v369_v32 = vpop.permute.xlu0 %368  ;;  %389 = vmatprep.subr.bf16.mxu0 %v384_v31  ;;  %v478_v34 = vpop.permute.xlu1 %477 }
  0x96   : > { %v375_v33 = vsel %vm374_vm6, %v369_v32, %v371_v28  ;;  %v1205_v28 = vld [vmem:[%s1552_s1 + $0xe] sm:$0x3] }
  0x97   : > { %v381_v38 = vand.u32 %v375_v33, %v1426_v15 }
  0x99   : > { %v480_v37 = vpop.permute.xlu0 %479  ;;  %v476_v41 = vpop.permute.xlu1 %475 }
  0x9a   : > { %v483_v39 = vsel %vm481_vm7, %v478_v34, %v480_v37  ;;  %v482_v43 = vsel %vm481_vm7, %v476_v41, %v478_v34  ;;  %v494_v45 = vand.u32 %v480_v37, %v1426_v15 }
  0x9b   : > { %1241 = vmatmul.mubr.msk.bf16.vlgmr.msra.gmra.mrb[0].mxu1 %vm166_vm5, %v151_v36  ;;  %v491_v40 = vand.u32 %v483_v39, %v1426_v15  ;;  %v488_v48 = vand.u32 %v482_v43, %v1426_v15 }
  0x9c   : > { %1245 = vmatpush3.bf16.msra.mxu1 %v387_v35  ;;  %1246 = vmatprep.mubr.msk.bf16.mxu1 %vm1381_vm0, %v1380_v0 }
  0x9d   : > { %1188 = vmatmul.mubr.msk.bf16.vlgmr.msra.gmra.mrb[0].mxu0 %vm166_vm5, %v151_v36  ;;  %1250 = vmatprep.subr.bf16.mxu1 %v1380_v0  ;;  %v587_v42 = vpop.permute.xlu1 %586  ;;  %v585_v44 = vpop.permute.xlu0 %584 }
  0x9e   : > { %390 = vmatpush1.bf16.msra.mxu0 %v381_v38  ;;  %421 = vmatprep.mubr.bf16.mxu0 %v1382_v4  ;;  %v590_v47 = vsel %vm588_vm8, %v585_v44, %v587_v42  ;;  %v601_v54 = vand.u32 %v587_v42, %v1426_v15 }
  0x9f   : > { %496 = vmatprep.subr.bf16.mxu0 %v491_v40  ;;  %v598_v49 = vand.u32 %v590_v47, %v1426_v15 }
  0xa1   : > { %v583_v50 = vpop.permute.xlu0 %582  ;;  %v692_v53 = vpop.permute.xlu1 %691 }
  0xa2   : > { %v589_v52 = vsel %vm588_vm8, %v583_v50, %v585_v44 }
  0xa3   : > { %v595_v57 = vand.u32 %v589_v52, %v1426_v15 }
  0xa5   : > { %v694_v51 = vpop.permute.xlu0 %693  ;;  %v690_v59 = vpop.permute.xlu1 %689 }
  0xa6   : > { %v697_v56 = vsel %vm695_vm9, %v692_v53, %v694_v51  ;;  %v696_v61 = vsel %vm695_vm9, %v690_v59, %v692_v53  ;;  %v708_v63 = vand.u32 %v694_v51, %v1426_v15 }
  0xa7   : > { %1247 = vmatmul.mubr.msk.bf16.vlgmr.msra.gmra.mrb[0].mxu1 %vm166_vm5, %v1190_v46  ;;  %v705_v58 = vand.u32 %v697_v56, %v1426_v15  ;;  %v702_v3 = vand.u32 %v696_v61, %v1426_v15 }
  0xa8   : > { %1251 = vmatpush3.bf16.msra.mxu1 %v494_v45  ;;  %1252 = vmatprep.mubr.msk.bf16.mxu1 %vm1381_vm0, %v1380_v0 }
  0xa9   : > { %1191 = vmatmul.mubr.msk.bf16.vlgmr.msra.gmra.mrb[0].mxu0 %vm166_vm5, %v1190_v46  ;;  %1256 = vmatprep.subr.bf16.mxu1 %v1380_v0  ;;  %v801_v60 = vpop.permute.xlu1 %800  ;;  %v799_v62 = vpop.permute.xlu0 %798 }
  0xaa   : > { %497 = vmatpush1.bf16.msra.mxu0 %v488_v48  ;;  %528 = vmatprep.mubr.bf16.mxu0 %v1382_v4  ;;  %v804_v2 = vsel %vm802_vm10, %v799_v62, %v801_v60  ;;  %v815_v10 = vand.u32 %v801_v60, %v1426_v15 }
  0xab   : > { %603 = vmatprep.subr.bf16.mxu0 %v598_v49  ;;  %v812_v5 = vand.u32 %v804_v2, %v1426_v15 }
  0xad   : > { %v797_v6 = vpop.permute.xlu0 %796  ;;  %v906_v9 = vpop.permute.xlu1 %905 }
  0xae   : > { %v803_v8 = vsel %vm802_vm10, %v797_v6, %v799_v62 }
  0xaf   : > { %v809_v13 = vand.u32 %v803_v8, %v1426_v15 }
  0xb1   : > { %v908_v7 = vpop.permute.xlu0 %907  ;;  %v904_v16 = vpop.permute.xlu1 %903 }
  0xb2   : > { %v911_v12 = vsel %vm909_vm11, %v906_v9, %v908_v7  ;;  %v910_v18 = vsel %vm909_vm11, %v904_v16, %v906_v9  ;;  %v922_v20 = vand.u32 %v908_v7, %v1426_v15 }
  0xb3   : > { %1253 = vmatmul.mubr.msk.bf16.vlgmr.msra.gmra.mrb[0].mxu1 %vm166_vm5, %v1193_v55  ;;  %v919_v14 = vand.u32 %v911_v12, %v1426_v15  ;;  %v916_v23 = vand.u32 %v910_v18, %v1426_v15 }
  0xb4   : > { %1257 = vmatpush3.bf16.msra.mxu1 %v601_v54  ;;  %1258 = vmatprep.mubr.msk.bf16.mxu1 %vm1381_vm0, %v1380_v0 }
  0xb5   : > { %1194 = vmatmul.mubr.msk.bf16.vlgmr.msra.gmra.mrb[0].mxu0 %vm166_vm5, %v1193_v55  ;;  %1262 = vmatprep.subr.bf16.mxu1 %v1380_v0  ;;  %v1015_v17 = vpop.permute.xlu1 %1014  ;;  %v1013_v19 = vpop.permute.xlu0 %1012 }
  0xb6   : > { %604 = vmatpush1.bf16.msra.mxu0 %v595_v57  ;;  %635 = vmatprep.mubr.bf16.mxu0 %v1382_v4  ;;  %v1018_v22 = vsel %vm1016_vm12, %v1013_v19, %v1015_v17  ;;  %v1029_v27 = vand.u32 %v1015_v17, %v1426_v15 }
  0xb7   : > { %710 = vmatprep.subr.bf16.mxu0 %v705_v58  ;;  %v1026_v24 = vand.u32 %v1018_v22, %v1426_v15 }
  0xb9   : > { %v1011_v25 = vpop.permute.xlu0 %1010 }
  0xba   : > { %v1017_v26 = vsel %vm1016_vm12, %v1011_v25, %v1013_v19 }
  0xbb   : > { %v1023_v29 = vand.u32 %v1017_v26, %v1426_v15 }
  0xbf   : > { %1259 = vmatmul.mubr.msk.bf16.vlgmr.msra.gmra.mrb[0].mxu1 %vm166_vm5, %v1196_v1 }
  0xc0   : > { %1263 = vmatpush3.bf16.msra.mxu1 %v708_v63  ;;  %1264 = vmatprep.mubr.msk.bf16.mxu1 %vm1381_vm0, %v1380_v0 }
  0xc1   : > { %1197 = vmatmul.mubr.msk.bf16.vlgmr.msra.gmra.mrb[0].mxu0 %vm166_vm5, %v1196_v1  ;;  %1268 = vmatprep.subr.bf16.mxu1 %v1380_v0 }
  0xc2   : > { %711 = vmatpush1.bf16.msra.mxu0 %v702_v3  ;;  %742 = vmatprep.mubr.bf16.mxu0 %v1382_v4 }
  0xc3   : > { %817 = vmatprep.subr.bf16.mxu0 %v812_v5 }
  0xcb   : > { %1265 = vmatmul.mubr.msk.bf16.vlgmr.msra.gmra.mrb[0].mxu1 %vm166_vm5, %v1199_v11 }
  0xcc   : > { %1269 = vmatpush3.bf16.msra.mxu1 %v815_v10  ;;  %1270 = vmatprep.mubr.msk.bf16.mxu1 %vm1381_vm0, %v1380_v0 }
  0xcd   : > { %1200 = vmatmul.mubr.msk.bf16.vlgmr.msra.gmra.mrb[0].mxu0 %vm166_vm5, %v1199_v11  ;;  %1274 = vmatprep.subr.bf16.mxu1 %v1380_v0 }
  0xce   : > { %818 = vmatpush1.bf16.msra.mxu0 %v809_v13  ;;  %849 = vmatprep.mubr.bf16.mxu0 %v1382_v4 }
  0xcf   : > { %924 = vmatprep.subr.bf16.mxu0 %v919_v14 }
  0xd7   : > { %1271 = vmatmul.mubr.msk.bf16.vlgmr.msra.gmra.mrb[0].mxu1 %vm166_vm5, %v1202_v21 }
  0xd8   : > { %1275 = vmatpush3.bf16.msra.mxu1 %v922_v20  ;;  %1276 = vmatprep.mubr.msk.bf16.mxu1 %vm1381_vm0, %v1380_v0 }
  0xd9   : > { %1203 = vmatmul.mubr.msk.bf16.vlgmr.msra.gmra.mrb[0].mxu0 %vm166_vm5, %v1202_v21  ;;  %1280 = vmatprep.subr.bf16.mxu1 %v1380_v0 }
  0xda   : > { %925 = vmatpush1.bf16.msra.mxu0 %v916_v23  ;;  %956 = vmatprep.mubr.bf16.mxu0 %v1382_v4 }
  0xdb   : > { %1031 = vmatprep.subr.bf16.mxu0 %v1026_v24 }
  0xe3   : > { %1277 = vmatmul.mubr.msk.bf16.vlgmr.msra.gmra.mrb[0].mxu1 %vm166_vm5, %v1205_v28 }
  0xe4   : > { %1281 = vmatpush3.bf16.msra.mxu1 %v1029_v27  ;;  %1282 = vmatprep.mubr.msk.bf16.mxu1 %vm1381_vm0, %v1380_v0 }
  0xe5   : > { %1206 = vmatmul.mubr.msk.bf16.vlgmr.msra.gmra.mrb[0].mxu0 %vm166_vm5, %v1205_v28 }
  0xe6   : > { %1032 = vmatpush1.bf16.msra.mxu0 %v1023_v29  ;;  %1063 = vmatprep.mubr.bf16.mxu0 %v1382_v4 }
  0xef   : > { %1283 = vmatmul.mubr.msk.bf16.vlgmr.msra.gmra.mrb[0].mxu1 %vm166_vm5, %v1208_v30 }
  0xf1   : > { %1209 = vmatmul.mubr.msk.bf16.vlgmr.msra.gmra.mrb[0].mxu0 %vm166_vm5, %v1208_v30 }
 0x1c2   : > { %v1106_v0 = vpop.f32.mrb[0].mxu1 }
 0x1c3   : > { %1121 = vst.msk [vmem:[%s143_s19 + $0x8] sm:$0x7] %vm1120_vm13, %v1106_v0  ;;  %v1284_v15 = vpop.f32.mrb[1].mxu1 }
 0x1c4   : > { %v1065_v31 = vpop.f32.mrb[0].mxu0  ;;  %v1109_v32 = vpop.f32.mrb[2].mxu1 }
 0x1c5   : > { %v1067_v4 = vpop.f32.mrb[1].mxu0  ;;  %v1285_v33 = vpop.f32.mrb[3].mxu1 }
 0x1c6   : > { %v1117_v34 = vcombine.low %v1065_v31, %v1067_v4  ;;  %v1069_v35 = vpop.f32.mrb[2].mxu0 }
 0x1c7   : > { %v1070_v36 = vpop.f32.mrb[3].mxu0 }
 0x1c8   : > { %1119 = vst [vmem:[%s143_s19] sm:$0x77] %v1117_v34 }
 0x1c9 PF: > { %s12_s9 = sadd.s32 1, %s1378_s9  }
 0x1ca   : > { %p9_p4 = scmp.ge.s32.totalorder %s12_s9, 4  }
 0x1cc   :  { %11 = sbr.rel (!%p9_p4) target bundleno = 1 (0x1), region = 66 }

// kernel: frame_transformer_forward.34
= control target key start
LH: loop header
LB: loop body
LE: loop exit
PB: predicated region body
PF: predicated region fallthrough
CT: control target
= control target key end

     0   :  { %9 = vsyncpa [#allocation3], 0  ;;  %s1392_s0 = inlined_call_operand.vmem [shape: f32[2,3,8,34], index: 0, kind: input, shape index: {}]   ;;  %s1393_s1 = inlined_call_operand.vmem [shape: f32[2,4,8,8], index: 1, kind: input, shape index: {}]   ;;  %s1394_s2 = inlined_call_operand.vmem [shape: f32[2,1,8,32], index: 2, kind: output, shape index: {0}]   ;;  %s1395_s3 = inlined_call_operand.hbm [shape: f32[2,4,8,8], index: 3, kind: output, shape index: {1}]  }
   0x1   :  { %11 = vsyncpa [#allocation3 + $0x1], 0  ;;  %s1168_s12 = smov 0   ;;  %s1170_s13 = smov 0  }
   0x2   :  { %s1172_s14 = smov 0   ;;  %s1174_s15 = smov 0  }
   0x3   :  { %s1176_s16 = smov 0   ;;  %s1178_s17 = smov 0  }
   0x4 LB: > { %s880_s18 = sadd.s32 4294967295, %s1136_s17   ;;  %s881_s19 = sadd.s32 4294967294, %s1136_s17   ;;  %s1136_s17 = sphi %s1178_s17, %s17_s17   ;;  %s1132_s16 = sphi %s1176_s16, %s1402_s16   ;;  %s1128_s15 = sphi %s1174_s15, %s1401_s15   ;;  %s1124_s14 = sphi %s1172_s14, %s1400_s14   ;;  %s1120_s13 = sphi %s1170_s13, %s1399_s13   ;;  %s1116_s12 = sphi %s1168_s12, %s1398_s12  }
   0x5   : > { %s29_s20 = sadd.s32 1, %s1132_s16  ;;  %s122_s21 = sadd.s32 1, %s1124_s14 }
   0x6   : > { %p31_p0 = scmp.ge.s32.totalorder %s29_s20, 2  ;;  %p132_p1 = scmp.ne.s32.totalorder %s1124_s14, %s1120_s13 }
   0x7   : > { %p133_p2 = scmp.eq.s32.totalorder %s880_s18, 1  ;;  %p138_p3 = scmp.ne.s32.totalorder %s1120_s13, %s1116_s12 }
   0x8   : > { %s1404_s20 = smov (%p31_p0, %s29_s20), 0  ;;  %p139_p5 = scmp.eq.s32.totalorder %s881_s19, 1 }
   0x9   : > { %p1208_p4 = por %p133_p2, %p132_p1  ;;  %s119_s23 = ssub.s32 %s1132_s16, %s1404_s20 }
   0xa   : > { %p884_p6 = scmp.ge.s32.totalorder %s1136_s17, 1  ;;  %p120_p7 = scmp.eq.s32.totalorder %s119_s23, 0 }
   0xb   : > { %p1215_p8 = por %p139_p5, %p138_p3  ;;  %p180_p9 = scmp.lt.s32.totalorder %s1136_s17, 3 }
   0xc   : > { %s1221_s25 = scalar_select %p120_p7, %s1124_s14, %s122_s21  }
   0xd   : > { %p181_p10 = pnand %p884_p6, %p180_p9 }
   0xe   : > { %p222_p11 = scmp.lt.s32.totalorder (!%p181_p10), %s1128_s15, 1  ;;  %v1138_v0 = vmov (!%p181_p10), 0.0   ;;  %vm1139_vm0 = vmmov (!%p181_p10), 0   ;;  %vm255_vm1 = vcmask (!%p181_p10), 64512   ;;  %s218_s5 = sand.u32 (!%p181_p10), 1, %s1120_s13   ;;  %vm321_vm2 = vcmask (!%p181_p10), 1043456  }
   0xf   : > { %184 = sbr.rel (%p181_p10) target bundleno = 1491 (0x5d3), region = 28  ;;  %929 = vmatprep.subr.bf16.mxu0 (!%p181_p10), %v1138_v0  ;;  %931 = vmatprep.mubr.msk.bf16.mxu0 (!%p181_p10), %vm1139_vm0, %v1138_v0  ;;  %s885_s9 = sshll.u32 (!%p181_p10), %s218_s5, 5 }
  0x10   : > { %935 = vmatprep.subr.bf16.mxu1 (!%p181_p10), %v1138_v0  ;;  %937 = vmatprep.mubr.msk.bf16.mxu1 (!%p181_p10), %vm1139_vm0, %v1138_v0  ;;  %s1256_s10 = scalar_lea.vmem (!%p181_p10), [#allocation2], %s885_s9  ;;  %s1140_s11 = smov (!%p181_p10), 120  }
  0x11   : > { %s1141_s18 = smov (!%p181_p10), 112   ;;  %s1142_s19 = smov (!%p181_p10), 104  }
  0x12   : > { %s1144_s29 = smov (!%p181_p10), 16   ;;  %s1342_s9 = scalar_lea.sflag (!%p181_p10), [#allocation3], %s218_s5 }
  0x16   : > { %s1228_s26 = scalar_select %p222_p11, %s1128_s15, 1 }
  0x18   : > { %s977_s27 = smul.u32 24, %s1228_s26  ;;  %s911_s4 = sshll.u32 %s1228_s26, 5 }
  0x19   : > { %s1251_s8 = scalar_lea.vmem %s1393_s1, %s911_s4  ;;  %s889_s21 = sshll.u32 %s1228_s26, 3 }
  0x1a   : > { %s1237_s30 = scalar_lea.vmem %s1392_s0, %s977_s27  ;;  %v303_v7 = vld [vmem:[%s1251_s8] sm:$0xff]  ;;  %s1293_s28 = scalar_lea.vmem %s1394_s2, %s889_s21  ;;  %v895_v40 = vld [vmem:[%s1251_s8 + $0x8] sm:$0xff]  ;;  %v899_v48 = vld [vmem:[%s1251_s8 + $0x10] sm:$0xff] }
  0x1b   : > { %v890_v1 = vld [vmem:[%s1237_s30 + $0x8] sm:$0xff]  ;;  %v247_v4 = vld [vmem:[%s1237_s30] sm:$0xff]  ;;  %v891_v19 = vld [vmem:[%s1237_s30 + $0x10] sm:$0xff]  ;;  %s1143_s26 = smov 8   ;;  %s760_s30 = sshll.u32 %s1256_s10, 4  ;;  %s1338_s30 = int_to_ptr.vmem [resolvable:$true] %s760_s30 }
  0x1c   : > { %v251_v2 = vpack.c.bf16 %v890_v1, %v890_v1  ;;  %v248_v5 = vpack.c.bf16 %v247_v4, %v247_v4  ;;  %v1268_v20 = vpack.c.bf16 %v891_v19, %v891_v19  ;;  %v903_v56 = vld [vmem:[%s1251_s8 + $0x18] sm:$0xff]  ;;  %s912_s4 = sshll.u32 %s1128_s15, 9 }
  0x1d   : > { %s1336_s8 = scalar_lea.hbm %s1395_s3, %s912_s4 }
  0x1e   : > { %v260_v3 = vsel %vm255_vm1, %v251_v2, 0  ;;  %370 = vrot.lane.b32.xlu1 %v251_v2, %s1140_s11  ;;  %v323_v21 = vsel %vm321_vm2, %v1268_v20, 0 }
  0x1f   : > { %930 = vmatpush3.bf16.xpose.msra.mxu0 %v260_v3  ;;  %936 = vmatpush3.bf16.msra.mxu1 %v323_v21 }
  0x20   : > { %947 = vmatprep.subr.bf16.mxu0 %v1138_v0  ;;  %941 = vmatprep.subr.bf16.mxu1 %v1138_v0 }
  0x22   : > { %367 = vrot.lane.b32.xlu1 %v248_v5, %s1140_s11 }
  0x26   : > { %932 = vmatmul.mubr.msk.bf16.vlgmr.msra.gmra.mrb[0].mxu0 %vm255_vm1, %v248_v5  ;;  %491 = vrot.lane.b32.xlu1 %v248_v5, %s1141_s18 }
  0x27   : > { %949 = vmatprep.mubr.msk.bf16.mxu0 %vm1139_vm0, %v1138_v0 }
  0x2a   : > { %615 = vrot.lane.b32.xlu1 %v251_v2, %s1142_s19 }
  0x2e   : > { %613 = vrot.lane.b32.xlu1 %v248_v5, %s1142_s19 }
  0x90   : > { %v371_v24 = vpop.permute.xlu1 %370 }
  0x91   : > { %v376_v26 = vsel %vm255_vm1, %v371_v24, 0 }
  0x94   : > { %v368_v28 = vpop.permute.xlu1 %367 }
  0x98   : > { %v492_v30 = vpop.permute.xlu1 %491 }
  0x9c   : > { %v616_v32 = vpop.permute.xlu1 %615 }
  0x9d   : > { %v621_v33 = vsel %vm255_vm1, %v616_v32, 0 }
  0xa0   : > { %v614_v34 = vpop.permute.xlu1 %613 }
  0xf9   : > { %v296_v6 = vpop.f32.mrb[0].mxu0 }
  0xfa   : > { %v302_v8 = vmul.f32 0.35355338, %v296_v6  ;;  %v933_v9 = vpop.f32.mrb[1].mxu0 }
  0xfb   : > { %v299_v10 = vpop.f32.mrb[2].mxu0 }
  0xfc   : > { %v304_v11 = vadd.f32 %v303_v7, %v302_v8  ;;  %v934_v12 = vpop.f32.mrb[3].mxu0 }
  0xfe   : > { %305 = vst.msk [vmem:[%s1256_s10] sm:$0xff] %vm255_vm1, %v304_v11  ;;  %v306_v13 = vsel %vm255_vm1, %v304_v11, -inf }
  0xff   : > { %307 = vmax.xlane.f32.xlu0 %v306_v13 }
 0x18c   : > { %v308_v14 = vpop.xlane.xlu0 %307 }
 0x18d   : > { %v309_v15 = vsub.f32 %v304_v11, %v308_v14 }
 0x18f   : > { %v310_v16 = vmul.f32 1.442695, %v309_v15 }
 0x191   : > { %1042 = vpow2.f32 %v310_v16 }
 0x19b   : > { %v1043_v17 = vpop.eup %1042 }
 0x19c   : > { %v312_v18 = vsel %vm255_vm1, %v1043_v17, 0.0 }
 0x19d   : > { %313 = vadd.xlane.f32.xlu0 %v312_v18 }
 0x1b3   : > { %493 = vrot.lane.b32.xlu0 %v251_v2, %s1141_s18 }
 0x22a   : > { %v314_v22 = vpop.xlane.xlu0 %313 }
 0x22b   : > { %1044 = vrcp.f32 %v314_v22 }
 0x22e   : > { %v494_v29 = vpop.permute.xlu0 %493 }
 0x22f   : > { %v499_v31 = vsel %vm255_vm1, %v494_v29, 0 }
 0x235   : > { %v1045_v23 = vpop.eup %1044 }
 0x236   : > { %v316_v25 = vmul.f32 %v1045_v23, %v1043_v17 }
 0x238   : > { %v317_v27 = vpack.c.bf16 %v316_v25, %v316_v25 }
 0x23a   : > { %938 = vmatmul.mubr.msk.bf16.vlgmr.msra.gmra.mrb[0].mxu1 %vm255_vm1, %v317_v27 }
 0x23b   : > { %942 = vmatpush3.bf16.xpose.msra.mxu1 %v376_v26  ;;  %943 = vmatprep.mubr.msk.bf16.mxu1 %vm1139_vm0, %v1138_v0 }
 0x23c   : > { %953 = vmatprep.subr.bf16.mxu1 %v1138_v0 }
 0x242   : > { %944 = vmatmul.mubr.msk.bf16.vlgmr.msra.gmra.mrb[4].mxu1 %vm255_vm1, %v368_v28 }
 0x243   : > { %954 = vmatpush3.bf16.xpose.msra.mxu1 %v499_v31  ;;  %955 = vmatprep.mubr.msk.bf16.mxu1 %vm1139_vm0, %v1138_v0 }
 0x244   : > { %965 = vmatprep.subr.bf16.mxu1 %v1138_v0 }
 0x24a   : > { %956 = vmatmul.mubr.msk.bf16.vlgmr.msra.gmra.mrb[8].mxu1 %vm255_vm1, %v492_v30 }
 0x24b   : > { %966 = vmatpush3.bf16.xpose.msra.mxu1 %v621_v33  ;;  %967 = vmatprep.mubr.msk.bf16.mxu1 %vm1139_vm0, %v1138_v0 }
 0x252   : > { %968 = vmatmul.mubr.msk.bf16.vlgmr.msra.gmra.mrb[12].mxu1 %vm255_vm1, %v614_v34 }
 0x30d   : > { %v359_v35 = vpop.f32.mrb[0].mxu1 }
 0x30e   : > { %365 = vst.msk [vmem:[%s1293_s28] sm:$0xff] %vm255_vm1, %v359_v35  ;;  %v939_v36 = vpop.f32.mrb[1].mxu1 }
 0x30f   : > { %v362_v37 = vpop.f32.mrb[2].mxu1 }
 0x310   : > { %v940_v38 = vpop.f32.mrb[3].mxu1 }
 0x315   : > { %v412_v39 = vpop.f32.mrb[4].mxu1 }
 0x316   : > { %v418_v41 = vmul.f32 0.35355338, %v412_v39  ;;  %v945_v42 = vpop.f32.mrb[5].mxu1 }
 0x317   : > { %v415_v43 = vpop.f32.mrb[6].mxu1 }
 0x318   : > { %v421_v44 = vadd.f32 %v895_v40, %v418_v41  ;;  %v946_v45 = vpop.f32.mrb[7].mxu1 }
 0x31a   : > { %896 = vst.msk [vmem:[%s1256_s10 + $0x8] sm:$0xff] %vm255_vm1, %v421_v44  ;;  %v424_v46 = vsel %vm255_vm1, %v421_v44, -inf }
 0x31b   : > { %425 = vmax.xlane.f32.xlu1 %v424_v46 }
 0x31d   : > { %v535_v47 = vpop.f32.mrb[8].mxu1 }
 0x31e   : > { %v541_v49 = vmul.f32 0.35355338, %v535_v47  ;;  %v957_v50 = vpop.f32.mrb[9].mxu1 }
 0x31f   : > { %v538_v51 = vpop.f32.mrb[10].mxu1 }
 0x320   : > { %v544_v52 = vadd.f32 %v899_v48, %v541_v49  ;;  %v958_v53 = vpop.f32.mrb[11].mxu1 }
 0x322   : > { %900 = vst.msk [vmem:[%s1256_s10 + $0x10] sm:$0xff] %vm255_vm1, %v544_v52  ;;  %v547_v54 = vsel %vm255_vm1, %v544_v52, -inf }
 0x323   : > { %548 = vmax.xlane.f32.xlu0 %v547_v54 }
 0x325   : > { %v657_v55 = vpop.f32.mrb[12].mxu1 }
 0x326   : > { %v663_v57 = vmul.f32 0.35355338, %v657_v55  ;;  %v969_v58 = vpop.f32.mrb[13].mxu1 }
 0x327   : > { %v660_v59 = vpop.f32.mrb[14].mxu1 }
 0x328   : > { %v666_v60 = vadd.f32 %v903_v56, %v663_v57  ;;  %v970_v61 = vpop.f32.mrb[15].mxu1 }
 0x32a   : > { %904 = vst.msk [vmem:[%s1256_s10 + $0x18] sm:$0xff] %vm255_vm1, %v666_v60  ;;  %v669_v62 = vsel %vm255_vm1, %v666_v60, -inf  ;;  %s1145_s10 = smov [#allocation2]  }
 0x32b   : > { %670 = vmax.xlane.f32.xlu1 %v669_v62  ;;  %s1062_s15 = sshll.u32 %s1145_s10, 4  ;;  %s1063_s15 = int_to_ptr.vmem [resolvable:$false] %s1062_s15 }
 0x32c   : > { %p1065_p1 = scmp.lt.s32.totalorder %s1338_s30, %s1063_s15 }
 0x3a8   : > { %v426_v63 = vpop.xlane.xlu1 %425 }
 0x3a9   : > { %v427_v1 = vsub.f32 %v421_v44, %v426_v63 }
 0x3ab   : > { %v428_v2 = vmul.f32 1.442695, %v427_v1 }
 0x3ad   : > { %1046 = vpow2.f32 %v428_v2 }
 0x3b0   : > { %v549_v3 = vpop.xlane.xlu0 %548 }
 0x3b1   : > { %v550_v4 = vsub.f32 %v544_v52, %v549_v3 }
 0x3b3   : > { %v551_v5 = vmul.f32 1.442695, %v550_v4 }
 0x3b5   : > { %1048 = vpow2.f32 %v551_v5 }
 0x3b7   : > { %v1047_v6 = vpop.eup %1046 }
 0x3b8   : > { %v430_v7 = vsel %vm255_vm1, %v1047_v6, 0.0  ;;  %v671_v10 = vpop.xlane.xlu1 %670 }
 0x3b9   : > { %431 = vadd.xlane.f32.xlu1 %v430_v7  ;;  %v672_v11 = vsub.f32 %v666_v60, %v671_v10 }
 0x3bb   : > { %v673_v12 = vmul.f32 1.442695, %v672_v11 }
 0x3bd   : > { %1050 = vpow2.f32 %v673_v12 }
 0x3bf   : > { %v1049_v8 = vpop.eup %1048 }
 0x3c0   : > { %v553_v9 = vsel %vm255_vm1, %v1049_v8, 0.0 }
 0x3c1   : > { %554 = vadd.xlane.f32.xlu0 %v553_v9 }
 0x3c7   : > { %v1051_v13 = vpop.eup %1050 }
 0x3c8   : > { %v675_v14 = vsel %vm255_vm1, %v1051_v13, 0.0 }
 0x3ca   : > { %559 = vrot.lane.b32.xlu1 %v1268_v20, %s1141_s18  ;;  %s1064_s18 = scalar_lea.vmem %s1063_s15, 1024 }
 0x3d7   : > { %437 = vrot.lane.b32.xlu0 %v1268_v20, %s1140_s11  ;;  %s1058_s11 = scalar_lea.vmem %s1338_s30, 512 }
 0x3d8   : > { %p1059_p12 = scmp.ne.s32.totalorder %s1338_s30, %s1058_s11  ;;  %p1066_p2 = scmp.lt.s32.totalorder %s1064_s18, %s1058_s11 }
 0x3da   : > { %p1060_p13 = pnand %p1059_p12, %p1208_p4  ;;  %p1067_p3 = por %p1066_p2, %p1065_p1 }
 0x3dc   : > { %p1061_p0 = pneg %p1060_p13 }
 0x3de   : > { %p1068_p5 = pnand %p1067_p3, %p1061_p0 }
 0x3ee   : > { %676 = vadd.xlane.f32.xlu1 %v675_v14 }
 0x3ff   : > { %681 = vrot.lane.b32.xlu1 %v1268_v20, %s1142_s19 }
 0x446   : > { %v432_v15 = vpop.xlane.xlu1 %431 }
 0x447   : > { %1052 = vrcp.f32 %v432_v15 }
 0x44a   : > { %v560_v22 = vpop.permute.xlu1 %559 }
 0x44b   : > { %v565_v24 = vsel %vm321_vm2, %v560_v22, 0 }
 0x44e   : > { %v555_v16 = vpop.xlane.xlu0 %554 }
 0x44f   : > { %1054 = vrcp.f32 %v555_v16 }
 0x451   : > { %v1053_v17 = vpop.eup %1052 }
 0x452   : > { %v434_v18 = vmul.f32 %v1053_v17, %v1047_v6  ;;  %v438_v19 = vpop.permute.xlu0 %437 }
 0x453   : > { %v443_v21 = vsel %vm321_vm2, %v438_v19, 0 }
 0x454   : > { %948 = vmatpush3.bf16.msra.mxu0 %v443_v21  ;;  %v435_v23 = vpack.c.bf16 %v434_v18, %v434_v18 }
 0x455   : > { %959 = vmatprep.subr.bf16.mxu0 %v1138_v0 }
 0x457   : > { %950 = vmatmul.mubr.msk.bf16.vlgmr.msra.gmra.mrb[4].mxu0 %vm255_vm1, %v435_v23 }
 0x458   : > { %960 = vmatpush3.bf16.msra.mxu0 %v565_v24  ;;  %961 = vmatprep.mubr.msk.bf16.mxu0 %vm1139_vm0, %v1138_v0 }
 0x459   : > { %v1055_v20 = vpop.eup %1054  ;;  %971 = vmatprep.subr.bf16.mxu0 %v1138_v0 }
 0x45a   : > { %v557_v25 = vmul.f32 %v1055_v20, %v1049_v8 }
 0x45c   : > { %v558_v26 = vpack.c.bf16 %v557_v25, %v557_v25 }
 0x45f   : > { %962 = vmatmul.mubr.msk.bf16.vlgmr.msra.gmra.mrb[8].mxu0 %vm255_vm1, %v558_v26 }
 0x460   : > { %973 = vmatprep.mubr.msk.bf16.mxu0 %vm1139_vm0, %v1138_v0 }
 0x47b   : > { %v677_v27 = vpop.xlane.xlu1 %676 }
 0x47c   : > { %1056 = vrcp.f32 %v677_v27 }
 0x47f   : > { %v682_v28 = vpop.permute.xlu1 %681 }
 0x480   : > { %v687_v29 = vsel %vm321_vm2, %v682_v28, 0 }
 0x481   : > { %972 = vmatpush3.bf16.msra.mxu0 %v687_v29 }
 0x486   : > { %v1057_v30 = vpop.eup %1056 }
 0x487   : > { %v679_v31 = vmul.f32 %v1057_v30, %v1051_v13 }
 0x489   : > { %v680_v32 = vpack.c.bf16 %v679_v31, %v679_v31 }
 0x48b   : > { %974 = vmatmul.mubr.msk.bf16.vlgmr.msra.gmra.mrb[12].mxu0 %vm255_vm1, %v680_v32 }
 0x52a   : > { %v479_v33 = vpop.f32.mrb[4].mxu0 }
 0x52b   : > { %486 = vrot.lane.b32.xlu0 %v479_v33, %s1143_s26  ;;  %v951_v34 = vpop.f32.mrb[5].mxu0 }
 0x52c   : > { %v482_v0 = vpop.f32.mrb[6].mxu0 }
 0x52d   : > { %v952_v35 = vpop.f32.mrb[7].mxu0 }
 0x532   : > { %v601_v36 = vpop.f32.mrb[8].mxu0 }
 0x533   : > { %608 = vrot.lane.b32.xlu1 %v601_v36, %s1144_s29  ;;  %v963_v37 = vpop.f32.mrb[9].mxu0 }
 0x534   : > { %v604_v38 = vpop.f32.mrb[10].mxu0 }
 0x535   : > { %v964_v39 = vpop.f32.mrb[11].mxu0 }
 0x536   : > { %1071 = shalt.err (!%p1068_p5)
}
 0x537   : > { %s1072_s5 = scalar_lea.hbm %s1336_s8, 512  ;;  %s1076_s23 = scalar_lea.hbm %s1395_s3, 1024 }
 0x538   : > { %p1073_p6 = scmp.ne.s32.totalorder %s1336_s8, %s1072_s5  ;;  %p1077_p10 = scmp.lt.u32.totalorder %s1336_s8, %s1395_s3 }
 0x539   : > { %p1078_p11 = scmp.lt.u32.totalorder %s1076_s23, %s1072_s5  ;;  %p1080_p13 = scmp.lt.u32.totalorder %s1072_s5, %s1336_s8 }
 0x53a   : > { %p1074_p7 = pnand %p1073_p6, %p1208_p4 }
 0x53b   : > { %p1079_p12 = por %p1078_p11, %p1077_p10 }
 0x53c   : > { %p1075_p9 = pneg %p1074_p7 }
 0x53d   : > { %p1081_p0 = por %p1080_p13, %p1079_p12 }
 0x53f   : > { %p1082_p1 = pnand %p1081_p0, %p1075_p9 }
 0x541   : > { %1085 = shalt.err (!%p1082_p1)
}
 0x542   : > { %s1146_s4 = smov 128   ;;  %s1147_s6 = smov 24   ;;  %vm489_vm3 = vcmask 130112   ;;  %vm611_vm4 = vcmask 195712   ;;  %vm733_vm5 = vcmask 261312  }
 0x543   : > { %978 = dma.vmem_to_hbm [thread:$0]  (%p1208_p4), %s1338_s30, 512, %s1336_s8, %s1342_s9, %s1146_s4, %s1146_s4, %s1143_s26  }
 0x55e   : > { %v723_v40 = vpop.f32.mrb[12].mxu0 }
 0x55f   : > { %730 = vrot.lane.b32.xlu0 %v723_v40, %s1147_s6  ;;  %v975_v41 = vpop.f32.mrb[13].mxu0 }
 0x560   : > { %v726_v42 = vpop.f32.mrb[14].mxu0 }
 0x561   : > { %v976_v43 = vpop.f32.mrb[15].mxu0 }
 0x59d   : > { %v487_v44 = vpop.permute.xlu0 %486 }
 0x59e   : > { %490 = vst.msk [vmem:[%s1293_s28] sm:$0xff] %vm489_vm3, %v487_v44 }
 0x5a5   : > { %v609_v45 = vpop.permute.xlu1 %608 }
 0x5a6   : > { %612 = vst.msk [vmem:[%s1293_s28] sm:$0xff] %vm611_vm4, %v609_v45 }
 0x5d1   : > { %v731_v46 = vpop.permute.xlu0 %730 }
 0x5d2   : > { %734 = vst.msk [vmem:[%s1293_s28] sm:$0xff] %vm733_vm5, %v731_v46 }
 0x5d3 PF: > { %p984_p4 = scmp.ge.s32.totalorder %s1136_s17, 2  ;;  %s785_s22 = sand.u32 1, %s1116_s12  }
 0x5d4   : > { %s786_s26 = scalar_lea.sflag [#allocation3], %s785_s22 }
 0x5d5   : > { %p981_p2 = pnand %p984_p4, %p1215_p8 }
 0x5d7   : > { %1111 = dma.done.wait (!%p981_p2), %s786_s26, 512  }
 0x5d8   : > { %1113 = vsyncadd (!%p981_p2), %s786_s26, 4294966784  ;;  %s17_s17 = sadd.s32 1, %s1136_s17   ;;  %s1398_s12 = smov %s1120_s13 }
 0x5d9   : > { %p14_p3 = scmp.ge.s32.totalorder %s17_s17, 4   ;;  %s1399_s13 = smov %s1124_s14 }
 0x5da   : > { %s1400_s14 = smov %s1221_s25  ;;  %s1401_s15 = smov %s1132_s16 }
 0x5db   : > { %s1402_s16 = smov %s1404_s20  ;;  %16 = sbr.rel (!%p14_p3) target bundleno = 4 (0x4), region = 86 }
 0x5e2   :  { %791 = vsyncpa [#allocation3], 1 }
 0x5e3   :  { %793 = vsyncpa [#allocation3 + $0x1], 1 }

// kernel: frame_transformer_forward.35
= control target key start
LH: loop header
LB: loop body
LE: loop exit
PB: predicated region body
PF: predicated region fallthrough
CT: control target
= control target key end

     0   :  { %s1541_s9 = smov 0   ;;  %s1670_s0 = inlined_call_operand.vmem [shape: f32[2,8,408], index: 0, kind: input, shape index: {}]   ;;  %s1671_s1 = inlined_call_operand.vmem [shape: bf16[9,12,8], index: 1, kind: input, shape index: {}]   ;;  %s1672_s2 = inlined_call_operand.vmem [shape: f32[2,12,272], index: 2, kind: output, shape index: {}]  }
   0x1 LB: > { %s1277_s10 = sadd.s32 4294967295, %s1512_s9   ;;  %p1281_p0 = scmp.ge.s32.totalorder %s1512_s9, 1  ;;  %s1512_s9 = sphi %s1541_s9, %s12_s9  }
   0x2   : > { %p112_p1 = scmp.lt.s32.totalorder %s1512_s9, 3 }
   0x4   : > { %p113_p2 = pnand %p1281_p0, %p112_p1 }
   0x5   : > { %p134_p3 = scmp.lt.s32.totalorder (!%p113_p2), %s1277_s10, 1  ;;  %v1514_v0 = vmov (!%p113_p2), 0.0   ;;  %vm1515_vm0 = vmmov (!%p113_p2), 0   ;;  %v1516_v1 = vmov (!%p113_p2), 0   ;;  %s1517_s15 = smov (!%p113_p2), 93   ;;  %vm177_vm1 = vcmask (!%p113_p2), 1043456  }
   0x6   : > { %116 = sbr.rel (%p113_p2) target bundleno = 455 (0x1c7), region = 28  ;;  %1358 = vmatprep.subr.bf16.mxu1 (!%p113_p2), %v1514_v0  ;;  %1360 = vmatprep.mubr.msk.bf16.mxu1 (!%p113_p2), %vm1515_vm0, %v1514_v0  ;;  %s1518_s16 = smov (!%p113_p2), 94   ;;  %v1497_v11 = vld [vmem:[%s1671_s1 + $0x8] sm:$0x3f] (!%p113_p2)   ;;  %vm173_vm2 = vcmask (!%p113_p2), 64512   ;;  %vm170_vm3 = vcmask (!%p113_p2), 760832  }
   0x7   : > { %219 = vmatprep.mubr.bf16.mxu0 (!%p113_p2), %v1516_v1  ;;  %s1519_s17 = smov (!%p113_p2), 92   ;;  %s1520_s18 = smov (!%p113_p2), 60   ;;  %vm282_vm4 = vcmask (!%p113_p2), 769024   ;;  %v1498_v25 = vld [vmem:[%s1671_s1] sm:$0x3f] (!%p113_p2)   ;;  %vm395_vm5 = vcmask (!%p113_p2), 752640  }
   0x8   : > { %s1521_s19 = smov (!%p113_p2), 59   ;;  %s1522_s20 = smov (!%p113_p2), 58   ;;  %vm514_vm6 = vcmask (!%p113_p2), 490496   ;;  %v1499_v36 = vld [vmem:[%s1671_s1 + $0x10] sm:$0x3f] (!%p113_p2)   ;;  %vm633_vm7 = vcmask (!%p113_p2), 482304  }
   0x9   : > { %s1523_s21 = smov (!%p113_p2), 26   ;;  %s1524_s22 = smov (!%p113_p2), 25   ;;  %v1500_v44 = vld [vmem:[%s1671_s1 + $0x18] sm:$0x3f] (!%p113_p2)   ;;  %vm752_vm8 = vcmask (!%p113_p2), 474112   ;;  %vm871_vm9 = vcmask (!%p113_p2), 211968  }
   0xa   : > { %s1525_s23 = smov (!%p113_p2), 24   ;;  %v1501_v52 = vld [vmem:[%s1671_s1 + $0x20] sm:$0x3f] (!%p113_p2)   ;;  %v1502_v60 = vld [vmem:[%s1671_s1 + $0x28] sm:$0x3f] (!%p113_p2)   ;;  %vm990_vm10 = vcmask (!%p113_p2), 203776  }
   0xb   : > { %vm1109_vm11 = vcmask (!%p113_p2), 195584   ;;  %vm1216_vm12 = vcmask (!%p113_p2), 130048   ;;  %vm1220_vm13 = vcmask (!%p113_p2), 125952  }
   0xd   : > { %s1674_s10 = smov (!%p134_p3, %s1277_s10), 1 }
   0xe   : > { %s1339_s11 = sshll.u32 %s1674_s10, 5 }
   0xf   : > { %s138_s14 = scalar_lea.vmem %s1670_s0, %s1339_s11 }
  0x10   : > { %v147_v2 = vld [vmem:[%s138_s14 + $0x10] sm:$0xff]  ;;  %v145_v3 = vld [vmem:[%s138_s14] sm:$0xff]  ;;  %v146_v4 = vld [vmem:[%s138_s14 + $0x8] sm:$0xff] }
  0x11   : > { %v150_v5 = vpack.c.bf16 %v147_v2, %v147_v2  ;;  %v148_v6 = vpack.c.bf16 %v145_v3, %v145_v3  ;;  %v149_v7 = vpack.c.bf16 %v146_v4, %v146_v4 }
  0x13   : > { %168 = vrot.lane.b32.xlu1 %v150_v5, %s1517_s15  ;;  %164 = vrot.lane.b32.xlu0 %v148_v6, %s1517_s15 }
  0x17   : > { %276 = vrot.lane.b32.xlu1 %v148_v6, %s1518_s16  ;;  %166 = vrot.lane.b32.xlu0 %v149_v7, %s1517_s15 }
  0x1b   : > { %280 = vrot.lane.b32.xlu1 %v150_v5, %s1518_s16  ;;  %278 = vrot.lane.b32.xlu0 %v149_v7, %s1518_s16  ;;  %s1476_s16 = smul.u32 48, %s1674_s10 }
  0x1f   : > { %389 = vrot.lane.b32.xlu0 %v148_v6, %s1519_s17  ;;  %391 = vrot.lane.b32.xlu1 %v149_v7, %s1519_s17 }
  0x23   : > { %393 = vrot.lane.b32.xlu0 %v150_v5, %s1519_s17  ;;  %508 = vrot.lane.b32.xlu1 %v148_v6, %s1520_s18 }
  0x27   : > { %510 = vrot.lane.b32.xlu0 %v149_v7, %s1520_s18  ;;  %512 = vrot.lane.b32.xlu1 %v150_v5, %s1520_s18 }
  0x2b   : > { %627 = vrot.lane.b32.xlu0 %v148_v6, %s1521_s19  ;;  %629 = vrot.lane.b32.xlu1 %v149_v7, %s1521_s19 }
  0x2f   : > { %631 = vrot.lane.b32.xlu0 %v150_v5, %s1521_s19  ;;  %746 = vrot.lane.b32.xlu1 %v148_v6, %s1522_s20  ;;  %s143_s19 = scalar_lea.vmem %s1672_s2, %s1476_s16 }
  0x33   : > { %748 = vrot.lane.b32.xlu0 %v149_v7, %s1522_s20  ;;  %750 = vrot.lane.b32.xlu1 %v150_v5, %s1522_s20 }
  0x37   : > { %865 = vrot.lane.b32.xlu0 %v148_v6, %s1523_s21  ;;  %867 = vrot.lane.b32.xlu1 %v149_v7, %s1523_s21 }
  0x3b   : > { %869 = vrot.lane.b32.xlu0 %v150_v5, %s1523_s21  ;;  %984 = vrot.lane.b32.xlu1 %v148_v6, %s1524_s22 }
  0x3f   : > { %986 = vrot.lane.b32.xlu0 %v149_v7, %s1524_s22  ;;  %988 = vrot.lane.b32.xlu1 %v150_v5, %s1524_s22 }
  0x43   : > { %1103 = vrot.lane.b32.xlu0 %v148_v6, %s1525_s23  ;;  %1105 = vrot.lane.b32.xlu1 %v149_v7, %s1525_s23  ;;  %v1503_v6 = vld [vmem:[%s1671_s1 + $0x30] sm:$0x3f]  }
  0x47   : > { %1107 = vrot.lane.b32.xlu0 %v150_v5, %s1525_s23 }
  0x85   : > { %v169_v8 = vpop.permute.xlu1 %168  ;;  %v165_v9 = vpop.permute.xlu0 %164 }
  0x86   : > { %v185_v10 = vsel %vm177_vm1, %v169_v8, 0 }
  0x87   : > { %1359 = vmatpush3.bf16.msra.mxu1 %v185_v10 }
  0x88   : > { %1364 = vmatprep.subr.bf16.mxu1 %v1514_v0 }
  0x89   : > { %v277_v12 = vpop.permute.xlu1 %276  ;;  %v167_v13 = vpop.permute.xlu0 %166 }
  0x8a   : > { %1361 = vmatmul.mubr.msk.bf16.vlgmr.msra.gmra.mrb[0].mxu1 %vm173_vm2, %v1497_v11  ;;  %v172_v14 = vsel %vm170_vm3, %v167_v13, %v169_v8  ;;  %v171_v15 = vsel %vm170_vm3, %v165_v9, %v167_v13  ;;  %v1504_v13 = vld [vmem:[%s1671_s1 + $0x38] sm:$0x3f]  }
  0x8b   : > { %1288 = vmatprep.subr.msk.bf16.mxu0 %vm177_vm1, %v172_v14  ;;  %v179_v16 = vsel %vm177_vm1, %v171_v15, 0  ;;  %1366 = vmatprep.mubr.msk.bf16.mxu1 %vm1515_vm0, %v1514_v0 }
  0x8c   : > { %188 = vmatpush1.bf16.msra.mxu0 %v179_v16 }
  0x8d   : > { %v281_v17 = vpop.permute.xlu1 %280  ;;  %v279_v18 = vpop.permute.xlu0 %278 }
  0x8e   : > { %v295_v19 = vsel %vm177_vm1, %v281_v17, 0  ;;  %v283_v20 = vsel %vm282_vm4, %v277_v12, %v279_v18  ;;  %v284_v21 = vsel %vm282_vm4, %v279_v18, %v281_v17  ;;  %v1505_v17 = vld [vmem:[%s1671_s1 + $0x40] sm:$0x3f]  }
  0x8f   : > { %v289_v22 = vsel %vm177_vm1, %v283_v20, 0  ;;  %1289 = vmatmul.mubr.msk.bf16.vlgmr.msra.gmra.mrb[0].mxu0 %vm173_vm2, %v1497_v11  ;;  %1292 = vmatprep.subr.msk.bf16.mxu0 %vm177_vm1, %v284_v21 }
  0x90   : > { %1365 = vmatpush3.bf16.msra.mxu1 %v295_v19  ;;  %298 = vmatpush1.bf16.msra.mxu0 %v289_v22 }
  0x91   : > { %v390_v23 = vpop.permute.xlu0 %389  ;;  %v392_v24 = vpop.permute.xlu1 %391  ;;  %329 = vmatprep.mubr.bf16.mxu0 %v1516_v1  ;;  %1370 = vmatprep.subr.bf16.mxu1 %v1514_v0 }
  0x92   : > { %v396_v28 = vsel %vm395_vm5, %v390_v23, %v392_v24 }
  0x93   : > { %v402_v31 = vsel %vm177_vm1, %v396_v28, 0 }
  0x95   : > { %v394_v26 = vpop.permute.xlu0 %393  ;;  %v509_v27 = vpop.permute.xlu1 %508 }
  0x96   : > { %1367 = vmatmul.mubr.msk.bf16.vlgmr.msra.gmra.mrb[0].mxu1 %vm173_vm2, %v1498_v25  ;;  %v397_v29 = vsel %vm395_vm5, %v392_v24, %v394_v26  ;;  %v408_v30 = vsel %vm177_vm1, %v394_v26, 0 }
  0x97   : > { %1298 = vmatprep.subr.msk.bf16.mxu0 %vm177_vm1, %v397_v29  ;;  %1371 = vmatpush3.bf16.msra.mxu1 %v408_v30 }
  0x98   : > { %1372 = vmatprep.mubr.msk.bf16.mxu1 %vm1515_vm0, %v1514_v0  ;;  %1376 = vmatprep.subr.bf16.mxu1 %v1514_v0 }
  0x99   : > { %v511_v32 = vpop.permute.xlu0 %510  ;;  %v513_v33 = vpop.permute.xlu1 %512 }
  0x9a   : > { %v516_v34 = vsel %vm514_vm6, %v511_v32, %v513_v33  ;;  %v527_v37 = vsel %vm177_vm1, %v513_v33, 0  ;;  %v515_v38 = vsel %vm514_vm6, %v509_v27, %v511_v32 }
  0x9b   : > { %1293 = vmatmul.mubr.msk.bf16.vlgmr.msra.gmra.mrb[0].mxu0 %vm173_vm2, %v1498_v25  ;;  %v521_v41 = vsel %vm177_vm1, %v515_v38, 0 }
  0x9c   : > { %411 = vmatpush1.bf16.msra.mxu0 %v402_v31  ;;  %442 = vmatprep.mubr.bf16.mxu0 %v1516_v1 }
  0x9d   : > { %1304 = vmatprep.subr.msk.bf16.mxu0 %vm177_vm1, %v516_v34  ;;  %v628_v35 = vpop.permute.xlu0 %627  ;;  %v630_v39 = vpop.permute.xlu1 %629 }
  0x9e   : > { %v634_v46 = vsel %vm633_vm7, %v628_v35, %v630_v39 }
  0x9f   : > { %v640_v49 = vsel %vm177_vm1, %v634_v46, 0 }
  0xa1   : > { %v632_v40 = vpop.permute.xlu0 %631  ;;  %v747_v43 = vpop.permute.xlu1 %746 }
  0xa2   : > { %1373 = vmatmul.mubr.msk.bf16.vlgmr.msra.gmra.mrb[0].mxu1 %vm173_vm2, %v1499_v36  ;;  %v635_v42 = vsel %vm633_vm7, %v630_v39, %v632_v40  ;;  %v646_v45 = vsel %vm177_vm1, %v632_v40, 0 }
  0xa3   : > { %1377 = vmatpush3.bf16.msra.mxu1 %v527_v37  ;;  %1378 = vmatprep.mubr.msk.bf16.mxu1 %vm1515_vm0, %v1514_v0 }
  0xa4   : > { %1382 = vmatprep.subr.bf16.mxu1 %v1514_v0 }
  0xa5   : > { %v749_v47 = vpop.permute.xlu0 %748  ;;  %v751_v48 = vpop.permute.xlu1 %750 }
  0xa6   : > { %v754_v50 = vsel %vm752_vm8, %v749_v47, %v751_v48  ;;  %v765_v53 = vsel %vm177_vm1, %v751_v48, 0  ;;  %v753_v54 = vsel %vm752_vm8, %v747_v43, %v749_v47 }
  0xa7   : > { %1299 = vmatmul.mubr.msk.bf16.vlgmr.msra.gmra.mrb[0].mxu0 %vm173_vm2, %v1499_v36  ;;  %v759_v57 = vsel %vm177_vm1, %v753_v54, 0 }
  0xa8   : > { %530 = vmatpush1.bf16.msra.mxu0 %v521_v41  ;;  %561 = vmatprep.mubr.bf16.mxu0 %v1516_v1 }
  0xa9   : > { %1310 = vmatprep.subr.msk.bf16.mxu0 %vm177_vm1, %v635_v42  ;;  %v866_v51 = vpop.permute.xlu0 %865  ;;  %v868_v55 = vpop.permute.xlu1 %867 }
  0xaa   : > { %v872_v62 = vsel %vm871_vm9, %v866_v51, %v868_v55 }
  0xab   : > { %v878_v3 = vsel %vm177_vm1, %v872_v62, 0 }
  0xad   : > { %v870_v56 = vpop.permute.xlu0 %869  ;;  %v985_v59 = vpop.permute.xlu1 %984 }
  0xae   : > { %1379 = vmatmul.mubr.msk.bf16.vlgmr.msra.gmra.mrb[0].mxu1 %vm173_vm2, %v1500_v44  ;;  %v873_v58 = vsel %vm871_vm9, %v868_v55, %v870_v56  ;;  %v884_v61 = vsel %vm177_vm1, %v870_v56, 0 }
  0xaf   : > { %1383 = vmatpush3.bf16.msra.mxu1 %v646_v45  ;;  %1384 = vmatprep.mubr.msk.bf16.mxu1 %vm1515_vm0, %v1514_v0 }
  0xb0   : > { %1388 = vmatprep.subr.bf16.mxu1 %v1514_v0 }
  0xb1   : > { %v987_v63 = vpop.permute.xlu0 %986  ;;  %v989_v2 = vpop.permute.xlu1 %988 }
  0xb2   : > { %v992_v4 = vsel %vm990_vm10, %v987_v63, %v989_v2  ;;  %v1003_v7 = vsel %vm177_vm1, %v989_v2, 0  ;;  %v991_v8 = vsel %vm990_vm10, %v985_v59, %v987_v63 }
  0xb3   : > { %1305 = vmatmul.mubr.msk.bf16.vlgmr.msra.gmra.mrb[0].mxu0 %vm173_vm2, %v1500_v44  ;;  %v997_v11 = vsel %vm177_vm1, %v991_v8, 0 }
  0xb4   : > { %649 = vmatpush1.bf16.msra.mxu0 %v640_v49  ;;  %680 = vmatprep.mubr.bf16.mxu0 %v1516_v1 }
  0xb5   : > { %1316 = vmatprep.subr.msk.bf16.mxu0 %vm177_vm1, %v754_v50  ;;  %v1104_v5 = vpop.permute.xlu0 %1103  ;;  %v1106_v9 = vpop.permute.xlu1 %1105 }
  0xb6   : > { %v1110_v15 = vsel %vm1109_vm11, %v1104_v5, %v1106_v9 }
  0xb7   : > { %v1116_v16 = vsel %vm177_vm1, %v1110_v15, 0 }
  0xb9   : > { %v1108_v10 = vpop.permute.xlu0 %1107 }
  0xba   : > { %1385 = vmatmul.mubr.msk.bf16.vlgmr.msra.gmra.mrb[0].mxu1 %vm173_vm2, %v1501_v52  ;;  %v1111_v12 = vsel %vm1109_vm11, %v1106_v9, %v1108_v10  ;;  %v1122_v14 = vsel %vm177_vm1, %v1108_v10, 0 }
  0xbb   : > { %1389 = vmatpush3.bf16.msra.mxu1 %v765_v53  ;;  %1390 = vmatprep.mubr.msk.bf16.mxu1 %vm1515_vm0, %v1514_v0 }
  0xbc   : > { %1394 = vmatprep.subr.bf16.mxu1 %v1514_v0 }
  0xbf   : > { %1311 = vmatmul.mubr.msk.bf16.vlgmr.msra.gmra.mrb[0].mxu0 %vm173_vm2, %v1501_v52 }
  0xc0   : > { %768 = vmatpush1.bf16.msra.mxu0 %v759_v57  ;;  %799 = vmatprep.mubr.bf16.mxu0 %v1516_v1 }
  0xc1   : > { %1322 = vmatprep.subr.msk.bf16.mxu0 %vm177_vm1, %v873_v58 }
  0xc6   : > { %1391 = vmatmul.mubr.msk.bf16.vlgmr.msra.gmra.mrb[0].mxu1 %vm173_vm2, %v1502_v60 }
  0xc7   : > { %1395 = vmatpush3.bf16.msra.mxu1 %v884_v61  ;;  %1396 = vmatprep.mubr.msk.bf16.mxu1 %vm1515_vm0, %v1514_v0 }
  0xc8   : > { %1400 = vmatprep.subr.bf16.mxu1 %v1514_v0 }
  0xcb   : > { %1317 = vmatmul.mubr.msk.bf16.vlgmr.msra.gmra.mrb[0].mxu0 %vm173_vm2, %v1502_v60 }
  0xcc   : > { %887 = vmatpush1.bf16.msra.mxu0 %v878_v3  ;;  %918 = vmatprep.mubr.bf16.mxu0 %v1516_v1 }
  0xcd   : > { %1328 = vmatprep.subr.msk.bf16.mxu0 %vm177_vm1, %v992_v4 }
  0xd2   : > { %1397 = vmatmul.mubr.msk.bf16.vlgmr.msra.gmra.mrb[0].mxu1 %vm173_vm2, %v1503_v6 }
  0xd3   : > { %1401 = vmatpush3.bf16.msra.mxu1 %v1003_v7  ;;  %1402 = vmatprep.mubr.msk.bf16.mxu1 %vm1515_vm0, %v1514_v0 }
  0xd4   : > { %1406 = vmatprep.subr.bf16.mxu1 %v1514_v0 }
  0xd7   : > { %1323 = vmatmul.mubr.msk.bf16.vlgmr.msra.gmra.mrb[0].mxu0 %vm173_vm2, %v1503_v6 }
  0xd8   : > { %1006 = vmatpush1.bf16.msra.mxu0 %v997_v11  ;;  %1037 = vmatprep.mubr.bf16.mxu0 %v1516_v1 }
  0xd9   : > { %1334 = vmatprep.subr.msk.bf16.mxu0 %vm177_vm1, %v1111_v12 }
  0xde   : > { %1403 = vmatmul.mubr.msk.bf16.vlgmr.msra.gmra.mrb[0].mxu1 %vm173_vm2, %v1504_v13 }
  0xdf   : > { %1407 = vmatpush3.bf16.msra.mxu1 %v1122_v14  ;;  %1408 = vmatprep.mubr.msk.bf16.mxu1 %vm1515_vm0, %v1514_v0 }
  0xe3   : > { %1329 = vmatmul.mubr.msk.bf16.vlgmr.msra.gmra.mrb[0].mxu0 %vm173_vm2, %v1504_v13 }
  0xe4   : > { %1125 = vmatpush1.bf16.msra.mxu0 %v1116_v16  ;;  %1156 = vmatprep.mubr.bf16.mxu0 %v1516_v1 }
  0xea   : > { %1409 = vmatmul.mubr.msk.bf16.vlgmr.msra.gmra.mrb[0].mxu1 %vm173_vm2, %v1505_v17 }
  0xef   : > { %1335 = vmatmul.mubr.msk.bf16.vlgmr.msra.gmra.mrb[0].mxu0 %vm173_vm2, %v1505_v17 }
 0x1bd   : > { %v1201_v0 = vpop.f32.mrb[0].mxu1 }
 0x1be   : > { %1217 = vst.msk [vmem:[%s143_s19 + $0x10] sm:$0xff] %vm1216_vm12, %v1201_v0  ;;  %v1410_v18 = vpop.f32.mrb[1].mxu1 }
 0x1bf   : > { %v1204_v19 = vpop.f32.mrb[2].mxu1 }
 0x1c0   : > { %1221 = vst.msk [vmem:[%s143_s19 + $0x28] sm:$0xf] %vm1220_vm13, %v1204_v19  ;;  %v1411_v1 = vpop.f32.mrb[3].mxu1 }
 0x1c2   : > { %v1158_v20 = vpop.f32.mrb[0].mxu0 }
 0x1c3   : > { %1214 = vst [vmem:[%s143_s19] sm:$0xff] %v1158_v20  ;;  %v1160_v21 = vpop.f32.mrb[1].mxu0 }
 0x1c4   : > { %1215 = vst [vmem:[%s143_s19 + $0x8] sm:$0xff] %v1160_v21  ;;  %v1162_v22 = vpop.f32.mrb[2].mxu0 }
 0x1c5   : > { %1218 = vst [vmem:[%s143_s19 + $0x18] sm:$0xf] %v1162_v22  ;;  %v1164_v23 = vpop.f32.mrb[3].mxu0 }
 0x1c6   : > { %1219 = vst [vmem:[%s143_s19 + $0x20] sm:$0xf] %v1164_v23 }
 0x1c7 PF: > { %s12_s9 = sadd.s32 1, %s1512_s9  }
 0x1c8   : > { %p9_p4 = scmp.ge.s32.totalorder %s12_s9, 4  }
 0x1ca   :  { %11 = sbr.rel (!%p9_p4) target bundleno = 1 (0x1), region = 66 }

</bundles_post_ra>
